<compile_context>
chip_gen: v5e
topology: v5e:2x2
jax: 0.10.0
libtpu: 0.0.40
codegen_flags: <defaults>
</compile_context>

<pallas_src>
import jax
import jax.numpy as jnp
from jax.experimental import pallas as pl
from jax.experimental.pallas import tpu as pltpu

EPS = 1e-5  # PyTorch InstanceNorm2d default eps


# ---------------------------------------------------------------------------
# VMEM budget: generation-aware (v7x has only 64 MiB per TensorCore).
# ---------------------------------------------------------------------------
def _vmem_limit_bytes():
    default = 64 * 1024 * 1024
    try:
        cap = int(getattr(pltpu.get_tpu_info(), "vmem_capacity_bytes", default))
    except Exception:
        cap = default
    return max(32 * 1024 * 1024, min(3 * cap // 4, 96 * 1024 * 1024))


_VMEM_LIMIT = _vmem_limit_bytes()


def _round_up(x, m):
    return (x + m - 1) // m * m


# ---------------------------------------------------------------------------
# Fused kernel:  (conv3x3 -> IN -> ReLU) x 2 with fused channel-concat.
#
# Inputs arrive as zero-padded images flattened row-major to (Np, C) with
# Np = (H+2)*(W+2).  For tap (kh, kw) the contribution to every genuine
# output pixel is obtained by one contiguous-row shift:
#     acc[i] += P[i + kh*(W+2) + kw] @ W_tap      over the run of length
# L = H*(W+2) - 2 starting at flat index W+3.  Rows of the run that fall on
# horizontal padding columns are masked out of the InstanceNorm statistics
# and zeroed before feeding conv2.
# ---------------------------------------------------------------------------
def _make_up_kernel(h, w):
    wp = w + 2
    start = wp + 1            # flat index of first genuine pixel (r=1, c=1)
    run = h * wp - 2          # contiguous run covering all genuine pixels
    inv_hw = 1.0 / float(h * w)

    def kernel(x2_ref, x1_ref, w1a_ref, w1b_ref, g1_ref, b1_ref,
               w2_ref, g2_ref, b2_ref, o_ref, mid_ref):
        cm = w1a_ref.shape[-1]
        co = w2_ref.shape[-1]

        # Validity mask over the run: zero at the horizontal padding columns
        # that sit between image rows inside the run.
        j = jax.lax.broadcasted_iota(jnp.int32, (run, 1), 0)
        col = jax.lax.rem(j + start, wp)
        mask = jnp.logical_and(col >= 1, col <= w).astype(jnp.float32)

        x2 = x2_ref.at[0]     # (Np, C2) bf16 ref-view, zero-padded (skip)
        x1 = x1_ref.at[0]     # (Np, C1) bf16 ref-view, zero-padded (upsampled)

        # ---- conv1 (concat fused via weight split): 9 taps x 2 operands ---
        acc = jnp.zeros((run, cm), jnp.float32)
        for t in range(9):
            off = (t // 3) * wp + (t % 3)
            acc += jnp.dot(x2[pl.ds(off, run), :], w1a_ref[t],
                           preferred_element_type=jnp.float32)
            acc += jnp.dot(x1[pl.ds(off, run), :], w1b_ref[t],
                           preferred_element_type=jnp.float32)

        # ---- InstanceNorm (stats over the H*W real pixels) + affine + ReLU
        masked = acc * mask
        s1 = jnp.sum(masked, axis=0, keepdims=True)
        s2 = jnp.sum(masked * acc, axis=0, keepdims=True)
        mean = s1 * inv_hw
        var = jnp.maximum(s2 * inv_hw - mean * mean, 0.0)
        scale = jax.lax.rsqrt(var + EPS) * g1_ref[...]
        shift = b1_ref[...] - mean * scale
        y = jnp.maximum(acc * scale + shift, 0.0) * mask   # zero padding cols

        # Re-assemble the zero-padded flat layout for the second conv in a
        # bf16 VMEM scratch; the intermediate never leaves the chip.
        zpad = jnp.zeros((start, cm), jnp.bfloat16)
        mid_ref[...] = jnp.concatenate(
            [zpad, y.astype(jnp.bfloat16), zpad], axis=0)

        # ---- conv2: 9 shifted-run taps read from the scratch ---------------
        acc2 = jnp.zeros((run, co), jnp.float32)
        for t in range(9):
            off = (t // 3) * wp + (t % 3)
            acc2 += jnp.dot(mid_ref[pl.ds(off, run), :], w2_ref[t],
                            preferred_element_type=jnp.float32)

        masked2 = acc2 * mask
        s1b = jnp.sum(masked2, axis=0, keepdims=True)
        s2b = jnp.sum(masked2 * acc2, axis=0, keepdims=True)
        mean2 = s1b * inv_hw
        var2 = jnp.maximum(s2b * inv_hw - mean2 * mean2, 0.0)
        scale2 = jax.lax.rsqrt(var2 + EPS) * g2_ref[...]
        shift2 = b2_ref[...] - mean2 * scale2
        # Padding rows/cols of the output are sliced off in the wrapper, so
        # no final mask multiply is needed (values there are finite garbage).
        z = jnp.maximum(acc2 * scale2 + shift2, 0.0)

        ozpad = jnp.zeros((start, co), o_ref.dtype)
        o_ref[0] = jnp.concatenate([ozpad, z.astype(o_ref.dtype), ozpad],
                                   axis=0)

    return kernel


# ---------------------------------------------------------------------------
# Wrapper: Up.forward(x1, x2) in NCHW, Pallas kernel inside.
# ---------------------------------------------------------------------------
def up_forward(params, x1_nchw, x2_nchw):
    # Cast to the MXU operand dtype up front so the transpose / upsample /
    # pad intermediates move half the bytes through HBM.
    x1 = jnp.transpose(x1_nchw, (0, 2, 3, 1)).astype(jnp.bfloat16)   # NHWC
    x2 = jnp.transpose(x2_nchw, (0, 2, 3, 1)).astype(jnp.bfloat16)
    n, h, w, c2 = x2.shape
    c1 = x1.shape[-1]

    # nn.Upsample(scale_factor=2) default mode is 'nearest'.
    x1u = jnp.repeat(jnp.repeat(x1, 2, axis=1), 2, axis=2)
    assert x1u.shape[1] == h and x1u.shape[2] == w

    hp, wp = h + 2, w + 2
    npad = hp * wp

    def prep(t):  # zero-pad spatially, flatten rows
        tp = jnp.pad(t, ((0, 0), (1, 1), (1, 1), (0, 0)))
        return tp.reshape(n, npad, t.shape[-1])

    x2f, x1f = prep(x2), prep(x1u)

    w1, g1, b1 = params["w1"], params["g1"], params["b1"]   # (9, c2+c1, cm)
    w2, g2, b2 = params["w2"], params["g2"], params["b2"]   # (9, cm, co)
    cm, co = w1.shape[-1], w2.shape[-1]
    cmp_, cop = _round_up(cm, 128), _round_up(co, 128)

    # Pad channel dims to multiples of 128 (lane-dense stores).  Padded
    # channels carry zero weights / gamma / beta, so they stay exactly zero.
    w1p = jnp.pad(w1, ((0, 0), (0, 0), (0, cmp_ - cm))).astype(jnp.bfloat16)
    w1a = w1p[:, :c2, :]          # weights hitting the x2 (skip) channels
    w1b = w1p[:, c2:, :]          # weights hitting the upsampled-x1 channels
    g1p = jnp.pad(g1, (0, cmp_ - cm)).reshape(1, cmp_).astype(jnp.float32)
    b1p = jnp.pad(b1, (0, cmp_ - cm)).reshape(1, cmp_).astype(jnp.float32)
    w2p = jnp.pad(w2, ((0, 0), (0, cmp_ - cm),
                       (0, cop - co))).astype(jnp.bfloat16)
    g2p = jnp.pad(g2, (0, cop - co)).reshape(1, cop).astype(jnp.float32)
    b2p = jnp.pad(b2, (0, cop - co)).reshape(1, cop).astype(jnp.float32)

    out_flat = pl.pallas_call(
        _make_up_kernel(h, w),
        out_shape=jax.ShapeDtypeStruct((n, npad, cop), jnp.float32),
        grid=(n,),
        in_specs=[
            pl.BlockSpec((1, npad, c2), lambda i: (i, 0, 0)),
            pl.BlockSpec((1, npad, c1), lambda i: (i, 0, 0)),
            pl.BlockSpec((9, c2, cmp_), lambda i: (0, 0, 0)),
            pl.BlockSpec((9, c1, cmp_), lambda i: (0, 0, 0)),
            pl.BlockSpec((1, cmp_), lambda i: (0, 0)),
            pl.BlockSpec((1, cmp_), lambda i: (0, 0)),
            pl.BlockSpec((9, cmp_, cop), lambda i: (0, 0, 0)),
            pl.BlockSpec((1, cop), lambda i: (0, 0)),
            pl.BlockSpec((1, cop), lambda i: (0, 0)),
        ],
        out_specs=pl.BlockSpec((1, npad, cop), lambda i: (i, 0, 0)),
        scratch_shapes=[pltpu.VMEM((npad, cmp_), jnp.bfloat16)],
        compiler_params=pltpu.CompilerParams(
            dimension_semantics=("parallel",),
            vmem_limit_bytes=_VMEM_LIMIT,
        ),
    )(x2f, x1f, w1a, w1b, g1p, b1p, w2p, g2p, b2p)

    out = out_flat.reshape(n, hp, wp, cop)[:, 1:h + 1, 1:w + 1, :co]
    return jnp.transpose(out, (0, 3, 1, 2))                 # back to NCHW


# ---------------------------------------------------------------------------
# Parameter construction (PyTorch-like fan-in scaling; gamma~1, beta~0).
# Conv weights stored as (9, Cin, Cout) with tap t = kh*3 + kw, i.e.
# w[t] == torch_weight[:, :, kh, kw].T  and Cin ordered [x2 | upsampled x1].
# ---------------------------------------------------------------------------
def init_up_params(key, in_channels, out_channels):
    cm = out_channels                       # DoubleConv: mid == out
    k = jax.random.split(key, 6)
    bd1 = 1.0 / (9 * in_channels) ** 0.5
    bd2 = 1.0 / (9 * cm) ** 0.5
    return {
        "w1": jax.random.uniform(k[0], (9, in_channels, cm), jnp.float32,
                                 -bd1, bd1),
        "g1": 1.0 + 0.05 * jax.random.normal(k[1], (cm,), jnp.float32),
        "b1": 0.05 * jax.random.normal(k[2], (cm,), jnp.float32),
        "w2": jax.random.uniform(k[3], (9, cm, out_channels), jnp.float32,
                                 -bd2, bd2),
        "g2": 1.0 + 0.05 * jax.random.normal(k[4], (out_channels,),
                                             jnp.float32),
        "b2": 0.05 * jax.random.normal(k[5], (out_channels,), jnp.float32),
    }


# ---------------------------------------------------------------------------
# Pure-JAX reference that mirrors the kernel's bf16 operand rounding.
# ---------------------------------------------------------------------------
def up_reference(params, x1_nchw, x2_nchw):
    f32 = jnp.float32
    x1 = jnp.transpose(x1_nchw, (0, 2, 3, 1)).astype(f32)
    x2 = jnp.transpose(x2_nchw, (0, 2, 3, 1)).astype(f32)
    x1u = jnp.repeat(jnp.repeat(x1, 2, axis=1), 2, axis=2)
    x = jnp.concatenate([x2, x1u], axis=-1)

    def conv_in_relu(x, w_taps, g, b):
        lhs = x.astype(jnp.bfloat16).astype(f32)
        whwio = w_taps.astype(jnp.bfloat16).astype(f32).reshape(
            3, 3, w_taps.shape[1], w_taps.shape[2])
        y = jax.lax.conv_general_dilated(
            lhs, whwio, window_strides=(1, 1), padding="SAME",
            dimension_numbers=("NHWC", "HWIO", "NHWC"),
            precision=jax.lax.Precision.HIGHEST)
        mean = jnp.mean(y, axis=(1, 2), keepdims=True)
        var = jnp.mean(jnp.square(y - mean), axis=(1, 2), keepdims=True)
        yn = (y - mean) * jax.lax.rsqrt(var + EPS) * g + b
        return jnp.maximum(yn, 0.0)

    y = conv_in_relu(x, params["w1"], params["g1"], params["b1"])
    y = y.astype(jnp.bfloat16).astype(f32)   # kernel keeps the mid in bf16
    z = conv_in_relu(y, params["w2"], params["g2"], params["b2"])
    return jnp.transpose(z, (0, 3, 1, 2))


# ---------------------------------------------------------------------------
if __name__ == "__main__":
    key = jax.random.PRNGKey(0)
    kp, kx1, kx2 = jax.random.split(key, 3)

    # Up(in_channels=128, out_channels=64):
    #   x1: (N, 64,  8,  8)  decoder feature (nearest-upsampled to 16x16)
    #   x2: (N, 64, 16, 16)  encoder skip connection
    n, c1, c2, s = 2, 64, 64, 16
    in_channels, out_channels = c1 + c2, 64

    params = init_up_params(kp, in_channels, out_channels)
    x1 = jax.random.normal(kx1, (n, c1, s // 2, s // 2), jnp.float32)
    x2 = jax.random.normal(kx2, (n, c2, s, s), jnp.float32)

    fwd = jax.jit(up_forward)
    out = fwd(params, x1, x2)
    jax.block_until_ready(out)

    assert out.shape == (n, out_channels, s, s), out.shape
    assert bool(jnp.all(jnp.isfinite(out)))

    ref = up_reference(params, x1, x2)
    err = float(jnp.max(jnp.abs(out - ref)))
    assert err < 3e-2, f"max|out-ref|={err}"

    print("KERNEL_OK")
</pallas_src>

<mosaic_0001>
module attributes {stable_mosaic.version = 11 : i64} {
  func.func @kernel(%arg0: i32, %arg1: memref<1x324x64xbf16, #tpu.memory_space<vmem>>, %arg2: memref<1x324x64xbf16, #tpu.memory_space<vmem>>, %arg3: memref<9x64x128xbf16, #tpu.memory_space<vmem>>, %arg4: memref<9x64x128xbf16, #tpu.memory_space<vmem>>, %arg5: memref<1x128xf32, #tpu.memory_space<vmem>>, %arg6: memref<1x128xf32, #tpu.memory_space<vmem>>, %arg7: memref<9x128x128xbf16, #tpu.memory_space<vmem>>, %arg8: memref<1x128xf32, #tpu.memory_space<vmem>>, %arg9: memref<1x128xf32, #tpu.memory_space<vmem>>, %arg10: memref<1x324x128xf32, #tpu.memory_space<vmem>>, %arg11: memref<324x128xbf16, #tpu.memory_space<vmem>>) attributes {dimension_semantics = [#tpu.dimension_semantics<parallel>], iteration_bounds = array<i64: 2>, scalar_prefetch = 0 : i64, scratch_operands = 1 : i64, tpu.core_type = #tpu.core_type<tc>, window_params = [{transform_indices = @transform_0, window_bounds = array<i64: 1, 324, 64>}, {transform_indices = @transform_1, window_bounds = array<i64: 1, 324, 64>}, {pipeline_mode = #tpu.pipeline_mode<synchronous>, transform_indices = @transform_2, window_bounds = array<i64: 9, 64, 128>}, {pipeline_mode = #tpu.pipeline_mode<synchronous>, transform_indices = @transform_3, window_bounds = array<i64: 9, 64, 128>}, {pipeline_mode = #tpu.pipeline_mode<synchronous>, transform_indices = @transform_4, window_bounds = array<i64: 1, 128>}, {pipeline_mode = #tpu.pipeline_mode<synchronous>, transform_indices = @transform_5, window_bounds = array<i64: 1, 128>}, {pipeline_mode = #tpu.pipeline_mode<synchronous>, transform_indices = @transform_6, window_bounds = array<i64: 9, 128, 128>}, {pipeline_mode = #tpu.pipeline_mode<synchronous>, transform_indices = @transform_7, window_bounds = array<i64: 1, 128>}, {pipeline_mode = #tpu.pipeline_mode<synchronous>, transform_indices = @transform_8, window_bounds = array<i64: 1, 128>}, {transform_indices = @transform_9, window_bounds = array<i64: 1, 324, 128>}]} {
    %0 = tpu.iota {dimensions = array<i32: 0>} : vector<286x1xi32>
    %c19_i32 = arith.constant 19 : i32
    %1 = vector.broadcast %c19_i32 : i32 to vector<286x1xi32>
    %2 = arith.addi %0, %1 : vector<286x1xi32>
    %c18_i32 = arith.constant 18 : i32
    %3 = vector.broadcast %c18_i32 : i32 to vector<286x1xi32>
    %4 = arith.remsi %2, %3 : vector<286x1xi32>
    %c1_i32 = arith.constant 1 : i32
    %5 = vector.broadcast %c1_i32 : i32 to vector<286x1xi32>
    %6 = arith.cmpi sge, %4, %5 : vector<286x1xi32>
    %c16_i32 = arith.constant 16 : i32
    %7 = vector.broadcast %c16_i32 : i32 to vector<286x1xi32>
    %8 = arith.cmpi sle, %4, %7 : vector<286x1xi32>
    %9 = arith.andi %6, %8 : vector<286x1xi1>
    %10 = arith.extui %9 : vector<286x1xi1> to vector<286x1xi32>
    %11 = arith.sitofp %10 : vector<286x1xi32> to vector<286x1xf32>
    %cst = arith.constant 0.000000e+00 : f32
    %12 = vector.broadcast %cst : f32 to vector<286x128xf32>
    %c0_i32 = arith.constant 0 : i32
    %c0_i32_0 = arith.constant 0 : i32
    %c0_i32_1 = arith.constant 0 : i32
    %13 = tpu.memref_slice %arg1[%c0_i32, %c0_i32_0, %c0_i32_1] : memref<1x324x64xbf16, #tpu.memory_space<vmem>> -> memref<1x324x64xbf16, #tpu.memory_space<vmem>>
    %14 = tpu.memref_squeeze %13 : memref<1x324x64xbf16, #tpu.memory_space<vmem>> -> memref<324x64xbf16, #tpu.memory_space<vmem>>
    %c0 = arith.constant 0 : index
    %c0_2 = arith.constant 0 : index
    %15 = vector.load %14[%c0, %c0_2] : memref<324x64xbf16, #tpu.memory_space<vmem>>, vector<286x64xbf16>
    %c0_3 = arith.constant 0 : index
    %c0_4 = arith.constant 0 : index
    %c0_5 = arith.constant 0 : index
    %16 = vector.load %arg3[%c0_3, %c0_4, %c0_5] : memref<9x64x128xbf16, #tpu.memory_space<vmem>>, vector<1x64x128xbf16>
    %17 = vector.shape_cast %16 : vector<1x64x128xbf16> to vector<64x128xbf16>
    %cst_6 = arith.constant dense<0.000000e+00> : vector<286x128xf32>
    %18 = tpu.matmul %15, %17, %cst_6 {dimension_numbers = #tpu.dot_dimension_numbers<[1], [0], [0], [1], [0, 0, 1, 1], [], []>} : vector<286x64xbf16>, vector<64x128xbf16>, vector<286x128xf32> -> vector<286x128xf32>
    %19 = arith.addf %12, %18 : vector<286x128xf32>
    %c0_i32_7 = arith.constant 0 : i32
    %c0_i32_8 = arith.constant 0 : i32
    %c0_i32_9 = arith.constant 0 : i32
    %20 = tpu.memref_slice %arg2[%c0_i32_7, %c0_i32_8, %c0_i32_9] : memref<1x324x64xbf16, #tpu.memory_space<vmem>> -> memref<1x324x64xbf16, #tpu.memory_space<vmem>>
    %21 = tpu.memref_squeeze %20 : memref<1x324x64xbf16, #tpu.memory_space<vmem>> -> memref<324x64xbf16, #tpu.memory_space<vmem>>
    %c0_10 = arith.constant 0 : index
    %c0_11 = arith.constant 0 : index
    %22 = vector.load %21[%c0_10, %c0_11] : memref<324x64xbf16, #tpu.memory_space<vmem>>, vector<286x64xbf16>
    %c0_12 = arith.constant 0 : index
    %c0_13 = arith.constant 0 : index
    %c0_14 = arith.constant 0 : index
    %23 = vector.load %arg4[%c0_12, %c0_13, %c0_14] : memref<9x64x128xbf16, #tpu.memory_space<vmem>>, vector<1x64x128xbf16>
    %24 = vector.shape_cast %23 : vector<1x64x128xbf16> to vector<64x128xbf16>
    %cst_15 = arith.constant dense<0.000000e+00> : vector<286x128xf32>
    %25 = tpu.matmul %22, %24, %cst_15 {dimension_numbers = #tpu.dot_dimension_numbers<[1], [0], [0], [1], [0, 0, 1, 1], [], []>} : vector<286x64xbf16>, vector<64x128xbf16>, vector<286x128xf32> -> vector<286x128xf32>
    %26 = arith.addf %19, %25 : vector<286x128xf32>
    %c0_i32_16 = arith.constant 0 : i32
    %c0_i32_17 = arith.constant 0 : i32
    %c0_i32_18 = arith.constant 0 : i32
    %27 = tpu.memref_slice %arg1[%c0_i32_16, %c0_i32_17, %c0_i32_18] : memref<1x324x64xbf16, #tpu.memory_space<vmem>> -> memref<1x324x64xbf16, #tpu.memory_space<vmem>>
    %28 = tpu.memref_squeeze %27 : memref<1x324x64xbf16, #tpu.memory_space<vmem>> -> memref<324x64xbf16, #tpu.memory_space<vmem>>
    %c1 = arith.constant 1 : index
    %c0_19 = arith.constant 0 : index
    %29 = vector.load %28[%c1, %c0_19] : memref<324x64xbf16, #tpu.memory_space<vmem>>, vector<286x64xbf16>
    %c1_20 = arith.constant 1 : index
    %c0_21 = arith.constant 0 : index
    %c0_22 = arith.constant 0 : index
    %30 = vector.load %arg3[%c1_20, %c0_21, %c0_22] : memref<9x64x128xbf16, #tpu.memory_space<vmem>>, vector<1x64x128xbf16>
    %31 = vector.shape_cast %30 : vector<1x64x128xbf16> to vector<64x128xbf16>
    %cst_23 = arith.constant dense<0.000000e+00> : vector<286x128xf32>
    %32 = tpu.matmul %29, %31, %cst_23 {dimension_numbers = #tpu.dot_dimension_numbers<[1], [0], [0], [1], [0, 0, 1, 1], [], []>} : vector<286x64xbf16>, vector<64x128xbf16>, vector<286x128xf32> -> vector<286x128xf32>
    %33 = arith.addf %26, %32 : vector<286x128xf32>
    %c0_i32_24 = arith.constant 0 : i32
    %c0_i32_25 = arith.constant 0 : i32
    %c0_i32_26 = arith.constant 0 : i32
    %34 = tpu.memref_slice %arg2[%c0_i32_24, %c0_i32_25, %c0_i32_26] : memref<1x324x64xbf16, #tpu.memory_space<vmem>> -> memref<1x324x64xbf16, #tpu.memory_space<vmem>>
    %35 = tpu.memref_squeeze %34 : memref<1x324x64xbf16, #tpu.memory_space<vmem>> -> memref<324x64xbf16, #tpu.memory_space<vmem>>
    %c1_27 = arith.constant 1 : index
    %c0_28 = arith.constant 0 : index
    %36 = vector.load %35[%c1_27, %c0_28] : memref<324x64xbf16, #tpu.memory_space<vmem>>, vector<286x64xbf16>
    %c1_29 = arith.constant 1 : index
    %c0_30 = arith.constant 0 : index
    %c0_31 = arith.constant 0 : index
    %37 = vector.load %arg4[%c1_29, %c0_30, %c0_31] : memref<9x64x128xbf16, #tpu.memory_space<vmem>>, vector<1x64x128xbf16>
    %38 = vector.shape_cast %37 : vector<1x64x128xbf16> to vector<64x128xbf16>
    %cst_32 = arith.constant dense<0.000000e+00> : vector<286x128xf32>
    %39 = tpu.matmul %36, %38, %cst_32 {dimension_numbers = #tpu.dot_dimension_numbers<[1], [0], [0], [1], [0, 0, 1, 1], [], []>} : vector<286x64xbf16>, vector<64x128xbf16>, vector<286x128xf32> -> vector<286x128xf32>
    %40 = arith.addf %33, %39 : vector<286x128xf32>
    %c0_i32_33 = arith.constant 0 : i32
    %c0_i32_34 = arith.constant 0 : i32
    %c0_i32_35 = arith.constant 0 : i32
    %41 = tpu.memref_slice %arg1[%c0_i32_33, %c0_i32_34, %c0_i32_35] : memref<1x324x64xbf16, #tpu.memory_space<vmem>> -> memref<1x324x64xbf16, #tpu.memory_space<vmem>>
    %42 = tpu.memref_squeeze %41 : memref<1x324x64xbf16, #tpu.memory_space<vmem>> -> memref<324x64xbf16, #tpu.memory_space<vmem>>
    %c2 = arith.constant 2 : index
    %c0_36 = arith.constant 0 : index
    %43 = vector.load %42[%c2, %c0_36] : memref<324x64xbf16, #tpu.memory_space<vmem>>, vector<286x64xbf16>
    %c2_37 = arith.constant 2 : index
    %c0_38 = arith.constant 0 : index
    %c0_39 = arith.constant 0 : index
    %44 = vector.load %arg3[%c2_37, %c0_38, %c0_39] : memref<9x64x128xbf16, #tpu.memory_space<vmem>>, vector<1x64x128xbf16>
    %45 = vector.shape_cast %44 : vector<1x64x128xbf16> to vector<64x128xbf16>
    %cst_40 = arith.constant dense<0.000000e+00> : vector<286x128xf32>
    %46 = tpu.matmul %43, %45, %cst_40 {dimension_numbers = #tpu.dot_dimension_numbers<[1], [0], [0], [1], [0, 0, 1, 1], [], []>} : vector<286x64xbf16>, vector<64x128xbf16>, vector<286x128xf32> -> vector<286x128xf32>
    %47 = arith.addf %40, %46 : vector<286x128xf32>
    %c0_i32_41 = arith.constant 0 : i32
    %c0_i32_42 = arith.constant 0 : i32
    %c0_i32_43 = arith.constant 0 : i32
    %48 = tpu.memref_slice %arg2[%c0_i32_41, %c0_i32_42, %c0_i32_43] : memref<1x324x64xbf16, #tpu.memory_space<vmem>> -> memref<1x324x64xbf16, #tpu.memory_space<vmem>>
    %49 = tpu.memref_squeeze %48 : memref<1x324x64xbf16, #tpu.memory_space<vmem>> -> memref<324x64xbf16, #tpu.memory_space<vmem>>
    %c2_44 = arith.constant 2 : index
    %c0_45 = arith.constant 0 : index
    %50 = vector.load %49[%c2_44, %c0_45] : memref<324x64xbf16, #tpu.memory_space<vmem>>, vector<286x64xbf16>
    %c2_46 = arith.constant 2 : index
    %c0_47 = arith.constant 0 : index
    %c0_48 = arith.constant 0 : index
    %51 = vector.load %arg4[%c2_46, %c0_47, %c0_48] : memref<9x64x128xbf16, #tpu.memory_space<vmem>>, vector<1x64x128xbf16>
    %52 = vector.shape_cast %51 : vector<1x64x128xbf16> to vector<64x128xbf16>
    %cst_49 = arith.constant dense<0.000000e+00> : vector<286x128xf32>
    %53 = tpu.matmul %50, %52, %cst_49 {dimension_numbers = #tpu.dot_dimension_numbers<[1], [0], [0], [1], [0, 0, 1, 1], [], []>} : vector<286x64xbf16>, vector<64x128xbf16>, vector<286x128xf32> -> vector<286x128xf32>
    %54 = arith.addf %47, %53 : vector<286x128xf32>
    %c0_i32_50 = arith.constant 0 : i32
    %c0_i32_51 = arith.constant 0 : i32
    %c0_i32_52 = arith.constant 0 : i32
    %55 = tpu.memref_slice %arg1[%c0_i32_50, %c0_i32_51, %c0_i32_52] : memref<1x324x64xbf16, #tpu.memory_space<vmem>> -> memref<1x324x64xbf16, #tpu.memory_space<vmem>>
    %56 = tpu.memref_squeeze %55 : memref<1x324x64xbf16, #tpu.memory_space<vmem>> -> memref<324x64xbf16, #tpu.memory_space<vmem>>
    %c18 = arith.constant 18 : index
    %c0_53 = arith.constant 0 : index
    %57 = vector.load %56[%c18, %c0_53] : memref<324x64xbf16, #tpu.memory_space<vmem>>, vector<286x64xbf16>
    %c3 = arith.constant 3 : index
    %c0_54 = arith.constant 0 : index
    %c0_55 = arith.constant 0 : index
    %58 = vector.load %arg3[%c3, %c0_54, %c0_55] : memref<9x64x128xbf16, #tpu.memory_space<vmem>>, vector<1x64x128xbf16>
    %59 = vector.shape_cast %58 : vector<1x64x128xbf16> to vector<64x128xbf16>
    %cst_56 = arith.constant dense<0.000000e+00> : vector<286x128xf32>
    %60 = tpu.matmul %57, %59, %cst_56 {dimension_numbers = #tpu.dot_dimension_numbers<[1], [0], [0], [1], [0, 0, 1, 1], [], []>} : vector<286x64xbf16>, vector<64x128xbf16>, vector<286x128xf32> -> vector<286x128xf32>
    %61 = arith.addf %54, %60 : vector<286x128xf32>
    %c0_i32_57 = arith.constant 0 : i32
    %c0_i32_58 = arith.constant 0 : i32
    %c0_i32_59 = arith.constant 0 : i32
    %62 = tpu.memref_slice %arg2[%c0_i32_57, %c0_i32_58, %c0_i32_59] : memref<1x324x64xbf16, #tpu.memory_space<vmem>> -> memref<1x324x64xbf16, #tpu.memory_space<vmem>>
    %63 = tpu.memref_squeeze %62 : memref<1x324x64xbf16, #tpu.memory_space<vmem>> -> memref<324x64xbf16, #tpu.memory_space<vmem>>
    %c18_60 = arith.constant 18 : index
    %c0_61 = arith.constant 0 : index
    %64 = vector.load %63[%c18_60, %c0_61] : memref<324x64xbf16, #tpu.memory_space<vmem>>, vector<286x64xbf16>
    %c3_62 = arith.constant 3 : index
    %c0_63 = arith.constant 0 : index
    %c0_64 = arith.constant 0 : index
    %65 = vector.load %arg4[%c3_62, %c0_63, %c0_64] : memref<9x64x128xbf16, #tpu.memory_space<vmem>>, vector<1x64x128xbf16>
    %66 = vector.shape_cast %65 : vector<1x64x128xbf16> to vector<64x128xbf16>
    %cst_65 = arith.constant dense<0.000000e+00> : vector<286x128xf32>
    %67 = tpu.matmul %64, %66, %cst_65 {dimension_numbers = #tpu.dot_dimension_numbers<[1], [0], [0], [1], [0, 0, 1, 1], [], []>} : vector<286x64xbf16>, vector<64x128xbf16>, vector<286x128xf32> -> vector<286x128xf32>
    %68 = arith.addf %61, %67 : vector<286x128xf32>
    %c0_i32_66 = arith.constant 0 : i32
    %c0_i32_67 = arith.constant 0 : i32
    %c0_i32_68 = arith.constant 0 : i32
    %69 = tpu.memref_slice %arg1[%c0_i32_66, %c0_i32_67, %c0_i32_68] : memref<1x324x64xbf16, #tpu.memory_space<vmem>> -> memref<1x324x64xbf16, #tpu.memory_space<vmem>>
    %70 = tpu.memref_squeeze %69 : memref<1x324x64xbf16, #tpu.memory_space<vmem>> -> memref<324x64xbf16, #tpu.memory_space<vmem>>
    %c19 = arith.constant 19 : index
    %c0_69 = arith.constant 0 : index
    %71 = vector.load %70[%c19, %c0_69] : memref<324x64xbf16, #tpu.memory_space<vmem>>, vector<286x64xbf16>
    %c4 = arith.constant 4 : index
    %c0_70 = arith.constant 0 : index
    %c0_71 = arith.constant 0 : index
    %72 = vector.load %arg3[%c4, %c0_70, %c0_71] : memref<9x64x128xbf16, #tpu.memory_space<vmem>>, vector<1x64x128xbf16>
    %73 = vector.shape_cast %72 : vector<1x64x128xbf16> to vector<64x128xbf16>
    %cst_72 = arith.constant dense<0.000000e+00> : vector<286x128xf32>
    %74 = tpu.matmul %71, %73, %cst_72 {dimension_numbers = #tpu.dot_dimension_numbers<[1], [0], [0], [1], [0, 0, 1, 1], [], []>} : vector<286x64xbf16>, vector<64x128xbf16>, vector<286x128xf32> -> vector<286x128xf32>
    %75 = arith.addf %68, %74 : vector<286x128xf32>
    %c0_i32_73 = arith.constant 0 : i32
    %c0_i32_74 = arith.constant 0 : i32
    %c0_i32_75 = arith.constant 0 : i32
    %76 = tpu.memref_slice %arg2[%c0_i32_73, %c0_i32_74, %c0_i32_75] : memref<1x324x64xbf16, #tpu.memory_space<vmem>> -> memref<1x324x64xbf16, #tpu.memory_space<vmem>>
    %77 = tpu.memref_squeeze %76 : memref<1x324x64xbf16, #tpu.memory_space<vmem>> -> memref<324x64xbf16, #tpu.memory_space<vmem>>
    %c19_76 = arith.constant 19 : index
    %c0_77 = arith.constant 0 : index
    %78 = vector.load %77[%c19_76, %c0_77] : memref<324x64xbf16, #tpu.memory_space<vmem>>, vector<286x64xbf16>
    %c4_78 = arith.constant 4 : index
    %c0_79 = arith.constant 0 : index
    %c0_80 = arith.constant 0 : index
    %79 = vector.load %arg4[%c4_78, %c0_79, %c0_80] : memref<9x64x128xbf16, #tpu.memory_space<vmem>>, vector<1x64x128xbf16>
    %80 = vector.shape_cast %79 : vector<1x64x128xbf16> to vector<64x128xbf16>
    %cst_81 = arith.constant dense<0.000000e+00> : vector<286x128xf32>
    %81 = tpu.matmul %78, %80, %cst_81 {dimension_numbers = #tpu.dot_dimension_numbers<[1], [0], [0], [1], [0, 0, 1, 1], [], []>} : vector<286x64xbf16>, vector<64x128xbf16>, vector<286x128xf32> -> vector<286x128xf32>
    %82 = arith.addf %75, %81 : vector<286x128xf32>
    %c0_i32_82 = arith.constant 0 : i32
    %c0_i32_83 = arith.constant 0 : i32
    %c0_i32_84 = arith.constant 0 : i32
    %83 = tpu.memref_slice %arg1[%c0_i32_82, %c0_i32_83, %c0_i32_84] : memref<1x324x64xbf16, #tpu.memory_space<vmem>> -> memref<1x324x64xbf16, #tpu.memory_space<vmem>>
    %84 = tpu.memref_squeeze %83 : memref<1x324x64xbf16, #tpu.memory_space<vmem>> -> memref<324x64xbf16, #tpu.memory_space<vmem>>
    %c20 = arith.constant 20 : index
    %c0_85 = arith.constant 0 : index
    %85 = vector.load %84[%c20, %c0_85] : memref<324x64xbf16, #tpu.memory_space<vmem>>, vector<286x64xbf16>
    %c5 = arith.constant 5 : index
    %c0_86 = arith.constant 0 : index
    %c0_87 = arith.constant 0 : index
    %86 = vector.load %arg3[%c5, %c0_86, %c0_87] : memref<9x64x128xbf16, #tpu.memory_space<vmem>>, vector<1x64x128xbf16>
    %87 = vector.shape_cast %86 : vector<1x64x128xbf16> to vector<64x128xbf16>
    %cst_88 = arith.constant dense<0.000000e+00> : vector<286x128xf32>
    %88 = tpu.matmul %85, %87, %cst_88 {dimension_numbers = #tpu.dot_dimension_numbers<[1], [0], [0], [1], [0, 0, 1, 1], [], []>} : vector<286x64xbf16>, vector<64x128xbf16>, vector<286x128xf32> -> vector<286x128xf32>
    %89 = arith.addf %82, %88 : vector<286x128xf32>
    %c0_i32_89 = arith.constant 0 : i32
    %c0_i32_90 = arith.constant 0 : i32
    %c0_i32_91 = arith.constant 0 : i32
    %90 = tpu.memref_slice %arg2[%c0_i32_89, %c0_i32_90, %c0_i32_91] : memref<1x324x64xbf16, #tpu.memory_space<vmem>> -> memref<1x324x64xbf16, #tpu.memory_space<vmem>>
    %91 = tpu.memref_squeeze %90 : memref<1x324x64xbf16, #tpu.memory_space<vmem>> -> memref<324x64xbf16, #tpu.memory_space<vmem>>
    %c20_92 = arith.constant 20 : index
    %c0_93 = arith.constant 0 : index
    %92 = vector.load %91[%c20_92, %c0_93] : memref<324x64xbf16, #tpu.memory_space<vmem>>, vector<286x64xbf16>
    %c5_94 = arith.constant 5 : index
    %c0_95 = arith.constant 0 : index
    %c0_96 = arith.constant 0 : index
    %93 = vector.load %arg4[%c5_94, %c0_95, %c0_96] : memref<9x64x128xbf16, #tpu.memory_space<vmem>>, vector<1x64x128xbf16>
    %94 = vector.shape_cast %93 : vector<1x64x128xbf16> to vector<64x128xbf16>
    %cst_97 = arith.constant dense<0.000000e+00> : vector<286x128xf32>
    %95 = tpu.matmul %92, %94, %cst_97 {dimension_numbers = #tpu.dot_dimension_numbers<[1], [0], [0], [1], [0, 0, 1, 1], [], []>} : vector<286x64xbf16>, vector<64x128xbf16>, vector<286x128xf32> -> vector<286x128xf32>
    %96 = arith.addf %89, %95 : vector<286x128xf32>
    %c0_i32_98 = arith.constant 0 : i32
    %c0_i32_99 = arith.constant 0 : i32
    %c0_i32_100 = arith.constant 0 : i32
    %97 = tpu.memref_slice %arg1[%c0_i32_98, %c0_i32_99, %c0_i32_100] : memref<1x324x64xbf16, #tpu.memory_space<vmem>> -> memref<1x324x64xbf16, #tpu.memory_space<vmem>>
    %98 = tpu.memref_squeeze %97 : memref<1x324x64xbf16, #tpu.memory_space<vmem>> -> memref<324x64xbf16, #tpu.memory_space<vmem>>
    %c36 = arith.constant 36 : index
    %c0_101 = arith.constant 0 : index
    %99 = vector.load %98[%c36, %c0_101] : memref<324x64xbf16, #tpu.memory_space<vmem>>, vector<286x64xbf16>
    %c6 = arith.constant 6 : index
    %c0_102 = arith.constant 0 : index
    %c0_103 = arith.constant 0 : index
    %100 = vector.load %arg3[%c6, %c0_102, %c0_103] : memref<9x64x128xbf16, #tpu.memory_space<vmem>>, vector<1x64x128xbf16>
    %101 = vector.shape_cast %100 : vector<1x64x128xbf16> to vector<64x128xbf16>
    %cst_104 = arith.constant dense<0.000000e+00> : vector<286x128xf32>
    %102 = tpu.matmul %99, %101, %cst_104 {dimension_numbers = #tpu.dot_dimension_numbers<[1], [0], [0], [1], [0, 0, 1, 1], [], []>} : vector<286x64xbf16>, vector<64x128xbf16>, vector<286x128xf32> -> vector<286x128xf32>
    %103 = arith.addf %96, %102 : vector<286x128xf32>
    %c0_i32_105 = arith.constant 0 : i32
    %c0_i32_106 = arith.constant 0 : i32
    %c0_i32_107 = arith.constant 0 : i32
    %104 = tpu.memref_slice %arg2[%c0_i32_105, %c0_i32_106, %c0_i32_107] : memref<1x324x64xbf16, #tpu.memory_space<vmem>> -> memref<1x324x64xbf16, #tpu.memory_space<vmem>>
    %105 = tpu.memref_squeeze %104 : memref<1x324x64xbf16, #tpu.memory_space<vmem>> -> memref<324x64xbf16, #tpu.memory_space<vmem>>
    %c36_108 = arith.constant 36 : index
    %c0_109 = arith.constant 0 : index
    %106 = vector.load %105[%c36_108, %c0_109] : memref<324x64xbf16, #tpu.memory_space<vmem>>, vector<286x64xbf16>
    %c6_110 = arith.constant 6 : index
    %c0_111 = arith.constant 0 : index
    %c0_112 = arith.constant 0 : index
    %107 = vector.load %arg4[%c6_110, %c0_111, %c0_112] : memref<9x64x128xbf16, #tpu.memory_space<vmem>>, vector<1x64x128xbf16>
    %108 = vector.shape_cast %107 : vector<1x64x128xbf16> to vector<64x128xbf16>
    %cst_113 = arith.constant dense<0.000000e+00> : vector<286x128xf32>
    %109 = tpu.matmul %106, %108, %cst_113 {dimension_numbers = #tpu.dot_dimension_numbers<[1], [0], [0], [1], [0, 0, 1, 1], [], []>} : vector<286x64xbf16>, vector<64x128xbf16>, vector<286x128xf32> -> vector<286x128xf32>
    %110 = arith.addf %103, %109 : vector<286x128xf32>
    %c0_i32_114 = arith.constant 0 : i32
    %c0_i32_115 = arith.constant 0 : i32
    %c0_i32_116 = arith.constant 0 : i32
    %111 = tpu.memref_slice %arg1[%c0_i32_114, %c0_i32_115, %c0_i32_116] : memref<1x324x64xbf16, #tpu.memory_space<vmem>> -> memref<1x324x64xbf16, #tpu.memory_space<vmem>>
    %112 = tpu.memref_squeeze %111 : memref<1x324x64xbf16, #tpu.memory_space<vmem>> -> memref<324x64xbf16, #tpu.memory_space<vmem>>
    %c37 = arith.constant 37 : index
    %c0_117 = arith.constant 0 : index
    %113 = vector.load %112[%c37, %c0_117] : memref<324x64xbf16, #tpu.memory_space<vmem>>, vector<286x64xbf16>
    %c7 = arith.constant 7 : index
    %c0_118 = arith.constant 0 : index
    %c0_119 = arith.constant 0 : index
    %114 = vector.load %arg3[%c7, %c0_118, %c0_119] : memref<9x64x128xbf16, #tpu.memory_space<vmem>>, vector<1x64x128xbf16>
    %115 = vector.shape_cast %114 : vector<1x64x128xbf16> to vector<64x128xbf16>
    %cst_120 = arith.constant dense<0.000000e+00> : vector<286x128xf32>
    %116 = tpu.matmul %113, %115, %cst_120 {dimension_numbers = #tpu.dot_dimension_numbers<[1], [0], [0], [1], [0, 0, 1, 1], [], []>} : vector<286x64xbf16>, vector<64x128xbf16>, vector<286x128xf32> -> vector<286x128xf32>
    %117 = arith.addf %110, %116 : vector<286x128xf32>
    %c0_i32_121 = arith.constant 0 : i32
    %c0_i32_122 = arith.constant 0 : i32
    %c0_i32_123 = arith.constant 0 : i32
    %118 = tpu.memref_slice %arg2[%c0_i32_121, %c0_i32_122, %c0_i32_123] : memref<1x324x64xbf16, #tpu.memory_space<vmem>> -> memref<1x324x64xbf16, #tpu.memory_space<vmem>>
    %119 = tpu.memref_squeeze %118 : memref<1x324x64xbf16, #tpu.memory_space<vmem>> -> memref<324x64xbf16, #tpu.memory_space<vmem>>
    %c37_124 = arith.constant 37 : index
    %c0_125 = arith.constant 0 : index
    %120 = vector.load %119[%c37_124, %c0_125] : memref<324x64xbf16, #tpu.memory_space<vmem>>, vector<286x64xbf16>
    %c7_126 = arith.constant 7 : index
    %c0_127 = arith.constant 0 : index
    %c0_128 = arith.constant 0 : index
    %121 = vector.load %arg4[%c7_126, %c0_127, %c0_128] : memref<9x64x128xbf16, #tpu.memory_space<vmem>>, vector<1x64x128xbf16>
    %122 = vector.shape_cast %121 : vector<1x64x128xbf16> to vector<64x128xbf16>
    %cst_129 = arith.constant dense<0.000000e+00> : vector<286x128xf32>
    %123 = tpu.matmul %120, %122, %cst_129 {dimension_numbers = #tpu.dot_dimension_numbers<[1], [0], [0], [1], [0, 0, 1, 1], [], []>} : vector<286x64xbf16>, vector<64x128xbf16>, vector<286x128xf32> -> vector<286x128xf32>
    %124 = arith.addf %117, %123 : vector<286x128xf32>
    %c0_i32_130 = arith.constant 0 : i32
    %c0_i32_131 = arith.constant 0 : i32
    %c0_i32_132 = arith.constant 0 : i32
    %125 = tpu.memref_slice %arg1[%c0_i32_130, %c0_i32_131, %c0_i32_132] : memref<1x324x64xbf16, #tpu.memory_space<vmem>> -> memref<1x324x64xbf16, #tpu.memory_space<vmem>>
    %126 = tpu.memref_squeeze %125 : memref<1x324x64xbf16, #tpu.memory_space<vmem>> -> memref<324x64xbf16, #tpu.memory_space<vmem>>
    %c38 = arith.constant 38 : index
    %c0_133 = arith.constant 0 : index
    %127 = vector.load %126[%c38, %c0_133] : memref<324x64xbf16, #tpu.memory_space<vmem>>, vector<286x64xbf16>
    %c8 = arith.constant 8 : index
    %c0_134 = arith.constant 0 : index
    %c0_135 = arith.constant 0 : index
    %128 = vector.load %arg3[%c8, %c0_134, %c0_135] : memref<9x64x128xbf16, #tpu.memory_space<vmem>>, vector<1x64x128xbf16>
    %129 = vector.shape_cast %128 : vector<1x64x128xbf16> to vector<64x128xbf16>
    %cst_136 = arith.constant dense<0.000000e+00> : vector<286x128xf32>
    %130 = tpu.matmul %127, %129, %cst_136 {dimension_numbers = #tpu.dot_dimension_numbers<[1], [0], [0], [1], [0, 0, 1, 1], [], []>} : vector<286x64xbf16>, vector<64x128xbf16>, vector<286x128xf32> -> vector<286x128xf32>
    %131 = arith.addf %124, %130 : vector<286x128xf32>
    %c0_i32_137 = arith.constant 0 : i32
    %c0_i32_138 = arith.constant 0 : i32
    %c0_i32_139 = arith.constant 0 : i32
    %132 = tpu.memref_slice %arg2[%c0_i32_137, %c0_i32_138, %c0_i32_139] : memref<1x324x64xbf16, #tpu.memory_space<vmem>> -> memref<1x324x64xbf16, #tpu.memory_space<vmem>>
    %133 = tpu.memref_squeeze %132 : memref<1x324x64xbf16, #tpu.memory_space<vmem>> -> memref<324x64xbf16, #tpu.memory_space<vmem>>
    %c38_140 = arith.constant 38 : index
    %c0_141 = arith.constant 0 : index
    %134 = vector.load %133[%c38_140, %c0_141] : memref<324x64xbf16, #tpu.memory_space<vmem>>, vector<286x64xbf16>
    %c8_142 = arith.constant 8 : index
    %c0_143 = arith.constant 0 : index
    %c0_144 = arith.constant 0 : index
    %135 = vector.load %arg4[%c8_142, %c0_143, %c0_144] : memref<9x64x128xbf16, #tpu.memory_space<vmem>>, vector<1x64x128xbf16>
    %136 = vector.shape_cast %135 : vector<1x64x128xbf16> to vector<64x128xbf16>
    %cst_145 = arith.constant dense<0.000000e+00> : vector<286x128xf32>
    %137 = tpu.matmul %134, %136, %cst_145 {dimension_numbers = #tpu.dot_dimension_numbers<[1], [0], [0], [1], [0, 0, 1, 1], [], []>} : vector<286x64xbf16>, vector<64x128xbf16>, vector<286x128xf32> -> vector<286x128xf32>
    %138 = arith.addf %131, %137 : vector<286x128xf32>
    %139 = vector.broadcast %11 : vector<286x1xf32> to vector<286x128xf32>
    %140 = arith.mulf %138, %139 : vector<286x128xf32>
    %cst_146 = arith.constant dense<0.000000e+00> : vector<128xf32>
    %141 = vector.multi_reduction <add>, %140, %cst_146 [0] : vector<286x128xf32> to vector<128xf32>
    %142 = vector.shape_cast %141 : vector<128xf32> to vector<1x128xf32>
    %143 = arith.mulf %140, %138 : vector<286x128xf32>
    %cst_147 = arith.constant dense<0.000000e+00> : vector<128xf32>
    %144 = vector.multi_reduction <add>, %143, %cst_147 [0] : vector<286x128xf32> to vector<128xf32>
    %145 = vector.shape_cast %144 : vector<128xf32> to vector<1x128xf32>
    %cst_148 = arith.constant 3.906250e-03 : f32
    %146 = vector.broadcast %cst_148 : f32 to vector<1x128xf32>
    %147 = arith.mulf %142, %146 : vector<1x128xf32>
    %cst_149 = arith.constant 3.906250e-03 : f32
    %148 = vector.broadcast %cst_149 : f32 to vector<1x128xf32>
    %149 = arith.mulf %145, %148 : vector<1x128xf32>
    %150 = arith.mulf %147, %147 : vector<1x128xf32>
    %151 = arith.subf %149, %150 : vector<1x128xf32>
    %cst_150 = arith.constant 0.000000e+00 : f32
    %152 = vector.broadcast %cst_150 : f32 to vector<1x128xf32>
    %153 = arith.maximumf %151, %152 : vector<1x128xf32>
    %cst_151 = arith.constant 9.99999974E-6 : f32
    %154 = vector.broadcast %cst_151 : f32 to vector<1x128xf32>
    %155 = arith.addf %153, %154 : vector<1x128xf32>
    %156 = math.rsqrt %155 : vector<1x128xf32>
    %c0_152 = arith.constant 0 : index
    %c0_153 = arith.constant 0 : index
    %157 = vector.load %arg5[%c0_152, %c0_153] : memref<1x128xf32, #tpu.memory_space<vmem>>, vector<1x128xf32>
    %158 = arith.mulf %156, %157 : vector<1x128xf32>
    %c0_154 = arith.constant 0 : index
    %c0_155 = arith.constant 0 : index
    %159 = vector.load %arg6[%c0_154, %c0_155] : memref<1x128xf32, #tpu.memory_space<vmem>>, vector<1x128xf32>
    %160 = arith.mulf %147, %158 : vector<1x128xf32>
    %161 = arith.subf %159, %160 : vector<1x128xf32>
    %162 = vector.broadcast %158 : vector<1x128xf32> to vector<286x128xf32>
    %163 = arith.mulf %138, %162 : vector<286x128xf32>
    %164 = vector.broadcast %161 : vector<1x128xf32> to vector<286x128xf32>
    %165 = arith.addf %163, %164 : vector<286x128xf32>
    %cst_156 = arith.constant 0.000000e+00 : f32
    %166 = vector.broadcast %cst_156 : f32 to vector<286x128xf32>
    %167 = arith.maximumf %165, %166 : vector<286x128xf32>
    %168 = vector.broadcast %11 : vector<286x1xf32> to vector<286x128xf32>
    %169 = arith.mulf %167, %168 : vector<286x128xf32>
    %cst_157 = arith.constant 0.000000e+00 : bf16
    %170 = vector.broadcast %cst_157 : bf16 to vector<19x128xbf16>
    %171 = arith.truncf %169 : vector<286x128xf32> to vector<286x128xbf16>
    %172 = tpu.concatenate %170, %171, %170 in 0 : vector<19x128xbf16>, vector<286x128xbf16>, vector<19x128xbf16> -> vector<324x128xbf16>
    %c0_158 = arith.constant 0 : index
    %c0_159 = arith.constant 0 : index
    %173 = vector.load %arg11[%c0_158, %c0_159] : memref<324x128xbf16, #tpu.memory_space<vmem>>, vector<324x128xbf16>
    tpu.vector_store %arg11[%c0_158, %c0_159], %172 {strides = array<i32>} : memref<324x128xbf16, #tpu.memory_space<vmem>>, vector<324x128xbf16>,
    %cst_160 = arith.constant 0.000000e+00 : f32
    %174 = vector.broadcast %cst_160 : f32 to vector<286x128xf32>
    %c0_161 = arith.constant 0 : index
    %c0_162 = arith.constant 0 : index
    %175 = vector.load %arg11[%c0_161, %c0_162] : memref<324x128xbf16, #tpu.memory_space<vmem>>, vector<286x128xbf16>
    %c0_163 = arith.constant 0 : index
    %c0_164 = arith.constant 0 : index
    %c0_165 = arith.constant 0 : index
    %176 = vector.load %arg7[%c0_163, %c0_164, %c0_165] : memref<9x128x128xbf16, #tpu.memory_space<vmem>>, vector<1x128x128xbf16>
    %177 = vector.shape_cast %176 : vector<1x128x128xbf16> to vector<128x128xbf16>
    %cst_166 = arith.constant dense<0.000000e+00> : vector<286x128xf32>
    %178 = tpu.matmul %175, %177, %cst_166 {dimension_numbers = #tpu.dot_dimension_numbers<[1], [0], [0], [1], [0, 0, 1, 1], [], []>} : vector<286x128xbf16>, vector<128x128xbf16>, vector<286x128xf32> -> vector<286x128xf32>
    %179 = arith.addf %174, %178 : vector<286x128xf32>
    %c1_167 = arith.constant 1 : index
    %c0_168 = arith.constant 0 : index
    %180 = vector.load %arg11[%c1_167, %c0_168] : memref<324x128xbf16, #tpu.memory_space<vmem>>, vector<286x128xbf16>
    %c1_169 = arith.constant 1 : index
    %c0_170 = arith.constant 0 : index
    %c0_171 = arith.constant 0 : index
    %181 = vector.load %arg7[%c1_169, %c0_170, %c0_171] : memref<9x128x128xbf16, #tpu.memory_space<vmem>>, vector<1x128x128xbf16>
    %182 = vector.shape_cast %181 : vector<1x128x128xbf16> to vector<128x128xbf16>
    %cst_172 = arith.constant dense<0.000000e+00> : vector<286x128xf32>
    %183 = tpu.matmul %180, %182, %cst_172 {dimension_numbers = #tpu.dot_dimension_numbers<[1], [0], [0], [1], [0, 0, 1, 1], [], []>} : vector<286x128xbf16>, vector<128x128xbf16>, vector<286x128xf32> -> vector<286x128xf32>
    %184 = arith.addf %179, %183 : vector<286x128xf32>
    %c2_173 = arith.constant 2 : index
    %c0_174 = arith.constant 0 : index
    %185 = vector.load %arg11[%c2_173, %c0_174] : memref<324x128xbf16, #tpu.memory_space<vmem>>, vector<286x128xbf16>
    %c2_175 = arith.constant 2 : index
    %c0_176 = arith.constant 0 : index
    %c0_177 = arith.constant 0 : index
    %186 = vector.load %arg7[%c2_175, %c0_176, %c0_177] : memref<9x128x128xbf16, #tpu.memory_space<vmem>>, vector<1x128x128xbf16>
    %187 = vector.shape_cast %186 : vector<1x128x128xbf16> to vector<128x128xbf16>
    %cst_178 = arith.constant dense<0.000000e+00> : vector<286x128xf32>
    %188 = tpu.matmul %185, %187, %cst_178 {dimension_numbers = #tpu.dot_dimension_numbers<[1], [0], [0], [1], [0, 0, 1, 1], [], []>} : vector<286x128xbf16>, vector<128x128xbf16>, vector<286x128xf32> -> vector<286x128xf32>
    %189 = arith.addf %184, %188 : vector<286x128xf32>
    %c18_179 = arith.constant 18 : index
    %c0_180 = arith.constant 0 : index
    %190 = vector.load %arg11[%c18_179, %c0_180] : memref<324x128xbf16, #tpu.memory_space<vmem>>, vector<286x128xbf16>
    %c3_181 = arith.constant 3 : index
    %c0_182 = arith.constant 0 : index
    %c0_183 = arith.constant 0 : index
    %191 = vector.load %arg7[%c3_181, %c0_182, %c0_183] : memref<9x128x128xbf16, #tpu.memory_space<vmem>>, vector<1x128x128xbf16>
    %192 = vector.shape_cast %191 : vector<1x128x128xbf16> to vector<128x128xbf16>
    %cst_184 = arith.constant dense<0.000000e+00> : vector<286x128xf32>
    %193 = tpu.matmul %190, %192, %cst_184 {dimension_numbers = #tpu.dot_dimension_numbers<[1], [0], [0], [1], [0, 0, 1, 1], [], []>} : vector<286x128xbf16>, vector<128x128xbf16>, vector<286x128xf32> -> vector<286x128xf32>
    %194 = arith.addf %189, %193 : vector<286x128xf32>
    %c19_185 = arith.constant 19 : index
    %c0_186 = arith.constant 0 : index
    %195 = vector.load %arg11[%c19_185, %c0_186] : memref<324x128xbf16, #tpu.memory_space<vmem>>, vector<286x128xbf16>
    %c4_187 = arith.constant 4 : index
    %c0_188 = arith.constant 0 : index
    %c0_189 = arith.constant 0 : index
    %196 = vector.load %arg7[%c4_187, %c0_188, %c0_189] : memref<9x128x128xbf16, #tpu.memory_space<vmem>>, vector<1x128x128xbf16>
    %197 = vector.shape_cast %196 : vector<1x128x128xbf16> to vector<128x128xbf16>
    %cst_190 = arith.constant dense<0.000000e+00> : vector<286x128xf32>
    %198 = tpu.matmul %195, %197, %cst_190 {dimension_numbers = #tpu.dot_dimension_numbers<[1], [0], [0], [1], [0, 0, 1, 1], [], []>} : vector<286x128xbf16>, vector<128x128xbf16>, vector<286x128xf32> -> vector<286x128xf32>
    %199 = arith.addf %194, %198 : vector<286x128xf32>
    %c20_191 = arith.constant 20 : index
    %c0_192 = arith.constant 0 : index
    %200 = vector.load %arg11[%c20_191, %c0_192] : memref<324x128xbf16, #tpu.memory_space<vmem>>, vector<286x128xbf16>
    %c5_193 = arith.constant 5 : index
    %c0_194 = arith.constant 0 : index
    %c0_195 = arith.constant 0 : index
    %201 = vector.load %arg7[%c5_193, %c0_194, %c0_195] : memref<9x128x128xbf16, #tpu.memory_space<vmem>>, vector<1x128x128xbf16>
    %202 = vector.shape_cast %201 : vector<1x128x128xbf16> to vector<128x128xbf16>
    %cst_196 = arith.constant dense<0.000000e+00> : vector<286x128xf32>
    %203 = tpu.matmul %200, %202, %cst_196 {dimension_numbers = #tpu.dot_dimension_numbers<[1], [0], [0], [1], [0, 0, 1, 1], [], []>} : vector<286x128xbf16>, vector<128x128xbf16>, vector<286x128xf32> -> vector<286x128xf32>
    %204 = arith.addf %199, %203 : vector<286x128xf32>
    %c36_197 = arith.constant 36 : index
    %c0_198 = arith.constant 0 : index
    %205 = vector.load %arg11[%c36_197, %c0_198] : memref<324x128xbf16, #tpu.memory_space<vmem>>, vector<286x128xbf16>
    %c6_199 = arith.constant 6 : index
    %c0_200 = arith.constant 0 : index
    %c0_201 = arith.constant 0 : index
    %206 = vector.load %arg7[%c6_199, %c0_200, %c0_201] : memref<9x128x128xbf16, #tpu.memory_space<vmem>>, vector<1x128x128xbf16>
    %207 = vector.shape_cast %206 : vector<1x128x128xbf16> to vector<128x128xbf16>
    %cst_202 = arith.constant dense<0.000000e+00> : vector<286x128xf32>
    %208 = tpu.matmul %205, %207, %cst_202 {dimension_numbers = #tpu.dot_dimension_numbers<[1], [0], [0], [1], [0, 0, 1, 1], [], []>} : vector<286x128xbf16>, vector<128x128xbf16>, vector<286x128xf32> -> vector<286x128xf32>
    %209 = arith.addf %204, %208 : vector<286x128xf32>
    %c37_203 = arith.constant 37 : index
    %c0_204 = arith.constant 0 : index
    %210 = vector.load %arg11[%c37_203, %c0_204] : memref<324x128xbf16, #tpu.memory_space<vmem>>, vector<286x128xbf16>
    %c7_205 = arith.constant 7 : index
    %c0_206 = arith.constant 0 : index
    %c0_207 = arith.constant 0 : index
    %211 = vector.load %arg7[%c7_205, %c0_206, %c0_207] : memref<9x128x128xbf16, #tpu.memory_space<vmem>>, vector<1x128x128xbf16>
    %212 = vector.shape_cast %211 : vector<1x128x128xbf16> to vector<128x128xbf16>
    %cst_208 = arith.constant dense<0.000000e+00> : vector<286x128xf32>
    %213 = tpu.matmul %210, %212, %cst_208 {dimension_numbers = #tpu.dot_dimension_numbers<[1], [0], [0], [1], [0, 0, 1, 1], [], []>} : vector<286x128xbf16>, vector<128x128xbf16>, vector<286x128xf32> -> vector<286x128xf32>
    %214 = arith.addf %209, %213 : vector<286x128xf32>
    %c38_209 = arith.constant 38 : index
    %c0_210 = arith.constant 0 : index
    %215 = vector.load %arg11[%c38_209, %c0_210] : memref<324x128xbf16, #tpu.memory_space<vmem>>, vector<286x128xbf16>
    %c8_211 = arith.constant 8 : index
    %c0_212 = arith.constant 0 : index
    %c0_213 = arith.constant 0 : index
    %216 = vector.load %arg7[%c8_211, %c0_212, %c0_213] : memref<9x128x128xbf16, #tpu.memory_space<vmem>>, vector<1x128x128xbf16>
    %217 = vector.shape_cast %216 : vector<1x128x128xbf16> to vector<128x128xbf16>
    %cst_214 = arith.constant dense<0.000000e+00> : vector<286x128xf32>
    %218 = tpu.matmul %215, %217, %cst_214 {dimension_numbers = #tpu.dot_dimension_numbers<[1], [0], [0], [1], [0, 0, 1, 1], [], []>} : vector<286x128xbf16>, vector<128x128xbf16>, vector<286x128xf32> -> vector<286x128xf32>
    %219 = arith.addf %214, %218 : vector<286x128xf32>
    %220 = vector.broadcast %11 : vector<286x1xf32> to vector<286x128xf32>
    %221 = arith.mulf %219, %220 : vector<286x128xf32>
    %cst_215 = arith.constant dense<0.000000e+00> : vector<128xf32>
    %222 = vector.multi_reduction <add>, %221, %cst_215 [0] : vector<286x128xf32> to vector<128xf32>
    %223 = vector.shape_cast %222 : vector<128xf32> to vector<1x128xf32>
    %224 = arith.mulf %221, %219 : vector<286x128xf32>
    %cst_216 = arith.constant dense<0.000000e+00> : vector<128xf32>
    %225 = vector.multi_reduction <add>, %224, %cst_216 [0] : vector<286x128xf32> to vector<128xf32>
    %226 = vector.shape_cast %225 : vector<128xf32> to vector<1x128xf32>
    %cst_217 = arith.constant 3.906250e-03 : f32
    %227 = vector.broadcast %cst_217 : f32 to vector<1x128xf32>
    %228 = arith.mulf %223, %227 : vector<1x128xf32>
    %cst_218 = arith.constant 3.906250e-03 : f32
    %229 = vector.broadcast %cst_218 : f32 to vector<1x128xf32>
    %230 = arith.mulf %226, %229 : vector<1x128xf32>
    %231 = arith.mulf %228, %228 : vector<1x128xf32>
    %232 = arith.subf %230, %231 : vector<1x128xf32>
    %cst_219 = arith.constant 0.000000e+00 : f32
    %233 = vector.broadcast %cst_219 : f32 to vector<1x128xf32>
    %234 = arith.maximumf %232, %233 : vector<1x128xf32>
    %cst_220 = arith.constant 9.99999974E-6 : f32
    %235 = vector.broadcast %cst_220 : f32 to vector<1x128xf32>
    %236 = arith.addf %234, %235 : vector<1x128xf32>
    %237 = math.rsqrt %236 : vector<1x128xf32>
    %c0_221 = arith.constant 0 : index
    %c0_222 = arith.constant 0 : index
    %238 = vector.load %arg8[%c0_221, %c0_222] : memref<1x128xf32, #tpu.memory_space<vmem>>, vector<1x128xf32>
    %239 = arith.mulf %237, %238 : vector<1x128xf32>
    %c0_223 = arith.constant 0 : index
    %c0_224 = arith.constant 0 : index
    %240 = vector.load %arg9[%c0_223, %c0_224] : memref<1x128xf32, #tpu.memory_space<vmem>>, vector<1x128xf32>
    %241 = arith.mulf %228, %239 : vector<1x128xf32>
    %242 = arith.subf %240, %241 : vector<1x128xf32>
    %243 = vector.broadcast %239 : vector<1x128xf32> to vector<286x128xf32>
    %244 = arith.mulf %219, %243 : vector<286x128xf32>
    %245 = vector.broadcast %242 : vector<1x128xf32> to vector<286x128xf32>
    %246 = arith.addf %244, %245 : vector<286x128xf32>
    %cst_225 = arith.constant 0.000000e+00 : f32
    %247 = vector.broadcast %cst_225 : f32 to vector<286x128xf32>
    %248 = arith.maximumf %246, %247 : vector<286x128xf32>
    %cst_226 = arith.constant 0.000000e+00 : f32
    %249 = vector.broadcast %cst_226 : f32 to vector<19x128xf32>
    %250 = tpu.concatenate %249, %248, %249 in 0 : vector<19x128xf32>, vector<286x128xf32>, vector<19x128xf32> -> vector<324x128xf32>
    %c0_227 = arith.constant 0 : index
    %c0_228 = arith.constant 0 : index
    %c0_229 = arith.constant 0 : index
    %251 = vector.load %arg10[%c0_227, %c0_228, %c0_229] : memref<1x324x128xf32, #tpu.memory_space<vmem>>, vector<1x324x128xf32>
    %252 = vector.shape_cast %251 : vector<1x324x128xf32> to vector<324x128xf32>
    %253 = vector.shape_cast %250 : vector<324x128xf32> to vector<1x324x128xf32>
    tpu.vector_store %arg10[%c0_227, %c0_228, %c0_229], %253 {strides = array<i32>} : memref<1x324x128xf32, #tpu.memory_space<vmem>>, vector<1x324x128xf32>,
    return
  }
  func.func @transform_0(%arg0: i32) -> (i32, i32, i32) {
    %c0_i32 = arith.constant 0 : i32
    %c0_i32_0 = arith.constant 0 : i32
    %c0_i32_1 = arith.constant 0 : i32
    return %arg0, %c0_i32, %c0_i32_0 : i32, i32, i32
  }
  func.func @transform_1(%arg0: i32) -> (i32, i32, i32) {
    %c0_i32 = arith.constant 0 : i32
    %c0_i32_0 = arith.constant 0 : i32
    %c0_i32_1 = arith.constant 0 : i32
    return %arg0, %c0_i32, %c0_i32_0 : i32, i32, i32
  }
  func.func @transform_2(%arg0: i32) -> (i32, i32, i32) {
    %c0_i32 = arith.constant 0 : i32
    %c0_i32_0 = arith.constant 0 : i32
    %c0_i32_1 = arith.constant 0 : i32
    %c0_i32_2 = arith.constant 0 : i32
    return %c0_i32, %c0_i32_0, %c0_i32_1 : i32, i32, i32
  }
  func.func @transform_3(%arg0: i32) -> (i32, i32, i32) {
    %c0_i32 = arith.constant 0 : i32
    %c0_i32_0 = arith.constant 0 : i32
    %c0_i32_1 = arith.constant 0 : i32
    %c0_i32_2 = arith.constant 0 : i32
    return %c0_i32, %c0_i32_0, %c0_i32_1 : i32, i32, i32
  }
  func.func @transform_4(%arg0: i32) -> (i32, i32) {
    %c0_i32 = arith.constant 0 : i32
    %c0_i32_0 = arith.constant 0 : i32
    %c0_i32_1 = arith.constant 0 : i32
    return %c0_i32, %c0_i32_0 : i32, i32
  }
  func.func @transform_5(%arg0: i32) -> (i32, i32) {
    %c0_i32 = arith.constant 0 : i32
    %c0_i32_0 = arith.constant 0 : i32
    %c0_i32_1 = arith.constant 0 : i32
    return %c0_i32, %c0_i32_0 : i32, i32
  }
  func.func @transform_6(%arg0: i32) -> (i32, i32, i32) {
    %c0_i32 = arith.constant 0 : i32
    %c0_i32_0 = arith.constant 0 : i32
    %c0_i32_1 = arith.constant 0 : i32
    %c0_i32_2 = arith.constant 0 : i32
    return %c0_i32, %c0_i32_0, %c0_i32_1 : i32, i32, i32
  }
  func.func @transform_7(%arg0: i32) -> (i32, i32) {
    %c0_i32 = arith.constant 0 : i32
    %c0_i32_0 = arith.constant 0 : i32
    %c0_i32_1 = arith.constant 0 : i32
    return %c0_i32, %c0_i32_0 : i32, i32
  }
  func.func @transform_8(%arg0: i32) -> (i32, i32) {
    %c0_i32 = arith.constant 0 : i32
    %c0_i32_0 = arith.constant 0 : i32
    %c0_i32_1 = arith.constant 0 : i32
    return %c0_i32, %c0_i32_0 : i32, i32
  }
  func.func @transform_9(%arg0: i32) -> (i32, i32, i32) {
    %c0_i32 = arith.constant 0 : i32
    %c0_i32_0 = arith.constant 0 : i32
    %c0_i32_1 = arith.constant 0 : i32
    return %arg0, %c0_i32, %c0_i32_0 : i32, i32, i32
  }
}

</mosaic_0001>

<bundles_post_ra>
// kernel: up_forward.1
= control target key start
LH: loop header
LB: loop body
LE: loop exit
PB: predicated region body
PF: predicated region fallthrough
CT: control target
= control target key end

     0   :  { %s14907_s30 = smov 0   ;;  %s20437_s0 = inlined_call_operand.vmem [shape: bf16[2,324,64], index: 0, kind: input, shape index: {}]   ;;  %s20438_s1 = inlined_call_operand.vmem [shape: bf16[2,324,64], index: 1, kind: input, shape index: {}]   ;;  %s20439_s2 = inlined_call_operand.vmem [shape: bf16[9,64,128], index: 2, kind: input, shape index: {}]   ;;  %s20440_s3 = inlined_call_operand.vmem [shape: bf16[9,64,128], index: 3, kind: input, shape index: {}]   ;;  %s20441_s4 = inlined_call_operand.vmem [shape: f32[1,128], index: 4, kind: input, shape index: {}]   ;;  %s20442_s5 = inlined_call_operand.vmem [shape: f32[1,128], index: 5, kind: input, shape index: {}]   ;;  %s20443_s6 = inlined_call_operand.vmem [shape: bf16[9,128,128], index: 6, kind: input, shape index: {}]   ;;  %s20444_s7 = inlined_call_operand.vmem [shape: f32[1,128], index: 7, kind: input, shape index: {}]   ;;  %s20445_s8 = inlined_call_operand.vmem [shape: f32[1,128], index: 8, kind: input, shape index: {}]   ;;  %s20446_s9 = inlined_call_operand.vmem [shape: f32[2,324,128], index: 9, kind: output, shape index: {}]  }
   0x1 LB: > { %s12343_s10 = sadd.s32 4294967295, %s14853_s30   ;;  %p12347_p0 = scmp.ge.s32.totalorder %s14853_s30, 1  ;;  %s14853_s30 = sphi %s14907_s30, %s19_s30  }
   0x2   : > { %p297_p1 = scmp.lt.s32.totalorder %s14853_s30, 3 }
   0x4   : > { %p298_p2 = pnand %p12347_p0, %p297_p1 }
   0x6   : > { %301 = sbr.rel (%p298_p2) target bundleno = 2830 (0xb0e), region = 56 }
   0xb   : > { %v14400_v0 = vld [vmem:[%s20440_s3 + $0x18] sm:$0xff]  ;;  %p338_p3 = scmp.lt.s32.totalorder %s12343_s10, 1  ;;  %v14399_v3 = vld [vmem:[%s20440_s3 + $0x10] sm:$0xff]  ;;  %v14398_v6 = vld [vmem:[%s20440_s3 + $0x8] sm:$0xff]  ;;  %vm2287_vm0 = vsmask.f32 7424 }
   0xc   : > { %v14380_v1 = vld [vmem:[%s20439_s2 + $0x18] sm:$0xff]  ;;  %1912 = vmatpush.bf16.msra.mxu0 %v14400_v0  ;;  %14730 = vmatpush.bf16.msra.mxu3 %v14400_v0  ;;  %v14379_v4 = vld [vmem:[%s20439_s2 + $0x10] sm:$0xff]  ;;  %v14378_v7 = vld [vmem:[%s20439_s2 + $0x8] sm:$0xff]  ;;  %vm1853_vm1 = vcmask 523264   ;;  %vm2992_vm2 = vcmask 1046528   ;;  %vm5318_vm4 = vcmask 1045504  }
   0xd   : > { %v14924_v2 = vld [vmem:[%s20439_s2 + $0x38] sm:$0xff]  ;;  %s20993_s10 = smov (!%p338_p3, %s12343_s10), 1  ;;  %2179 = vmatpush.bf16.msra.mxu1 %v14380_v1  ;;  %v14938_v5 = vld [vmem:[%s20439_s2 + $0x30] sm:$0xff]  ;;  %v14402_v8 = vld [vmem:[%s20439_s2 + $0x28] sm:$0xff]  ;;  %vm4407_vm3 = vsmask.f32 6400 }
   0xe   : > { %2496 = vmatpush.bf16.msra.mxu2 %v14924_v2  ;;  %s14742_s23 = smul.u32 164, %s20993_s10  ;;  %v14397_v13 = vld [vmem:[%s20440_s3] sm:$0xff]  ;;  %v14412_v20 = vld [vmem:[%s20439_s2 + $0x58] sm:$0xff]  ;;  %v14411_v35 = vld [vmem:[%s20439_s2 + $0x50] sm:$0xff]  ;;  %vm6623_vm5 = vsmask.f32 5376 }
   0xf   : > { %v14377_v16 = vld [vmem:[%s20439_s2] sm:$0xff]  ;;  %v14416_v21 = vld [vmem:[%s20440_s3 + $0x58] sm:$0xff]  ;;  %v14415_v36 = vld [vmem:[%s20440_s3 + $0x50] sm:$0xff]  ;;  %vm7416_vm6 = vcmask 1044480   ;;  %s14743_s20 = smul.u32 328, %s20993_s10 }
  0x10   : > { %1913 = vmatpush.bf16.msra.mxu0 %v14399_v3  ;;  %14731 = vmatpush.bf16.msra.mxu3 %v14399_v3  ;;  %s14947_s28 = scalar_lea.vmem %s20437_s0, %s14742_s23  ;;  %s14966_s18 = scalar_lea.vmem %s20438_s1, %s14742_s23  ;;  %v14401_v17 = vld [vmem:[%s20439_s2 + $0x20] sm:$0xff] }
  0x11   : > { %2180 = vmatpush.bf16.msra.mxu1 %v14379_v4  ;;  %v14710_v9 = vld [vmem:[%s14947_s28] sm:$0xff]   ;;  %v14958_v12 = vld [vmem:[%s14947_s28 + $0x8] sm:$0xff]  ;;  %v14394_v22 = vld [vmem:[%s14966_s18 + $0x70] sm:$0xff]  ;;  %s19929_s23 = scalar_lea.vmem %s20446_s9, %s14743_s20 }
  0x12   : > { %2497 = vmatpush.bf16.msra.mxu2 %v14938_v5  ;;  %v2288_v10 = vshrl.u32 %v14710_v9, 16  ;;  %v2290_v11 = vshll.u32 %v14710_v9, 16  ;;  %v2294_v15 = vshll.u32 %v14958_v12, 16  ;;  %v14983_v23 = vld [vmem:[%s14966_s18] sm:$0xff]   ;;  %v14992_v25 = vld [vmem:[%s14947_s28 + $0x10] sm:$0xff]  ;;  %v2298_v26 = vshrl.u32 %v14958_v12, 16 }
  0x13   : > { %v2301_v27 = vshll.u32 %v14992_v25, 16  ;;  %v14997_v30 = vld [vmem:[%s14966_s18 + $0x8] sm:$0xff]  ;;  %v14395_v31 = vld [vmem:[%s14966_s18 + $0x78] sm:$0xff]  ;;  %v2305_v38 = vshrl.u32 %v14992_v25, 16  ;;  %v15025_v42 = vld [vmem:[%s14966_s18 + $0x10] sm:$0xff] }
  0x14   : > { %1914 = vmatpush.bf16.msra.mxu0 %v14398_v6  ;;  %14732 = vmatpush.bf16.msra.mxu3 %v14398_v6  ;;  %v2292_v14 = vrot.slane %v2290_v11, 1  ;;  %v2296_v19 = vrot.slane %v2294_v15, 1  ;;  %v15001_v32 = vld [vmem:[%s14966_s18 + $0x88] sm:$0xff]   ;;  %v15019_v37 = vld [vmem:[%s14947_s28 + $0x18] sm:$0xff]  ;;  %v14396_v43 = vld [vmem:[%s14966_s18 + $0x80] sm:$0xff] }
  0x15   : > { %2181 = vmatpush.bf16.msra.mxu1 %v14378_v7  ;;  %v2303_v29 = vrot.slane %v2301_v27, 1  ;;  %20569 = vst [vmem:[#allocation3_spill] sm:$0xff] %v15001_v32  ;;  %v14834_v33 = vld [vmem:[%s14966_s18 + $0x88] sm:$0xf]   ;;  %v2308_v39 = vshll.u32 %v15019_v37, 16  ;;  %v15036_v45 = vld [vmem:[%s14947_s28 + $0x20] sm:$0xff] }
  0x16   : > { %2498 = vmatpush.bf16.msra.mxu2 %v14402_v8  ;;  %v2293_v18 = vor.u32 %v2292_v14, %v2288_v10  ;;  %v2300_v28 = vor.u32 %v2298_v26, %v2296_v19  ;;  %v14844_v46 = vld [vmem:[%s14966_s18 + $0x88] sm:$0x70]  ;;  %v2312_v47 = vshrl.u32 %v15019_v37, 16  ;;  %v2315_v48 = vshll.u32 %v15036_v45, 16  ;;  %v15042_v51 = vld [vmem:[%s14966_s18 + $0x18] sm:$0xff]  ;;  %v15057_v59 = vld [vmem:[%s14966_s18 + $0x20] sm:$0xff] }
  0x17   : > { %v2307_v40 = vor.u32 %v2305_v38, %v2303_v29  ;;  %v2310_v41 = vrot.slane %v2308_v39, 1  ;;  %v14835_v52 = vor.u32 %v14844_v46, %v14834_v33  ;;  %v15052_v54 = vld [vmem:[%s14947_s28 + $0x28] sm:$0xff]  ;;  %v2319_v55 = vshrl.u32 %v15036_v45, 16  ;;  %v14374_v60 = vld [vmem:[%s14947_s28 + $0x70] sm:$0xff]  ;;  %v15101_v15 = vld [vmem:[%s14947_s28 + $0x80] sm:$0xff] }
  0x18   : > { %1915 = vmatpush.bf16.msra.mxu0 %v14397_v13  ;;  %14733 = vmatpush.bf16.msra.mxu3 %v14397_v13  ;;  %v2297_v24 = vsel %vm2287_vm0, %v2293_v18, %v2296_v19  ;;  %v2304_v34 = vsel %vm2287_vm0, %v2300_v28, %v2303_v29  ;;  %v2317_v50 = vrot.slane %v2315_v48, 1  ;;  %v2322_v56 = vshll.u32 %v15052_v54, 16  ;;  %v15068_v62 = vld [vmem:[%s14947_s28 + $0x30] sm:$0xff]  ;;  %v15073_v3 = vld [vmem:[%s14966_s18 + $0x28] sm:$0xff]  ;;  %v15122_v27 = vld [vmem:[%s14966_s18 + $0x38] sm:$0xff] }
  0x19   : > { %2182 = vmatpush.bf16.msra.mxu1 %v14377_v16  ;;  %v2311_v44 = vsel %vm2287_vm0, %v2307_v40, %v2310_v41  ;;  %v2314_v49 = vor.u32 %v2312_v47, %v2310_v41  ;;  %v2326_v63 = vshrl.u32 %v15052_v54, 16  ;;  %v2329_v0 = vshll.u32 %v15068_v62, 16  ;;  %v14410_v6 = vld [vmem:[%s20439_s2 + $0x48] sm:$0xff]  ;;  %v15098_v14 = vld [vmem:[%s14966_s18 + $0x30] sm:$0xff]  ;;  %v14408_v40 = vld [vmem:[%s20440_s3 + $0x38] sm:$0xff] }
  0x1a   : > { %2499 = vmatpush.bf16.msra.mxu2 %v14401_v17  ;;  %v2321_v57 = vor.u32 %v2319_v55, %v2317_v50  ;;  %v2324_v58 = vrot.slane %v2322_v56, 1  ;;  %v15115_v18 = vld [vmem:[%s14947_s28 + $0x88] sm:$0xff]   ;;  %v15144_v47 = vld [vmem:[%s14966_s18 + $0x40] sm:$0xff]  ;;  %v15155_v55 = vld [vmem:[%s14947_s28 + $0x50] sm:$0xff] }
  0x1b   : > { %12467 = vmatmul.msk.bf16.vlgmr.msra.gmra.mxu0 %vm1853_vm1, %v14983_v23  ;;  %12481 = vmatmul.msk.bf16.vlgmr.msra.gmra.mxu3 %vm1853_vm1, %v14394_v22  ;;  %v2318_v53 = vsel %vm2287_vm0, %v2314_v49, %v2317_v50  ;;  %20570 = vst [vmem:[#allocation4_spill] sm:$0xff] %v15115_v18  ;;  %v14847_v19 = vld [vmem:[%s14947_s28 + $0x88] sm:$0xf]  }
  0x1c   : > { %3110 = vmatpush.bf16.msrb.mxu0 %v14412_v20  ;;  %12565 = vmatmul.msk.bf16.vlgmr.msra.gmra.mxu1 %vm1853_vm1, %v14710_v9  ;;  %v2325_v61 = vsel %vm2287_vm0, %v2321_v57, %v2324_v58  ;;  %v2333_v9 = vshrl.u32 %v15068_v62, 16  ;;  %v14850_v20 = vld [vmem:[%s14947_s28 + $0x88] sm:$0x70] }
  0x1d   : > { %3371 = vmatpush.bf16.msrb.mxu1 %v14416_v21  ;;  %12607 = vmatmul.msk.bf16.vlgmr.msra.gmra.mxu2 %vm1853_vm1, %v2297_v24  ;;  %v14848_v28 = vor.u32 %v14850_v20, %v14847_v19  ;;  %v15132_v33 = vld [vmem:[%s14947_s28 + $0x48] sm:$0xff] }
  0x1e   : > { %14734 = vmatpush.bf16.msrb.mxu3 %v14380_v1  ;;  %v2328_v1 = vor.u32 %v2326_v63, %v2324_v58  ;;  %v2350_v39 = vshll.u32 %v15132_v33, 16  ;;  %v2399_v63 = vshll.u32 %v15101_v15, 16  ;;  %v15177_v20 = vld [vmem:[%s14966_s18 + $0x48] sm:$0xff] }
  0x20   : > { %3111 = vmatpush.bf16.msrb.mxu0 %v14411_v35  ;;  %v2389_v35 = vshrl.u32 %v14374_v60, 16  ;;  %v2352_v46 = vrot.slane %v2350_v39, 1 }
  0x21   : > { %3372 = vmatpush.bf16.msrb.mxu1 %v14415_v36 }
  0x22   : > { %14735 = vmatpush.bf16.msrb.mxu3 %v14379_v4  ;;  %v15076_v4 = vld [vmem:[%s14947_s28 + $0x78] sm:$0xff] }
  0x23   : > { %v2392_v36 = vshll.u32 %v15076_v4, 16 }
  0x24   : > { %3112 = vmatpush.bf16.msrb.mxu0 %v14410_v6  ;;  %v14407_v6 = vld [vmem:[%s20440_s3 + $0x30] sm:$0xff] }
  0x26   : > { %14736 = vmatpush.bf16.msrb.mxu3 %v14378_v7  ;;  %v14414_v7 = vld [vmem:[%s20440_s3 + $0x48] sm:$0xff] }
  0x27   : > { %3373 = vmatpush.bf16.msrb.mxu1 %v14414_v7  ;;  %v14409_v7 = vld [vmem:[%s20439_s2 + $0x40] sm:$0xff] }
  0x28   : > { %3113 = vmatpush.bf16.msrb.mxu0 %v14409_v7 }
  0x2a   : > { %14737 = vmatpush.bf16.msrb.mxu3 %v14377_v16 }
  0x2b   : > { %12468 = vmatmul.msk.bf16.gmra.mxu0 %vm1853_vm1, %v14997_v30  ;;  %12482 = vmatmul.msk.bf16.gmra.mxu3 %vm1853_vm1, %v14395_v31  ;;  %v2385_v31 = vshll.u32 %v14374_v60, 16 }
  0x2c   : > { %12566 = vmatmul.msk.bf16.gmra.mxu1 %vm1853_vm1, %v14958_v12 }
  0x2d   : > { %12608 = vmatmul.msk.bf16.gmra.mxu2 %vm1853_vm1, %v2304_v34  ;;  %v15134_v34 = vrot.slane %v2385_v31, 1  ;;  %v15190_v31 = vld [vmem:[%s14947_s28 + $0x58] sm:$0xff] }
  0x2e   : > { %14738 = vmatpush.bf16.msra.mxu3 %v14924_v2  ;;  %v2331_v2 = vrot.slane %v2329_v0, 1  ;;  %20571 = vst [vmem:[#allocation5_spill] sm:$0xff] %v15190_v31 }
  0x2f   : > { %v2391_v41 = vor.u32 %v2389_v35, %v15134_v34 }
  0x30   : > { %v2335_v11 = vor.u32 %v2333_v9, %v2331_v2 }
  0x32   : > { %14739 = vmatpush.bf16.msra.mxu3 %v14938_v5  ;;  %v2332_v5 = vsel %vm2287_vm0, %v2328_v1, %v2331_v2  ;;  %v2354_v1 = vshrl.u32 %v15132_v33, 16  ;;  %v2357_v2 = vshll.u32 %v15155_v55, 16 }
  0x36   : > { %14740 = vmatpush.bf16.msra.mxu3 %v14402_v8  ;;  %v15093_v8 = vld [vmem:[%s14947_s28 + $0x38] sm:$0xff] }
  0x37   : > { %v2336_v10 = vshll.u32 %v15093_v8, 16  ;;  %v2340_v21 = vshrl.u32 %v15093_v8, 16 }
  0x39   : > { %v2338_v13 = vrot.slane %v2336_v10, 1  ;;  %v2401_v10 = vrot.slane %v2399_v63, 1  ;;  %v14405_v63 = vld [vmem:[%s20440_s3 + $0x20] sm:$0xff] }
  0x3a   : > { %14741 = vmatpush.bf16.msra.mxu3 %v14401_v17  ;;  %v15112_v17 = vld [vmem:[%s14947_s28 + $0x40] sm:$0xff] }
  0x3b   : > { %12469 = vmatmul.msk.bf16.gmra.mxu0 %vm1853_vm1, %v15025_v42  ;;  %12483 = vmatmul.msk.bf16.gmra.mxu3 %vm1853_vm1, %v14396_v43  ;;  %v2339_v16 = vsel %vm2287_vm0, %v2335_v11, %v2338_v13  ;;  %v2343_v22 = vshll.u32 %v15112_v17, 16  ;;  %v2342_v24 = vor.u32 %v2340_v21, %v2338_v13  ;;  %v2347_v38 = vshrl.u32 %v15112_v17, 16 }
  0x3c   : > { %12567 = vmatmul.msk.bf16.gmra.mxu1 %vm1853_vm1, %v14992_v25  ;;  %v2394_v43 = vrot.slane %v2392_v36, 1  ;;  %v2356_v11 = vor.u32 %v2354_v1, %v2352_v46  ;;  %v2359_v13 = vrot.slane %v2357_v2, 1 }
  0x3d   : > { %12609 = vmatmul.msk.bf16.gmra.mxu2 %vm1853_vm1, %v2311_v44  ;;  %v2345_v26 = vrot.slane %v2343_v22, 1 }
  0x3e   : > { %v2395_v49 = vsel %vm2287_vm0, %v2391_v41, %v2394_v43  ;;  %v2407_v41 = vshll.u32 %v15115_v18, 16 }
  0x3f   : > { %v2346_v29 = vsel %vm2287_vm0, %v2342_v24, %v2345_v26  ;;  %v2349_v44 = vor.u32 %v2347_v38, %v2345_v26 }
  0x4b   : > { %12470 = vmatmul.msk.bf16.gmra.mxu0 %vm1853_vm1, %v15042_v51  ;;  %12484 = vmatmul.msk.bf16.gmra.mxu3 %vm1853_vm1, %v14835_v52  ;;  %v2353_v52 = vsel %vm2287_vm0, %v2349_v44, %v2352_v46  ;;  %v2361_v44 = vshrl.u32 %v15155_v55, 16  ;;  %v2364_v46 = vshll.u32 %v15190_v31, 16 }
  0x4c   : > { %12568 = vmatmul.msk.bf16.gmra.mxu1 %vm1853_vm1, %v15019_v37 }
  0x4d   : > { %12610 = vmatmul.msk.bf16.gmra.mxu2 %vm1853_vm1, %v2318_v53 }
  0x5b   : > { %12471 = vmatmul.msk.bf16.gmra.mxu0 %vm1853_vm1, %v15057_v59  ;;  %12579 = vmatmul.msk.bf16.vlgmr.msrb.gmra.mxu3 %vm1853_vm1, %v14374_v60 }
  0x5c   : > { %12569 = vmatmul.msk.bf16.gmra.mxu1 %vm1853_vm1, %v15036_v45  ;;  %2848 = vmatpush.bf16.msrb.mxu3 %v14408_v40  ;;  %v2403_v40 = vshrl.u32 %v15101_v15, 16 }
  0x5d   : > { %12611 = vmatmul.msk.bf16.gmra.mxu2 %vm1853_vm1, %v2325_v61  ;;  %v2396_v61 = vshrl.u32 %v15076_v4, 16 }
  0x5f   : > { %v2398_v9 = vor.u32 %v2396_v61, %v2394_v43  ;;  %v15206_v61 = vld [vmem:[%s14966_s18 + $0x50] sm:$0xff] }
  0x60   : > { %2849 = vmatpush.bf16.msrb.mxu3 %v14407_v6 }
  0x61   : > { %v2402_v24 = vsel %vm2287_vm0, %v2398_v9, %v2401_v10 }
  0x6b   : > { %12472 = vmatmul.msk.bf16.gmra.mxu0 %vm1853_vm1, %v15073_v3  ;;  %12580 = vmatmul.msk.bf16.gmra.mxu3 %vm1853_vm1, %v15076_v4  ;;  %v14413_v4 = vld [vmem:[%s20440_s3 + $0x40] sm:$0xff] }
  0x6c   : > { %12570 = vmatmul.msk.bf16.gmra.mxu1 %vm1853_vm1, %v15052_v54 }
  0x6d   : > { %12612 = vmatmul.msk.bf16.gmra.mxu2 %vm1853_vm1, %v2332_v5  ;;  %3374 = vmatpush.bf16.msrb.mxu1 %v14413_v4  ;;  %v15222_v4 = vld [vmem:[%s14947_s28 + $0x60] sm:$0xff] }
  0x6e   : > { %20572 = vst [vmem:[#allocation6_spill] sm:$0xff] %v15222_v4 }
  0x7b   : > { %12473 = vmatmul.msk.bf16.gmra.mxu0 %vm1853_vm1, %v15098_v14  ;;  %12581 = vmatmul.msk.bf16.gmra.mxu3 %vm1853_vm1, %v15101_v15 }
  0x7c   : > { %12571 = vmatmul.msk.bf16.gmra.mxu1 %vm1853_vm1, %v15068_v62 }
  0x7d   : > { %12613 = vmatmul.msk.bf16.gmra.mxu2 %vm1853_vm1, %v2339_v16 }
  0x8b   : > { %12474 = vmatmul.msk.bf16.gmra.mxu0 %vm1853_vm1, %v15122_v27  ;;  %12582 = vmatmul.msk.bf16.gmra.mxu3 %vm1853_vm1, %v14848_v28  ;;  %v2360_v28 = vsel %vm2287_vm0, %v2356_v11, %v2359_v13 }
  0x8c   : > { %12572 = vmatmul.msk.bf16.gmra.mxu1 %vm1853_vm1, %v15093_v8 }
  0x8d   : > { %12614 = vmatmul.msk.bf16.gmra.mxu2 %vm1853_vm1, %v2346_v29 }
  0x98   : > { %v1917_v48 = vpop.f32.mrf.mxu0 }
  0x99   : > { %v2184_v50 = vpop.f32.mrf.mxu1 }
  0x9a   : > { %v2185_v53 = vadd.f32 %v2184_v50, %v1917_v48  ;;  %v2405_v50 = vor.u32 %v2403_v40, %v2401_v10 }
  0x9b   : > { %12475 = vmatmul.msk.bf16.gmra.mxu0 %vm1853_vm1, %v15144_v47  ;;  %12621 = vmatmul.msk.bf16.vlgmr.msra.gmra.mxu3 %vm1853_vm1, %v2395_v49  ;;  %v14406_v49 = vld [vmem:[%s20440_s3 + $0x28] sm:$0xff] }
  0x9c   : > { %12573 = vmatmul.msk.bf16.gmra.mxu1 %vm1853_vm1, %v15112_v17  ;;  %2850 = vmatpush.bf16.msrb.mxu3 %v14406_v49 }
  0x9d   : > { %12615 = vmatmul.msk.bf16.gmra.mxu2 %vm1853_vm1, %v2353_v52  ;;  %v2409_v52 = vrot.slane %v2407_v41, 1  ;;  %v15234_v41 = vld [vmem:[%s14966_s18 + $0x58] sm:$0xff] }
  0x9e   : > { %v15157_v56 = vpop.f32.mrf.mxu3 }
  0x9f   : > { %v2410_v2 = vsel %vm2287_vm0, %v2405_v50, %v2409_v52 }
  0xa0   : > { %v2501_v57 = vpop.f32.mrf.mxu2  ;;  %v1919_v60 = vpop.f32.mrf.mxu0  ;;  %2851 = vmatpush.bf16.msrb.mxu3 %v14405_v63 }
  0xa1   : > { %v15159_v58 = vadd.f32 %v2501_v57, %v2185_v53  ;;  %v2186_v0 = vpop.f32.mrf.mxu1  ;;  %v2363_v53 = vor.u32 %v2361_v44, %v2359_v13  ;;  %v2366_v57 = vrot.slane %v2364_v46, 1 }
  0xa2   : > { %v2187_v5 = vadd.f32 %v2186_v0, %v1919_v60 }
  0xa3   : > { %v2367_v6 = vsel %vm2287_vm0, %v2363_v53, %v2366_v57  ;;  %v14438_v53 = vld [vmem:[%s20439_s2 + $0x78] sm:$0xff] }
  0xa4   : > { %3754 = vmatpush.bf16.msrb.mxu2 %v14438_v53 }
  0xa6   : > { %v15174_v16 = vpop.f32.mrf.mxu3 }
  0xa8   : > { %v2503_v19 = vpop.f32.mrf.mxu2  ;;  %v1922_v22 = vpop.f32.mrf.mxu0 }
  0xa9   : > { %v15179_v21 = vadd.f32 %v2503_v19, %v2187_v5  ;;  %v2189_v26 = vpop.f32.mrf.mxu1 }
  0xaa   : > { %v2190_v29 = vadd.f32 %v2189_v26, %v1922_v22  ;;  %v2368_v22 = vshrl.u32 %v15190_v31, 16 }
  0xab   : > { %12476 = vmatmul.msk.bf16.gmra.mxu0 %vm1853_vm1, %v15177_v20  ;;  %12622 = vmatmul.msk.bf16.gmra.mxu3 %vm1853_vm1, %v2402_v24  ;;  %v2371_v24 = vshll.u32 %v15222_v4, 16 }
  0xac   : > { %12574 = vmatmul.msk.bf16.gmra.mxu1 %vm1853_vm1, %v15132_v33 }
  0xad   : > { %12616 = vmatmul.msk.bf16.gmra.mxu2 %vm1853_vm1, %v2360_v28  ;;  %v2411_v28 = vshrl.u32 %v15115_v18, 16  ;;  %v14418_v18 = vld [vmem:[%s14947_s28 + $0x10] sm:$0xff] }
  0xae   : > { %v15192_v35 = vpop.f32.mrf.mxu3 }
  0xb0   : > { %v2506_v36 = vpop.f32.mrf.mxu2  ;;  %v1924_v39 = vpop.f32.mrf.mxu0 }
  0xb1   : > { %v15194_v38 = vadd.f32 %v2506_v36, %v2190_v29  ;;  %v2191_v43 = vpop.f32.mrf.mxu1  ;;  %v2370_v29 = vor.u32 %v2368_v22, %v2366_v57  ;;  %v2373_v36 = vrot.slane %v2371_v24, 1  ;;  %v2642_v57 = vshll.u32 %v14983_v23, 16 }
  0xb2   : > { %v2192_v48 = vadd.f32 %v2191_v43, %v1924_v39  ;;  %v2413_v43 = vor.u32 %v2411_v28, %v2409_v52  ;;  %v15250_v52 = vld [vmem:[%s14947_s28 + $0x68] sm:$0xff] }
  0xb3   : > { %v2374_v49 = vsel %vm2287_vm0, %v2370_v29, %v2373_v36  ;;  %20573 = vst [vmem:[#allocation7_spill] sm:$0xff] %v15250_v52  ;;  %v2378_v22 = vshll.u32 %v15250_v52, 16 }
  0xb6   : > { %v15203_v60 = vpop.f32.mrf.mxu3 }
  0xb8   : > { %v2508_v15 = vpop.f32.mrf.mxu2  ;;  %v1927_v1 = vpop.f32.mrf.mxu0 }
  0xb9   : > { %v15211_v0 = vadd.f32 %v2508_v15, %v2192_v48  ;;  %v2194_v5 = vpop.f32.mrf.mxu1 }
  0xba   : > { %v2195_v7 = vadd.f32 %v2194_v5, %v1927_v1  ;;  %v14437_v1 = vld [vmem:[%s20439_s2 + $0x70] sm:$0xff]  ;;  %v2644_v5 = vrot.slane %v2642_v57, 1 }
  0xbb   : > { %12477 = vmatmul.msk.bf16.gmra.mxu0 %vm1853_vm1, %v15206_v61  ;;  %12623 = vmatmul.msk.bf16.gmra.mxu3 %vm1853_vm1, %v2410_v2  ;;  %v2640_v2 = vshrl.u32 %v14983_v23, 16  ;;  %v14436_v23 = vld [vmem:[%s20439_s2 + $0x68] sm:$0xff] }
  0xbc   : > { %12575 = vmatmul.msk.bf16.gmra.mxu1 %vm1853_vm1, %v15155_v55  ;;  %3755 = vmatpush.bf16.msrb.mxu2 %v14437_v1 }
  0xbd   : > { %12617 = vmatmul.msk.bf16.gmra.mxu2 %vm1853_vm1, %v2367_v6  ;;  %v2645_v28 = vor.u32 %v2644_v5, %v2640_v2  ;;  %v14481_v5 = vld [vmem:[%s20439_s2 + $0x98] sm:$0xff] }
  0xbe   : > { %v15224_v9 = vpop.f32.mrf.mxu3  ;;  %4656 = vmatpush.bf16.msra.mxu0 %v14481_v5 }
  0xc0   : > { %v2511_v10 = vpop.f32.mrf.mxu2  ;;  %v1929_v13 = vpop.f32.mrf.mxu0  ;;  %3756 = vmatpush.bf16.msrb.mxu2 %v14436_v23  ;;  %v2653_v23 = vshll.u32 %v15025_v42, 16 }
  0xc1   : > { %v15226_v11 = vadd.f32 %v2511_v10, %v2195_v7  ;;  %v2196_v19 = vpop.f32.mrf.mxu1  ;;  %v2646_v10 = vshll.u32 %v14997_v30, 16 }
  0xc2   : > { %v2197_v26 = vadd.f32 %v2196_v19, %v1929_v13  ;;  %v2375_v19 = vshrl.u32 %v15222_v4, 16 }
  0xc3   : > { %v2648_v29 = vrot.slane %v2646_v10, 1 }
  0xc6   : > { %v15231_v39 = vpop.f32.mrf.mxu3 }
  0xc8   : > { %v2513_v40 = vpop.f32.mrf.mxu2  ;;  %v1932_v46 = vpop.f32.mrf.mxu0 }
  0xc9   : > { %v15236_v44 = vadd.f32 %v2513_v40, %v2197_v26  ;;  %v2199_v48 = vpop.f32.mrf.mxu1  ;;  %v14460_v26 = vld [vmem:[%s20440_s3 + $0x78] sm:$0xff]  ;;  %v2377_v40 = vor.u32 %v2375_v19, %v2373_v36 }
  0xca   : > { %v2200_v50 = vadd.f32 %v2199_v48, %v1932_v46  ;;  %4137 = vmatpush.bf16.msra.mxu3 %v14460_v26  ;;  %v2650_v26 = vshrl.u32 %v14997_v30, 16 }
  0xcb   : > { %12478 = vmatmul.msk.bf16.gmra.mxu0 %vm1853_vm1, %v15234_v41  ;;  %12624 = vmatmul.msk.bf16.gmra.mxu3 %vm1853_vm1, %v2413_v43  ;;  %v2380_v43 = vrot.slane %v2378_v22, 1 }
  0xcc   : > { %12576 = vmatmul.msk.bf16.gmra.mxu1 %vm1853_vm1, %v15190_v31 }
  0xcd   : > { %12618 = vmatmul.msk.bf16.gmra.mxu2 %vm1853_vm1, %v2374_v49  ;;  %v15272_v49 = vld [vmem:[%s14966_s18 + $0x60] sm:$0xff]  ;;  %v2381_v2 = vsel %vm2287_vm0, %v2377_v40, %v2380_v43  ;;  %v2382_v40 = vshrl.u32 %v15250_v52, 16 }
  0xce   : > { %v15252_v15 = vpop.f32.mrf.mxu3 }
  0xd0   : > { %v2516_v63 = vpop.f32.mrf.mxu2  ;;  %v1934_v7 = vpop.f32.mrf.mxu0 }
  0xd1   : > { %v15258_v6 = vadd.f32 %v2516_v63, %v2200_v50  ;;  %v2201_v13 = vpop.f32.mrf.mxu1  ;;  %v14435_v50 = vld [vmem:[%s20439_s2 + $0x60] sm:$0xff]  ;;  %v2649_v63 = vsel %vm2287_vm0, %v2645_v28, %v2648_v29 }
  0xd2   : > { %v2202_v24 = vadd.f32 %v2201_v13, %v1934_v7  ;;  %3757 = vmatpush.bf16.msrb.mxu2 %v14435_v50  ;;  %v14502_v7 = vld [vmem:[%s20440_s3 + $0x98] sm:$0xff]  ;;  %v2652_v50 = vor.u32 %v2650_v26, %v2648_v29  ;;  %v14724_v26 = vld [vmem:[%s14966_s18] sm:$0xf0] }
  0xd3   : > { %5174 = vmatpush.bf16.msra.mxu1 %v14502_v7 }
  0xd6   : > { %v15269_v46 = vpop.f32.mrf.mxu3 }
  0xd8   : > { %v2518_v48 = vpop.f32.mrf.mxu2  ;;  %v1937_v57 = vpop.f32.mrf.mxu0 }
  0xd9   : > { %v15277_v53 = vadd.f32 %v2518_v48, %v2202_v24  ;;  %v2204_v1 = vpop.f32.mrf.mxu1 }
  0xda   : > { %v2205_v36 = vadd.f32 %v2204_v1, %v1937_v57  ;;  %v2655_v57 = vrot.slane %v2653_v23, 1 }
  0xdb   : > { %20574 = vst [vmem:[#allocation8_spill] sm:$0xff] %v15277_v53  ;;  %12479 = vmatmul.msk.bf16.gmra.mxu0 %vm1853_vm1, %v15272_v49  ;;  %12649 = vmatmul.msk.bf16.vlgmr.msrb.gmra.mxu3 %vm1853_vm1, %v2649_v63  ;;  %v2384_v63 = vor.u32 %v2382_v40, %v2380_v43  ;;  %v12761_v40 = vld [vmem:[%s14947_s28 + $0x8] sm:$0xe]  ;;  %v3255_v53 = vrot.slane %v14997_v30, 1 }
  0xdc   : > { %12577 = vmatmul.msk.bf16.gmra.mxu1 %vm1853_vm1, %v15222_v4  ;;  %v2656_v29 = vsel %vm2287_vm0, %v2652_v50, %v2655_v57 }
  0xdd   : > { %12619 = vmatmul.msk.bf16.gmra.mxu2 %vm1853_vm1, %v2381_v2  ;;  %v2388_v43 = vsel %vm2287_vm0, %v2384_v63, %v15134_v34  ;;  %v2657_v63 = vshrl.u32 %v15025_v42, 16 }
  0xde   : > { %v2254_v10 = vpop.f32.mrf.mxu3 }
  0xdf   : > { %v15294_v13 = vadd.f32 %v2254_v10, %v15157_v56 }
  0xe0   : > { %v2521_v19 = vpop.f32.mrf.mxu2  ;;  %v1939_v24 = vpop.f32.mrf.mxu0 }
  0xe1   : > { %v15296_v22 = vadd.f32 %v2521_v19, %v2205_v36  ;;  %v2206_v28 = vpop.f32.mrf.mxu1  ;;  %v15305_v36 = vld [vmem:[%s14966_s18 + $0x68] sm:$0xff] }
  0xe2   : > { %v2207_v48 = vadd.f32 %v2206_v28, %v1939_v24  ;;  %v14722_v24 = vld [vmem:[%s14947_s28] sm:$0xe] }
  0xe3   : > { %20575 = vst [vmem:[#allocation9_spill] sm:$0xff] %v15296_v22  ;;  %v14725_v28 = vld [vmem:[%s14966_s18] sm:$0xe] }
  0xe6   : > { %v2256_v1 = vpop.f32.mrf.mxu3 }
  0xe7   : > { %v15302_v56 = vadd.f32 %v2256_v1, %v15174_v16  ;;  %v14721_v16 = vld [vmem:[%s14947_s28] sm:$0xf0] }
  0xe8   : > { %v2523_v2 = vpop.f32.mrf.mxu2  ;;  %v1942_v7 = vpop.f32.mrf.mxu0 }
  0xe9   : > { %v15307_v5 = vadd.f32 %v2523_v2, %v2207_v48  ;;  %v2209_v10 = vpop.f32.mrf.mxu1  ;;  %v14417_v48 = vld [vmem:[%s14947_s28 + $0x8] sm:$0xf0] }
  0xea   : > { %v2210_v19 = vadd.f32 %v2209_v10, %v1942_v7  ;;  %v2660_v7 = vshll.u32 %v15042_v51, 16  ;;  %v12762_v32 = vor.u32 %v14417_v48, %v12761_v40  ;;  %v2664_v48 = vshrl.u32 %v15042_v51, 16 }
  0xeb   : > { %20576 = vst [vmem:[#allocation10_spill] sm:$0xff] %v15307_v5  ;;  %12480 = vmatmul.msk.bf16.gmra.mxu0 %vm1853_vm1, %v15305_v36  ;;  %12650 = vmatmul.msk.bf16.gmra.mxu3 %vm1853_vm1, %v2656_v29  ;;  %v14723_v29 = vor.u32 %v14722_v24, %v14721_v16  ;;  %v2659_v5 = vor.u32 %v2657_v63, %v2655_v57  ;;  %v2667_v63 = vshll.u32 %v15057_v59, 16 }
  0xec   : > { %12578 = vmatmul.msk.bf16.gmra.mxu1 %vm1853_vm1, %v15250_v52  ;;  %v2662_v4 = vrot.slane %v2660_v7, 1 }
  0xed   : > { %12620 = vmatmul.msk.bf16.gmra.mxu2 %vm1853_vm1, %v2388_v43  ;;  %v14726_v43 = vor.u32 %v14725_v28, %v14724_v26  ;;  %v2993_v22 = vrot.slane %v14723_v29, 1 }
  0xee   : > { %v2259_v23 = vpop.f32.mrf.mxu3  ;;  %v2663_v57 = vsel %vm2287_vm0, %v2659_v5, %v2662_v4  ;;  %v2666_v29 = vor.u32 %v2664_v48, %v2662_v4  ;;  %v14420_v48 = vld [vmem:[%s14947_s28 + $0x20] sm:$0xff] }
  0xef   : > { %v15325_v34 = vadd.f32 %v2259_v23, %v15192_v35  ;;  %v2994_v35 = vrot.slane %v14958_v12, 1  ;;  %v3254_v23 = vrot.slane %v14726_v43, 1  ;;  %v2996_v43 = vrot.slane %v14992_v25, 1 }
  0xf0   : > { %v2526_v50 = vpop.f32.mrf.mxu2  ;;  %v1944_v2 = vpop.f32.mrf.mxu0 }
  0xf1   : > { %v15328_v1 = vadd.f32 %v2526_v50, %v2210_v19  ;;  %v2211_v10 = vpop.f32.mrf.mxu1  ;;  %v3637_v19 = vrot.slane %v12762_v32, 1  ;;  %v3638_v50 = vrot.slane %v14418_v18, 1  ;;  %v2995_v28 = vsel %vm2992_vm2, %v2993_v22, %v2994_v35 }
  0xf2   : > { %v2212_v52 = vadd.f32 %v2211_v10, %v1944_v2  ;;  %v3256_v12 = vsel %vm2992_vm2, %v3254_v23, %v3255_v53  ;;  %v14419_v2 = vld [vmem:[%s14947_s28 + $0x18] sm:$0xff]  ;;  %v2669_v10 = vrot.slane %v2667_v63, 1  ;;  %v3257_v23 = vrot.slane %v15025_v42, 1 }
  0xf3   : > { %20577 = vst [vmem:[#allocation11_spill] sm:$0xff] %v15328_v1  ;;  %v3639_v30 = vsel %vm2992_vm2, %v3637_v19, %v3638_v50  ;;  %v3640_v19 = vrot.slane %v14419_v2, 1 }
  0xf4   : > { %v3258_v4 = vsel %vm2992_vm2, %v3255_v53, %v3257_v23  ;;  %v2671_v53 = vshrl.u32 %v15057_v59, 16 }
  0xf5   : > { %v3641_v25 = vsel %vm2992_vm2, %v3638_v50, %v3640_v19  ;;  %v2674_v50 = vshll.u32 %v15073_v3, 16 }
  0xf6   : > { %v2261_v1 = vpop.f32.mrf.mxu3 }
  0xf7   : > { %v15335_v31 = vadd.f32 %v2261_v1, %v15203_v60  ;;  %v2676_v2 = vrot.slane %v2674_v50, 1  ;;  %v14421_v50 = vld [vmem:[%s14947_s28 + $0x28] sm:$0xff] }
  0xf8   : > { %v2528_v16 = vpop.f32.mrf.mxu2  ;;  %v1947_v26 = vpop.f32.mrf.mxu0 }
  0xf9   : > { %v15337_v24 = vadd.f32 %v2528_v16, %v2212_v52  ;;  %v2214_v40 = vpop.f32.mrf.mxu1 }
  0xfa   : > { %v2215_v32 = vadd.f32 %v2214_v40, %v1947_v26  ;;  %v2670_v40 = vsel %vm2287_vm0, %v2666_v29, %v2669_v10  ;;  %v3259_v29 = vrot.slane %v15042_v51, 1 }
  0xfb   : > { %12651 = vmatmul.msk.bf16.gmra.mxu3 %vm1853_vm1, %v2663_v57  ;;  %12691 = vmatmul.msk.bf16.vlgmr.msrb.gmra.mxu0 %vm1853_vm1, %v2995_v28 }
  0xfc   : > { %12733 = vmatmul.msk.bf16.vlgmr.msrb.gmra.mxu1 %vm1853_vm1, %v3256_v12  ;;  %v2997_v12 = vsel %vm2992_vm2, %v2994_v35, %v2996_v43 }
  0xfd   : > { %12847 = vmatmul.msk.bf16.vlgmr.msrb.gmra.mxu2 %vm1853_vm1, %v3639_v30 }
  0xfe   : > { %v2264_v18 = vpop.f32.mrf.mxu3 }
  0xff   : > { %v15348_v60 = vadd.f32 %v2264_v18, %v15224_v9 }
 0x100   : > { %v2531_v52 = vpop.f32.mrf.mxu2  ;;  %v1949_v5 = vpop.f32.mrf.mxu0 }
 0x101   : > { %v15350_v22 = vadd.f32 %v2531_v52, %v2215_v32  ;;  %v2216_v1 = vpop.f32.mrf.mxu1 }
 0x102   : > { %v2217_v7 = vadd.f32 %v2216_v1, %v1949_v5  ;;  %v2673_v1 = vor.u32 %v2671_v53, %v2669_v10  ;;  %v3260_v10 = vsel %vm2992_vm2, %v3257_v23, %v3259_v29 }
 0x106   : > { %v2266_v9 = vpop.f32.mrf.mxu3 }
 0x107   : > { %v15358_v16 = vadd.f32 %v2266_v9, %v15231_v39  ;;  %v3642_v9 = vrot.slane %v14420_v48, 1  ;;  %v14480_v48 = vld [vmem:[%s20439_s2 + $0x90] sm:$0xff] }
 0x108   : > { %v2533_v26 = vpop.f32.mrf.mxu2  ;;  %v1952_v28 = vpop.f32.mrf.mxu0  ;;  %4657 = vmatpush.bf16.msra.mxu0 %v14480_v48 }
 0x109   : > { %v15360_v57 = vadd.f32 %v2533_v26, %v2217_v7  ;;  %v2219_v30 = vpop.f32.mrf.mxu1  ;;  %v2998_v7 = vrot.slane %v15019_v37, 1  ;;  %v3643_v37 = vsel %vm2992_vm2, %v3640_v19, %v3642_v9 }
 0x10a   : > { %v2220_v42 = vadd.f32 %v2219_v30, %v1952_v28  ;;  %v2677_v30 = vsel %vm2287_vm0, %v2673_v1, %v2676_v2 }
 0x10b   : > { %12652 = vmatmul.msk.bf16.gmra.mxu3 %vm1853_vm1, %v2670_v40  ;;  %12692 = vmatmul.msk.bf16.gmra.mxu0 %vm1853_vm1, %v2997_v12 }
 0x10c   : > { %12734 = vmatmul.msk.bf16.gmra.mxu1 %vm1853_vm1, %v3258_v4  ;;  %v2999_v4 = vsel %vm2992_vm2, %v2996_v43, %v2998_v7 }
 0x10d   : > { %12848 = vmatmul.msk.bf16.gmra.mxu2 %vm1853_vm1, %v3641_v25 }
 0x10e   : > { %v2269_v39 = vpop.f32.mrf.mxu3 }
 0x10f   : > { %v15371_v32 = vadd.f32 %v2269_v39, %v15252_v15 }
 0x110   : > { %v2536_v35 = vpop.f32.mrf.mxu2  ;;  %v1954_v52 = vpop.f32.mrf.mxu0 }
 0x111   : > { %v15373_v18 = vadd.f32 %v2536_v35, %v2220_v42  ;;  %v2221_v5 = vpop.f32.mrf.mxu1  ;;  %v2678_v35 = vshrl.u32 %v15073_v3, 16 }
 0x112   : > { %v2222_v63 = vadd.f32 %v2221_v5, %v1954_v52  ;;  %v2681_v52 = vshll.u32 %v15098_v14, 16 }
 0x114   : > { %v2683_v1 = vrot.slane %v2681_v52, 1 }
 0x116   : > { %v2271_v15 = vpop.f32.mrf.mxu3 }
 0x117   : > { %v15381_v26 = vadd.f32 %v2271_v15, %v15269_v46  ;;  %v14459_v46 = vld [vmem:[%s20440_s3 + $0x70] sm:$0xff]  ;;  %v3000_v15 = vrot.slane %v15036_v45, 1 }
 0x118   : > { %v2538_v28 = vpop.f32.mrf.mxu2  ;;  %v1957_v12 = vpop.f32.mrf.mxu0  ;;  %4138 = vmatpush.bf16.msra.mxu3 %v14459_v46 }
 0x119   : > { %v15383_v40 = vadd.f32 %v2538_v28, %v2222_v63  ;;  %v2224_v25 = vpop.f32.mrf.mxu1  ;;  %v14501_v63 = vld [vmem:[%s20440_s3 + $0x90] sm:$0xff]  ;;  %v3261_v28 = vrot.slane %v15057_v59, 1 }
 0x11a   : > { %v2225_v51 = vadd.f32 %v2224_v25, %v1957_v12  ;;  %5175 = vmatpush.bf16.msra.mxu1 %v14501_v63  ;;  %v3644_v12 = vrot.slane %v14421_v50, 1  ;;  %v3002_v63 = vrot.slane %v15052_v54, 1 }
 0x11b   : > { %12653 = vmatmul.msk.bf16.gmra.mxu3 %vm1853_vm1, %v2677_v30  ;;  %12693 = vmatmul.msk.bf16.gmra.mxu0 %vm1853_vm1, %v2999_v4  ;;  %v3262_v45 = vsel %vm2992_vm2, %v3259_v29, %v3261_v28  ;;  %v2685_v29 = vshrl.u32 %v15098_v14, 16 }
 0x11c   : > { %12735 = vmatmul.msk.bf16.gmra.mxu1 %vm1853_vm1, %v3260_v10 }
 0x11d   : > { %12849 = vmatmul.msk.bf16.gmra.mxu2 %vm1853_vm1, %v3643_v37 }
 0x11e   : > { %v2571_v43 = vpop.f32.mrf.mxu3 }
 0x11f   : > { %v15397_v23 = vadd.f32 %v2571_v43, %v15294_v13  ;;  %v2680_v13 = vor.u32 %v2678_v35, %v2676_v2  ;;  %v3001_v2 = vsel %vm2992_vm2, %v2998_v7, %v3000_v15  ;;  %v3645_v43 = vsel %vm2992_vm2, %v3642_v9, %v3644_v12 }
 0x120   : > { %v2541_v42 = vpop.f32.mrf.mxu2  ;;  %v1959_v39 = vpop.f32.mrf.mxu0  ;;  %v2688_v9 = vshll.u32 %v15122_v27, 16 }
 0x121   : > { %v15399_v19 = vadd.f32 %v2541_v42, %v2225_v51  ;;  %v2226_v53 = vpop.f32.mrf.mxu1  ;;  %v2684_v51 = vsel %vm2287_vm0, %v2680_v13, %v2683_v1  ;;  %v3263_v13 = vrot.slane %v15073_v3, 1 }
 0x122   : > { %v2227_v5 = vadd.f32 %v2226_v53, %v1959_v39  ;;  %v14422_v53 = vld [vmem:[%s14947_s28 + $0x30] sm:$0xff]  ;;  %v2690_v48 = vrot.slane %v2688_v9, 1 }
 0x126   : > { %v2573_v30 = vpop.f32.mrf.mxu3 }
 0x127   : > { %v15413_v25 = vadd.f32 %v2573_v30, %v15302_v56  ;;  %v3646_v30 = vrot.slane %v14422_v53, 1 }
 0x128   : > { %v2543_v4 = vpop.f32.mrf.mxu2  ;;  %v1962_v37 = vpop.f32.mrf.mxu0 }
 0x129   : > { %v15415_v10 = vadd.f32 %v2543_v4, %v2227_v5  ;;  %v2229_v46 = vpop.f32.mrf.mxu1  ;;  %v2687_v5 = vor.u32 %v2685_v29, %v2683_v1  ;;  %v3264_v1 = vsel %vm2992_vm2, %v3261_v28, %v3263_v13  ;;  %v3647_v54 = vsel %vm2992_vm2, %v3644_v12, %v3646_v30  ;;  %v14423_v29 = vld [vmem:[%s14947_s28 + $0x38] sm:$0xff] }
 0x12a   : > { %v2230_v59 = vadd.f32 %v2229_v46, %v1962_v37  ;;  %v2692_v28 = vshrl.u32 %v15122_v27, 16  ;;  %v2695_v12 = vshll.u32 %v15144_v47, 16 }
 0x12b   : > { %12654 = vmatmul.msk.bf16.gmra.mxu3 %vm1853_vm1, %v2684_v51  ;;  %12694 = vmatmul.msk.bf16.gmra.mxu0 %vm1853_vm1, %v3001_v2  ;;  %v2691_v46 = vsel %vm2287_vm0, %v2687_v5, %v2690_v48  ;;  %v3265_v5 = vrot.slane %v15098_v14, 1 }
 0x12c   : > { %12736 = vmatmul.msk.bf16.gmra.mxu1 %vm1853_vm1, %v3262_v45  ;;  %v3003_v45 = vsel %vm2992_vm2, %v3000_v15, %v3002_v63  ;;  %v2697_v53 = vrot.slane %v2695_v12, 1 }
 0x12d   : > { %12850 = vmatmul.msk.bf16.gmra.mxu2 %vm1853_vm1, %v3645_v43 }
 0x12e   : > { %v2576_v56 = vpop.f32.mrf.mxu3 }
 0x12f   : > { %v15426_v39 = vadd.f32 %v2576_v56, %v15325_v34 }
 0x130   : > { %v2546_v42 = vpop.f32.mrf.mxu2  ;;  %v1964_v35 = vpop.f32.mrf.mxu0 }
 0x131   : > { %v15428_v7 = vadd.f32 %v2546_v42, %v2230_v59  ;;  %v2231_v52 = vpop.f32.mrf.mxu1 }
 0x132   : > { %v2232_v50 = vadd.f32 %v2231_v52, %v1964_v35  ;;  %v2694_v52 = vor.u32 %v2692_v28, %v2690_v48  ;;  %v3266_v48 = vsel %vm2992_vm2, %v3263_v13, %v3265_v5  ;;  %v2699_v13 = vshrl.u32 %v15144_v47, 16  ;;  %v14424_v28 = vld [vmem:[%s14947_s28 + $0x40] sm:$0xff] }
 0x136   : > { %v2578_v4 = vpop.f32.mrf.mxu3 }
 0x137   : > { %v15436_v37 = vadd.f32 %v2578_v4, %v15335_v31  ;;  %v3648_v4 = vrot.slane %v14423_v29, 1 }
 0x138   : > { %v2548_v34 = vpop.f32.mrf.mxu2  ;;  %v1967_v2 = vpop.f32.mrf.mxu0 }
 0x139   : > { %v15438_v51 = vadd.f32 %v2548_v34, %v2232_v50  ;;  %v2234_v43 = vpop.f32.mrf.mxu1  ;;  %v3004_v50 = vrot.slane %v15068_v62, 1  ;;  %v3649_v62 = vsel %vm2992_vm2, %v3646_v30, %v3648_v4  ;;  %v2702_v30 = vshll.u32 %v15177_v20, 16 }
 0x13a   : > { %v2235_v3 = vadd.f32 %v2234_v43, %v1967_v2  ;;  %v2698_v43 = vsel %vm2287_vm0, %v2694_v52, %v2697_v53  ;;  %v3267_v52 = vrot.slane %v15122_v27, 1 }
 0x13b   : > { %12655 = vmatmul.msk.bf16.gmra.mxu3 %vm1853_vm1, %v2691_v46  ;;  %12695 = vmatmul.msk.bf16.gmra.mxu0 %vm1853_vm1, %v3003_v45  ;;  %v2704_v29 = vrot.slane %v2702_v30, 1 }
 0x13c   : > { %12737 = vmatmul.msk.bf16.gmra.mxu1 %vm1853_vm1, %v3264_v1  ;;  %v3005_v1 = vsel %vm2992_vm2, %v3002_v63, %v3004_v50 }
 0x13d   : > { %12851 = vmatmul.msk.bf16.gmra.mxu2 %vm1853_vm1, %v3647_v54 }
 0x13e   : > { %v2581_v31 = vpop.f32.mrf.mxu3 }
 0x13f   : > { %v15449_v56 = vadd.f32 %v2581_v31, %v15348_v60 }
 0x140   : > { %v2551_v59 = vpop.f32.mrf.mxu2  ;;  %v1969_v42 = vpop.f32.mrf.mxu0 }
 0x141   : > { %v15451_v15 = vadd.f32 %v2551_v59, %v2235_v3  ;;  %v2236_v35 = vpop.f32.mrf.mxu1 }
 0x142   : > { %v2237_v9 = vadd.f32 %v2236_v35, %v1969_v42  ;;  %v2701_v35 = vor.u32 %v2699_v13, %v2697_v53  ;;  %v3268_v53 = vsel %vm2992_vm2, %v3265_v5, %v3267_v52  ;;  %v2706_v5 = vshrl.u32 %v15177_v20, 16  ;;  %v14425_v13 = vld [vmem:[%s14947_s28 + $0x48] sm:$0xff] }
 0x146   : > { %v2583_v34 = vpop.f32.mrf.mxu3 }
 0x147   : > { %v15459_v2 = vadd.f32 %v2583_v34, %v15358_v16  ;;  %v3650_v34 = vrot.slane %v14424_v28, 1  ;;  %v2708_v28 = vor.u32 %v2706_v5, %v2704_v29  ;;  %v2713_v5 = vshrl.u32 %v15206_v61, 16 }
 0x148   : > { %v2553_v60 = vpop.f32.mrf.mxu2  ;;  %v1972_v45 = vpop.f32.mrf.mxu0 }
 0x149   : > { %v15461_v46 = vadd.f32 %v2553_v60, %v2237_v9  ;;  %v2239_v54 = vpop.f32.mrf.mxu1  ;;  %v3006_v9 = vrot.slane %v15093_v8, 1  ;;  %v3651_v8 = vsel %vm2992_vm2, %v3648_v4, %v3650_v34  ;;  %v2709_v4 = vshll.u32 %v15206_v61, 16 }
 0x14a   : > { %v2240_v14 = vadd.f32 %v2239_v54, %v1972_v45  ;;  %v2705_v54 = vsel %vm2287_vm0, %v2701_v35, %v2704_v29  ;;  %v3008_v35 = vrot.slane %v15112_v17, 1 }
 0x14b   : > { %12656 = vmatmul.msk.bf16.gmra.mxu3 %vm1853_vm1, %v2698_v43  ;;  %12696 = vmatmul.msk.bf16.gmra.mxu0 %vm1853_vm1, %v3005_v1 }
 0x14c   : > { %12738 = vmatmul.msk.bf16.gmra.mxu1 %vm1853_vm1, %v3266_v48  ;;  %v3007_v48 = vsel %vm2992_vm2, %v3004_v50, %v3006_v9 }
 0x14d   : > { %12852 = vmatmul.msk.bf16.gmra.mxu2 %vm1853_vm1, %v3649_v62 }
 0x14e   : > { %v2586_v16 = vpop.f32.mrf.mxu3 }
 0x14f   : > { %v15472_v31 = vadd.f32 %v2586_v16, %v15371_v32 }
 0x150   : > { %v2556_v3 = vpop.f32.mrf.mxu2  ;;  %v1974_v59 = vpop.f32.mrf.mxu0 }
 0x151   : > { %v15474_v63 = vadd.f32 %v2556_v3, %v2240_v14  ;;  %v2241_v42 = vpop.f32.mrf.mxu1 }
 0x152   : > { %v2242_v12 = vadd.f32 %v2241_v42, %v1974_v59  ;;  %v14458_v42 = vld [vmem:[%s20440_s3 + $0x68] sm:$0xff] }
 0x153   : > { %4139 = vmatpush.bf16.msra.mxu3 %v14458_v42 }
 0x156   : > { %v2588_v60 = vpop.f32.mrf.mxu3 }
 0x157   : > { %v15482_v45 = vadd.f32 %v2588_v60, %v15381_v26  ;;  %v3652_v60 = vrot.slane %v14425_v13, 1  ;;  %v14426_v13 = vld [vmem:[%s14947_s28 + $0x50] sm:$0xff] }
 0x158   : > { %v2558_v32 = vpop.f32.mrf.mxu2  ;;  %v1977_v1 = vpop.f32.mrf.mxu0 }
 0x159   : > { %v15484_v43 = vadd.f32 %v2558_v32, %v2242_v12  ;;  %v2244_v62 = vpop.f32.mrf.mxu1  ;;  %v2711_v12 = vrot.slane %v2709_v4, 1  ;;  %v3653_v17 = vsel %vm2992_vm2, %v3650_v34, %v3652_v60  ;;  %v2716_v4 = vshll.u32 %v15234_v41, 16 }
 0x15a   : > { %v2245_v27 = vadd.f32 %v2244_v62, %v1977_v1 }
 0x15b   : > { %12657 = vmatmul.msk.bf16.gmra.mxu3 %vm1853_vm1, %v2705_v54  ;;  %12697 = vmatmul.msk.bf16.gmra.mxu0 %vm1853_vm1, %v3007_v48  ;;  %v2715_v42 = vor.u32 %v2713_v5, %v2711_v12 }
 0x15c   : > { %12739 = vmatmul.msk.bf16.gmra.mxu1 %vm1853_vm1, %v3268_v53  ;;  %v2712_v53 = vsel %vm2287_vm0, %v2708_v28, %v2711_v12  ;;  %v2718_v28 = vrot.slane %v2716_v4, 1  ;;  %v14427_v4 = vld [vmem:[%s14947_s28 + $0x58] sm:$0xff] }
 0x15d   : > { %12853 = vmatmul.msk.bf16.gmra.mxu2 %vm1853_vm1, %v3651_v8  ;;  %v3009_v8 = vsel %vm2992_vm2, %v3006_v9, %v3008_v35 }
 0x15e   : > { %v2853_v26 = vpop.f32.mrf.mxu3 }
 0x15f   : > { %v2943_v16 = vadd.f32 %v2853_v26, %v15159_v58  ;;  %v3269_v58 = vrot.slane %v15144_v47, 1  ;;  %v14479_v47 = vld [vmem:[%s20439_s2 + $0x88] sm:$0xff] }
 0x160   : > { %v2561_v14 = vpop.f32.mrf.mxu2  ;;  %v1979_v3 = vpop.f32.mrf.mxu0  ;;  %4658 = vmatpush.bf16.msra.mxu0 %v14479_v47 }
 0x161   : > { %v15495_v50 = vadd.f32 %v2561_v14, %v2245_v27  ;;  %v2246_v59 = vpop.f32.mrf.mxu1  ;;  %v3270_v29 = vsel %vm2992_vm2, %v3267_v52, %v3269_v58 }
 0x162   : > { %v2247_v30 = vadd.f32 %v2246_v59, %v1979_v3 }
 0x166   : > { %v2855_v32 = vpop.f32.mrf.mxu3 }
 0x167   : > { %v2944_v54 = vadd.f32 %v2855_v32, %v15179_v21  ;;  %v14500_v21 = vld [vmem:[%s20440_s3 + $0x88] sm:$0xff]  ;;  %v3010_v32 = vrot.slane %v15132_v33, 1 }
 0x168   : > { %v2563_v1 = vpop.f32.mrf.mxu2  ;;  %v1982_v62 = vpop.f32.mrf.mxu0  ;;  %5176 = vmatpush.bf16.msra.mxu1 %v14500_v21 }
 0x169   : > { %v15506_v48 = vadd.f32 %v2563_v1, %v2247_v30  ;;  %v2249_v27 = vpop.f32.mrf.mxu1  ;;  %v3271_v1 = vrot.slane %v15177_v20, 1 }
 0x16a   : > { %v2250_v26 = vadd.f32 %v2249_v27, %v1982_v62  ;;  %v3654_v62 = vrot.slane %v14426_v13, 1 }
 0x16b   : > { %12658 = vmatmul.msk.bf16.gmra.mxu3 %vm1853_vm1, %v2712_v53  ;;  %12698 = vmatmul.msk.bf16.gmra.mxu0 %vm1853_vm1, %v3009_v8  ;;  %v3272_v12 = vsel %vm2992_vm2, %v3269_v58, %v3271_v1  ;;  %v2720_v58 = vshrl.u32 %v15234_v41, 16 }
 0x16c   : > { %12740 = vmatmul.msk.bf16.gmra.mxu1 %vm1853_vm1, %v3270_v29  ;;  %v3655_v33 = vsel %vm2992_vm2, %v3652_v60, %v3654_v62  ;;  %v2723_v60 = vshll.u32 %v15272_v49, 16 }
 0x16d   : > { %12854 = vmatmul.msk.bf16.gmra.mxu2 %vm1853_vm1, %v3653_v17  ;;  %v2719_v17 = vsel %vm2287_vm0, %v2715_v42, %v2718_v28  ;;  %v2722_v13 = vor.u32 %v2720_v58, %v2718_v28  ;;  %v3012_v42 = vrot.slane %v15155_v55, 1  ;;  %v14428_v58 = vld [vmem:[%s14947_s28 + $0x60] sm:$0xff] }
 0x16e   : > { %v2858_v9 = vpop.f32.mrf.mxu3 }
 0x16f   : > { %v2945_v34 = vadd.f32 %v2858_v9, %v15194_v38 }
 0x170   : > { %v2566_v52 = vpop.f32.mrf.mxu2  ;;  %v1984_v3 = vpop.f32.mrf.mxu0 }
 0x171   : > { %v15523_v14 = vadd.f32 %v2566_v52, %v2250_v26  ;;  %v2251_v59 = vpop.f32.mrf.mxu1  ;;  %v3011_v26 = vsel %vm2992_vm2, %v3008_v35, %v3010_v32 }
 0x172   : > { %v2252_v30 = vadd.f32 %v2251_v59, %v1984_v3 }
 0x176   : > { %v2860_v53 = vpop.f32.mrf.mxu3 }
 0x177   : > { %v2946_v38 = vadd.f32 %v2860_v53, %v15211_v0  ;;  %v3273_v53 = vrot.slane %v15206_v61, 1 }
 0x178   : > { %v2568_v8 = vpop.f32.mrf.mxu2  ;;  %v3115_v29 = vpop.f32.mrf.mxu0 }
 0x179   : > { %v15531_v27 = vadd.f32 %v2568_v8, %v2252_v30  ;;  %v3205_v47 = vadd.f32 %v3115_v29, %v2943_v16  ;;  %v3376_v21 = vpop.f32.mrf.mxu1  ;;  %v2725_v30 = vrot.slane %v2723_v60, 1  ;;  %v3656_v8 = vrot.slane %v14427_v4, 1  ;;  %v20578_v4 = vld [vmem:[#allocation5_spill] sm:$0xff] }
 0x17a   : > { %v3274_v28 = vsel %vm2992_vm2, %v3271_v1, %v3273_v53  ;;  %v2727_v1 = vshrl.u32 %v15272_v49, 16 }
 0x17b   : > { %v3466_v20 = vadd.f32 %v3376_v21, %v3205_v47  ;;  %12659 = vmatmul.msk.bf16.gmra.mxu3 %vm1853_vm1, %v2719_v17  ;;  %12699 = vmatmul.msk.bf16.gmra.mxu0 %vm1853_vm1, %v3011_v26  ;;  %v2726_v21 = vsel %vm2287_vm0, %v2722_v13, %v2725_v30  ;;  %v3657_v55 = vsel %vm2992_vm2, %v3654_v62, %v3656_v8  ;;  %v2730_v62 = vshll.u32 %v15305_v36, 16 }
 0x17c   : > { %12741 = vmatmul.msk.bf16.gmra.mxu1 %vm1853_vm1, %v3272_v12  ;;  %v3275_v13 = vrot.slane %v15234_v41, 1 }
 0x17d   : > { %12855 = vmatmul.msk.bf16.gmra.mxu2 %vm1853_vm1, %v3655_v33 }
 0x17e   : > { %v2863_v0 = vpop.f32.mrf.mxu3 }
 0x17f   : > { %v2947_v9 = vadd.f32 %v2863_v0, %v15226_v11 }
 0x180   : > { %v3759_v35 = vpop.f32.mrf.mxu2  ;;  %v3117_v52 = vpop.f32.mrf.mxu0 }
 0x181   : > { %v15542_v16 = vadd.f32 %v3759_v35, %v3466_v20  ;;  %v3206_v3 = vadd.f32 %v3117_v52, %v2944_v54  ;;  %v3378_v5 = vpop.f32.mrf.mxu1  ;;  %v3013_v54 = vsel %vm2992_vm2, %v3010_v32, %v3012_v42 }
 0x183   : > { %v3467_v59 = vadd.f32 %v3378_v5, %v3206_v3  ;;  %v2729_v3 = vor.u32 %v2727_v1, %v2725_v30  ;;  %v2732_v5 = vrot.slane %v2730_v62, 1  ;;  %v15586_v1 = vld [vmem:[%s14966_s18 + $0x70] sm:$0xff] }
 0x184   : > { %v2737_v62 = vshll.u32 %v15586_v1, 16 }
 0x186   : > { %v2865_v11 = vpop.f32.mrf.mxu3 }
 0x187   : > { %v2948_v29 = vadd.f32 %v2865_v11, %v15236_v44  ;;  %v3658_v11 = vrot.slane %v14428_v58, 1  ;;  %v14429_v58 = vld [vmem:[%s14947_s28 + $0x68] sm:$0xff] }
 0x188   : > { %v3761_v17 = vpop.f32.mrf.mxu2  ;;  %v3120_v47 = vpop.f32.mrf.mxu0 }
 0x189   : > { %v15550_v26 = vadd.f32 %v3761_v17, %v3467_v59  ;;  %v3207_v12 = vadd.f32 %v3120_v47, %v2945_v34  ;;  %v3381_v33 = vpop.f32.mrf.mxu1  ;;  %v3014_v59 = vrot.slane %v20578_v4, 1  ;;  %v20579_v17 = vld [vmem:[#allocation8_spill] sm:$0xff]  ;;  %v2739_v4 = vrot.slane %v2737_v62, 1 }
 0x18b   : > { %v3468_v61 = vadd.f32 %v3381_v33, %v3207_v12  ;;  %12660 = vmatmul.msk.bf16.gmra.mxu3 %vm1853_vm1, %v2726_v21  ;;  %12700 = vmatmul.msk.bf16.gmra.mxu0 %vm1853_vm1, %v3013_v54  ;;  %v2733_v33 = vsel %vm2287_vm0, %v2729_v3, %v2732_v5 }
 0x18c   : > { %12742 = vmatmul.msk.bf16.gmra.mxu1 %vm1853_vm1, %v3274_v28 }
 0x18d   : > { %12856 = vmatmul.msk.bf16.gmra.mxu2 %vm1853_vm1, %v3657_v55  ;;  %v3276_v55 = vsel %vm2992_vm2, %v3273_v53, %v3275_v13 }
 0x18e   : > { %v2868_v44 = vpop.f32.mrf.mxu3 }
 0x18f   : > { %v2949_v20 = vadd.f32 %v2868_v44, %v15258_v6 }
 0x190   : > { %v3764_v32 = vpop.f32.mrf.mxu2  ;;  %v3122_v0 = vpop.f32.mrf.mxu0 }
 0x191   : > { %v15561_v34 = vadd.f32 %v3764_v32, %v3468_v61  ;;  %v3208_v35 = vadd.f32 %v3122_v0, %v2946_v38  ;;  %v3383_v52 = vpop.f32.mrf.mxu1  ;;  %v3015_v38 = vsel %vm2992_vm2, %v3012_v42, %v3014_v59  ;;  %v3659_v61 = vsel %vm2992_vm2, %v3656_v8, %v3658_v11  ;;  %v20580_v32 = vld [vmem:[#allocation9_spill] sm:$0xff] }
 0x192   : > { %v2734_v8 = vshrl.u32 %v15305_v36, 16 }
 0x193   : > { %v3469_v60 = vadd.f32 %v3383_v52, %v3208_v35 }
 0x194   : > { %v2736_v3 = vor.u32 %v2734_v8, %v2732_v5 }
 0x196   : > { %v2870_v6 = vpop.f32.mrf.mxu3 }
 0x197   : > { %v2950_v47 = vadd.f32 %v2870_v6, %v20579_v17  ;;  %v20581_v6 = vld [vmem:[#allocation6_spill] sm:$0xff] }
 0x198   : > { %v3766_v21 = vpop.f32.mrf.mxu2  ;;  %v3125_v12 = vpop.f32.mrf.mxu0  ;;  %v3016_v17 = vrot.slane %v20581_v6, 1  ;;  %v14430_v6 = vld [vmem:[%s14947_s28 + $0x70] sm:$0xff] }
 0x199   : > { %v15569_v54 = vadd.f32 %v3766_v21, %v3469_v60  ;;  %v3209_v28 = vadd.f32 %v3125_v12, %v2947_v9  ;;  %v3386_v30 = vpop.f32.mrf.mxu1  ;;  %v3277_v21 = vrot.slane %v15272_v49, 1  ;;  %v3660_v12 = vrot.slane %v14429_v58, 1 }
 0x19b   : > { %v3470_v41 = vadd.f32 %v3386_v30, %v3209_v28  ;;  %12661 = vmatmul.msk.bf16.gmra.mxu3 %vm1853_vm1, %v2733_v33  ;;  %12701 = vmatmul.msk.bf16.gmra.mxu0 %vm1853_vm1, %v3015_v38  ;;  %v20582_v38 = vld [vmem:[#allocation10_spill] sm:$0xff]  ;;  %v3278_v5 = vsel %vm2992_vm2, %v3275_v13, %v3277_v21 }
 0x19c   : > { %12743 = vmatmul.msk.bf16.gmra.mxu1 %vm1853_vm1, %v3276_v55 }
 0x19d   : > { %12857 = vmatmul.msk.bf16.gmra.mxu2 %vm1853_vm1, %v3659_v61 }
 0x19e   : > { %v2873_v44 = vpop.f32.mrf.mxu3 }
 0x19f   : > { %v15580_v42 = vadd.f32 %v2873_v44, %v20580_v32 }
 0x1a0   : > { %v3769_v9 = vpop.f32.mrf.mxu2  ;;  %v3127_v53 = vpop.f32.mrf.mxu0 }
 0x1a1   : > { %v15582_v0 = vadd.f32 %v3769_v9, %v3470_v41  ;;  %v3210_v35 = vadd.f32 %v3127_v53, %v2948_v29  ;;  %v3388_v52 = vpop.f32.mrf.mxu1  ;;  %v2740_v41 = vsel %vm2287_vm0, %v2736_v3, %v2739_v4  ;;  %v3017_v29 = vsel %vm2992_vm2, %v3014_v59, %v3016_v17  ;;  %v20583_v53 = vld [vmem:[#allocation11_spill] sm:$0xff] }
 0x1a2   : > { %v3661_v9 = vsel %vm2992_vm2, %v3658_v11, %v3660_v12 }
 0x1a3   : > { %v3471_v60 = vadd.f32 %v3388_v52, %v3210_v35  ;;  %v2741_v35 = vshrl.u32 %v15586_v1, 16  ;;  %v15611_v52 = vld [vmem:[%s14966_s18 + $0x78] sm:$0xff] }
 0x1a4   : > { %v2744_v58 = vshll.u32 %v15611_v52, 16 }
 0x1a6   : > { %v2875_v33 = vpop.f32.mrf.mxu3 }
 0x1a7   : > { %v2952_v28 = vadd.f32 %v2875_v33, %v20582_v38  ;;  %v14478_v38 = vld [vmem:[%s20439_s2 + $0x80] sm:$0xff] }
 0x1a8   : > { %v3771_v30 = vpop.f32.mrf.mxu2  ;;  %v3130_v61 = vpop.f32.mrf.mxu0  ;;  %4659 = vmatpush.bf16.msra.mxu0 %v14478_v38 }
 0x1a9   : > { %v15593_v55 = vadd.f32 %v3771_v30, %v3471_v60  ;;  %v3211_v44 = vadd.f32 %v3130_v61, %v2949_v20  ;;  %v3391_v32 = vpop.f32.mrf.mxu1  ;;  %v14457_v20 = vld [vmem:[%s20440_s3 + $0x60] sm:$0xff]  ;;  %v2743_v61 = vor.u32 %v2741_v35, %v2739_v4 }
 0x1aa   : > { %4140 = vmatpush.bf16.msra.mxu3 %v14457_v20  ;;  %v14499_v30 = vld [vmem:[%s20440_s3 + $0x80] sm:$0xff] }
 0x1ab   : > { %v3472_v49 = vadd.f32 %v3391_v32, %v3211_v44  ;;  %12662 = vmatmul.msk.bf16.gmra.mxu3 %vm1853_vm1, %v2740_v41  ;;  %12702 = vmatmul.msk.bf16.gmra.mxu0 %vm1853_vm1, %v3017_v29  ;;  %v2746_v41 = vrot.slane %v2744_v58, 1  ;;  %v20584_v29 = vld [vmem:[#allocation7_spill] sm:$0xff]  ;;  %v3279_v32 = vrot.slane %v15305_v36, 1 }
 0x1ac   : > { %12744 = vmatmul.msk.bf16.gmra.mxu1 %vm1853_vm1, %v3278_v5  ;;  %v3018_v44 = vrot.slane %v20584_v29, 1  ;;  %v3662_v5 = vrot.slane %v14430_v6, 1 }
 0x1ad   : > { %12858 = vmatmul.msk.bf16.gmra.mxu2 %vm1853_vm1, %v3661_v9  ;;  %5177 = vmatpush.bf16.msra.mxu1 %v14499_v30  ;;  %v3280_v36 = vsel %vm2992_vm2, %v3277_v21, %v3279_v32  ;;  %v14431_v30 = vld [vmem:[%s14947_s28 + $0x78] sm:$0xff] }
 0x1ae   : > { %v2878_v59 = vpop.f32.mrf.mxu3  ;;  %v3663_v35 = vsel %vm2992_vm2, %v3660_v12, %v3662_v5  ;;  %v2748_v12 = vshrl.u32 %v15611_v52, 16 }
 0x1af   : > { %v2953_v13 = vadd.f32 %v2878_v59, %v20583_v53  ;;  %v2747_v53 = vsel %vm2287_vm0, %v2743_v61, %v2746_v41 }
 0x1b0   : > { %v3774_v8 = vpop.f32.mrf.mxu2  ;;  %v3132_v62 = vpop.f32.mrf.mxu0  ;;  %v2750_v29 = vor.u32 %v2748_v12, %v2746_v41 }
 0x1b1   : > { %v15607_v11 = vadd.f32 %v3774_v8, %v3472_v49  ;;  %v3212_v60 = vadd.f32 %v3132_v62, %v2950_v47  ;;  %v3393_v3 = vpop.f32.mrf.mxu1  ;;  %v3019_v8 = vsel %vm2992_vm2, %v3016_v17, %v3018_v44 }
 0x1b3   : > { %v3473_v33 = vadd.f32 %v3393_v3, %v3212_v60  ;;  %v15640_v3 = vld [vmem:[%s14966_s18 + $0x80] sm:$0xff] }
 0x1b4   : > { %v2751_v6 = vshll.u32 %v15640_v3, 16 }
 0x1b6   : > { %v2880_v47 = vpop.f32.mrf.mxu3 }
 0x1b7   : > { %v2954_v9 = vadd.f32 %v2880_v47, %v15337_v24  ;;  %v2753_v47 = vrot.slane %v2751_v6, 1  ;;  %v2755_v6 = vshrl.u32 %v15640_v3, 16 }
 0x1b8   : > { %v3776_v49 = vpop.f32.mrf.mxu2  ;;  %v3135_v59 = vpop.f32.mrf.mxu0 }
 0x1b9   : > { %v15624_v20 = vadd.f32 %v3776_v49, %v3473_v33  ;;  %v3213_v4 = vadd.f32 %v3135_v59, %v15580_v42  ;;  %v3396_v62 = vpop.f32.mrf.mxu1  ;;  %v14761_v49 = vld [vmem:[%s14947_s28 + $0x70] sm:$0xff] }
 0x1ba   : > { %v3020_v59 = vrot.slane %v14761_v49, 1  ;;  %v2757_v49 = vor.u32 %v2755_v6, %v2753_v47 }
 0x1bb   : > { %v3474_v58 = vadd.f32 %v3396_v62, %v3213_v4  ;;  %12663 = vmatmul.msk.bf16.gmra.mxu3 %vm1853_vm1, %v2747_v53  ;;  %12703 = vmatmul.msk.bf16.gmra.mxu0 %vm1853_vm1, %v3019_v8  ;;  %v3664_v53 = vrot.slane %v14431_v30, 1 }
 0x1bc   : > { %12745 = vmatmul.msk.bf16.gmra.mxu1 %vm1853_vm1, %v3280_v36 }
 0x1bd   : > { %12859 = vmatmul.msk.bf16.gmra.mxu2 %vm1853_vm1, %v3663_v35 }
 0x1be   : > { %v2883_v24 = vpop.f32.mrf.mxu3 }
 0x1bf   : > { %v2955_v17 = vadd.f32 %v2883_v24, %v15350_v22  ;;  %v3281_v22 = vrot.slane %v15586_v1, 1 }
 0x1c0   : > { %v3779_v42 = vpop.f32.mrf.mxu2  ;;  %v3137_v21 = vpop.f32.mrf.mxu0 }
 0x1c1   : > { %v15636_v60 = vadd.f32 %v3779_v42, %v3474_v58  ;;  %v3214_v33 = vadd.f32 %v3137_v21, %v2952_v28  ;;  %v3398_v38 = vpop.f32.mrf.mxu1  ;;  %v2754_v58 = vsel %vm2287_vm0, %v2750_v29, %v2753_v47  ;;  %v3021_v28 = vsel %vm2992_vm2, %v3018_v44, %v3020_v59 }
 0x1c2   : > { %v3282_v41 = vsel %vm2992_vm2, %v3279_v32, %v3281_v22  ;;  %v3665_v21 = vsel %vm2992_vm2, %v3662_v5, %v3664_v53  ;;  %v20585_v5 = vld [vmem:[#allocation3_spill] sm:$0xff] }
 0x1c3   : > { %v3475_v61 = vadd.f32 %v3398_v38, %v3214_v33  ;;  %v2759_v33 = vshll.u32 %v20585_v5, 16 }
 0x1c6   : > { %v2885_v8 = vpop.f32.mrf.mxu3 }
 0x1c7   : > { %v2956_v4 = vadd.f32 %v2885_v8, %v15360_v57  ;;  %v2761_v8 = vrot.slane %v2759_v33, 1 }
 0x1c8   : > { %v3781_v62 = vpop.f32.mrf.mxu2  ;;  %v3140_v35 = vpop.f32.mrf.mxu0 }
 0x1c9   : > { %v15647_v36 = vadd.f32 %v3781_v62, %v3475_v61  ;;  %v3215_v24 = vadd.f32 %v3140_v35, %v2953_v13  ;;  %v3401_v42 = vpop.f32.mrf.mxu1  ;;  %v14432_v61 = vld [vmem:[%s14947_s28 + $0x80] sm:$0xff]  ;;  %v14762_v62 = vld [vmem:[%s14947_s28 + $0x78] sm:$0xff] }
 0x1ca   : > { %v3022_v35 = vrot.slane %v14762_v62, 1  ;;  %v3285_v62 = vrot.slane %v15640_v3, 1 }
 0x1cb   : > { %v3476_v1 = vadd.f32 %v3401_v42, %v3215_v24  ;;  %12664 = vmatmul.msk.bf16.gmra.mxu3 %vm1853_vm1, %v2754_v58  ;;  %12704 = vmatmul.msk.bf16.gmra.mxu0 %vm1853_vm1, %v3021_v28  ;;  %v3283_v58 = vrot.slane %v15611_v52, 1  ;;  %v3666_v28 = vrot.slane %v14432_v61, 1  ;;  %v2763_v61 = vshrl.u32 %v20585_v5, 16 }
 0x1cc   : > { %12746 = vmatmul.msk.bf16.gmra.mxu1 %vm1853_vm1, %v3282_v41 }
 0x1cd   : > { %12860 = vmatmul.msk.bf16.gmra.mxu2 %vm1853_vm1, %v3665_v21 }
 0x1ce   : > { %v2888_v57 = vpop.f32.mrf.mxu3 }
 0x1cf   : > { %v2957_v44 = vadd.f32 %v2888_v57, %v15373_v18 }
 0x1d0   : > { %v3784_v13 = vpop.f32.mrf.mxu2  ;;  %v3142_v32 = vpop.f32.mrf.mxu0 }
 0x1d1   : > { %v15658_v12 = vadd.f32 %v3784_v13, %v3476_v1  ;;  %v3216_v38 = vadd.f32 %v3142_v32, %v2954_v9  ;;  %v3403_v30 = vpop.f32.mrf.mxu1  ;;  %v2762_v1 = vsel %vm2287_vm0, %v2757_v49, %v2761_v8  ;;  %v3023_v9 = vsel %vm2992_vm2, %v3020_v59, %v3022_v35 }
 0x1d2   : > { %v3284_v13 = vsel %vm2992_vm2, %v3281_v22, %v3283_v58  ;;  %v3667_v32 = vsel %vm2992_vm2, %v3664_v53, %v3666_v28 }
 0x1d3   : > { %v3477_v29 = vadd.f32 %v3403_v30, %v3216_v38  ;;  %v14433_v38 = vld [vmem:[%s14947_s28 + $0x88] sm:$0xff] }
 0x1d6   : > { %v2890_v18 = vpop.f32.mrf.mxu3 }
 0x1d7   : > { %v2958_v24 = vadd.f32 %v2890_v18, %v15383_v40  ;;  %v3668_v18 = vrot.slane %v14433_v38, 1 }
 0x1d8   : > { %v3786_v42 = vpop.f32.mrf.mxu2  ;;  %v3145_v21 = vpop.f32.mrf.mxu0 }
 0x1d9   : > { %v15666_v41 = vadd.f32 %v3786_v42, %v3477_v29  ;;  %v3217_v57 = vadd.f32 %v3145_v21, %v2955_v17  ;;  %v3406_v47 = vpop.f32.mrf.mxu1  ;;  %v14763_v29 = vld [vmem:[%s14947_s28 + $0x80] sm:$0xff]  ;;  %v3669_v3 = vsel %vm2992_vm2, %v3666_v28, %v3668_v18 }
 0x1da   : > { %v3024_v49 = vrot.slane %v14763_v29, 1 }
 0x1db   : > { %v3478_v52 = vadd.f32 %v3406_v47, %v3217_v57  ;;  %12665 = vmatmul.msk.bf16.gmra.mxu3 %vm1853_vm1, %v2762_v1  ;;  %12705 = vmatmul.msk.bf16.gmra.mxu0 %vm1853_vm1, %v3023_v9  ;;  %v2765_v1 = vor.u32 %v2763_v61, %v2761_v8  ;;  %v14439_v8 = vld [vmem:[%s14966_s18 + $0x8] sm:$0xf0]  ;;  %v15714_v61 = vld [vmem:[%s14947_s28 + $0x90] sm:$0xff] }
 0x1dc   : > { %12747 = vmatmul.msk.bf16.gmra.mxu1 %vm1853_vm1, %v3284_v13  ;;  %v3025_v57 = vsel %vm2992_vm2, %v3022_v35, %v3024_v49 }
 0x1dd   : > { %12861 = vmatmul.msk.bf16.gmra.mxu2 %vm1853_vm1, %v3667_v32  ;;  %v3286_v32 = vsel %vm2992_vm2, %v3283_v58, %v3285_v62 }
 0x1de   : > { %v2893_v40 = vpop.f32.mrf.mxu3 }
 0x1df   : > { %v15677_v59 = vadd.f32 %v2893_v40, %v15399_v19  ;;  %v14505_v40 = vld [vmem:[%s20439_s2 + $0xb0] sm:$0xff] }
 0x1e0   : > { %v3789_v17 = vpop.f32.mrf.mxu2  ;;  %v3147_v22 = vpop.f32.mrf.mxu0 }
 0x1e1   : > { %v15679_v6 = vadd.f32 %v3789_v17, %v3478_v52  ;;  %v3218_v33 = vadd.f32 %v3147_v22, %v2956_v4  ;;  %v3408_v53 = vpop.f32.mrf.mxu1 }
 0x1e3   : > { %v3479_v30 = vadd.f32 %v3408_v53, %v3218_v33  ;;  %v15711_v33 = vld [vmem:[%s14966_s18 + $0x10] sm:$0xff] }
 0x1e6   : > { %v2895_v42 = vpop.f32.mrf.mxu3 }
 0x1e7   : > { %v15686_v21 = vadd.f32 %v2895_v42, %v15415_v10  ;;  %v14506_v10 = vld [vmem:[%s20439_s2 + $0xb8] sm:$0xff]  ;;  %v14504_v42 = vld [vmem:[%s20439_s2 + $0xa8] sm:$0xff] }
 0x1e8   : > { %v3791_v19 = vpop.f32.mrf.mxu2  ;;  %v3150_v4 = vpop.f32.mrf.mxu0  ;;  %5438 = vmatpush.bf16.msra.mxu2 %v14506_v10 }
 0x1e9   : > { %v15688_v9 = vadd.f32 %v3791_v19, %v3479_v30  ;;  %v3219_v47 = vadd.f32 %v3150_v4, %v2957_v44  ;;  %v3411_v13 = vpop.f32.mrf.mxu1  ;;  %v12875_v44 = vld [vmem:[%s14966_s18 + $0x8] sm:$0xe]  ;;  %v20586_v19 = vld [vmem:[#allocation4_spill] sm:$0xff] }
 0x1ea   : > { %v12876_v53 = vor.u32 %v14439_v8, %v12875_v44 }
 0x1eb   : > { %v3480_v52 = vadd.f32 %v3411_v13, %v3219_v47  ;;  %12666 = vmatmul.msk.bf16.gmra.mxu3 %vm1853_vm1, %v2765_v1  ;;  %12706 = vmatmul.msk.bf16.gmra.mxu0 %vm1853_vm1, %v3025_v57  ;;  %v3026_v1 = vrot.slane %v20586_v19, 1  ;;  %v4021_v57 = vrot.slane %v15711_v33, 1  ;;  %v3670_v47 = vrot.slane %v15714_v61, 1 }
 0x1ec   : > { %12748 = vmatmul.msk.bf16.gmra.mxu1 %vm1853_vm1, %v3286_v32  ;;  %5439 = vmatpush.bf16.msra.mxu2 %v14505_v40  ;;  %v4020_v4 = vrot.slane %v12876_v53, 1 }
 0x1ed   : > { %12862 = vmatmul.msk.bf16.gmra.mxu2 %vm1853_vm1, %v3669_v3  ;;  %v3027_v8 = vsel %vm2992_vm2, %v3024_v49, %v3026_v1  ;;  %v14552_v49 = vld [vmem:[%s20440_s3 + $0xd8] sm:$0xff] }
 0x1ee   : > { %v2898_v35 = vpop.f32.mrf.mxu3  ;;  %6479 = vmatpush.bf16.msrb.mxu1 %v14552_v49 }
 0x1ef   : > { %v15703_v58 = vadd.f32 %v2898_v35, %v15428_v7  ;;  %v14510_v7 = vld [vmem:[%s20440_s3 + $0xb8] sm:$0xff]  ;;  %v4022_v35 = vsel %vm2992_vm2, %v4020_v4, %v4021_v57 }
 0x1f0   : > { %v3794_v28 = vpop.f32.mrf.mxu2  ;;  %v3152_v22 = vpop.f32.mrf.mxu0  ;;  %5701 = vmatpush.bf16.msrb.mxu3 %v14510_v7  ;;  %5440 = vmatpush.bf16.msra.mxu2 %v14504_v42  ;;  %v4268_v7 = vld [vmem:[%s14947_s28 + $0x8] sm:$0xe]  ;;  %v4269_v42 = vld [vmem:[%s14947_s28 + $0xc] sm:$0xf] }
 0x1f1   : > { %v15708_v17 = vadd.f32 %v3794_v28, %v3480_v52  ;;  %v3220_v38 = vadd.f32 %v3152_v22, %v2958_v24  ;;  %v3413_v30 = vpop.f32.mrf.mxu1  ;;  %v3287_v24 = vrot.slane %v20585_v5, 1  ;;  %v14503_v52 = vld [vmem:[%s20439_s2 + $0xa0] sm:$0xff]  ;;  %v3671_v22 = vsel %vm2992_vm2, %v3668_v18, %v3670_v47 }
 0x1f3   : > { %v3481_v29 = vadd.f32 %v3413_v30, %v3220_v38 }
 0x1f4   : > { %5441 = vmatpush.bf16.msra.mxu2 %v14503_v52 }
 0x1f6   : > { %v2900_v13 = vpop.f32.mrf.mxu3 }
 0x1f7   : > { %v15727_v32 = vadd.f32 %v2900_v13, %v15438_v51  ;;  %v3288_v51 = vsel %vm2992_vm2, %v3285_v62, %v3287_v24  ;;  %v4787_v13 = vld [vmem:[%s14966_s18 + $0x8] sm:$0xe] }
 0x1f8   : > { %v3796_v3 = vpop.f32.mrf.mxu2  ;;  %v3155_v44 = vpop.f32.mrf.mxu0 }
 0x1f9   : > { %v15732_v10 = vadd.f32 %v3796_v3, %v3481_v29  ;;  %v3221_v28 = vadd.f32 %v3155_v44, %v15677_v59  ;;  %v3416_v40 = vpop.f32.mrf.mxu1  ;;  %v14531_v59 = vld [vmem:[%s20439_s2 + $0xd8] sm:$0xff]  ;;  %v15766_v3 = vld [vmem:[%s14966_s18 + $0xc] sm:$0xf]  ;;  %v4351_v44 = vunpack.c.l.b16 %v4268_v7 }
 0x1fa   : > { %6090 = vmatpush.bf16.msrb.mxu0 %v14531_v59  ;;  %v15759_v29 = vld [vmem:[%s14966_s18 + $0x18] sm:$0xff]  ;;  %20587 = vst [vmem:[#allocation5_spill] sm:$0xff] %v15766_v3 }
 0x1fb   : > { %v3482_v33 = vadd.f32 %v3416_v40, %v3221_v28  ;;  %12707 = vmatmul.msk.bf16.gmra.mxu0 %vm1853_vm1, %v3027_v8  ;;  %12961 = vmatmul.msk.bf16.vlgmr.msra.gmra.mxu3 %vm1853_vm1, %v4022_v35  ;;  %v20453_v8 = vrot.slane %v15759_v29, 1  ;;  %v4870_v35 = vunpack.c.l.b16 %v4787_v13  ;;  %v20452_v28 = vunpack.c.l.b16 %v15766_v3 }
 0x1fc   : > { %12749 = vmatmul.msk.bf16.gmra.mxu1 %vm1853_vm1, %v3288_v51 }
 0x1fd   : > { %12863 = vmatmul.msk.bf16.gmra.mxu2 %vm1853_vm1, %v3671_v22 }
 0x1fe   : > { %v2903_v62 = vpop.f32.mrf.mxu3 }
 0x1ff   : > { %v15754_v18 = vadd.f32 %v2903_v62, %v15451_v15  ;;  %v4352_v15 = vunpack.c.l.b16 %v4269_v42  ;;  %v4024_v62 = vsel %vm2992_vm2, %v4021_v57, %v20453_v8  ;;  %v14482_v42 = vld [vmem:[%s14966_s18 + $0x10] sm:$0xff] }
 0x200   : > { %v3799_v53 = vpop.f32.mrf.mxu2  ;;  %v3157_v30 = vpop.f32.mrf.mxu0 }
 0x201   : > { %v15756_v38 = vadd.f32 %v3799_v53, %v3482_v33  ;;  %v3222_v19 = vadd.f32 %v3157_v30, %v15686_v21  ;;  %v3418_v4 = vpop.f32.mrf.mxu1  ;;  %v15774_v21 = vld [vmem:[%s14947_s28 + $0x10] sm:$0xff]  ;;  %v4388_v33 = vpack.c.b16 %v4352_v15, %v4351_v44  ;;  %v4907_v53 = vpack.c.b16 %v20452_v28, %v4870_v35 }
 0x202   : > { %v4938_v35 = vshll.u32 %v14482_v42, 16 }
 0x203   : > { %v3483_v52 = vadd.f32 %v3418_v4, %v3222_v19  ;;  %v4409_v4 = vshrl.u32 %v4388_v33, 16  ;;  %v4412_v13 = vshll.u32 %v4388_v33, 16  ;;  %v4927_v57 = vshrl.u32 %v4907_v53, 16 }
 0x204   : > { %v4930_v44 = vshll.u32 %v4907_v53, 16  ;;  %v4940_v3 = vrot.slane %v4938_v35, 2  ;;  %v20589_v35 = vrot.slane %v15759_v29, 1 }
 0x205   : > { %v4411_v5 = vrot.slane %v4409_v4, 1  ;;  %v4929_v28 = vrot.slane %v4927_v57, 1 }
 0x206   : > { %v2905_v40 = vpop.f32.mrf.mxu3  ;;  %v4932_v8 = vrot.slane %v4930_v44, 2 }
 0x207   : > { %v15771_v51 = vadd.f32 %v2905_v40, %v15461_v46  ;;  %v5305_v46 = vld [vmem:[%s14947_s28 + $0x8] sm:$0xc] }
 0x208   : > { %v3801_v22 = vpop.f32.mrf.mxu2  ;;  %v3160_v49 = vpop.f32.mrf.mxu0  ;;  %v5316_v40 = vunpack.c.l.b16 %v5305_v46 }
 0x209   : > { %v15776_v59 = vadd.f32 %v3801_v22, %v3483_v52  ;;  %v3223_v30 = vadd.f32 %v3160_v49, %v15703_v58  ;;  %v3421_v7 = vpop.f32.mrf.mxu1  ;;  %v4417_v52 = vshrl.u32 %v15774_v21, 16  ;;  %v4420_v58 = vshll.u32 %v15774_v21, 16 }
 0x20b   : > { %20588 = vst [vmem:[#allocation8_spill] sm:$0xff] %v15776_v59  ;;  %v3484_v19 = vadd.f32 %v3421_v7, %v3223_v30  ;;  %12708 = vmatmul.msk.bf16.gmra.mxu0 %vm1853_vm1, %v3026_v1  ;;  %12962 = vmatmul.msk.bf16.gmra.mxu3 %vm1853_vm1, %v4024_v62  ;;  %v4935_v1 = vshrl.u32 %v14482_v42, 16  ;;  %v4414_v62 = vrot.slane %v4412_v13, 2  ;;  %v15802_v7 = vld [vmem:[%s14966_s18 + $0x20] sm:$0xff]  ;;  %v5317_v59 = vpack.c.b16 %v4352_v15, %v5316_v40 }
 0x20c   : > { %12750 = vmatmul.msk.bf16.gmra.mxu1 %vm1853_vm1, %v3287_v24  ;;  %v4419_v24 = vrot.slane %v4417_v52, 1  ;;  %v4933_v13 = vor.u32 %v4932_v8, %v4929_v28 }
 0x20d   : > { %12864 = vmatmul.msk.bf16.gmra.mxu2 %vm1853_vm1, %v3670_v47  ;;  %v4422_v47 = vrot.slane %v4420_v58, 2  ;;  %v4937_v46 = vrot.slane %v4935_v1, 1  ;;  %v4415_v4 = vor.u32 %v4414_v62, %v4411_v5  ;;  %v5320_v58 = vrot.slane %v15774_v21, 2  ;;  %v14483_v5 = vld [vmem:[%s14966_s18 + $0x18] sm:$0xff] }
 0x20e   : > { %v2908_v22 = vpop.f32.mrf.mxu3 }
 0x20f   : > { %v15797_v33 = vadd.f32 %v2908_v22, %v15474_v63  ;;  %v4025_v22 = vrot.slane %v15802_v7, 1  ;;  %v4941_v52 = vor.u32 %v4940_v3, %v4937_v46  ;;  %v15817_v3 = vld [vmem:[%s14947_s28 + $0x18] sm:$0xff] }
 0x210   : > { %v3804_v49 = vpop.f32.mrf.mxu2  ;;  %v3162_v61 = vpop.f32.mrf.mxu0  ;;  %v4426_v29 = vshrl.u32 %v15817_v3, 16 }
 0x211   : > { %v15799_v30 = vadd.f32 %v3804_v49, %v3484_v19  ;;  %v3224_v53 = vadd.f32 %v3162_v61, %v15727_v32  ;;  %v3423_v42 = vpop.f32.mrf.mxu1  ;;  %v4423_v19 = vor.u32 %v4422_v47, %v4419_v24  ;;  %v5319_v49 = vrot.slane %v5317_v59, 2 }
 0x212   : > { %v4026_v40 = vsel %vm2992_vm2, %v20589_v35, %v4025_v22  ;;  %v4942_v59 = vsel %vm4407_vm3, %v4933_v13, %v4941_v52  ;;  %v4944_v24 = vshrl.u32 %v14483_v5, 16  ;;  %v4947_v61 = vshll.u32 %v14483_v5, 16 }
 0x213   : > { %v3485_v63 = vadd.f32 %v3423_v42, %v3224_v53  ;;  %v4424_v8 = vsel %vm4407_vm3, %v4415_v4, %v4423_v19  ;;  %v4428_v4 = vrot.slane %v4426_v29, 1 }
 0x216   : > { %v2910_v57 = vpop.f32.mrf.mxu3 }
 0x217   : > { %v15808_v32 = vadd.f32 %v2910_v57, %v15484_v43  ;;  %v5321_v43 = vsel %vm5318_vm4, %v5319_v49, %v5320_v58 }
 0x218   : > { %v3806_v44 = vpop.f32.mrf.mxu2  ;;  %v3165_v1 = vpop.f32.mrf.mxu0 }
 0x219   : > { %v15810_v15 = vadd.f32 %v3806_v44, %v3485_v63  ;;  %v3225_v28 = vadd.f32 %v3165_v1, %v15754_v18  ;;  %v3426_v21 = vpop.f32.mrf.mxu1  ;;  %v4429_v18 = vshll.u32 %v15817_v3, 16  ;;  %v14443_v63 = vld [vmem:[%s14966_s18 + $0x28] sm:$0xff]  ;;  %v4946_v44 = vrot.slane %v4944_v24, 1 }
 0x21a   : > { %v4949_v1 = vrot.slane %v4947_v61, 2 }
 0x21b   : > { %v3486_v62 = vadd.f32 %v3426_v21, %v3225_v28  ;;  %12963 = vmatmul.msk.bf16.gmra.mxu3 %vm1853_vm1, %v4026_v40  ;;  %13071 = vmatmul.msk.bf16.vlgmr.msra.gmra.mxu0 %vm1853_vm1, %v4424_v8  ;;  %v4431_v13 = vrot.slane %v4429_v18, 2  ;;  %v4027_v40 = vrot.slane %v14443_v63, 1  ;;  %v15845_v18 = vld [vmem:[%s14947_s28 + $0x20] sm:$0xff] }
 0x21c   : > { %13181 = vmatmul.msk.bf16.vlgmr.msra.gmra.mxu1 %vm1853_vm1, %v4942_v59  ;;  %v4950_v28 = vor.u32 %v4949_v1, %v4946_v44 }
 0x21d   : > { %13223 = vmatmul.msk.bf16.vlgmr.msra.gmra.mxu2 %vm1853_vm1, %v5321_v43  ;;  %v4432_v8 = vor.u32 %v4431_v13, %v4428_v4 }
 0x21e   : > { %v2913_v7 = vpop.f32.mrf.mxu3 }
 0x21f   : > { %v15830_v47 = vadd.f32 %v2913_v7, %v15495_v50  ;;  %v5322_v50 = vrot.slane %v15817_v3, 2  ;;  %v4433_v29 = vsel %vm4407_vm3, %v4423_v19, %v4432_v8  ;;  %v4951_v7 = vsel %vm4407_vm3, %v4941_v52, %v4950_v28 }
 0x220   : > { %v3809_v53 = vpop.f32.mrf.mxu2  ;;  %v3167_v46 = vpop.f32.mrf.mxu0 }
 0x221   : > { %v15832_v42 = vadd.f32 %v3809_v53, %v3486_v62  ;;  %v3226_v49 = vadd.f32 %v3167_v46, %v15771_v51  ;;  %v3428_v57 = vpop.f32.mrf.mxu1  ;;  %v4028_v51 = vsel %vm2992_vm2, %v4025_v22, %v4027_v40  ;;  %v5323_v3 = vsel %vm5318_vm4, %v5320_v58, %v5322_v50 }
 0x222   : > { %v4435_v22 = vshrl.u32 %v15845_v18, 16 }
 0x223   : > { %v3487_v35 = vadd.f32 %v3428_v57, %v3226_v49  ;;  %v15863_v49 = vld [vmem:[%s14966_s18 + $0x30] sm:$0xff] }
 0x224   : > { %v4437_v57 = vrot.slane %v4435_v22, 1 }
 0x226   : > { %v2915_v21 = vpop.f32.mrf.mxu3 }
 0x227   : > { %v15838_v59 = vadd.f32 %v2915_v21, %v15506_v48  ;;  %v14484_v48 = vld [vmem:[%s14966_s18 + $0x20] sm:$0xff] }
 0x228   : > { %v3811_v43 = vpop.f32.mrf.mxu2  ;;  %v3170_v62 = vpop.f32.mrf.mxu0  ;;  %v4953_v19 = vshrl.u32 %v14484_v48, 16  ;;  %v4956_v46 = vshll.u32 %v14484_v48, 16 }
 0x229   : > { %v15840_v5 = vadd.f32 %v3811_v43, %v3487_v35  ;;  %v3227_v24 = vadd.f32 %v3170_v62, %v15797_v33  ;;  %v3431_v61 = vpop.f32.mrf.mxu1  ;;  %v4438_v33 = vshll.u32 %v15845_v18, 16 }
 0x22a   : > { %v4955_v21 = vrot.slane %v4953_v19, 1  ;;  %v4958_v43 = vrot.slane %v4956_v46, 2 }
 0x22b   : > { %v3488_v53 = vadd.f32 %v3431_v61, %v3227_v24  ;;  %12964 = vmatmul.msk.bf16.gmra.mxu3 %vm1853_vm1, %v4028_v51  ;;  %13072 = vmatmul.msk.bf16.gmra.mxu0 %vm1853_vm1, %v4433_v29  ;;  %v4440_v44 = vrot.slane %v4438_v33, 2  ;;  %v4029_v51 = vrot.slane %v15863_v49, 1  ;;  %v5324_v24 = vrot.slane %v15845_v18, 2  ;;  %v15876_v33 = vld [vmem:[%s14947_s28 + $0x28] sm:$0xff] }
 0x22c   : > { %13182 = vmatmul.msk.bf16.gmra.mxu1 %vm1853_vm1, %v4951_v7  ;;  %v4959_v29 = vor.u32 %v4958_v43, %v4955_v21 }
 0x22d   : > { %13224 = vmatmul.msk.bf16.gmra.mxu2 %vm1853_vm1, %v5323_v3  ;;  %v5325_v18 = vsel %vm5318_vm4, %v5322_v50, %v5324_v24 }
 0x22e   : > { %v2918_v52 = vpop.f32.mrf.mxu3 }
 0x22f   : > { %v15858_v58 = vadd.f32 %v2918_v52, %v15523_v14  ;;  %v4441_v14 = vor.u32 %v4440_v44, %v4437_v57  ;;  %v4960_v52 = vsel %vm4407_vm3, %v4950_v28, %v4959_v29 }
 0x230   : > { %v3814_v63 = vpop.f32.mrf.mxu2  ;;  %v3172_v13 = vpop.f32.mrf.mxu0 }
 0x231   : > { %v15860_v4 = vadd.f32 %v3814_v63, %v3488_v53  ;;  %v3228_v1 = vadd.f32 %v3172_v13, %v15808_v32  ;;  %v3433_v35 = vpop.f32.mrf.mxu1  ;;  %v4030_v53 = vsel %vm2992_vm2, %v4027_v40, %v4029_v51  ;;  %v4442_v22 = vsel %vm4407_vm3, %v4432_v8, %v4441_v14  ;;  %v14485_v63 = vld [vmem:[%s14966_s18 + $0x28] sm:$0xff]  ;;  %v14509_v8 = vld [vmem:[%s20440_s3 + $0xb0] sm:$0xff] }
 0x232   : > { %v4444_v40 = vshrl.u32 %v15876_v33, 16  ;;  %v4962_v28 = vshrl.u32 %v14485_v63, 16  ;;  %v4965_v50 = vshll.u32 %v14485_v63, 16  ;;  %5702 = vmatpush.bf16.msrb.mxu3 %v14509_v8 }
 0x233   : > { %v3489_v62 = vadd.f32 %v3433_v35, %v3228_v1  ;;  %v14445_v35 = vld [vmem:[%s14966_s18 + $0x38] sm:$0xff] }
 0x234   : > { %v4446_v21 = vrot.slane %v4444_v40, 1 }
 0x236   : > { %v2920_v61 = vpop.f32.mrf.mxu3 }
 0x237   : > { %v15869_v7 = vadd.f32 %v2920_v61, %v15531_v27 }
 0x238   : > { %v3816_v3 = vpop.f32.mrf.mxu2  ;;  %v3175_v32 = vpop.f32.mrf.mxu0 }
 0x239   : > { %v15871_v48 = vadd.f32 %v3816_v3, %v3489_v62  ;;  %v3229_v19 = vadd.f32 %v3175_v32, %v15830_v47  ;;  %v3436_v46 = vpop.f32.mrf.mxu1  ;;  %v4447_v47 = vshll.u32 %v15876_v33, 16  ;;  %v4964_v3 = vrot.slane %v4962_v28, 1 }
 0x23a   : > { %v4967_v32 = vrot.slane %v4965_v50, 2  ;;  %v15913_v50 = vld [vmem:[%s14947_s28 + $0x30] sm:$0xff] }
 0x23b   : > { %v3490_v27 = vadd.f32 %v3436_v46, %v3229_v19  ;;  %12965 = vmatmul.msk.bf16.gmra.mxu3 %vm1853_vm1, %v4030_v53  ;;  %13073 = vmatmul.msk.bf16.gmra.mxu0 %vm1853_vm1, %v4442_v22  ;;  %v4449_v43 = vrot.slane %v4447_v47, 2  ;;  %v14530_v22 = vld [vmem:[%s20439_s2 + $0xd0] sm:$0xff]  ;;  %v4031_v19 = vrot.slane %v14445_v35, 1 }
 0x23c   : > { %13183 = vmatmul.msk.bf16.gmra.mxu1 %vm1853_vm1, %v4960_v52  ;;  %v4968_v52 = vor.u32 %v4967_v32, %v4964_v3  ;;  %6091 = vmatpush.bf16.msrb.mxu0 %v14530_v22  ;;  %v14446_v3 = vld [vmem:[%s14966_s18 + $0x40] sm:$0xff] }
 0x23d   : > { %13225 = vmatmul.msk.bf16.gmra.mxu2 %vm1853_vm1, %v5325_v18  ;;  %v4450_v46 = vor.u32 %v4449_v43, %v4446_v21  ;;  %v5326_v18 = vrot.slane %v15876_v33, 2  ;;  %v4032_v8 = vsel %vm2992_vm2, %v4029_v51, %v4031_v19  ;;  %v4453_v51 = vshrl.u32 %v15913_v50, 16 }
 0x23e   : > { %v2923_v13 = vpop.f32.mrf.mxu3  ;;  %v4969_v33 = vsel %vm4407_vm3, %v4959_v29, %v4968_v52 }
 0x23f   : > { %v15892_v49 = vadd.f32 %v2923_v13, %v15397_v23  ;;  %v14551_v23 = vld [vmem:[%s20440_s3 + $0xd0] sm:$0xff]  ;;  %v4451_v28 = vsel %vm4407_vm3, %v4441_v14, %v4450_v46  ;;  %v4455_v32 = vrot.slane %v4453_v51, 1 }
 0x240   : > { %v3819_v57 = vpop.f32.mrf.mxu2  ;;  %v3177_v1 = vpop.f32.mrf.mxu0  ;;  %6480 = vmatpush.bf16.msrb.mxu1 %v14551_v23 }
 0x241   : > { %v15894_v44 = vadd.f32 %v3819_v57, %v3490_v27  ;;  %v3230_v62 = vadd.f32 %v3177_v1, %v15838_v59  ;;  %v3438_v61 = vpop.f32.mrf.mxu1  ;;  %v5327_v1 = vsel %vm5318_vm4, %v5324_v24, %v5326_v18 }
 0x243   : > { %v3491_v53 = vadd.f32 %v3438_v61, %v3230_v62 }
 0x246   : > { %v2925_v59 = vpop.f32.mrf.mxu3 }
 0x247   : > { %v15906_v63 = vadd.f32 %v2925_v59, %v15413_v25  ;;  %v14486_v25 = vld [vmem:[%s14966_s18 + $0x30] sm:$0xff] }
 0x248   : > { %v3821_v27 = vpop.f32.mrf.mxu2  ;;  %v3180_v47 = vpop.f32.mrf.mxu0  ;;  %v4971_v14 = vshrl.u32 %v14486_v25, 16  ;;  %v4974_v21 = vshll.u32 %v14486_v25, 16 }
 0x249   : > { %v15908_v40 = vadd.f32 %v3821_v27, %v3491_v53  ;;  %v3231_v13 = vadd.f32 %v3180_v47, %v15858_v58  ;;  %v3441_v57 = vpop.f32.mrf.mxu1  ;;  %v4456_v58 = vshll.u32 %v15913_v50, 16 }
 0x24a   : > { %v4973_v59 = vrot.slane %v4971_v14, 1  ;;  %v4976_v27 = vrot.slane %v4974_v21, 2 }
 0x24b   : > { %v3492_v35 = vadd.f32 %v3441_v57, %v3231_v13  ;;  %12966 = vmatmul.msk.bf16.gmra.mxu3 %vm1853_vm1, %v4032_v8  ;;  %13074 = vmatmul.msk.bf16.gmra.mxu0 %vm1853_vm1, %v4451_v28  ;;  %v4458_v53 = vrot.slane %v4456_v58, 2  ;;  %v4033_v8 = vrot.slane %v14446_v3, 1  ;;  %v15941_v58 = vld [vmem:[%s14947_s28 + $0x38] sm:$0xff] }
 0x24c   : > { %13184 = vmatmul.msk.bf16.gmra.mxu1 %vm1853_vm1, %v4969_v33  ;;  %v4977_v13 = vor.u32 %v4976_v27, %v4973_v59 }
 0x24d   : > { %13226 = vmatmul.msk.bf16.gmra.mxu2 %vm1853_vm1, %v5327_v1  ;;  %v4459_v28 = vor.u32 %v4458_v53, %v4455_v32 }
 0x24e   : > { %v2928_v29 = vpop.f32.mrf.mxu3 }
 0x24f   : > { %v15926_v24 = vadd.f32 %v2928_v29, %v15426_v39  ;;  %v5328_v39 = vrot.slane %v15913_v50, 2  ;;  %v4460_v51 = vsel %vm4407_vm3, %v4450_v46, %v4459_v28  ;;  %v4978_v29 = vsel %vm4407_vm3, %v4968_v52, %v4977_v13 }
 0x250   : > { %v3824_v43 = vpop.f32.mrf.mxu2  ;;  %v3182_v61 = vpop.f32.mrf.mxu0 }
 0x251   : > { %v15928_v62 = vadd.f32 %v3824_v43, %v3492_v35  ;;  %v3232_v22 = vadd.f32 %v3182_v61, %v15869_v7  ;;  %v3443_v23 = vpop.f32.mrf.mxu1  ;;  %v4034_v7 = vsel %vm2992_vm2, %v4031_v19, %v4033_v8  ;;  %v5329_v50 = vsel %vm5318_vm4, %v5326_v18, %v5328_v39 }
 0x252   : > { %v4462_v19 = vshrl.u32 %v15941_v58, 16 }
 0x253   : > { %v3493_v47 = vadd.f32 %v3443_v23, %v3232_v22  ;;  %v14447_v22 = vld [vmem:[%s14966_s18 + $0x48] sm:$0xff] }
 0x254   : > { %v4464_v23 = vrot.slane %v4462_v19, 1 }
 0x256   : > { %v2930_v57 = vpop.f32.mrf.mxu3 }
 0x257   : > { %v15934_v33 = vadd.f32 %v2930_v57, %v15436_v37  ;;  %v14487_v37 = vld [vmem:[%s14966_s18 + $0x38] sm:$0xff] }
 0x258   : > { %v3826_v1 = vpop.f32.mrf.mxu2  ;;  %v3185_v35 = vpop.f32.mrf.mxu0  ;;  %v4980_v46 = vshrl.u32 %v14487_v37, 16  ;;  %v4983_v61 = vshll.u32 %v14487_v37, 16 }
 0x259   : > { %v15936_v25 = vadd.f32 %v3826_v1, %v3493_v47  ;;  %v3233_v14 = vadd.f32 %v3185_v35, %v15892_v49  ;;  %v3446_v21 = vpop.f32.mrf.mxu1  ;;  %v4465_v49 = vshll.u32 %v15941_v58, 16 }
 0x25a   : > { %v4982_v57 = vrot.slane %v4980_v46, 1  ;;  %v4985_v1 = vrot.slane %v4983_v61, 2 }
 0x25b   : > { %v3494_v43 = vadd.f32 %v3446_v21, %v3233_v14  ;;  %12967 = vmatmul.msk.bf16.gmra.mxu3 %vm1853_vm1, %v4034_v7  ;;  %13075 = vmatmul.msk.bf16.gmra.mxu0 %vm1853_vm1, %v4460_v51  ;;  %v4467_v59 = vrot.slane %v4465_v49, 2  ;;  %v4035_v7 = vrot.slane %v14447_v22, 1  ;;  %v15969_v49 = vld [vmem:[%s14947_s28 + $0x40] sm:$0xff] }
 0x25c   : > { %13185 = vmatmul.msk.bf16.gmra.mxu1 %vm1853_vm1, %v4978_v29  ;;  %v4986_v14 = vor.u32 %v4985_v1, %v4982_v57 }
 0x25d   : > { %13227 = vmatmul.msk.bf16.gmra.mxu2 %vm1853_vm1, %v5329_v50  ;;  %v4468_v51 = vor.u32 %v4467_v59, %v4464_v23 }
 0x25e   : > { %v2933_v52 = vpop.f32.mrf.mxu3 }
 0x25f   : > { %v15954_v18 = vadd.f32 %v2933_v52, %v15449_v56  ;;  %v5330_v56 = vrot.slane %v15941_v58, 2  ;;  %v4469_v19 = vsel %vm4407_vm3, %v4459_v28, %v4468_v51  ;;  %v4987_v52 = vsel %vm4407_vm3, %v4977_v13, %v4986_v14 }
 0x260   : > { %v3829_v3 = vpop.f32.mrf.mxu2  ;;  %v3187_v53 = vpop.f32.mrf.mxu0 }
 0x261   : > { %v15956_v32 = vadd.f32 %v3829_v3, %v3494_v43  ;;  %v3234_v27 = vadd.f32 %v3187_v53, %v15906_v63  ;;  %v3448_v47 = vpop.f32.mrf.mxu1  ;;  %v4036_v63 = vsel %vm2992_vm2, %v4033_v8, %v4035_v7  ;;  %v5331_v58 = vsel %vm5318_vm4, %v5328_v39, %v5330_v56 }
 0x262   : > { %v4471_v8 = vshrl.u32 %v15969_v49, 16 }
 0x263   : > { %v3495_v35 = vadd.f32 %v3448_v47, %v3234_v27  ;;  %v14448_v27 = vld [vmem:[%s14966_s18 + $0x50] sm:$0xff] }
 0x264   : > { %v4473_v47 = vrot.slane %v4471_v8, 1 }
 0x266   : > { %v2935_v21 = vpop.f32.mrf.mxu3 }
 0x267   : > { %v15962_v29 = vadd.f32 %v2935_v21, %v15459_v2  ;;  %v14488_v2 = vld [vmem:[%s14966_s18 + $0x40] sm:$0xff] }
 0x268   : > { %v3831_v50 = vpop.f32.mrf.mxu2  ;;  %v3190_v43 = vpop.f32.mrf.mxu0  ;;  %v4989_v28 = vshrl.u32 %v14488_v2, 16  ;;  %v4992_v53 = vshll.u32 %v14488_v2, 16 }
 0x269   : > { %v15964_v37 = vadd.f32 %v3831_v50, %v3495_v35  ;;  %v3235_v46 = vadd.f32 %v3190_v43, %v15926_v24  ;;  %v3451_v61 = vpop.f32.mrf.mxu1  ;;  %v4474_v24 = vshll.u32 %v15969_v49, 16 }
 0x26a   : > { %v4991_v21 = vrot.slane %v4989_v28, 1  ;;  %v4994_v50 = vrot.slane %v4992_v53, 2 }
 0x26b   : > { %v3496_v3 = vadd.f32 %v3451_v61, %v3235_v46  ;;  %12968 = vmatmul.msk.bf16.gmra.mxu3 %vm1853_vm1, %v4036_v63  ;;  %13076 = vmatmul.msk.bf16.gmra.mxu0 %vm1853_vm1, %v4469_v19  ;;  %v4476_v57 = vrot.slane %v4474_v24, 2  ;;  %v4037_v63 = vrot.slane %v14448_v27, 1  ;;  %v15997_v24 = vld [vmem:[%s14947_s28 + $0x48] sm:$0xff] }
 0x26c   : > { %13186 = vmatmul.msk.bf16.gmra.mxu1 %vm1853_vm1, %v4987_v52  ;;  %v4995_v46 = vor.u32 %v4994_v50, %v4991_v21 }
 0x26d   : > { %13228 = vmatmul.msk.bf16.gmra.mxu2 %vm1853_vm1, %v5331_v58  ;;  %v4477_v19 = vor.u32 %v4476_v57, %v4473_v47 }
 0x26e   : > { %v2938_v13 = vpop.f32.mrf.mxu3 }
 0x26f   : > { %v15982_v39 = vadd.f32 %v2938_v13, %v15472_v31  ;;  %v5332_v31 = vrot.slane %v15969_v49, 2  ;;  %v4478_v8 = vsel %vm4407_vm3, %v4468_v51, %v4477_v19  ;;  %v4996_v13 = vsel %vm4407_vm3, %v4986_v14, %v4995_v46 }
 0x270   : > { %v3834_v22 = vpop.f32.mrf.mxu2  ;;  %v3192_v59 = vpop.f32.mrf.mxu0 }
 0x271   : > { %v15984_v23 = vadd.f32 %v3834_v22, %v3496_v3  ;;  %v3236_v1 = vadd.f32 %v3192_v59, %v15934_v33  ;;  %v3453_v35 = vpop.f32.mrf.mxu1  ;;  %v4038_v33 = vsel %vm2992_vm2, %v4035_v7, %v4037_v63  ;;  %v5333_v49 = vsel %vm5318_vm4, %v5330_v56, %v5332_v31 }
 0x272   : > { %v4480_v7 = vshrl.u32 %v15997_v24, 16 }
 0x273   : > { %v3497_v43 = vadd.f32 %v3453_v35, %v3236_v1  ;;  %v16015_v1 = vld [vmem:[%s14966_s18 + $0x58] sm:$0xff] }
 0x274   : > { %v4482_v35 = vrot.slane %v4480_v7, 1 }
 0x276   : > { %v2940_v61 = vpop.f32.mrf.mxu3 }
 0x277   : > { %v15990_v52 = vadd.f32 %v2940_v61, %v15482_v45  ;;  %v14489_v45 = vld [vmem:[%s14966_s18 + $0x48] sm:$0xff] }
 0x278   : > { %v3836_v58 = vpop.f32.mrf.mxu2  ;;  %v3195_v3 = vpop.f32.mrf.mxu0  ;;  %v4998_v51 = vshrl.u32 %v14489_v45, 16  ;;  %v5001_v59 = vshll.u32 %v14489_v45, 16 }
 0x279   : > { %v15992_v2 = vadd.f32 %v3836_v58, %v3497_v43  ;;  %v3237_v28 = vadd.f32 %v3195_v3, %v15954_v18  ;;  %v3456_v53 = vpop.f32.mrf.mxu1  ;;  %v4483_v18 = vshll.u32 %v15997_v24, 16 }
 0x27a   : > { %v5000_v61 = vrot.slane %v4998_v51, 1  ;;  %v5003_v58 = vrot.slane %v5001_v59, 2  ;;  %v16031_v51 = vld [vmem:[%s14947_s28 + $0x50] sm:$0xff] }
 0x27b   : > { %v3498_v22 = vadd.f32 %v3456_v53, %v3237_v28  ;;  %12969 = vmatmul.msk.bf16.gmra.mxu3 %vm1853_vm1, %v4038_v33  ;;  %13077 = vmatmul.msk.bf16.gmra.mxu0 %vm1853_vm1, %v4478_v8  ;;  %v4485_v21 = vrot.slane %v4483_v18, 2  ;;  %v14508_v33 = vld [vmem:[%s20440_s3 + $0xa8] sm:$0xff]  ;;  %v5334_v53 = vrot.slane %v15997_v24, 2 }
 0x27c   : > { %13187 = vmatmul.msk.bf16.gmra.mxu1 %vm1853_vm1, %v4996_v13  ;;  %v5004_v28 = vor.u32 %v5003_v58, %v5000_v61  ;;  %5703 = vmatpush.bf16.msrb.mxu3 %v14508_v33  ;;  %v14450_v58 = vld [vmem:[%s14966_s18 + $0x60] sm:$0xff] }
 0x27d   : > { %13229 = vmatmul.msk.bf16.gmra.mxu2 %vm1853_vm1, %v5333_v49  ;;  %v4486_v8 = vor.u32 %v4485_v21, %v4482_v35 }
 0x27e   : > { %v4142_v14 = vpop.f32.mrf.mxu3  ;;  %v5005_v24 = vsel %vm4407_vm3, %v4995_v46, %v5004_v28 }
 0x27f   : > { %v16010_v56 = vadd.f32 %v4142_v14, %v15542_v16  ;;  %v4039_v16 = vrot.slane %v16015_v1, 1  ;;  %v4487_v18 = vsel %vm4407_vm3, %v4477_v19, %v4486_v8  ;;  %v14550_v19 = vld [vmem:[%s20440_s3 + $0xc8] sm:$0xff] }
 0x280   : > { %v3839_v27 = vpop.f32.mrf.mxu2  ;;  %v3197_v57 = vpop.f32.mrf.mxu0  ;;  %6481 = vmatpush.bf16.msrb.mxu1 %v14550_v19  ;;  %v16063_v19 = vld [vmem:[%s14947_s28 + $0x58] sm:$0xff] }
 0x281   : > { %v16012_v47 = vadd.f32 %v3839_v27, %v3498_v22  ;;  %v3238_v50 = vadd.f32 %v3197_v57, %v15962_v29  ;;  %v3458_v43 = vpop.f32.mrf.mxu1  ;;  %v4040_v7 = vsel %vm2992_vm2, %v4037_v63, %v4039_v16  ;;  %v5335_v27 = vsel %vm5318_vm4, %v5332_v31, %v5334_v53  ;;  %v14490_v57 = vld [vmem:[%s14966_s18 + $0x50] sm:$0xff]  ;;  %v14529_v63 = vld [vmem:[%s20439_s2 + $0xc8] sm:$0xff] }
 0x282   : > { %v5007_v46 = vshrl.u32 %v14490_v57, 16  ;;  %v5010_v31 = vshll.u32 %v14490_v57, 16  ;;  %6092 = vmatpush.bf16.msrb.mxu0 %v14529_v63 }
 0x283   : > { %v3499_v3 = vadd.f32 %v3458_v43, %v3238_v50 }
 0x286   : > { %v4144_v13 = vpop.f32.mrf.mxu3 }
 0x287   : > { %v16024_v29 = vadd.f32 %v4144_v13, %v15550_v26  ;;  %v4489_v26 = vshrl.u32 %v16031_v51, 16 }
 0x288   : > { %v3841_v49 = vpop.f32.mrf.mxu2  ;;  %v3200_v22 = vpop.f32.mrf.mxu0 }
 0x289   : > { %v16026_v45 = vadd.f32 %v3841_v49, %v3499_v3  ;;  %v3239_v59 = vadd.f32 %v3200_v22, %v15982_v39  ;;  %v3461_v14 = vpop.f32.mrf.mxu1  ;;  %v4492_v39 = vshll.u32 %v16031_v51, 16  ;;  %v4491_v3 = vrot.slane %v4489_v26, 1 }
 0x28a   : > { %v5009_v22 = vrot.slane %v5007_v46, 1 }
 0x28b   : > { %v3500_v1 = vadd.f32 %v3461_v14, %v3239_v59  ;;  %12970 = vmatmul.msk.bf16.gmra.mxu3 %vm1853_vm1, %v4040_v7  ;;  %13078 = vmatmul.msk.bf16.gmra.mxu0 %vm1853_vm1, %v4487_v18  ;;  %v4494_v33 = vrot.slane %v4492_v39, 2  ;;  %v5012_v7 = vrot.slane %v5010_v31, 2  ;;  %v4041_v59 = vrot.slane %v14450_v58, 1 }
 0x28c   : > { %13188 = vmatmul.msk.bf16.gmra.mxu1 %vm1853_vm1, %v5005_v24 }
 0x28d   : > { %13230 = vmatmul.msk.bf16.gmra.mxu2 %vm1853_vm1, %v5335_v27  ;;  %v4495_v14 = vor.u32 %v4494_v33, %v4491_v3  ;;  %v5013_v24 = vor.u32 %v5012_v7, %v5009_v22  ;;  %v5336_v27 = vrot.slane %v16031_v51, 2 }
 0x28e   : > { %v4147_v35 = vpop.f32.mrf.mxu3 }
 0x28f   : > { %v4234_v50 = vadd.f32 %v4147_v35, %v15561_v34  ;;  %v4496_v63 = vsel %vm4407_vm3, %v4486_v8, %v4495_v14  ;;  %v5014_v35 = vsel %vm4407_vm3, %v5004_v28, %v5013_v24  ;;  %v5337_v51 = vsel %vm5318_vm4, %v5334_v53, %v5336_v27 }
 0x290   : > { %v3844_v21 = vpop.f32.mrf.mxu2  ;;  %v3202_v61 = vpop.f32.mrf.mxu0 }
 0x291   : > { %v16050_v43 = vadd.f32 %v3844_v21, %v3500_v1  ;;  %v3240_v13 = vadd.f32 %v3202_v61, %v15990_v52  ;;  %v3463_v49 = vpop.f32.mrf.mxu1  ;;  %v4042_v52 = vsel %vm2992_vm2, %v4039_v16, %v4041_v59  ;;  %v14491_v21 = vld [vmem:[%s14966_s18 + $0x58] sm:$0xff]  ;;  %v4498_v16 = vshrl.u32 %v16063_v19, 16 }
 0x292   : > { %v5016_v8 = vshrl.u32 %v14491_v21, 16  ;;  %v5019_v61 = vshll.u32 %v14491_v21, 16 }
 0x293   : > { %v3501_v18 = vadd.f32 %v3463_v49, %v3240_v13  ;;  %v14451_v13 = vld [vmem:[%s14966_s18 + $0x68] sm:$0xff]  ;;  %v4500_v49 = vrot.slane %v4498_v16, 1 }
 0x296   : > { %v4149_v34 = vpop.f32.mrf.mxu3 }
 0x297   : > { %v16056_v1 = vadd.f32 %v4149_v34, %v15569_v54  ;;  %v5018_v34 = vrot.slane %v5016_v8, 1 }
 0x298   : > { %v3846_v57 = vpop.f32.mrf.mxu2  ;;  %v4661_v39 = vpop.f32.mrf.mxu0 }
 0x299   : > { %v16058_v26 = vadd.f32 %v3846_v57, %v3501_v18  ;;  %v4751_v46 = vadd.f32 %v4661_v39, %v16010_v56  ;;  %v5179_v31 = vpop.f32.mrf.mxu1  ;;  %v4501_v56 = vshll.u32 %v16063_v19, 16  ;;  %v5021_v57 = vrot.slane %v5019_v61, 2 }
 0x29b   : > { %v5269_v54 = vadd.f32 %v5179_v31, %v4751_v46  ;;  %12971 = vmatmul.msk.bf16.gmra.mxu3 %vm1853_vm1, %v4042_v52  ;;  %13079 = vmatmul.msk.bf16.gmra.mxu0 %vm1853_vm1, %v4496_v63  ;;  %v4503_v22 = vrot.slane %v4501_v56, 2  ;;  %v4043_v52 = vrot.slane %v14451_v13, 1  ;;  %v5022_v46 = vor.u32 %v5021_v57, %v5018_v34  ;;  %v16091_v56 = vld [vmem:[%s14947_s28 + $0x60] sm:$0xff] }
 0x29c   : > { %13189 = vmatmul.msk.bf16.gmra.mxu1 %vm1853_vm1, %v5014_v35 }
 0x29d   : > { %13231 = vmatmul.msk.bf16.gmra.mxu2 %vm1853_vm1, %v5337_v51  ;;  %v4504_v63 = vor.u32 %v4503_v22, %v4500_v49 }
 0x29e   : > { %v4152_v28 = vpop.f32.mrf.mxu3 }
 0x29f   : > { %v16076_v53 = vadd.f32 %v4152_v28, %v15582_v0  ;;  %v5338_v0 = vrot.slane %v16063_v19, 2  ;;  %v4505_v16 = vsel %vm4407_vm3, %v4495_v14, %v4504_v63  ;;  %v5023_v28 = vsel %vm4407_vm3, %v5013_v24, %v5022_v46 }
 0x2a0   : > { %v5443_v58 = vpop.f32.mrf.mxu2  ;;  %v4663_v33 = vpop.f32.mrf.mxu0 }
 0x2a1   : > { %v16078_v3 = vadd.f32 %v5443_v58, %v5269_v54  ;;  %v4752_v7 = vadd.f32 %v4663_v33, %v16024_v29  ;;  %v5181_v18 = vpop.f32.mrf.mxu1  ;;  %v4044_v29 = vsel %vm2992_vm2, %v4041_v59, %v4043_v52  ;;  %v5339_v19 = vsel %vm5318_vm4, %v5336_v27, %v5338_v0  ;;  %v14492_v58 = vld [vmem:[%s14966_s18 + $0x60] sm:$0xff] }
 0x2a2   : > { %v4507_v59 = vshrl.u32 %v16091_v56, 16  ;;  %v5025_v14 = vshrl.u32 %v14492_v58, 16  ;;  %v5028_v33 = vshll.u32 %v14492_v58, 16 }
 0x2a3   : > { %v5270_v39 = vadd.f32 %v5181_v18, %v4752_v7  ;;  %v14452_v7 = vld [vmem:[%s14966_s18 + $0x70] sm:$0xff] }
 0x2a4   : > { %v4509_v18 = vrot.slane %v4507_v59, 1 }
 0x2a6   : > { %v4154_v31 = vpop.f32.mrf.mxu3 }
 0x2a7   : > { %v16084_v35 = vadd.f32 %v4154_v31, %v15593_v55  ;;  %v5027_v31 = vrot.slane %v5025_v14, 1 }
 0x2a8   : > { %v5445_v51 = vpop.f32.mrf.mxu2  ;;  %v4666_v54 = vpop.f32.mrf.mxu0 }
 0x2a9   : > { %v16086_v21 = vadd.f32 %v5445_v51, %v5270_v39  ;;  %v4753_v8 = vadd.f32 %v4666_v54, %v4234_v50  ;;  %v5184_v61 = vpop.f32.mrf.mxu1  ;;  %v4510_v50 = vshll.u32 %v16091_v56, 16  ;;  %v5030_v51 = vrot.slane %v5028_v33, 2 }
 0x2ab   : > { %v5271_v55 = vadd.f32 %v5184_v61, %v4753_v8  ;;  %12972 = vmatmul.msk.bf16.gmra.mxu3 %vm1853_vm1, %v4044_v29  ;;  %13080 = vmatmul.msk.bf16.gmra.mxu0 %vm1853_vm1, %v4505_v16  ;;  %v4512_v34 = vrot.slane %v4510_v50, 2  ;;  %v4045_v29 = vrot.slane %v14452_v7, 1  ;;  %v5031_v8 = vor.u32 %v5030_v51, %v5027_v31  ;;  %v16118_v50 = vld [vmem:[%s14947_s28 + $0x68] sm:$0xff] }
 0x2ac   : > { %13190 = vmatmul.msk.bf16.gmra.mxu1 %vm1853_vm1, %v5023_v28 }
 0x2ad   : > { %13232 = vmatmul.msk.bf16.gmra.mxu2 %vm1853_vm1, %v5339_v19  ;;  %v4513_v16 = vor.u32 %v4512_v34, %v4509_v18 }
 0x2ae   : > { %v4157_v24 = vpop.f32.mrf.mxu3 }
 0x2af   : > { %v16103_v27 = vadd.f32 %v4157_v24, %v15607_v11  ;;  %v5340_v11 = vrot.slane %v16091_v56, 2  ;;  %v4514_v59 = vsel %vm4407_vm3, %v4504_v63, %v4513_v16  ;;  %v5032_v24 = vsel %vm4407_vm3, %v5022_v46, %v5031_v8 }
 0x2b0   : > { %v5448_v13 = vpop.f32.mrf.mxu2  ;;  %v4668_v22 = vpop.f32.mrf.mxu0 }
 0x2b1   : > { %v16105_v49 = vadd.f32 %v5448_v13, %v5271_v55  ;;  %v4754_v57 = vadd.f32 %v4668_v22, %v16056_v1  ;;  %v5186_v39 = vpop.f32.mrf.mxu1  ;;  %v4046_v1 = vsel %vm2992_vm2, %v4043_v52, %v4045_v29  ;;  %v5341_v56 = vsel %vm5318_vm4, %v5338_v0, %v5340_v11 }
 0x2b2   : > { %v4516_v52 = vshrl.u32 %v16118_v50, 16 }
 0x2b3   : > { %v5272_v54 = vadd.f32 %v5186_v39, %v4754_v57  ;;  %v16136_v57 = vld [vmem:[%s14966_s18 + $0x78] sm:$0xff] }
 0x2b4   : > { %v4518_v39 = vrot.slane %v4516_v52, 1 }
 0x2b6   : > { %v4159_v61 = vpop.f32.mrf.mxu3 }
 0x2b7   : > { %v16111_v28 = vadd.f32 %v4159_v61, %v15624_v20  ;;  %v14493_v20 = vld [vmem:[%s14966_s18 + $0x68] sm:$0xff] }
 0x2b8   : > { %v5450_v19 = vpop.f32.mrf.mxu2  ;;  %v4671_v55 = vpop.f32.mrf.mxu0  ;;  %v5034_v63 = vshrl.u32 %v14493_v20, 16  ;;  %v5037_v22 = vshll.u32 %v14493_v20, 16 }
 0x2b9   : > { %v16113_v58 = vadd.f32 %v5450_v19, %v5272_v54  ;;  %v4755_v14 = vadd.f32 %v4671_v55, %v16076_v53  ;;  %v5189_v33 = vpop.f32.mrf.mxu1  ;;  %v4519_v53 = vshll.u32 %v16118_v50, 16 }
 0x2ba   : > { %v5036_v61 = vrot.slane %v5034_v63, 1  ;;  %v5039_v19 = vrot.slane %v5037_v22, 2 }
 0x2bb   : > { %v5273_v13 = vadd.f32 %v5189_v33, %v4755_v14  ;;  %12973 = vmatmul.msk.bf16.gmra.mxu3 %vm1853_vm1, %v4046_v1  ;;  %13081 = vmatmul.msk.bf16.gmra.mxu0 %vm1853_vm1, %v4514_v59  ;;  %v4521_v31 = vrot.slane %v4519_v53, 2  ;;  %v4047_v1 = vrot.slane %v16136_v57, 1  ;;  %v5342_v14 = vrot.slane %v16118_v50, 2  ;;  %v16149_v53 = vld [vmem:[%s14947_s28 + $0x70] sm:$0xff] }
 0x2bc   : > { %13191 = vmatmul.msk.bf16.gmra.mxu1 %vm1853_vm1, %v5032_v24  ;;  %v5040_v59 = vor.u32 %v5039_v19, %v5036_v61 }
 0x2bd   : > { %13233 = vmatmul.msk.bf16.gmra.mxu2 %vm1853_vm1, %v5341_v56  ;;  %v5343_v50 = vsel %vm5318_vm4, %v5340_v11, %v5342_v14 }
 0x2be   : > { %v4162_v46 = vpop.f32.mrf.mxu3 }
 0x2bf   : > { %v16131_v0 = vadd.f32 %v4162_v46, %v15636_v60  ;;  %v4522_v60 = vor.u32 %v4521_v31, %v4518_v39  ;;  %v5041_v46 = vsel %vm4407_vm3, %v5031_v8, %v5040_v59 }
 0x2c0   : > { %v5453_v7 = vpop.f32.mrf.mxu2  ;;  %v4673_v34 = vpop.f32.mrf.mxu0 }
 0x2c1   : > { %v16133_v18 = vadd.f32 %v5453_v7, %v5273_v13  ;;  %v4756_v51 = vadd.f32 %v4673_v34, %v16084_v35  ;;  %v5191_v54 = vpop.f32.mrf.mxu1  ;;  %v4048_v13 = vsel %vm2992_vm2, %v4045_v29, %v4047_v1  ;;  %v4523_v52 = vsel %vm4407_vm3, %v4513_v16, %v4522_v60  ;;  %v14494_v7 = vld [vmem:[%s14966_s18 + $0x70] sm:$0xff]  ;;  %v14507_v16 = vld [vmem:[%s20440_s3 + $0xa0] sm:$0xff] }
 0x2c2   : > { %v4525_v29 = vshrl.u32 %v16149_v53, 16  ;;  %v5043_v8 = vshrl.u32 %v14494_v7, 16  ;;  %v5046_v11 = vshll.u32 %v14494_v7, 16  ;;  %5704 = vmatpush.bf16.msrb.mxu3 %v14507_v16 }
 0x2c3   : > { %v5274_v55 = vadd.f32 %v5191_v54, %v4756_v51  ;;  %v14454_v54 = vld [vmem:[%s14966_s18 + $0x80] sm:$0xff] }
 0x2c4   : > { %v4527_v61 = vrot.slane %v4525_v29, 1 }
 0x2c6   : > { %v4164_v33 = vpop.f32.mrf.mxu3 }
 0x2c7   : > { %v16142_v24 = vadd.f32 %v4164_v33, %v15647_v36 }
 0x2c8   : > { %v5455_v56 = vpop.f32.mrf.mxu2  ;;  %v4676_v35 = vpop.f32.mrf.mxu0 }
 0x2c9   : > { %v16144_v20 = vadd.f32 %v5455_v56, %v5274_v55  ;;  %v4757_v63 = vadd.f32 %v4676_v35, %v16103_v27  ;;  %v5194_v22 = vpop.f32.mrf.mxu1  ;;  %v4528_v27 = vshll.u32 %v16149_v53, 16  ;;  %v5045_v56 = vrot.slane %v5043_v8, 1 }
 0x2ca   : > { %v5048_v35 = vrot.slane %v5046_v11, 2  ;;  %v16186_v11 = vld [vmem:[%s14947_s28 + $0x78] sm:$0xff] }
 0x2cb   : > { %v5275_v36 = vadd.f32 %v5194_v22, %v4757_v63  ;;  %12974 = vmatmul.msk.bf16.gmra.mxu3 %vm1853_vm1, %v4048_v13  ;;  %13082 = vmatmul.msk.bf16.gmra.mxu0 %vm1853_vm1, %v4523_v52  ;;  %v4530_v19 = vrot.slane %v4528_v27, 2  ;;  %v14528_v52 = vld [vmem:[%s20439_s2 + $0xc0] sm:$0xff]  ;;  %v4049_v63 = vrot.slane %v14454_v54, 1 }
 0x2cc   : > { %13192 = vmatmul.msk.bf16.gmra.mxu1 %vm1853_vm1, %v5041_v46  ;;  %v5049_v46 = vor.u32 %v5048_v35, %v5045_v56  ;;  %6093 = vmatpush.bf16.msrb.mxu0 %v14528_v52  ;;  %v14455_v56 = vld [vmem:[%s14966_s18 + $0x88] sm:$0xff] }
 0x2cd   : > { %13234 = vmatmul.msk.bf16.gmra.mxu2 %vm1853_vm1, %v5343_v50  ;;  %v4531_v22 = vor.u32 %v4530_v19, %v4527_v61  ;;  %v5344_v50 = vrot.slane %v16149_v53, 2  ;;  %v4050_v16 = vsel %vm2992_vm2, %v4047_v1, %v4049_v63  ;;  %v4534_v1 = vshrl.u32 %v16186_v11, 16 }
 0x2ce   : > { %v4167_v34 = vpop.f32.mrf.mxu3  ;;  %v5050_v53 = vsel %vm4407_vm3, %v5040_v59, %v5049_v46 }
 0x2cf   : > { %v16165_v57 = vadd.f32 %v4167_v34, %v15658_v12  ;;  %v14549_v12 = vld [vmem:[%s20440_s3 + $0xc0] sm:$0xff]  ;;  %v4532_v8 = vsel %vm4407_vm3, %v4522_v60, %v4531_v22  ;;  %v4536_v35 = vrot.slane %v4534_v1, 1 }
 0x2d0   : > { %v5458_v39 = vpop.f32.mrf.mxu2  ;;  %v4678_v51 = vpop.f32.mrf.mxu0  ;;  %6482 = vmatpush.bf16.msrb.mxu1 %v14549_v12 }
 0x2d1   : > { %v16167_v31 = vadd.f32 %v5458_v39, %v5275_v36  ;;  %v4758_v55 = vadd.f32 %v4678_v51, %v16111_v28  ;;  %v5196_v33 = vpop.f32.mrf.mxu1  ;;  %v5345_v51 = vsel %vm5318_vm4, %v5342_v14, %v5344_v50 }
 0x2d3   : > { %v5276_v13 = vadd.f32 %v5196_v33, %v4758_v55 }
 0x2d6   : > { %v4169_v28 = vpop.f32.mrf.mxu3 }
 0x2d7   : > { %v16179_v7 = vadd.f32 %v4169_v28, %v15666_v41  ;;  %v14495_v41 = vld [vmem:[%s14966_s18 + $0x78] sm:$0xff] }
 0x2d8   : > { %v5460_v36 = vpop.f32.mrf.mxu2  ;;  %v4681_v27 = vpop.f32.mrf.mxu0  ;;  %v5052_v60 = vshrl.u32 %v14495_v41, 16  ;;  %v5055_v61 = vshll.u32 %v14495_v41, 16 }
 0x2d9   : > { %v16181_v29 = vadd.f32 %v5460_v36, %v5276_v13  ;;  %v4759_v34 = vadd.f32 %v4681_v27, %v16131_v0  ;;  %v5199_v39 = vpop.f32.mrf.mxu1  ;;  %v4537_v0 = vshll.u32 %v16186_v11, 16 }
 0x2da   : > { %v5054_v28 = vrot.slane %v5052_v60, 1  ;;  %v5057_v36 = vrot.slane %v5055_v61, 2 }
 0x2db   : > { %v5277_v54 = vadd.f32 %v5199_v39, %v4759_v34  ;;  %12975 = vmatmul.msk.bf16.gmra.mxu3 %vm1853_vm1, %v4050_v16  ;;  %13083 = vmatmul.msk.bf16.gmra.mxu0 %vm1853_vm1, %v4532_v8  ;;  %v4539_v13 = vrot.slane %v4537_v0, 2  ;;  %v4051_v16 = vrot.slane %v14455_v56, 1  ;;  %v16214_v0 = vld [vmem:[%s14947_s28 + $0x80] sm:$0xff] }
 0x2dc   : > { %13193 = vmatmul.msk.bf16.gmra.mxu1 %vm1853_vm1, %v5050_v53  ;;  %v5058_v34 = vor.u32 %v5057_v36, %v5054_v28 }
 0x2dd   : > { %13235 = vmatmul.msk.bf16.gmra.mxu2 %vm1853_vm1, %v5345_v51  ;;  %v4540_v8 = vor.u32 %v4539_v13, %v4536_v35 }
 0x2de   : > { %v4172_v59 = vpop.f32.mrf.mxu3 }
 0x2df   : > { %v16199_v14 = vadd.f32 %v4172_v59, %v15679_v6  ;;  %v5346_v6 = vrot.slane %v16186_v11, 2  ;;  %v4541_v1 = vsel %vm4407_vm3, %v4531_v22, %v4540_v8  ;;  %v5059_v59 = vsel %vm4407_vm3, %v5049_v46, %v5058_v34 }
 0x2e0   : > { %v5463_v19 = vpop.f32.mrf.mxu2  ;;  %v4683_v33 = vpop.f32.mrf.mxu0 }
 0x2e1   : > { %v16201_v55 = vadd.f32 %v5463_v19, %v5277_v54  ;;  %v4760_v52 = vadd.f32 %v4683_v33, %v16142_v24  ;;  %v5201_v12 = vpop.f32.mrf.mxu1  ;;  %v4052_v24 = vsel %vm2992_vm2, %v4049_v63, %v4051_v16  ;;  %v5347_v11 = vsel %vm5318_vm4, %v5344_v50, %v5346_v6 }
 0x2e2   : > { %v4543_v63 = vshrl.u32 %v16214_v0, 16 }
 0x2e3   : > { %v5278_v27 = vadd.f32 %v5201_v12, %v4760_v52  ;;  %v16230_v52 = vld [vmem:[%s14966_s18 + $0x90] sm:$0xff] }
 0x2e4   : > { %v4545_v12 = vrot.slane %v4543_v63, 1 }
 0x2e6   : > { %v4174_v39 = vpop.f32.mrf.mxu3 }
 0x2e7   : > { %v16207_v53 = vadd.f32 %v4174_v39, %v15688_v9  ;;  %v14496_v9 = vld [vmem:[%s14966_s18 + $0x80] sm:$0xff] }
 0x2e8   : > { %v5465_v51 = vpop.f32.mrf.mxu2  ;;  %v4686_v54 = vpop.f32.mrf.mxu0  ;;  %v5061_v22 = vshrl.u32 %v14496_v9, 16  ;;  %v5064_v33 = vshll.u32 %v14496_v9, 16 }
 0x2e9   : > { %v16209_v41 = vadd.f32 %v5465_v51, %v5278_v27  ;;  %v4761_v60 = vadd.f32 %v4686_v54, %v16165_v57  ;;  %v5204_v61 = vpop.f32.mrf.mxu1  ;;  %v4546_v57 = vshll.u32 %v16214_v0, 16 }
 0x2ea   : > { %v5063_v39 = vrot.slane %v5061_v22, 1  ;;  %v5066_v51 = vrot.slane %v5064_v33, 2 }
 0x2eb   : > { %v5279_v19 = vadd.f32 %v5204_v61, %v4761_v60  ;;  %12976 = vmatmul.msk.bf16.gmra.mxu3 %vm1853_vm1, %v4052_v24  ;;  %13084 = vmatmul.msk.bf16.gmra.mxu0 %vm1853_vm1, %v4541_v1  ;;  %v4548_v28 = vrot.slane %v4546_v57, 2  ;;  %v4053_v24 = vrot.slane %v16230_v52, 1  ;;  %v5348_v60 = vrot.slane %v16214_v0, 2  ;;  %v16243_v57 = vld [vmem:[%s14947_s28 + $0x88] sm:$0xff] }
 0x2ec   : > { %13194 = vmatmul.msk.bf16.gmra.mxu1 %vm1853_vm1, %v5059_v59 }
 0x2ed   : > { %13236 = vmatmul.msk.bf16.gmra.mxu2 %vm1853_vm1, %v5347_v11  ;;  %v4549_v1 = vor.u32 %v4548_v28, %v4545_v12  ;;  %v5349_v0 = vsel %vm5318_vm4, %v5346_v6, %v5348_v60 }
 0x2ee   : > { %v4177_v46 = vpop.f32.mrf.mxu3 }
 0x2ef   : > { %v4246_v50 = vadd.f32 %v4177_v46, %v15708_v17  ;;  %v5067_v17 = vor.u32 %v5066_v51, %v5063_v39  ;;  %v4550_v63 = vsel %vm4407_vm3, %v4540_v8, %v4549_v1  ;;  %v4555_v8 = vshll.u32 %v16243_v57, 16 }
 0x2f0   : > { %v5468_v56 = vpop.f32.mrf.mxu2  ;;  %v4688_v13 = vpop.f32.mrf.mxu0 }
 0x2f1   : > { %v16227_v35 = vadd.f32 %v5468_v56, %v5279_v19  ;;  %v4762_v36 = vadd.f32 %v4688_v13, %v16179_v7  ;;  %v5206_v27 = vpop.f32.mrf.mxu1  ;;  %v4054_v19 = vsel %vm2992_vm2, %v4051_v16, %v4053_v24  ;;  %v5068_v46 = vsel %vm4407_vm3, %v5058_v34, %v5067_v17  ;;  %v14497_v56 = vld [vmem:[%s14966_s18 + $0x88] sm:$0xff] }
 0x2f2   : > { %v4552_v16 = vshrl.u32 %v16243_v57, 16  ;;  %v5073_v13 = vshll.u32 %v14497_v56, 16 }
 0x2f3   : > { %v5280_v54 = vadd.f32 %v5206_v27, %v4762_v36  ;;  %v4557_v27 = vrot.slane %v4555_v8, 2 }
 0x2f4   : > { %v4554_v36 = vrot.slane %v4552_v16, 1 }
 0x2f6   : > { %v4179_v61 = vpop.f32.mrf.mxu3 }
 0x2f7   : > { %v16236_v59 = vadd.f32 %v4179_v61, %v15732_v10  ;;  %v5075_v61 = vrot.slane %v5073_v13, 2 }
 0x2f8   : > { %v5470_v11 = vpop.f32.mrf.mxu2  ;;  %v4691_v7 = vpop.f32.mrf.mxu0 }
 0x2f9   : > { %v16238_v9 = vadd.f32 %v5470_v11, %v5280_v54  ;;  %v4763_v22 = vadd.f32 %v4691_v7, %v16199_v14  ;;  %v5209_v33 = vpop.f32.mrf.mxu1  ;;  %v5070_v14 = vshrl.u32 %v14497_v56, 16  ;;  %v4558_v7 = vor.u32 %v4557_v27, %v4554_v36 }
 0x2fb   : > { %v5281_v10 = vadd.f32 %v5209_v33, %v4763_v22  ;;  %12977 = vmatmul.msk.bf16.gmra.mxu3 %vm1853_vm1, %v4054_v19  ;;  %13085 = vmatmul.msk.bf16.gmra.mxu0 %vm1853_vm1, %v4550_v63  ;;  %v5072_v54 = vrot.slane %v5070_v14, 1  ;;  %v20590_v22 = vld [vmem:[#allocation8_spill] sm:$0xff] }
 0x2fc   : > { %13195 = vmatmul.msk.bf16.gmra.mxu1 %vm1853_vm1, %v5068_v46 }
 0x2fd   : > { %13237 = vmatmul.msk.bf16.gmra.mxu2 %vm1853_vm1, %v5349_v0  ;;  %v16261_v19 = vor.u32 %v5075_v61, %v5072_v54  ;;  %v14555_v54 = vld [vmem:[%s20439_s2 + $0xf0] sm:$0xff] }
 0x2fe   : > { %v4182_v52 = vpop.f32.mrf.mxu3 }
 0x2ff   : > { %v16256_v34 = vadd.f32 %v4182_v52, %v15756_v38  ;;  %v5350_v38 = vrot.slane %v16243_v57, 2  ;;  %v5077_v14 = vsel %vm4407_vm3, %v5067_v17, %v16261_v19  ;;  %v14498_v52 = vld [vmem:[%s14966_s18 + $0x90] sm:$0xff]  ;;  %v14564_v57 = vld [vmem:[%s20439_s2 + $0x118] sm:$0xff] }
 0x300   : > { %v5473_v6 = vpop.f32.mrf.mxu2  ;;  %v4693_v28 = vpop.f32.mrf.mxu0  ;;  %v5079_v36 = vshrl.u32 %v14498_v52, 16  ;;  %v5082_v27 = vshll.u32 %v14498_v52, 16  ;;  %v14560_v52 = vld [vmem:[%s20440_s3 + $0xf8] sm:$0xff]  ;;  %7536 = vmatpush.bf16.msra.mxu0 %v14564_v57 }
 0x301   : > { %v16258_v12 = vadd.f32 %v5473_v6, %v5281_v10  ;;  %v4764_v39 = vadd.f32 %v4693_v28, %v16207_v53  ;;  %v5211_v51 = vpop.f32.mrf.mxu1  ;;  %v4559_v53 = vsel %vm4407_vm3, %v4549_v1, %v4558_v7  ;;  %v16271_v10 = vld [vmem:[%s14947_s28 + $0x90] sm:$0xff]  ;;  %v5351_v13 = vsel %vm5318_vm4, %v5348_v60, %v5350_v38  ;;  %v5569_v6 = vld [vmem:[%s14966_s18 + $0x8] sm:$0xc]  ;;  %v14556_v1 = vld [vmem:[%s20439_s2 + $0xf8] sm:$0xff]  ;;  %7272 = vmatpush.bf16.msra.mxu3 %v14560_v52 }
 0x302   : > { %v4564_v17 = vshll.u32 %v16271_v10, 16  ;;  %v5580_v60 = vunpack.c.l.b16 %v5569_v6  ;;  %6876 = vmatpush.bf16.msrb.mxu2 %v14556_v1  ;;  %v14554_v6 = vld [vmem:[%s20439_s2 + $0xe8] sm:$0xff] }
 0x303   : > { %v5282_v11 = vadd.f32 %v5211_v51, %v4764_v39 }
 0x306   : > { %v4184_v63 = vpop.f32.mrf.mxu3  ;;  %6877 = vmatpush.bf16.msrb.mxu2 %v14555_v54 }
 0x307   : > { %v16265_v33 = vadd.f32 %v4184_v63, %v20590_v22  ;;  %v4566_v22 = vrot.slane %v4564_v17, 2 }
 0x308   : > { %v5475_v46 = vpop.f32.mrf.mxu2  ;;  %v4696_v56 = vpop.f32.mrf.mxu0 }
 0x309   : > { %v16267_v0 = vadd.f32 %v5475_v46, %v5282_v11  ;;  %v4765_v16 = vadd.f32 %v4696_v56, %v4246_v50  ;;  %v5214_v8 = vpop.f32.mrf.mxu1  ;;  %v4561_v50 = vshrl.u32 %v16271_v10, 16  ;;  %v20591_v46 = vld [vmem:[#allocation5_spill] sm:$0xff] }
 0x30a   : > { %v20592_v56 = vunpack.c.l.b16 %v20591_v46  ;;  %6878 = vmatpush.bf16.msrb.mxu2 %v14554_v6 }
 0x30b   : > { %v5283_v28 = vadd.f32 %v5214_v8, %v4765_v16  ;;  %12978 = vmatmul.msk.bf16.gmra.mxu3 %vm1853_vm1, %v4053_v24  ;;  %13086 = vmatmul.msk.bf16.gmra.mxu0 %vm1853_vm1, %v4559_v53  ;;  %v4563_v63 = vrot.slane %v4561_v50, 1  ;;  %v14764_v50 = vld [vmem:[%s14966_s18 + $0x10] sm:$0xff] }
 0x30c   : > { %13196 = vmatmul.msk.bf16.gmra.mxu1 %vm1853_vm1, %v5077_v14  ;;  %v5581_v53 = vpack.c.b16 %v20592_v56, %v5580_v60  ;;  %v5084_v14 = vrot.slane %v5082_v27, 2  ;;  %v5583_v17 = vrot.slane %v14764_v50, 2 }
 0x30d   : > { %13238 = vmatmul.msk.bf16.gmra.mxu2 %vm1853_vm1, %v5351_v13 }
 0x30e   : > { %v4187_v39 = vpop.f32.mrf.mxu3  ;;  %v5582_v1 = vrot.slane %v5581_v53, 2 }
 0x30f   : > { %v16290_v24 = vadd.f32 %v4187_v39, %v15799_v30  ;;  %v5081_v30 = vrot.slane %v5079_v36, 1  ;;  %v4304_v36 = vld [vmem:[%s14947_s28 + $0x98] sm:$0x1] }
 0x310   : > { %v5478_v51 = vpop.f32.mrf.mxu2  ;;  %v4698_v11 = vpop.f32.mrf.mxu0  ;;  %v4823_v39 = vld [vmem:[%s14966_s18 + $0x98] sm:$0x1]  ;;  %v4387_v56 = vunpack.c.l.b16 %v4304_v36 }
 0x311   : > { %v16295_v61 = vadd.f32 %v5478_v51, %v5283_v28  ;;  %v4766_v16 = vadd.f32 %v4698_v11, %v16236_v59  ;;  %v5216_v8 = vpop.f32.mrf.mxu1  ;;  %v4567_v28 = vor.u32 %v4566_v22, %v4563_v63  ;;  %v5085_v60 = vor.u32 %v5084_v14, %v5081_v30  ;;  %v14553_v11 = vld [vmem:[%s20439_s2 + $0xe0] sm:$0xff] }
 0x312   : > { %v5352_v59 = vrot.slane %v16271_v10, 2  ;;  %v5584_v10 = vsel %vm5318_vm4, %v5582_v1, %v5583_v17  ;;  %v4906_v30 = vunpack.c.l.b16 %v4823_v39  ;;  %6879 = vmatpush.bf16.msrb.mxu2 %v14553_v11  ;;  %v16347_v11 = vld [vmem:[%s14947_s28 + $0x14] sm:$0xf] }
 0x313   : > { %v5284_v13 = vadd.f32 %v5216_v8, %v4766_v16  ;;  %v4568_v46 = vsel %vm4407_vm3, %v4558_v7, %v4567_v28  ;;  %v14568_v7 = vld [vmem:[%s20440_s3 + $0x118] sm:$0xff] }
 0x314   : > { %v5353_v8 = vsel %vm5318_vm4, %v5350_v38, %v5352_v59  ;;  %7799 = vmatpush.bf16.msra.mxu1 %v14568_v7 }
 0x316   : > { %v4189_v27 = vpop.f32.mrf.mxu3 }
 0x317   : > { %v16311_v51 = vadd.f32 %v4189_v27, %v15810_v15  ;;  %v5086_v15 = vsel %vm4407_vm3, %v16261_v19, %v5085_v60  ;;  %v16336_v19 = vpack.c.b16 %v4906_v30, %v4906_v30 }
 0x318   : > { %v5480_v54 = vpop.f32.mrf.mxu2  ;;  %v4701_v22 = vpop.f32.mrf.mxu0 }
 0x319   : > { %v16316_v63 = vadd.f32 %v5480_v54, %v5284_v13  ;;  %v4767_v53 = vadd.f32 %v4701_v22, %v16256_v34  ;;  %v5219_v16 = vpop.f32.mrf.mxu1  ;;  %v4406_v34 = vpack.c.b16 %v4387_v56, %v4387_v56  ;;  %v5088_v39 = vshll.u32 %v16336_v19, 16  ;;  %v5832_v54 = vld [vmem:[%s14947_s28 + $0x10] sm:$0xc] }
 0x31b   : > { %v5285_v14 = vadd.f32 %v5219_v16, %v4767_v53  ;;  %13087 = vmatmul.msk.bf16.gmra.mxu0 %vm1853_vm1, %v4568_v46  ;;  %13265 = vmatmul.msk.bf16.vlgmr.msrb.gmra.mxu3 %vm1853_vm1, %v5584_v10  ;;  %v4570_v50 = vshll.u32 %v4406_v34, 16  ;;  %v14765_v10 = vld [vmem:[%s14966_s18 + $0x18] sm:$0xff]  ;;  %v5915_v53 = vunpack.c.l.b16 %v5832_v54  ;;  %v5090_v16 = vrot.slane %v5088_v39, 2  ;;  %v16368_v39 = vld [vmem:[%s14966_s18 + $0x14] sm:$0xf] }
 0x31c   : > { %13197 = vmatmul.msk.bf16.gmra.mxu1 %vm1853_vm1, %v5086_v15  ;;  %v5585_v56 = vrot.slane %v14765_v10, 2  ;;  %v5354_v15 = vrot.slane %v4406_v34, 2 }
 0x31d   : > { %13239 = vmatmul.msk.bf16.gmra.mxu2 %vm1853_vm1, %v5353_v8  ;;  %v4572_v46 = vrot.slane %v4570_v50, 2  ;;  %v5091_v34 = vsel %vm4407_vm3, %v5085_v60, %v5090_v16 }
 0x31e   : > { %v4192_v38 = vpop.f32.mrf.mxu3 }
 0x31f   : > { %v16339_v13 = vadd.f32 %v4192_v38, %v15832_v42  ;;  %v20455_v42 = vunpack.c.l.b16 %v16347_v11  ;;  %v4573_v7 = vsel %vm4407_vm3, %v4567_v28, %v4572_v46  ;;  %v5586_v38 = vsel %vm5318_vm4, %v5583_v17, %v5585_v56 }
 0x320   : > { %v5483_v52 = vpop.f32.mrf.mxu2  ;;  %v4703_v1 = vpop.f32.mrf.mxu0  ;;  %v20456_v28 = vunpack.c.l.b16 %v16368_v39 }
 0x321   : > { %v16341_v6 = vadd.f32 %v5483_v52, %v5285_v14  ;;  %v4768_v36 = vadd.f32 %v4703_v1, %v16265_v33  ;;  %v5221_v27 = vpop.f32.mrf.mxu1  ;;  %v5952_v52 = vpack.c.b16 %v20455_v42, %v5915_v53 }
 0x323   : > { %v5286_v22 = vadd.f32 %v5221_v27, %v4768_v36  ;;  %v5355_v36 = vsel %vm5318_vm4, %v5352_v59, %v5354_v15  ;;  %v6221_v27 = vld [vmem:[%s14966_s18 + $0x10] sm:$0xc]  ;;  %v6625_v17 = vshrl.u32 %v5952_v52, 16  ;;  %v6628_v60 = vshll.u32 %v5952_v52, 16 }
 0x326   : > { %v4194_v8 = vpop.f32.mrf.mxu3 }
 0x327   : > { %v16352_v33 = vadd.f32 %v4194_v8, %v15840_v5  ;;  %v16364_v5 = vld [vmem:[%s14947_s28 + $0x18] sm:$0xff] }
 0x328   : > { %v5485_v30 = vpop.f32.mrf.mxu2  ;;  %v4706_v57 = vpop.f32.mrf.mxu0  ;;  %v6633_v59 = vshrl.u32 %v16364_v5, 16 }
 0x329   : > { %v16354_v14 = vadd.f32 %v5485_v30, %v5286_v22  ;;  %v4769_v1 = vadd.f32 %v4706_v57, %v16290_v24  ;;  %v5224_v50 = vpop.f32.mrf.mxu1  ;;  %v6304_v24 = vunpack.c.l.b16 %v6221_v27  ;;  %v6636_v22 = vshll.u32 %v16364_v5, 16  ;;  %v14766_v27 = vld [vmem:[%s14966_s18 + $0x20] sm:$0xff] }
 0x32a   : > { %v6627_v30 = vrot.slane %v6625_v17, 2 }
 0x32b   : > { %v5287_v54 = vadd.f32 %v5224_v50, %v4769_v1  ;;  %13088 = vmatmul.msk.bf16.gmra.mxu0 %vm1853_vm1, %v4573_v7  ;;  %13266 = vmatmul.msk.bf16.gmra.mxu3 %vm1853_vm1, %v5586_v38  ;;  %v16384_v8 = vpack.c.b16 %v20456_v28, %v6304_v24  ;;  %v14532_v38 = vld [vmem:[%s14966_s18 + $0x18] sm:$0xff]  ;;  %v6630_v1 = vrot.slane %v6628_v60, 3  ;;  %v6635_v50 = vrot.slane %v6633_v59, 2 }
 0x32c   : > { %13198 = vmatmul.msk.bf16.gmra.mxu1 %vm1853_vm1, %v5091_v34  ;;  %v6638_v34 = vrot.slane %v6636_v22, 3  ;;  %v6361_v42 = vrot.slane %v14532_v38, 2  ;;  %v16400_v38 = vld [vmem:[%s14947_s28 + $0x20] sm:$0xff] }
 0x32d   : > { %13240 = vmatmul.msk.bf16.gmra.mxu2 %vm1853_vm1, %v5355_v36  ;;  %v6631_v24 = vor.u32 %v6630_v1, %v6627_v30 }
 0x32e   : > { %v4197_v46 = vpop.f32.mrf.mxu3  ;;  %v6639_v28 = vor.u32 %v6638_v34, %v6635_v50 }
 0x32f   : > { %v16378_v10 = vadd.f32 %v4197_v46, %v15860_v4  ;;  %v5587_v4 = vrot.slane %v14766_v27, 2  ;;  %v5971_v46 = vrot.slane %v5952_v52, 2 }
 0x330   : > { %v5488_v53 = vpop.f32.mrf.mxu2  ;;  %v4708_v15 = vpop.f32.mrf.mxu0  ;;  %v6640_v30 = vsel %vm6623_vm5, %v6631_v24, %v6639_v28  ;;  %v14533_v24 = vld [vmem:[%s14966_s18 + $0x20] sm:$0xff] }
 0x331   : > { %v16380_v16 = vadd.f32 %v5488_v53, %v5287_v54  ;;  %v4770_v57 = vadd.f32 %v4708_v15, %v16311_v51  ;;  %v5226_v7 = vpop.f32.mrf.mxu1  ;;  %v5972_v54 = vrot.slane %v16364_v5, 2  ;;  %v6360_v53 = vrot.slane %v16384_v8, 2 }
 0x332   : > { %v5588_v22 = vsel %vm5318_vm4, %v5585_v56, %v5587_v4 }
 0x333   : > { %v5288_v36 = vadd.f32 %v5226_v7, %v4770_v57  ;;  %v5973_v52 = vsel %vm5318_vm4, %v5971_v46, %v5972_v54  ;;  %v6362_v7 = vsel %vm5318_vm4, %v6360_v53, %v6361_v42 }
 0x336   : > { %v4199_v17 = vpop.f32.mrf.mxu3 }
 0x337   : > { %v4255_v51 = vadd.f32 %v4199_v17, %v15871_v48  ;;  %v6642_v48 = vshrl.u32 %v16400_v38, 16 }
 0x338   : > { %v5490_v15 = vpop.f32.mrf.mxu2  ;;  %v4711_v59 = vpop.f32.mrf.mxu0 }
 0x339   : > { %v16392_v60 = vadd.f32 %v5490_v15, %v5288_v36  ;;  %v4771_v5 = vadd.f32 %v4711_v59, %v16339_v13  ;;  %v5229_v57 = vpop.f32.mrf.mxu1  ;;  %v6645_v13 = vshll.u32 %v16400_v38, 16  ;;  %v6644_v17 = vrot.slane %v6642_v48, 2 }
 0x33b   : > { %v5289_v1 = vadd.f32 %v5229_v57, %v4771_v5  ;;  %13267 = vmatmul.msk.bf16.gmra.mxu3 %vm1853_vm1, %v5588_v22  ;;  %13375 = vmatmul.msk.bf16.vlgmr.msrb.gmra.mxu0 %vm1853_vm1, %v5973_v52  ;;  %v6647_v15 = vrot.slane %v6645_v13, 3  ;;  %v14767_v22 = vld [vmem:[%s14966_s18 + $0x28] sm:$0xff]  ;;  %v5974_v5 = vrot.slane %v16400_v38, 2  ;;  %v6363_v57 = vrot.slane %v14533_v24, 2 }
 0x33c   : > { %13485 = vmatmul.msk.bf16.vlgmr.msrb.gmra.mxu1 %vm1853_vm1, %v6362_v7  ;;  %v5589_v52 = vrot.slane %v14767_v22, 2  ;;  %v14534_v22 = vld [vmem:[%s14966_s18 + $0x28] sm:$0xff] }
 0x33d   : > { %13527 = vmatmul.msk.bf16.vlgmr.msrb.gmra.mxu2 %vm1853_vm1, %v6640_v30  ;;  %v6648_v7 = vor.u32 %v6647_v15, %v6644_v17  ;;  %v5975_v48 = vsel %vm5318_vm4, %v5972_v54, %v5974_v5 }
 0x33e   : > { %v4202_v56 = vpop.f32.mrf.mxu3 }
 0x33f   : > { %v4256_v50 = vadd.f32 %v4202_v56, %v15894_v44  ;;  %v6649_v38 = vsel %vm6623_vm5, %v6639_v28, %v6648_v7 }
 0x340   : > { %v5493_v34 = vpop.f32.mrf.mxu2  ;;  %v4713_v27 = vpop.f32.mrf.mxu0 }
 0x341   : > { %v16409_v36 = vadd.f32 %v5493_v34, %v5289_v1  ;;  %v4772_v46 = vadd.f32 %v4713_v27, %v16352_v33  ;;  %v5231_v53 = vpop.f32.mrf.mxu1  ;;  %v5590_v33 = vsel %vm5318_vm4, %v5587_v4, %v5589_v52 }
 0x343   : > { %v5290_v59 = vadd.f32 %v5231_v53, %v4772_v46  ;;  %v6364_v46 = vsel %vm5318_vm4, %v6361_v42, %v6363_v57  ;;  %v16424_v53 = vld [vmem:[%s14947_s28 + $0x28] sm:$0xff] }
 0x346   : > { %v4204_v30 = vpop.f32.mrf.mxu3 }
 0x347   : > { %v4257_v44 = vadd.f32 %v4204_v30, %v15908_v40  ;;  %v6651_v40 = vshrl.u32 %v16424_v53, 16 }
 0x348   : > { %v5495_v1 = vpop.f32.mrf.mxu2  ;;  %v4716_v34 = vpop.f32.mrf.mxu0 }
 0x349   : > { %v16416_v56 = vadd.f32 %v5495_v1, %v5290_v59  ;;  %v4773_v13 = vadd.f32 %v4716_v34, %v16378_v10  ;;  %v5234_v27 = vpop.f32.mrf.mxu1  ;;  %v6654_v10 = vshll.u32 %v16424_v53, 16  ;;  %v6653_v30 = vrot.slane %v6651_v40, 2 }
 0x34b   : > { %v5291_v24 = vadd.f32 %v5234_v27, %v4773_v13  ;;  %13268 = vmatmul.msk.bf16.gmra.mxu3 %vm1853_vm1, %v5590_v33  ;;  %13376 = vmatmul.msk.bf16.gmra.mxu0 %vm1853_vm1, %v5975_v48  ;;  %v6656_v1 = vrot.slane %v6654_v10, 3  ;;  %v14768_v33 = vld [vmem:[%s14966_s18 + $0x30] sm:$0xff]  ;;  %v5976_v13 = vrot.slane %v16424_v53, 2  ;;  %v6365_v27 = vrot.slane %v14534_v22, 2 }
 0x34c   : > { %13486 = vmatmul.msk.bf16.gmra.mxu1 %vm1853_vm1, %v6364_v46  ;;  %v5591_v48 = vrot.slane %v14768_v33, 2 }
 0x34d   : > { %13528 = vmatmul.msk.bf16.gmra.mxu2 %vm1853_vm1, %v6649_v38  ;;  %v6657_v46 = vor.u32 %v6656_v1, %v6653_v30  ;;  %v5977_v40 = vsel %vm5318_vm4, %v5974_v5, %v5976_v13 }
 0x34e   : > { %v4207_v42 = vpop.f32.mrf.mxu3 }
 0x34f   : > { %v16433_v28 = vadd.f32 %v4207_v42, %v15928_v62  ;;  %v6658_v53 = vsel %vm6623_vm5, %v6648_v7, %v6657_v46 }
 0x350   : > { %v5498_v4 = vpop.f32.mrf.mxu2  ;;  %v4718_v17 = vpop.f32.mrf.mxu0 }
 0x351   : > { %v16435_v54 = vadd.f32 %v5498_v4, %v5291_v24  ;;  %v4774_v15 = vadd.f32 %v4718_v17, %v4255_v51  ;;  %v5236_v59 = vpop.f32.mrf.mxu1  ;;  %v5592_v4 = vsel %vm5318_vm4, %v5589_v52, %v5591_v48 }
 0x353   : > { %v5292_v34 = vadd.f32 %v5236_v59, %v4774_v15  ;;  %v6366_v15 = vsel %vm5318_vm4, %v6363_v57, %v6365_v27  ;;  %v16450_v59 = vld [vmem:[%s14947_s28 + $0x30] sm:$0xff] }
 0x354   : > { %v6663_v52 = vshll.u32 %v16450_v59, 16 }
 0x356   : > { %v4209_v38 = vpop.f32.mrf.mxu3 }
 0x357   : > { %v16441_v62 = vadd.f32 %v4209_v38, %v15936_v25  ;;  %v14559_v25 = vld [vmem:[%s20440_s3 + $0xf0] sm:$0xff] }
 0x358   : > { %v5500_v24 = vpop.f32.mrf.mxu2  ;;  %v4721_v51 = vpop.f32.mrf.mxu0  ;;  %7273 = vmatpush.bf16.msra.mxu3 %v14559_v25  ;;  %v14535_v38 = vld [vmem:[%s14966_s18 + $0x30] sm:$0xff] }
 0x359   : > { %v16443_v42 = vadd.f32 %v5500_v24, %v5292_v34  ;;  %v4775_v10 = vadd.f32 %v4721_v51, %v4256_v50  ;;  %v5239_v17 = vpop.f32.mrf.mxu1  ;;  %v6660_v50 = vshrl.u32 %v16450_v59, 16  ;;  %v6665_v51 = vrot.slane %v6663_v52, 3 }
 0x35b   : > { %v5293_v22 = vadd.f32 %v5239_v17, %v4775_v10  ;;  %13269 = vmatmul.msk.bf16.gmra.mxu3 %vm1853_vm1, %v5592_v4  ;;  %13377 = vmatmul.msk.bf16.gmra.mxu0 %vm1853_vm1, %v5977_v40  ;;  %v6662_v24 = vrot.slane %v6660_v50, 2  ;;  %v14563_v40 = vld [vmem:[%s20439_s2 + $0x110] sm:$0xff]  ;;  %v14769_v17 = vld [vmem:[%s14966_s18 + $0x38] sm:$0xff] }
 0x35c   : > { %13487 = vmatmul.msk.bf16.gmra.mxu1 %vm1853_vm1, %v6366_v15  ;;  %v14567_v10 = vld [vmem:[%s20440_s3 + $0x110] sm:$0xff]  ;;  %v5978_v15 = vrot.slane %v16450_v59, 2  ;;  %7537 = vmatpush.bf16.msra.mxu0 %v14563_v40 }
 0x35d   : > { %13529 = vmatmul.msk.bf16.gmra.mxu2 %vm1853_vm1, %v6658_v53  ;;  %v6367_v53 = vrot.slane %v14535_v38, 2  ;;  %7800 = vmatpush.bf16.msra.mxu1 %v14567_v10 }
 0x35e   : > { %v4212_v5 = vpop.f32.mrf.mxu3 }
 0x35f   : > { %v4260_v57 = vadd.f32 %v4212_v5, %v15956_v32  ;;  %v5593_v32 = vrot.slane %v14769_v17, 2  ;;  %v6368_v59 = vsel %vm5318_vm4, %v6365_v27, %v6367_v53  ;;  %v14536_v17 = vld [vmem:[%s14966_s18 + $0x38] sm:$0xff] }
 0x360   : > { %v5503_v7 = vpop.f32.mrf.mxu2  ;;  %v4723_v1 = vpop.f32.mrf.mxu0 }
 0x361   : > { %v16462_v30 = vadd.f32 %v5503_v7, %v5293_v22  ;;  %v4776_v34 = vadd.f32 %v4723_v1, %v4257_v44  ;;  %v5241_v33 = vpop.f32.mrf.mxu1  ;;  %v6666_v44 = vor.u32 %v6665_v51, %v6662_v24  ;;  %v5594_v7 = vsel %vm5318_vm4, %v5591_v48, %v5593_v32  ;;  %v16482_v24 = vld [vmem:[%s14947_s28 + $0x38] sm:$0xff] }
 0x362   : > { %v5979_v1 = vsel %vm5318_vm4, %v5976_v13, %v5978_v15 }
 0x363   : > { %v5294_v4 = vadd.f32 %v5241_v33, %v4776_v34  ;;  %v6667_v38 = vsel %vm6623_vm5, %v6657_v46, %v6666_v44 }
 0x366   : > { %v4214_v22 = vpop.f32.mrf.mxu3 }
 0x367   : > { %v4261_v25 = vadd.f32 %v4214_v22, %v15964_v37  ;;  %v6669_v37 = vshrl.u32 %v16482_v24, 16 }
 0x368   : > { %v5505_v50 = vpop.f32.mrf.mxu2  ;;  %v4726_v5 = vpop.f32.mrf.mxu0 }
 0x369   : > { %v16474_v52 = vadd.f32 %v5505_v50, %v5294_v4  ;;  %v4777_v34 = vadd.f32 %v4726_v5, %v16433_v28  ;;  %v5244_v33 = vpop.f32.mrf.mxu1  ;;  %v6672_v28 = vshll.u32 %v16482_v24, 16  ;;  %v6671_v22 = vrot.slane %v6669_v37, 2 }
 0x36b   : > { %v5295_v51 = vadd.f32 %v5244_v33, %v4777_v34  ;;  %13270 = vmatmul.msk.bf16.gmra.mxu3 %vm1853_vm1, %v5594_v7  ;;  %13378 = vmatmul.msk.bf16.gmra.mxu0 %vm1853_vm1, %v5979_v1  ;;  %v6674_v50 = vrot.slane %v6672_v28, 3  ;;  %v14770_v7 = vld [vmem:[%s14966_s18 + $0x40] sm:$0xff]  ;;  %v5980_v34 = vrot.slane %v16482_v24, 2  ;;  %v6369_v33 = vrot.slane %v14536_v17, 2 }
 0x36c   : > { %13488 = vmatmul.msk.bf16.gmra.mxu1 %vm1853_vm1, %v6368_v59  ;;  %v5595_v1 = vrot.slane %v14770_v7, 2  ;;  %v16505_v24 = vld [vmem:[%s14947_s28 + $0x40] sm:$0xff] }
 0x36d   : > { %13530 = vmatmul.msk.bf16.gmra.mxu2 %vm1853_vm1, %v6667_v38  ;;  %v6675_v59 = vor.u32 %v6674_v50, %v6671_v22  ;;  %v5981_v37 = vsel %vm5318_vm4, %v5978_v15, %v5980_v34  ;;  %v14537_v7 = vld [vmem:[%s14966_s18 + $0x40] sm:$0xff] }
 0x36e   : > { %v4217_v48 = vpop.f32.mrf.mxu3 }
 0x36f   : > { %v4262_v13 = vadd.f32 %v4217_v48, %v15984_v23 }
 0x370   : > { %v5508_v27 = vpop.f32.mrf.mxu2  ;;  %v4728_v4 = vpop.f32.mrf.mxu0 }
 0x371   : > { %v16491_v46 = vadd.f32 %v5508_v27, %v5295_v51  ;;  %v4778_v40 = vadd.f32 %v4728_v4, %v16441_v62  ;;  %v5246_v10 = vpop.f32.mrf.mxu1  ;;  %v5596_v62 = vsel %vm5318_vm4, %v5593_v32, %v5595_v1 }
 0x373   : > { %v5296_v5 = vadd.f32 %v5246_v10, %v4778_v40  ;;  %v6370_v40 = vsel %vm5318_vm4, %v6367_v53, %v6369_v33  ;;  %v6676_v10 = vsel %vm6623_vm5, %v6666_v44, %v6675_v59 }
 0x376   : > { %v4219_v38 = vpop.f32.mrf.mxu3 }
 0x377   : > { %v4263_v23 = vadd.f32 %v4219_v38, %v15992_v2  ;;  %v6678_v2 = vshrl.u32 %v16505_v24, 16 }
 0x378   : > { %v5510_v51 = vpop.f32.mrf.mxu2  ;;  %v4731_v27 = vpop.f32.mrf.mxu0 }
 0x379   : > { %v16498_v48 = vadd.f32 %v5510_v51, %v5296_v5  ;;  %v4779_v28 = vadd.f32 %v4731_v27, %v4260_v57  ;;  %v5249_v4 = vpop.f32.mrf.mxu1  ;;  %v6681_v57 = vshll.u32 %v16505_v24, 16  ;;  %v6680_v38 = vrot.slane %v6678_v2, 2 }
 0x37b   : > { %v5297_v17 = vadd.f32 %v5249_v4, %v4779_v28  ;;  %13271 = vmatmul.msk.bf16.gmra.mxu3 %vm1853_vm1, %v5596_v62  ;;  %13379 = vmatmul.msk.bf16.gmra.mxu0 %vm1853_vm1, %v5981_v37  ;;  %v6683_v51 = vrot.slane %v6681_v57, 3  ;;  %v14771_v62 = vld [vmem:[%s14966_s18 + $0x48] sm:$0xff]  ;;  %v5982_v28 = vrot.slane %v16505_v24, 2  ;;  %v6371_v4 = vrot.slane %v14537_v7, 2 }
 0x37c   : > { %13489 = vmatmul.msk.bf16.gmra.mxu1 %vm1853_vm1, %v6370_v40  ;;  %v5597_v37 = vrot.slane %v14771_v62, 2  ;;  %v16527_v24 = vld [vmem:[%s14947_s28 + $0x48] sm:$0xff] }
 0x37d   : > { %13531 = vmatmul.msk.bf16.gmra.mxu2 %vm1853_vm1, %v6676_v10  ;;  %v6684_v40 = vor.u32 %v6683_v51, %v6680_v38  ;;  %v5983_v2 = vsel %vm5318_vm4, %v5980_v34, %v5982_v28  ;;  %v14538_v62 = vld [vmem:[%s14966_s18 + $0x48] sm:$0xff] }
 0x37e   : > { %v4222_v32 = vpop.f32.mrf.mxu3 }
 0x37f   : > { %v4264_v15 = vadd.f32 %v4222_v32, %v16012_v47 }
 0x380   : > { %v5513_v53 = vpop.f32.mrf.mxu2  ;;  %v4733_v22 = vpop.f32.mrf.mxu0 }
 0x381   : > { %v16514_v44 = vadd.f32 %v5513_v53, %v5297_v17  ;;  %v4780_v50 = vadd.f32 %v4733_v22, %v4261_v25  ;;  %v5251_v5 = vpop.f32.mrf.mxu1  ;;  %v5598_v25 = vsel %vm5318_vm4, %v5595_v1, %v5597_v37 }
 0x383   : > { %v5298_v27 = vadd.f32 %v5251_v5, %v4780_v50  ;;  %v6372_v50 = vsel %vm5318_vm4, %v6369_v33, %v6371_v4  ;;  %v6685_v5 = vsel %vm6623_vm5, %v6675_v59, %v6684_v40 }
 0x386   : > { %v4224_v10 = vpop.f32.mrf.mxu3 }
 0x387   : > { %v4265_v47 = vadd.f32 %v4224_v10, %v16026_v45  ;;  %v6687_v45 = vshrl.u32 %v16527_v24, 16 }
 0x388   : > { %v5515_v32 = vpop.f32.mrf.mxu2  ;;  %v4736_v53 = vpop.f32.mrf.mxu0 }
 0x389   : > { %v16520_v17 = vadd.f32 %v5515_v32, %v5298_v27  ;;  %v4781_v57 = vadd.f32 %v4736_v53, %v4262_v13  ;;  %v5254_v22 = vpop.f32.mrf.mxu1  ;;  %v6690_v13 = vshll.u32 %v16527_v24, 16  ;;  %v6689_v10 = vrot.slane %v6687_v45, 2 }
 0x38b   : > { %v5299_v7 = vadd.f32 %v5254_v22, %v4781_v57  ;;  %13272 = vmatmul.msk.bf16.gmra.mxu3 %vm1853_vm1, %v5598_v25  ;;  %13380 = vmatmul.msk.bf16.gmra.mxu0 %vm1853_vm1, %v5983_v2  ;;  %v6692_v32 = vrot.slane %v6690_v13, 3  ;;  %v14772_v25 = vld [vmem:[%s14966_s18 + $0x50] sm:$0xff]  ;;  %v5984_v57 = vrot.slane %v16527_v24, 2  ;;  %v6373_v22 = vrot.slane %v14538_v62, 2 }
 0x38c   : > { %13490 = vmatmul.msk.bf16.gmra.mxu1 %vm1853_vm1, %v6372_v50  ;;  %v5599_v2 = vrot.slane %v14772_v25, 2  ;;  %v14539_v25 = vld [vmem:[%s14966_s18 + $0x50] sm:$0xff] }
 0x38d   : > { %13532 = vmatmul.msk.bf16.gmra.mxu2 %vm1853_vm1, %v6685_v5  ;;  %v6693_v50 = vor.u32 %v6692_v32, %v6689_v10  ;;  %v5985_v45 = vsel %vm5318_vm4, %v5982_v28, %v5984_v57 }
 0x38e   : > { %v4227_v1 = vpop.f32.mrf.mxu3 }
 0x38f   : > { %v4266_v34 = vadd.f32 %v4227_v1, %v16050_v43  ;;  %v6694_v24 = vsel %vm6623_vm5, %v6684_v40, %v6693_v50 }
 0x390   : > { %v5518_v33 = vpop.f32.mrf.mxu2  ;;  %v4738_v38 = vpop.f32.mrf.mxu0 }
 0x391   : > { %v16536_v59 = vadd.f32 %v5518_v33, %v5299_v7  ;;  %v4782_v51 = vadd.f32 %v4738_v38, %v4263_v23  ;;  %v5256_v27 = vpop.f32.mrf.mxu1  ;;  %v5600_v33 = vsel %vm5318_vm4, %v5597_v37, %v5599_v2 }
 0x393   : > { %v5300_v53 = vadd.f32 %v5256_v27, %v4782_v51  ;;  %v6374_v51 = vsel %vm5318_vm4, %v6371_v4, %v6373_v22  ;;  %v16551_v27 = vld [vmem:[%s14947_s28 + $0x50] sm:$0xff] }
 0x396   : > { %v4229_v5 = vpop.f32.mrf.mxu3 }
 0x397   : > { %v16542_v43 = vadd.f32 %v4229_v5, %v16058_v26  ;;  %v6696_v26 = vshrl.u32 %v16551_v27, 16 }
 0x398   : > { %v5520_v7 = vpop.f32.mrf.mxu2  ;;  %v4741_v23 = vpop.f32.mrf.mxu0 }
 0x399   : > { %v16544_v1 = vadd.f32 %v5520_v7, %v5300_v53  ;;  %v4783_v13 = vadd.f32 %v4741_v23, %v4264_v15  ;;  %v5259_v38 = vpop.f32.mrf.mxu1  ;;  %v6699_v15 = vshll.u32 %v16551_v27, 16  ;;  %v6698_v5 = vrot.slane %v6696_v26, 2 }
 0x39b   : > { %v5301_v62 = vadd.f32 %v5259_v38, %v4783_v13  ;;  %13273 = vmatmul.msk.bf16.gmra.mxu3 %vm1853_vm1, %v5600_v33  ;;  %13381 = vmatmul.msk.bf16.gmra.mxu0 %vm1853_vm1, %v5985_v45  ;;  %v6701_v7 = vrot.slane %v6699_v15, 3  ;;  %v14558_v33 = vld [vmem:[%s20440_s3 + $0xe8] sm:$0xff]  ;;  %v14773_v45 = vld [vmem:[%s14966_s18 + $0x58] sm:$0xff]  ;;  %v5986_v38 = vrot.slane %v16551_v27, 2 }
 0x39c   : > { %13491 = vmatmul.msk.bf16.gmra.mxu1 %vm1853_vm1, %v6374_v51  ;;  %v5601_v13 = vrot.slane %v14773_v45, 2  ;;  %7274 = vmatpush.bf16.msra.mxu3 %v14558_v33 }
 0x39d   : > { %13533 = vmatmul.msk.bf16.gmra.mxu2 %vm1853_vm1, %v6694_v24  ;;  %v6702_v51 = vor.u32 %v6701_v7, %v6698_v5 }
 0x39e   : > { %v5706_v37 = vpop.f32.mrf.mxu3  ;;  %v5602_v15 = vsel %vm5318_vm4, %v5599_v2, %v5601_v13 }
 0x39f   : > { %v16560_v4 = vadd.f32 %v5706_v37, %v16078_v3  ;;  %v6375_v3 = vrot.slane %v14539_v25, 2  ;;  %v6703_v27 = vsel %vm6623_vm5, %v6693_v50, %v6702_v51  ;;  %v16578_v25 = vld [vmem:[%s14947_s28 + $0x58] sm:$0xff] }
 0x3a0   : > { %v5523_v28 = vpop.f32.mrf.mxu2  ;;  %v4743_v10 = vpop.f32.mrf.mxu0  ;;  %v6705_v2 = vshrl.u32 %v16578_v25, 16 }
 0x3a1   : > { %v16562_v40 = vadd.f32 %v5523_v28, %v5301_v62  ;;  %v4784_v32 = vadd.f32 %v4743_v10, %v4265_v47  ;;  %v5261_v53 = vpop.f32.mrf.mxu1  ;;  %v5987_v28 = vsel %vm5318_vm4, %v5984_v57, %v5986_v38  ;;  %v6708_v57 = vshll.u32 %v16578_v25, 16 }
 0x3a3   : > { %v5302_v23 = vadd.f32 %v5261_v53, %v4784_v32  ;;  %v6376_v53 = vsel %vm5318_vm4, %v6373_v22, %v6375_v3 }
 0x3a6   : > { %v5708_v24 = vpop.f32.mrf.mxu3 }
 0x3a7   : > { %v5797_v47 = vadd.f32 %v5708_v24, %v16086_v21  ;;  %v14562_v21 = vld [vmem:[%s20439_s2 + $0x108] sm:$0xff] }
 0x3a8   : > { %v5525_v62 = vpop.f32.mrf.mxu2  ;;  %v4746_v26 = vpop.f32.mrf.mxu0  ;;  %7538 = vmatpush.bf16.msra.mxu0 %v14562_v21 }
 0x3a9   : > { %v16571_v37 = vadd.f32 %v5525_v62, %v5302_v23  ;;  %v4785_v10 = vadd.f32 %v4746_v26, %v4266_v34  ;;  %v5264_v32 = vpop.f32.mrf.mxu1  ;;  %v14566_v34 = vld [vmem:[%s20440_s3 + $0x108] sm:$0xff]  ;;  %v14540_v62 = vld [vmem:[%s14966_s18 + $0x58] sm:$0xff]  ;;  %v6707_v26 = vrot.slane %v6705_v2, 2 }
 0x3aa   : > { %7801 = vmatpush.bf16.msra.mxu1 %v14566_v34 }
 0x3ab   : > { %20593 = vst [vmem:[#allocation9_spill] sm:$0xff] %v16571_v37  ;;  %v5303_v5 = vadd.f32 %v5264_v32, %v4785_v10  ;;  %13274 = vmatmul.msk.bf16.gmra.mxu3 %vm1853_vm1, %v5602_v15  ;;  %13382 = vmatmul.msk.bf16.gmra.mxu0 %vm1853_vm1, %v5987_v28  ;;  %v6710_v15 = vrot.slane %v6708_v57, 3  ;;  %v14774_v10 = vld [vmem:[%s14966_s18 + $0x60] sm:$0xff] }
 0x3ac   : > { %13492 = vmatmul.msk.bf16.gmra.mxu1 %vm1853_vm1, %v6376_v53  ;;  %v5603_v32 = vrot.slane %v14774_v10, 2  ;;  %v5988_v53 = vrot.slane %v16578_v25, 2 }
 0x3ad   : > { %13534 = vmatmul.msk.bf16.gmra.mxu2 %vm1853_vm1, %v6703_v27  ;;  %v6377_v27 = vrot.slane %v14540_v62, 2  ;;  %v6711_v21 = vor.u32 %v6710_v15, %v6707_v26  ;;  %v14541_v15 = vld [vmem:[%s14966_s18 + $0x60] sm:$0xff] }
 0x3ae   : > { %v5711_v22 = vpop.f32.mrf.mxu3  ;;  %v5989_v2 = vsel %vm5318_vm4, %v5986_v38, %v5988_v53 }
 0x3af   : > { %v5798_v7 = vadd.f32 %v5711_v22, %v16105_v49  ;;  %v6712_v25 = vsel %vm6623_vm5, %v6702_v51, %v6711_v21 }
 0x3b0   : > { %v5528_v50 = vpop.f32.mrf.mxu2  ;;  %v4748_v33 = vpop.f32.mrf.mxu0 }
 0x3b1   : > { %v16593_v23 = vadd.f32 %v5528_v50, %v5303_v5  ;;  %v4786_v45 = vadd.f32 %v4748_v33, %v16542_v43  ;;  %v5266_v24 = vpop.f32.mrf.mxu1  ;;  %v5604_v43 = vsel %vm5318_vm4, %v5601_v13, %v5603_v32  ;;  %v6378_v33 = vsel %vm5318_vm4, %v6375_v3, %v6377_v27 }
 0x3b3   : > { %v5304_v28 = vadd.f32 %v5266_v24, %v4786_v45  ;;  %v16608_v45 = vld [vmem:[%s14947_s28 + $0x60] sm:$0xff] }
 0x3b6   : > { %v5713_v34 = vpop.f32.mrf.mxu3 }
 0x3b7   : > { %v5799_v49 = vadd.f32 %v5713_v34, %v16113_v58  ;;  %v6714_v58 = vshrl.u32 %v16608_v45, 16 }
 0x3b8   : > { %v5530_v37 = vpop.f32.mrf.mxu2  ;;  %v6095_v22 = vpop.f32.mrf.mxu0 }
 0x3b9   : > { %v16600_v5 = vadd.f32 %v5530_v37, %v5304_v28  ;;  %v6185_v57 = vadd.f32 %v6095_v22, %v16560_v4  ;;  %v6484_v50 = vpop.f32.mrf.mxu1  ;;  %v6717_v4 = vshll.u32 %v16608_v45, 16  ;;  %v6716_v28 = vrot.slane %v6714_v58, 2  ;;  %v14775_v22 = vld [vmem:[%s14966_s18 + $0x68] sm:$0xff] }
 0x3bb   : > { %v6574_v24 = vadd.f32 %v6484_v50, %v6185_v57  ;;  %13275 = vmatmul.msk.bf16.gmra.mxu3 %vm1853_vm1, %v5604_v43  ;;  %13383 = vmatmul.msk.bf16.gmra.mxu0 %vm1853_vm1, %v5989_v2  ;;  %v6719_v10 = vrot.slane %v6717_v4, 3  ;;  %v5605_v43 = vrot.slane %v14775_v22, 2  ;;  %v5990_v2 = vrot.slane %v16608_v45, 2  ;;  %v16630_v45 = vld [vmem:[%s14947_s28 + $0x68] sm:$0xff] }
 0x3bc   : > { %13493 = vmatmul.msk.bf16.gmra.mxu1 %vm1853_vm1, %v6378_v33  ;;  %v6379_v57 = vrot.slane %v14541_v15, 2 }
 0x3bd   : > { %13535 = vmatmul.msk.bf16.gmra.mxu2 %vm1853_vm1, %v6712_v25  ;;  %v6720_v50 = vor.u32 %v6719_v10, %v6716_v28  ;;  %v5991_v58 = vsel %vm5318_vm4, %v5988_v53, %v5990_v2 }
 0x3be   : > { %v5716_v13 = vpop.f32.mrf.mxu3 }
 0x3bf   : > { %v5800_v38 = vadd.f32 %v5716_v13, %v16133_v18 }
 0x3c0   : > { %v6881_v3 = vpop.f32.mrf.mxu2  ;;  %v6097_v37 = vpop.f32.mrf.mxu0 }
 0x3c1   : > { %v16617_v51 = vadd.f32 %v6881_v3, %v6574_v24  ;;  %v6186_v62 = vadd.f32 %v6097_v37, %v5797_v47  ;;  %v6486_v26 = vpop.f32.mrf.mxu1  ;;  %v5606_v47 = vsel %vm5318_vm4, %v5603_v32, %v5605_v43  ;;  %v6380_v37 = vsel %vm5318_vm4, %v6377_v27, %v6379_v57 }
 0x3c3   : > { %v6575_v34 = vadd.f32 %v6486_v26, %v6186_v62  ;;  %v6721_v62 = vsel %vm6623_vm5, %v6711_v21, %v6720_v50 }
 0x3c6   : > { %v5718_v33 = vpop.f32.mrf.mxu3 }
 0x3c7   : > { %v5801_v18 = vadd.f32 %v5718_v33, %v16144_v20  ;;  %v6723_v20 = vshrl.u32 %v16630_v45, 16 }
 0x3c8   : > { %v6883_v25 = vpop.f32.mrf.mxu2  ;;  %v6100_v13 = vpop.f32.mrf.mxu0 }
 0x3c9   : > { %v16623_v24 = vadd.f32 %v6883_v25, %v6575_v34  ;;  %v6187_v4 = vadd.f32 %v6100_v13, %v5798_v7  ;;  %v6489_v3 = vpop.f32.mrf.mxu1  ;;  %v6726_v7 = vshll.u32 %v16630_v45, 16  ;;  %v14542_v34 = vld [vmem:[%s14966_s18 + $0x68] sm:$0xff]  ;;  %v6725_v22 = vrot.slane %v6723_v20, 2  ;;  %v14776_v13 = vld [vmem:[%s14966_s18 + $0x70] sm:$0xff] }
 0x3cb   : > { %v6576_v26 = vadd.f32 %v6489_v3, %v6187_v4  ;;  %13276 = vmatmul.msk.bf16.gmra.mxu3 %vm1853_vm1, %v5606_v47  ;;  %13384 = vmatmul.msk.bf16.gmra.mxu0 %vm1853_vm1, %v5991_v58  ;;  %v6728_v33 = vrot.slane %v6726_v7, 3  ;;  %v5607_v47 = vrot.slane %v14776_v13, 2  ;;  %v5992_v58 = vrot.slane %v16630_v45, 2  ;;  %v16652_v45 = vld [vmem:[%s14947_s28 + $0x70] sm:$0xff] }
 0x3cc   : > { %13494 = vmatmul.msk.bf16.gmra.mxu1 %vm1853_vm1, %v6380_v37  ;;  %v6381_v4 = vrot.slane %v14542_v34, 2 }
 0x3cd   : > { %13536 = vmatmul.msk.bf16.gmra.mxu2 %vm1853_vm1, %v6721_v62  ;;  %v6729_v3 = vor.u32 %v6728_v33, %v6725_v22  ;;  %v5993_v20 = vsel %vm5318_vm4, %v5990_v2, %v5992_v58 }
 0x3ce   : > { %v5721_v32 = vpop.f32.mrf.mxu3 }
 0x3cf   : > { %v5802_v53 = vadd.f32 %v5721_v32, %v16167_v31 }
 0x3d0   : > { %v6886_v27 = vpop.f32.mrf.mxu2  ;;  %v6102_v15 = vpop.f32.mrf.mxu0 }
 0x3d1   : > { %v16639_v21 = vadd.f32 %v6886_v27, %v6576_v26  ;;  %v6188_v28 = vadd.f32 %v6102_v15, %v5799_v49  ;;  %v6491_v10 = vpop.f32.mrf.mxu1  ;;  %v5608_v49 = vsel %vm5318_vm4, %v5605_v43, %v5607_v47  ;;  %v6382_v15 = vsel %vm5318_vm4, %v6379_v57, %v6381_v4 }
 0x3d3   : > { %v6577_v25 = vadd.f32 %v6491_v10, %v6188_v28  ;;  %v6730_v28 = vsel %vm6623_vm5, %v6720_v50, %v6729_v3 }
 0x3d6   : > { %v5723_v37 = vpop.f32.mrf.mxu3 }
 0x3d7   : > { %v5803_v31 = vadd.f32 %v5723_v37, %v16181_v29  ;;  %v6732_v29 = vshrl.u32 %v16652_v45, 16 }
 0x3d8   : > { %v6888_v62 = vpop.f32.mrf.mxu2  ;;  %v6105_v32 = vpop.f32.mrf.mxu0 }
 0x3d9   : > { %v16645_v26 = vadd.f32 %v6888_v62, %v6577_v25  ;;  %v6189_v7 = vadd.f32 %v6105_v32, %v5800_v38  ;;  %v6494_v27 = vpop.f32.mrf.mxu1  ;;  %v6735_v38 = vshll.u32 %v16652_v45, 16  ;;  %v14543_v25 = vld [vmem:[%s14966_s18 + $0x70] sm:$0xff]  ;;  %v6734_v13 = vrot.slane %v6732_v29, 2  ;;  %v14777_v32 = vld [vmem:[%s14966_s18 + $0x78] sm:$0xff] }
 0x3db   : > { %v6578_v10 = vadd.f32 %v6494_v27, %v6189_v7  ;;  %13277 = vmatmul.msk.bf16.gmra.mxu3 %vm1853_vm1, %v5608_v49  ;;  %13385 = vmatmul.msk.bf16.gmra.mxu0 %vm1853_vm1, %v5993_v20  ;;  %v6737_v37 = vrot.slane %v6735_v38, 3  ;;  %v5609_v49 = vrot.slane %v14777_v32, 2  ;;  %v5994_v20 = vrot.slane %v16652_v45, 2  ;;  %v14544_v32 = vld [vmem:[%s14966_s18 + $0x78] sm:$0xff] }
 0x3dc   : > { %13495 = vmatmul.msk.bf16.gmra.mxu1 %vm1853_vm1, %v6382_v15  ;;  %v6383_v7 = vrot.slane %v14543_v25, 2 }
 0x3dd   : > { %13537 = vmatmul.msk.bf16.gmra.mxu2 %vm1853_vm1, %v6730_v28  ;;  %v6738_v27 = vor.u32 %v6737_v37, %v6734_v13  ;;  %v5995_v29 = vsel %vm5318_vm4, %v5992_v58, %v5994_v20 }
 0x3de   : > { %v5726_v43 = vpop.f32.mrf.mxu3 }
 0x3df   : > { %v16661_v2 = vadd.f32 %v5726_v43, %v16201_v55  ;;  %v5610_v43 = vsel %vm5318_vm4, %v5607_v47, %v5609_v49  ;;  %v6739_v45 = vsel %vm6623_vm5, %v6729_v3, %v6738_v27 }
 0x3e0   : > { %v6891_v57 = vpop.f32.mrf.mxu2  ;;  %v6107_v34 = vpop.f32.mrf.mxu0 }
 0x3e1   : > { %v16663_v50 = vadd.f32 %v6891_v57, %v6578_v10  ;;  %v6190_v22 = vadd.f32 %v6107_v34, %v5801_v18  ;;  %v6496_v33 = vpop.f32.mrf.mxu1  ;;  %v6384_v34 = vsel %vm5318_vm4, %v6381_v4, %v6383_v7 }
 0x3e3   : > { %v6579_v62 = vadd.f32 %v6496_v33, %v6190_v22  ;;  %v16678_v22 = vld [vmem:[%s14947_s28 + $0x78] sm:$0xff] }
 0x3e4   : > { %v6744_v47 = vshll.u32 %v16678_v22, 16 }
 0x3e6   : > { %v5728_v15 = vpop.f32.mrf.mxu3 }
 0x3e7   : > { %v16669_v55 = vadd.f32 %v5728_v15, %v16209_v41  ;;  %v14557_v41 = vld [vmem:[%s20440_s3 + $0xe0] sm:$0xff] }
 0x3e8   : > { %v6893_v28 = vpop.f32.mrf.mxu2  ;;  %v6110_v18 = vpop.f32.mrf.mxu0  ;;  %7275 = vmatpush.bf16.msra.mxu3 %v14557_v41 }
 0x3e9   : > { %v16671_v10 = vadd.f32 %v6893_v28, %v6579_v62  ;;  %v6191_v38 = vadd.f32 %v6110_v18, %v5802_v53  ;;  %v6499_v57 = vpop.f32.mrf.mxu1  ;;  %v6741_v53 = vshrl.u32 %v16678_v22, 16  ;;  %v6746_v28 = vrot.slane %v6744_v47, 3 }
 0x3eb   : > { %v6580_v33 = vadd.f32 %v6499_v57, %v6191_v38  ;;  %13278 = vmatmul.msk.bf16.gmra.mxu3 %vm1853_vm1, %v5610_v43  ;;  %13386 = vmatmul.msk.bf16.gmra.mxu0 %vm1853_vm1, %v5995_v29  ;;  %v6743_v15 = vrot.slane %v6741_v53, 2  ;;  %v14561_v43 = vld [vmem:[%s20439_s2 + $0x100] sm:$0xff]  ;;  %v5996_v57 = vrot.slane %v16678_v22, 2 }
 0x3ec   : > { %13496 = vmatmul.msk.bf16.gmra.mxu1 %vm1853_vm1, %v6384_v34  ;;  %v14565_v29 = vld [vmem:[%s20440_s3 + $0x100] sm:$0xff]  ;;  %v6385_v34 = vrot.slane %v14544_v32, 2  ;;  %7539 = vmatpush.bf16.msra.mxu0 %v14561_v43 }
 0x3ed   : > { %13538 = vmatmul.msk.bf16.gmra.mxu2 %vm1853_vm1, %v6739_v45  ;;  %v14778_v38 = vld [vmem:[%s14966_s18 + $0x80] sm:$0xff]  ;;  %7802 = vmatpush.bf16.msra.mxu1 %v14565_v29 }
 0x3ee   : > { %v5731_v58 = vpop.f32.mrf.mxu3  ;;  %v6386_v22 = vsel %vm5318_vm4, %v6383_v7, %v6385_v34  ;;  %v16710_v32 = vld [vmem:[%s14947_s28 + $0x80] sm:$0xff] }
 0x3ef   : > { %v5806_v4 = vadd.f32 %v5731_v58, %v16227_v35  ;;  %v5611_v35 = vrot.slane %v14778_v38, 2  ;;  %v14545_v29 = vld [vmem:[%s14966_s18 + $0x80] sm:$0xff] }
 0x3f0   : > { %v6896_v3 = vpop.f32.mrf.mxu2  ;;  %v6112_v13 = vpop.f32.mrf.mxu0 }
 0x3f1   : > { %v16690_v25 = vadd.f32 %v6896_v3, %v6580_v33  ;;  %v6192_v37 = vadd.f32 %v6112_v13, %v5803_v31  ;;  %v6501_v62 = vpop.f32.mrf.mxu1  ;;  %v6747_v31 = vor.u32 %v6746_v28, %v6743_v15  ;;  %v5612_v58 = vsel %vm5318_vm4, %v5609_v49, %v5611_v35 }
 0x3f2   : > { %v5997_v3 = vsel %vm5318_vm4, %v5994_v20, %v5996_v57 }
 0x3f3   : > { %v6581_v18 = vadd.f32 %v6501_v62, %v6192_v37  ;;  %v6748_v62 = vsel %vm6623_vm5, %v6738_v27, %v6747_v31 }
 0x3f6   : > { %v5733_v45 = vpop.f32.mrf.mxu3 }
 0x3f7   : > { %v5807_v33 = vadd.f32 %v5733_v45, %v16238_v9  ;;  %v6750_v9 = vshrl.u32 %v16710_v32, 16 }
 0x3f8   : > { %v6898_v41 = vpop.f32.mrf.mxu2  ;;  %v6115_v47 = vpop.f32.mrf.mxu0 }
 0x3f9   : > { %v16702_v53 = vadd.f32 %v6898_v41, %v6581_v18  ;;  %v6193_v13 = vadd.f32 %v6115_v47, %v16661_v2  ;;  %v6504_v37 = vpop.f32.mrf.mxu1  ;;  %v6753_v2 = vshll.u32 %v16710_v32, 16  ;;  %v6752_v38 = vrot.slane %v6750_v9, 2  ;;  %v14779_v47 = vld [vmem:[%s14966_s18 + $0x88] sm:$0xff] }
 0x3fb   : > { %v6582_v15 = vadd.f32 %v6504_v37, %v6193_v13  ;;  %13279 = vmatmul.msk.bf16.gmra.mxu3 %vm1853_vm1, %v5612_v58  ;;  %13387 = vmatmul.msk.bf16.gmra.mxu0 %vm1853_vm1, %v5997_v3  ;;  %v6755_v45 = vrot.slane %v6753_v2, 3  ;;  %v5613_v58 = vrot.slane %v14779_v47, 2  ;;  %v5998_v3 = vrot.slane %v16710_v32, 2  ;;  %v16733_v32 = vld [vmem:[%s14947_s28 + $0x88] sm:$0xff] }
 0x3fc   : > { %13497 = vmatmul.msk.bf16.gmra.mxu1 %vm1853_vm1, %v6386_v22  ;;  %v6387_v13 = vrot.slane %v14545_v29, 2 }
 0x3fd   : > { %13539 = vmatmul.msk.bf16.gmra.mxu2 %vm1853_vm1, %v6748_v62  ;;  %v6756_v37 = vor.u32 %v6755_v45, %v6752_v38  ;;  %v5999_v9 = vsel %vm5318_vm4, %v5996_v57, %v5998_v3 }
 0x3fe   : > { %v5736_v49 = vpop.f32.mrf.mxu3 }
 0x3ff   : > { %v5808_v20 = vadd.f32 %v5736_v49, %v16258_v12 }
 0x400   : > { %v6901_v7 = vpop.f32.mrf.mxu2  ;;  %v6117_v28 = vpop.f32.mrf.mxu0 }
 0x401   : > { %v16719_v27 = vadd.f32 %v6901_v7, %v6582_v15  ;;  %v6194_v18 = vadd.f32 %v6117_v28, %v16669_v55  ;;  %v6506_v43 = vpop.f32.mrf.mxu1  ;;  %v5614_v55 = vsel %vm5318_vm4, %v5611_v35, %v5613_v58  ;;  %v6388_v28 = vsel %vm5318_vm4, %v6385_v34, %v6387_v13 }
 0x403   : > { %20594 = vst [vmem:[#allocation6_spill] sm:$0xff] %v16719_v27  ;;  %v6583_v41 = vadd.f32 %v6506_v43, %v6194_v18  ;;  %v6757_v18 = vsel %vm6623_vm5, %v6747_v31, %v6756_v37 }
 0x406   : > { %v5738_v22 = vpop.f32.mrf.mxu3 }
 0x407   : > { %v5809_v12 = vadd.f32 %v5738_v22, %v16267_v0  ;;  %v6759_v0 = vshrl.u32 %v16733_v32, 16 }
 0x408   : > { %v6903_v62 = vpop.f32.mrf.mxu2  ;;  %v6120_v49 = vpop.f32.mrf.mxu0 }
 0x409   : > { %v16726_v15 = vadd.f32 %v6903_v62, %v6583_v41  ;;  %v6195_v2 = vadd.f32 %v6120_v49, %v5806_v4  ;;  %v6509_v7 = vpop.f32.mrf.mxu1  ;;  %v6762_v4 = vshll.u32 %v16733_v32, 16  ;;  %v14546_v41 = vld [vmem:[%s14966_s18 + $0x88] sm:$0xff]  ;;  %v6761_v47 = vrot.slane %v6759_v0, 2  ;;  %v14780_v49 = vld [vmem:[%s14966_s18 + $0x90] sm:$0xff] }
 0x40b   : > { %20595 = vst [vmem:[#allocation10_spill] sm:$0xff] %v16726_v15  ;;  %v6584_v43 = vadd.f32 %v6509_v7, %v6195_v2  ;;  %13280 = vmatmul.msk.bf16.gmra.mxu3 %vm1853_vm1, %v5614_v55  ;;  %13388 = vmatmul.msk.bf16.gmra.mxu0 %vm1853_vm1, %v5999_v9  ;;  %v6764_v22 = vrot.slane %v6762_v4, 3  ;;  %v5615_v55 = vrot.slane %v14780_v49, 2  ;;  %v6000_v9 = vrot.slane %v16733_v32, 2 }
 0x40c   : > { %13498 = vmatmul.msk.bf16.gmra.mxu1 %vm1853_vm1, %v6388_v28  ;;  %v6389_v2 = vrot.slane %v14546_v41, 2 }
 0x40d   : > { %13540 = vmatmul.msk.bf16.gmra.mxu2 %vm1853_vm1, %v6757_v18  ;;  %v6765_v7 = vor.u32 %v6764_v22, %v6761_v47  ;;  %v6001_v0 = vsel %vm5318_vm4, %v5998_v3, %v6000_v9 }
 0x40e   : > { %v5741_v35 = vpop.f32.mrf.mxu3 }
 0x40f   : > { %v5810_v57 = vadd.f32 %v5741_v35, %v16295_v61  ;;  %v5616_v35 = vsel %vm5318_vm4, %v5613_v58, %v5615_v55  ;;  %v6766_v32 = vsel %vm6623_vm5, %v6756_v37, %v6765_v7 }
 0x410   : > { %v6906_v34 = vpop.f32.mrf.mxu2  ;;  %v6122_v29 = vpop.f32.mrf.mxu0 }
 0x411   : > { %v16742_v31 = vadd.f32 %v6906_v34, %v6584_v43  ;;  %v6196_v38 = vadd.f32 %v6122_v29, %v5807_v33  ;;  %v6511_v45 = vpop.f32.mrf.mxu1  ;;  %v6390_v29 = vsel %vm5318_vm4, %v6387_v13, %v6389_v2 }
 0x413   : > { %20596 = vst [vmem:[#allocation11_spill] sm:$0xff] %v16742_v31  ;;  %v6585_v62 = vadd.f32 %v6511_v45, %v6196_v38  ;;  %v16757_v38 = vld [vmem:[%s14947_s28 + $0x90] sm:$0xff] }
 0x416   : > { %v5743_v28 = vpop.f32.mrf.mxu3 }
 0x417   : > { %v16748_v61 = vadd.f32 %v5743_v28, %v16316_v63  ;;  %v6768_v63 = vshrl.u32 %v16757_v38, 16 }
 0x418   : > { %v6908_v18 = vpop.f32.mrf.mxu2  ;;  %v6125_v33 = vpop.f32.mrf.mxu0 }
 0x419   : > { %v16750_v43 = vadd.f32 %v6908_v18, %v6585_v62  ;;  %v6197_v4 = vadd.f32 %v6125_v33, %v5808_v20  ;;  %v6514_v34 = vpop.f32.mrf.mxu1  ;;  %v6771_v20 = vshll.u32 %v16757_v38, 16  ;;  %v16771_v62 = vld [vmem:[%s14966_s18 + $0x90] sm:$0xff]  ;;  %v6770_v49 = vrot.slane %v6768_v63, 2 }
 0x41a   : > { %v5617_v33 = vrot.slane %v16336_v19, 2 }
 0x41b   : > { %20597 = vst [vmem:[#allocation7_spill] sm:$0xff] %v16750_v43  ;;  %v6586_v45 = vadd.f32 %v6514_v34, %v6197_v4  ;;  %13281 = vmatmul.msk.bf16.gmra.mxu3 %vm1853_vm1, %v5616_v35  ;;  %13389 = vmatmul.msk.bf16.gmra.mxu0 %vm1853_vm1, %v6001_v0  ;;  %v6773_v28 = vrot.slane %v6771_v20, 3  ;;  %v6002_v35 = vrot.slane %v16757_v38, 2 }
 0x41c   : > { %13499 = vmatmul.msk.bf16.gmra.mxu1 %vm1853_vm1, %v6390_v29 }
 0x41d   : > { %13541 = vmatmul.msk.bf16.gmra.mxu2 %vm1853_vm1, %v6766_v32  ;;  %v6774_v0 = vor.u32 %v6773_v28, %v6770_v49  ;;  %v5618_v32 = vsel %vm5318_vm4, %v5615_v55, %v5617_v33  ;;  %v16797_v55 = vld [vmem:[%s14966_s18 + $0x18] sm:$0xff] }
 0x41e   : > { %v5746_v58 = vpop.f32.mrf.mxu3 }
 0x41f   : > { %v16766_v3 = vadd.f32 %v5746_v58, %v16341_v6  ;;  %v6391_v6 = vrot.slane %v16771_v62, 2  ;;  %v6775_v38 = vsel %vm6623_vm5, %v6765_v7, %v6774_v0  ;;  %v16788_v58 = vld [vmem:[%s14947_s28 + $0x98] sm:$0xff] }
 0x420   : > { %v6911_v13 = vpop.f32.mrf.mxu2  ;;  %v6127_v41 = vpop.f32.mrf.mxu0  ;;  %v6777_v7 = vshrl.u32 %v16788_v58, 16 }
 0x421   : > { %v16768_v37 = vadd.f32 %v6911_v13, %v6586_v45  ;;  %v6198_v47 = vadd.f32 %v6127_v41, %v5809_v12  ;;  %v6516_v22 = vpop.f32.mrf.mxu1  ;;  %v6003_v45 = vsel %vm5318_vm4, %v6000_v9, %v6002_v35  ;;  %v6392_v19 = vsel %vm5318_vm4, %v6389_v2, %v6391_v6 }
 0x422   : > { %v7029_v9 = vshrl.u32 %v16797_v55, 16  ;;  %v7032_v2 = vshll.u32 %v16797_v55, 16  ;;  %v6780_v41 = vshll.u32 %v16788_v58, 16 }
 0x423   : > { %20598 = vst [vmem:[#allocation3_spill] sm:$0xff] %v16768_v37  ;;  %v16773_v18 = vadd.f32 %v6516_v22, %v6198_v47 }
 0x426   : > { %v5748_v4 = vpop.f32.mrf.mxu3 }
 0x427   : > { %v16779_v34 = vadd.f32 %v5748_v4, %v16354_v14  ;;  %v7021_v14 = vshrl.u32 %v16384_v8, 16  ;;  %v7031_v4 = vrot.slane %v7029_v9, 2 }
 0x428   : > { %v16781_v12 = vpop.f32.mrf.mxu2  ;;  %v6130_v29 = vpop.f32.mrf.mxu0 }
 0x429   : > { %v6199_v63 = vadd.f32 %v6130_v29, %v5810_v57  ;;  %v6519_v20 = vpop.f32.mrf.mxu1  ;;  %v7024_v57 = vshll.u32 %v16384_v8, 16  ;;  %v7023_v49 = vrot.slane %v7021_v14, 2  ;;  %v7034_v29 = vrot.slane %v7032_v2, 3 }
 0x42a   : > { %v17037_v15 = vadd.f32 %v16781_v12, %v16773_v18 }
 0x42b   : > { %v6588_v13 = vadd.f32 %v6519_v20, %v6199_v63  ;;  %13282 = vmatmul.msk.bf16.gmra.mxu3 %vm1853_vm1, %v5618_v32  ;;  %13390 = vmatmul.msk.bf16.gmra.mxu0 %vm1853_vm1, %v6003_v45  ;;  %v7026_v33 = vrot.slane %v7024_v57, 3  ;;  %v16810_v63 = vld [vmem:[%s14966_s18 + $0x98] sm:$0xff]  ;;  %v6779_v20 = vrot.slane %v6777_v7, 2 }
 0x42c   : > { %13500 = vmatmul.msk.bf16.gmra.mxu1 %vm1853_vm1, %v6392_v19  ;;  %v6782_v19 = vrot.slane %v6780_v41, 3  ;;  %v6393_v57 = vrot.slane %v16810_v63, 2 }
 0x42d   : > { %13542 = vmatmul.msk.bf16.gmra.mxu2 %vm1853_vm1, %v6775_v38  ;;  %v6610_v38 = vld [vmem:[%s14947_s28 + $0xa0] sm:$0x3]  ;;  %v7027_v14 = vor.u32 %v7026_v33, %v7023_v49 }
 0x42e   : > { %v5751_v47 = vpop.f32.mrf.mxu3  ;;  %v6783_v9 = vor.u32 %v6782_v19, %v6779_v20  ;;  %v6621_v2 = vunpack.c.l.b16 %v6610_v38  ;;  %v6394_v33 = vsel %vm5318_vm4, %v6391_v6, %v6393_v57 }
 0x42f   : > { %v16804_v22 = vadd.f32 %v5751_v47, %v16380_v16  ;;  %v6004_v16 = vrot.slane %v16788_v58, 2 }
 0x430   : > { %v6916_v62 = vpop.f32.mrf.mxu2  ;;  %v6132_v8 = vpop.f32.mrf.mxu0 }
 0x431   : > { %v16806_v28 = vadd.f32 %v6916_v62, %v6588_v13  ;;  %v6200_v32 = vadd.f32 %v6132_v8, %v16748_v61  ;;  %v6521_v45 = vpop.f32.mrf.mxu1  ;;  %v7035_v13 = vor.u32 %v7034_v29, %v7031_v4  ;;  %v6005_v41 = vsel %vm5318_vm4, %v6002_v35, %v6004_v16  ;;  %v5868_v29 = vld [vmem:[%s14947_s28 + $0xa0] sm:$0x1] }
 0x432   : > { %v6784_v4 = vsel %vm6623_vm5, %v6774_v0, %v6783_v9  ;;  %v5951_v35 = vunpack.c.l.b16 %v5868_v29 }
 0x433   : > { %20599 = vst [vmem:[#allocation4_spill] sm:$0xff] %v16806_v28  ;;  %v16813_v37 = vadd.f32 %v6521_v45, %v6200_v32  ;;  %v7036_v58 = vsel %vm6623_vm5, %v7027_v14, %v7035_v13  ;;  %v16828_v32 = vpack.c.b16 %v6621_v2, %v6621_v2 }
 0x435   : > { %20600 = vst [vmem:[#allocation8_spill] sm:$0xff] %v16828_v32  ;;  %v6786_v20 = vshrl.u32 %v16828_v32, 16  ;;  %v6789_v19 = vshll.u32 %v16828_v32, 16 }
 0x436   : > { %v5753_v47 = vpop.f32.mrf.mxu3 }
 0x437   : > { %v16818_v61 = vadd.f32 %v5753_v47, %v16392_v60  ;;  %v6257_v60 = vld [vmem:[%s14966_s18 + $0xa0] sm:$0x1]  ;;  %v6788_v29 = vrot.slane %v6786_v20, 2 }
 0x438   : > { %v16820_v62 = vpop.f32.mrf.mxu2  ;;  %v6135_v7 = vpop.f32.mrf.mxu0  ;;  %v6340_v63 = vunpack.c.l.b16 %v6257_v60  ;;  %v6791_v60 = vrot.slane %v6789_v19, 3 }
 0x439   : > { %v6201_v49 = vadd.f32 %v6135_v7, %v16766_v3  ;;  %v6524_v8 = vpop.f32.mrf.mxu1  ;;  %v16836_v3 = vld [vmem:[%s14966_s18 + $0x20] sm:$0xff] }
 0x43a   : > { %v7038_v6 = vshrl.u32 %v16836_v3, 16  ;;  %v7041_v0 = vshll.u32 %v16836_v3, 16  ;;  %v6792_v43 = vor.u32 %v6791_v60, %v6788_v29  ;;  %v20603_v60 = vunpack.c.l.b16 %v16347_v11 }
 0x43b   : > { %v6590_v45 = vadd.f32 %v6524_v8, %v6201_v49  ;;  %13391 = vmatmul.msk.bf16.gmra.mxu0 %vm1853_vm1, %v6005_v41  ;;  %13569 = vmatmul.msk.bf16.vlgmr.msra.gmra.mxu3 %vm1853_vm1, %v7036_v58  ;;  %v5970_v41 = vpack.c.b16 %v5951_v35, %v5951_v35 }
 0x43c   : > { %13501 = vmatmul.msk.bf16.gmra.mxu1 %vm1853_vm1, %v6394_v33  ;;  %v7040_v58 = vrot.slane %v7038_v6, 2  ;;  %v7043_v49 = vrot.slane %v7041_v0, 3 }
 0x43d   : > { %13543 = vmatmul.msk.bf16.gmra.mxu2 %vm1853_vm1, %v6784_v4  ;;  %v6359_v4 = vpack.c.b16 %v6340_v63, %v6340_v63  ;;  %v6006_v32 = vrot.slane %v5970_v41, 2  ;;  %v7403_v41 = vld [vmem:[%s14947_s28 + $0x10] sm:$0x8] }
 0x43e   : > { %v5756_v38 = vpop.f32.mrf.mxu3 }
 0x43f   : > { %v16843_v14 = vadd.f32 %v5756_v38, %v16409_v36  ;;  %v7044_v36 = vor.u32 %v7043_v49, %v7040_v58  ;;  %v6395_v38 = vrot.slane %v6359_v4, 2  ;;  %v6007_v6 = vsel %vm5318_vm4, %v6004_v16, %v6006_v32  ;;  %v7667_v58 = vld [vmem:[%s14966_s18 + $0x10] sm:$0x8] }
 0x440   : > { %v6921_v2 = vpop.f32.mrf.mxu2  ;;  %v6137_v7 = vpop.f32.mrf.mxu0 }
 0x441   : > { %v16845_v47 = vadd.f32 %v6921_v2, %v6590_v45  ;;  %v6202_v8 = vadd.f32 %v6137_v7, %v16779_v34  ;;  %v6526_v33 = vpop.f32.mrf.mxu1  ;;  %v7045_v0 = vsel %vm6623_vm5, %v7035_v13, %v7044_v36  ;;  %v6396_v19 = vsel %vm5318_vm4, %v6393_v57, %v6395_v38 }
 0x442   : > { %v6793_v7 = vsel %vm6623_vm5, %v6783_v9, %v6792_v43  ;;  %v7414_v13 = vunpack.c.l.b16 %v7403_v41  ;;  %v7678_v43 = vunpack.c.l.b16 %v7667_v58  ;;  %v7681_v58 = vrot.slane %v16797_v55, 3 }
 0x443   : > { %20601 = vst [vmem:[#allocation5_spill] sm:$0xff] %v16845_v47  ;;  %v16848_v28 = vadd.f32 %v6526_v33, %v6202_v8 }
 0x444   : > { %v7415_v38 = vpack.c.b16 %v20603_v60, %v7414_v13 }
 0x446   : > { %v5758_v45 = vpop.f32.mrf.mxu3 }
 0x447   : > { %v16851_v2 = vadd.f32 %v5758_v45, %v16416_v56  ;;  %v16867_v56 = vld [vmem:[%s14966_s18 + $0x28] sm:$0xff] }
 0x448   : > { %v16853_v35 = vpop.f32.mrf.mxu2  ;;  %v6140_v34 = vpop.f32.mrf.mxu0  ;;  %v7050_v16 = vshll.u32 %v16867_v56, 16 }
 0x449   : > { %v6203_v63 = vadd.f32 %v6140_v34, %v16804_v22  ;;  %v6529_v20 = vpop.f32.mrf.mxu1  ;;  %v7047_v22 = vshrl.u32 %v16867_v56, 16 }
 0x44a   : > { %v7052_v29 = vrot.slane %v7050_v16, 3 }
 0x44b   : > { %v6592_v49 = vadd.f32 %v6529_v20, %v6203_v63  ;;  %13392 = vmatmul.msk.bf16.gmra.mxu0 %vm1853_vm1, %v6007_v6  ;;  %13570 = vmatmul.msk.bf16.gmra.mxu3 %vm1853_vm1, %v7045_v0  ;;  %v7049_v4 = vrot.slane %v7047_v22, 2  ;;  %v20604_v6 = vunpack.c.l.b16 %v16368_v39 }
 0x44c   : > { %13502 = vmatmul.msk.bf16.gmra.mxu1 %vm1853_vm1, %v6396_v19  ;;  %v7417_v19 = vrot.slane %v7415_v38, 3 }
 0x44d   : > { %13544 = vmatmul.msk.bf16.gmra.mxu2 %vm1853_vm1, %v6793_v7  ;;  %v7679_v0 = vpack.c.b16 %v20604_v6, %v7678_v43  ;;  %v7053_v20 = vor.u32 %v7052_v29, %v7049_v4 }
 0x44e   : > { %v5761_v57 = vpop.f32.mrf.mxu3 }
 0x44f   : > { %v5818_v9 = vadd.f32 %v5761_v57, %v16435_v54  ;;  %v14784_v54 = vld [vmem:[%s14947_s28 + $0x18] sm:$0xff]  ;;  %v7680_v41 = vrot.slane %v7679_v0, 3  ;;  %v7054_v39 = vsel %vm6623_vm5, %v7044_v36, %v7053_v20 }
 0x450   : > { %v6926_v32 = vpop.f32.mrf.mxu2  ;;  %v6142_v33 = vpop.f32.mrf.mxu0  ;;  %v7418_v7 = vrot.slane %v14784_v54, 3  ;;  %v14786_v54 = vld [vmem:[%s14947_s28 + $0x20] sm:$0xff] }
 0x451   : > { %v16872_v8 = vadd.f32 %v6926_v32, %v6592_v49  ;;  %v6204_v45 = vadd.f32 %v6142_v33, %v16818_v61  ;;  %v6531_v34 = vpop.f32.mrf.mxu1  ;;  %v7682_v57 = vsel %vm7416_vm6, %v7680_v41, %v7681_v58  ;;  %v7420_v41 = vrot.slane %v14786_v54, 3  ;;  %v14788_v54 = vld [vmem:[%s14947_s28 + $0x28] sm:$0xff] }
 0x452   : > { %v7419_v16 = vsel %vm7416_vm6, %v7417_v19, %v7418_v7 }
 0x453   : > { %20602 = vst [vmem:[#allocation12_spill] sm:$0xff] %v16872_v8  ;;  %v16879_v63 = vadd.f32 %v6531_v34, %v6204_v45 }
 0x456   : > { %v5763_v49 = vpop.f32.mrf.mxu3 }
 0x457   : > { %v5819_v11 = vadd.f32 %v5763_v49, %v16443_v42  ;;  %v16894_v42 = vld [vmem:[%s14966_s18 + $0x30] sm:$0xff]  ;;  %v7683_v49 = vrot.slane %v16836_v3, 3 }
 0x458   : > { %v16884_v22 = vpop.f32.mrf.mxu2  ;;  %v6145_v61 = vpop.f32.mrf.mxu0  ;;  %v7056_v55 = vshrl.u32 %v16894_v42, 16  ;;  %v7059_v36 = vshll.u32 %v16894_v42, 16 }
 0x459   : > { %v6205_v13 = vadd.f32 %v6145_v61, %v16843_v14  ;;  %v6534_v43 = vpop.f32.mrf.mxu1 }
 0x45a   : > { %v7058_v38 = vrot.slane %v7056_v55, 2  ;;  %v7061_v45 = vrot.slane %v7059_v36, 3 }
 0x45b   : > { %v6594_v32 = vadd.f32 %v6534_v43, %v6205_v13  ;;  %13571 = vmatmul.msk.bf16.gmra.mxu3 %vm1853_vm1, %v7054_v39  ;;  %13611 = vmatmul.msk.bf16.vlgmr.msra.gmra.mxu0 %vm1853_vm1, %v7419_v16  ;;  %v7421_v43 = vsel %vm7416_vm6, %v7418_v7, %v7420_v41 }
 0x45c   : > { %13653 = vmatmul.msk.bf16.vlgmr.msra.gmra.mxu1 %vm1853_vm1, %v7682_v57  ;;  %v7062_v19 = vor.u32 %v7061_v45, %v7058_v38 }
 0x45e   : > { %v5766_v33 = vpop.f32.mrf.mxu3  ;;  %v7063_v13 = vsel %vm6623_vm5, %v7053_v20, %v7062_v19 }
 0x45f   : > { %v5820_v14 = vadd.f32 %v5766_v33, %v16462_v30 }
 0x460   : > { %v6931_v4 = vpop.f32.mrf.mxu2  ;;  %v6147_v60 = vpop.f32.mrf.mxu0 }
 0x461   : > { %v16899_v29 = vadd.f32 %v6931_v4, %v6594_v32  ;;  %v6206_v34 = vadd.f32 %v6147_v60, %v16851_v2  ;;  %v6536_v6 = vpop.f32.mrf.mxu1  ;;  %v7684_v32 = vsel %vm7416_vm6, %v7681_v58, %v7683_v49 }
 0x463   : > { %20605 = vst [vmem:[#allocation13_spill] sm:$0xff] %v16899_v29  ;;  %v16902_v0 = vadd.f32 %v6536_v6, %v6206_v34 }
 0x466   : > { %v5768_v61 = vpop.f32.mrf.mxu3 }
 0x467   : > { %v5821_v30 = vadd.f32 %v5768_v61, %v16474_v52  ;;  %v16916_v52 = vld [vmem:[%s14966_s18 + $0x38] sm:$0xff]  ;;  %v7422_v61 = vrot.slane %v14788_v54, 3 }
 0x468   : > { %v16907_v39 = vpop.f32.mrf.mxu2  ;;  %v6150_v16 = vpop.f32.mrf.mxu0  ;;  %v7065_v3 = vshrl.u32 %v16916_v52, 16  ;;  %v7068_v20 = vshll.u32 %v16916_v52, 16 }
 0x469   : > { %v6207_v2 = vadd.f32 %v6150_v16, %v5818_v9  ;;  %v6539_v57 = vpop.f32.mrf.mxu1  ;;  %v7685_v16 = vrot.slane %v16867_v56, 3 }
 0x46a   : > { %v7067_v4 = vrot.slane %v7065_v3, 2  ;;  %v7070_v60 = vrot.slane %v7068_v20, 3 }
 0x46b   : > { %v6596_v55 = vadd.f32 %v6539_v57, %v6207_v2  ;;  %13572 = vmatmul.msk.bf16.gmra.mxu3 %vm1853_vm1, %v7063_v13  ;;  %13612 = vmatmul.msk.bf16.gmra.mxu0 %vm1853_vm1, %v7421_v43  ;;  %v7686_v3 = vsel %vm7416_vm6, %v7683_v49, %v7685_v16 }
 0x46c   : > { %13654 = vmatmul.msk.bf16.gmra.mxu1 %vm1853_vm1, %v7684_v32  ;;  %v7071_v6 = vor.u32 %v7070_v60, %v7067_v4  ;;  %v7423_v32 = vsel %vm7416_vm6, %v7420_v41, %v7422_v61 }
 0x46e   : > { %v5771_v36 = vpop.f32.mrf.mxu3  ;;  %v7072_v57 = vsel %vm6623_vm5, %v7062_v19, %v7071_v6 }
 0x46f   : > { %v5822_v9 = vadd.f32 %v5771_v36, %v16491_v46 }
 0x470   : > { %v6936_v7 = vpop.f32.mrf.mxu2  ;;  %v6152_v58 = vpop.f32.mrf.mxu0 }
 0x471   : > { %v16921_v33 = vadd.f32 %v6936_v7, %v6596_v55  ;;  %v6208_v38 = vadd.f32 %v6152_v58, %v5819_v11  ;;  %v6541_v45 = vpop.f32.mrf.mxu1 }
 0x473   : > { %20606 = vst [vmem:[#allocation14_spill] sm:$0xff] %v16921_v33  ;;  %v16923_v34 = vadd.f32 %v6541_v45, %v6208_v38 }
 0x476   : > { %v5773_v13 = vpop.f32.mrf.mxu3 }
 0x477   : > { %v5823_v43 = vadd.f32 %v5773_v13, %v16498_v48  ;;  %v16937_v48 = vld [vmem:[%s14966_s18 + $0x40] sm:$0xff]  ;;  %v14790_v13 = vld [vmem:[%s14947_s28 + $0x30] sm:$0xff] }
 0x478   : > { %v16928_v46 = vpop.f32.mrf.mxu2  ;;  %v6155_v2 = vpop.f32.mrf.mxu0  ;;  %v7074_v56 = vshrl.u32 %v16937_v48, 16  ;;  %v7077_v19 = vshll.u32 %v16937_v48, 16 }
 0x479   : > { %v6209_v11 = vadd.f32 %v6155_v2, %v5820_v14  ;;  %v6544_v55 = vpop.f32.mrf.mxu1  ;;  %v7424_v2 = vrot.slane %v14790_v13, 3  ;;  %v14792_v13 = vld [vmem:[%s14947_s28 + $0x38] sm:$0xff] }
 0x47a   : > { %v7076_v58 = vrot.slane %v7074_v56, 2  ;;  %v7079_v4 = vrot.slane %v7077_v19, 3 }
 0x47b   : > { %v6598_v20 = vadd.f32 %v6544_v55, %v6209_v11  ;;  %13573 = vmatmul.msk.bf16.gmra.mxu3 %vm1853_vm1, %v7072_v57  ;;  %13613 = vmatmul.msk.bf16.gmra.mxu0 %vm1853_vm1, %v7423_v32  ;;  %v7687_v57 = vrot.slane %v16894_v42, 3 }
 0x47c   : > { %13655 = vmatmul.msk.bf16.gmra.mxu1 %vm1853_vm1, %v7686_v3  ;;  %v7080_v54 = vor.u32 %v7079_v4, %v7076_v58  ;;  %v7425_v3 = vsel %vm7416_vm6, %v7422_v61, %v7424_v2 }
 0x47e   : > { %v5776_v36 = vpop.f32.mrf.mxu3  ;;  %v7081_v55 = vsel %vm6623_vm5, %v7071_v6, %v7080_v54 }
 0x47f   : > { %v5824_v14 = vadd.f32 %v5776_v36, %v16514_v44 }
 0x480   : > { %v6941_v41 = vpop.f32.mrf.mxu2  ;;  %v6157_v49 = vpop.f32.mrf.mxu0 }
 0x481   : > { %v16942_v7 = vadd.f32 %v6941_v41, %v6598_v20  ;;  %v6210_v60 = vadd.f32 %v6157_v49, %v5821_v30  ;;  %v6546_v38 = vpop.f32.mrf.mxu1  ;;  %v7688_v30 = vsel %vm7416_vm6, %v7685_v16, %v7687_v57 }
 0x483   : > { %20607 = vst [vmem:[#allocation15_spill] sm:$0xff] %v16942_v7  ;;  %v16944_v45 = vadd.f32 %v6546_v38, %v6210_v60  ;;  %v20609_v7 = vrot.slane %v16937_v48, 3 }
 0x486   : > { %v5778_v32 = vpop.f32.mrf.mxu3 }
 0x487   : > { %v5825_v11 = vadd.f32 %v5778_v32, %v16520_v17  ;;  %v16960_v17 = vld [vmem:[%s14966_s18 + $0x48] sm:$0xff]  ;;  %v7426_v32 = vrot.slane %v14792_v13, 3 }
 0x488   : > { %v6160_v44 = vpop.f32.mrf.mxu0  ;;  %v16952_v19 = vpop.f32.mrf.mxu2  ;;  %v7083_v42 = vshrl.u32 %v16960_v17, 16 }
 0x489   : > { %v6211_v20 = vadd.f32 %v6160_v44, %v5822_v9  ;;  %v6549_v56 = vpop.f32.mrf.mxu1  ;;  %v7086_v9 = vshll.u32 %v16960_v17, 16 }
 0x48a   : > { %v7085_v41 = vrot.slane %v7083_v42, 2 }
 0x48b   : > { %v16954_v36 = vadd.f32 %v6549_v56, %v6211_v20  ;;  %13574 = vmatmul.msk.bf16.gmra.mxu3 %vm1853_vm1, %v7081_v55  ;;  %13614 = vmatmul.msk.bf16.gmra.mxu0 %vm1853_vm1, %v7425_v3  ;;  %v7088_v49 = vrot.slane %v7086_v9, 3  ;;  %v7689_v55 = vrot.slane %v16916_v52, 3  ;;  %v16983_v52 = vld [vmem:[%s14966_s18 + $0x50] sm:$0xff] }
 0x48c   : > { %13656 = vmatmul.msk.bf16.gmra.mxu1 %vm1853_vm1, %v7688_v30 }
 0x48d   : > { %v7089_v38 = vor.u32 %v7088_v49, %v7085_v41  ;;  %v7690_v9 = vsel %vm7416_vm6, %v7687_v57, %v7689_v55 }
 0x48e   : > { %v5781_v6 = vpop.f32.mrf.mxu3 }
 0x48f   : > { %v5826_v61 = vadd.f32 %v5781_v6, %v16536_v59  ;;  %v7090_v56 = vsel %vm6623_vm5, %v7080_v54, %v7089_v38  ;;  %v7095_v54 = vshll.u32 %v16983_v52, 16 }
 0x490   : > { %v6162_v16 = vpop.f32.mrf.mxu0  ;;  %v16968_v44 = vpop.f32.mrf.mxu2 }
 0x491   : > { %v6212_v58 = vadd.f32 %v6162_v16, %v5823_v43  ;;  %v6551_v4 = vpop.f32.mrf.mxu1  ;;  %v7427_v43 = vsel %vm7416_vm6, %v7424_v2, %v7426_v32  ;;  %v354_v16 = vlaneseq }
 0x493   : > { %v16965_v60 = vadd.f32 %v6551_v4, %v6212_v58  ;;  %v7097_v58 = vrot.slane %v7095_v54, 3 }
 0x496   : > { %v5783_v3 = vpop.f32.mrf.mxu3 }
 0x497   : > { %v16972_v20 = vadd.f32 %v5783_v3, %v16544_v1  ;;  %v7092_v1 = vshrl.u32 %v16983_v52, 16  ;;  %v16992_v3 = vshrl.u32 %v354_v16, 7 }
 0x498   : > { %v6165_v59 = vpop.f32.mrf.mxu0 }
 0x499   : > { %v6213_v30 = vadd.f32 %v6165_v59, %v5824_v14  ;;  %v6554_v42 = vpop.f32.mrf.mxu1  ;;  %v16987_v14 = vpop.f32.mrf.mxu2  ;;  %v7094_v49 = vrot.slane %v7092_v1, 2  ;;  %v20608_v1 = vld [vmem:[#allocation9_spill] sm:$0xff] }
 0x49b   : > { %v16977_v6 = vadd.f32 %v6554_v42, %v6213_v30  ;;  %13575 = vmatmul.msk.bf16.gmra.mxu3 %vm1853_vm1, %v7090_v56  ;;  %13615 = vmatmul.msk.bf16.gmra.mxu0 %vm1853_vm1, %v7427_v43  ;;  %v16997_v56 = vadd.s32 19, %v16992_v3  ;;  %v16999_v43 = vor.u32 %v7097_v58, %v7094_v49  ;;  %v17002_v30 = vld [vmem:[%s14947_s28 + $0x40] sm:$0xff] }
 0x49c   : > { %13657 = vmatmul.msk.bf16.gmra.mxu1 %vm1853_vm1, %v7690_v9 }
 0x49d   : > { %v430_v9 = vand.u32 65535, %v16997_v56 }
 0x49e   : > { %v5786_v2 = vpop.f32.mrf.mxu3 }
 0x49f   : > { %v16990_v57 = vadd.f32 %v5786_v2, %v16562_v40  ;;  %v20458_v40 = vrot.slane %v17002_v30, 3  ;;  %v431_v2 = vshrl.u32 %v16997_v56, 16  ;;  %v434_v58 = vmul.u32 58254, %v430_v9 }
 0x4a0   : > { %v6167_v41 = vpop.f32.mrf.mxu0 }
 0x4a1   : > { %v6214_v4 = vadd.f32 %v6167_v41, %v5825_v11  ;;  %v6556_v13 = vpop.f32.mrf.mxu1  ;;  %v7099_v41 = vsel %vm6623_vm5, %v7089_v38, %v16999_v43  ;;  %v7429_v49 = vsel %vm7416_vm6, %v7426_v32, %v20458_v40  ;;  %v433_v38 = vmul.u32 14564, %v430_v9 }
 0x4a2   : > { %v435_v8 = vmul.u32 14564, %v431_v2  ;;  %v437_v47 = vshll.u32 %v434_v58, 16  ;;  %v356_v32 = vadd.s32 8, %v16992_v3 }
 0x4a3   : > { %v16994_v59 = vadd.f32 %v6556_v13, %v6214_v4  ;;  %v17016_v4 = vpop.f32.mrf.mxu2 }
 0x4a4   : > { %vm441_vm7 = vc.u32 %v433_v38, %v437_v47  ;;  %v443_v31 = vadd.s32 %v437_v47, %v433_v38  ;;  %v17033_v9 = vadd.s32 19, %v356_v32  ;;  %v17045_v47 = vadd.f32 %v16820_v62, %v16813_v37 }
 0x4a5   : > { %v17049_v38 = vadd.f32 %v16853_v35, %v16848_v28  ;;  %v440_v37 = vshrl.u32 %v435_v8, 16  ;;  %v357_v35 = vadd.s32 16, %v16992_v3 }
 0x4a6   : > { %v5788_v11 = vpop.f32.mrf.mxu3 }
 0x4a7   : > { %v17008_v54 = vadd.f32 %v5788_v11, %v20608_v1  ;;  %v7692_v11 = vsel %vm7416_vm6, %v7689_v55, %v20609_v7  ;;  %v17022_v1 = vld [vmem:[%s14966_s18 + $0x58] sm:$0xff]  ;;  %v439_v7 = vshll.u32 %v435_v8, 16  ;;  %v20459_v55 = vmov 0   ;;  %v17071_v8 = vld [vmem:[%s14966_s18 + $0x60] sm:$0xff] }
 0x4a8   : > { %v6170_v16 = vpop.f32.mrf.mxu0  ;;  %v7101_v33 = vshrl.u32 %v17022_v1, 16  ;;  %v7104_v29 = vshll.u32 %v17022_v1, 16 }
 0x4a9   : > { %v6215_v13 = vadd.f32 %v6170_v16, %v5826_v61  ;;  %v6559_v42 = vpop.f32.mrf.mxu1  ;;  %v436_v61 = vmul.u32 58254, %v431_v2  ;;  %v442_v16 = vsel %vm441_vm7, 1, %v20459_v55  ;;  %vm445_vm8 = vc.u32 %v443_v31, %v439_v7 }
 0x4aa   : > { %v446_v12 = vsel %vm445_vm8, 1, %v20459_v55 }
 0x4ab   : > { %v17027_v40 = vadd.f32 %v6559_v42, %v6215_v13  ;;  %13576 = vmatmul.msk.bf16.gmra.mxu3 %vm1853_vm1, %v7099_v41  ;;  %13616 = vmatmul.msk.bf16.gmra.mxu0 %vm1853_vm1, %v7429_v49  ;;  %v7103_v13 = vrot.slane %v7101_v33, 2  ;;  %v7106_v41 = vrot.slane %v7104_v29, 3  ;;  %v444_v27 = vadd.s32 %v442_v16, %v436_v61  ;;  %v6953_v61 = vpop.f32.mrf.mxu2 }
 0x4ac   : > { %13658 = vmatmul.msk.bf16.gmra.mxu1 %vm1853_vm1, %v7692_v11  ;;  %v438_v49 = vshrl.u32 %v434_v58, 16  ;;  %v459_v11 = vand.u32 65535, %v17033_v9  ;;  %v460_v29 = vshrl.u32 %v17033_v9, 16 }
 0x4ad   : > { %v448_v62 = vadd.s32 %v446_v12, %v444_v27  ;;  %v17063_v16 = vor.u32 %v7106_v41, %v7103_v13  ;;  %v7110_v27 = vshrl.u32 %v17071_v8, 16  ;;  %v17077_v12 = vadd.f32 %v16907_v39, %v16902_v0 }
 0x4ae   : > { %v5791_v42 = vpop.f32.mrf.mxu3  ;;  %v462_v58 = vmul.u32 14564, %v459_v11  ;;  %v463_v32 = vmul.u32 58254, %v459_v11  ;;  %v17058_v28 = vmul.u32 14564, %v460_v29  ;;  %v7113_v13 = vshll.u32 %v17071_v8, 16 }
 0x4af   : > { %v17040_v2 = vadd.f32 %v5791_v42, %v16593_v23  ;;  %v17055_v23 = vadd.f32 %v16884_v22, %v16879_v63  ;;  %v17066_v42 = vld [vmem:[%s14947_s28 + $0x48] sm:$0xff]  ;;  %v449_v22 = vadd.s32 %v448_v62, %v438_v49  ;;  %v17084_v49 = vadd.f32 %v16928_v46, %v16923_v34 }
 0x4b0   : > { %v6172_v18 = vpop.f32.mrf.mxu0  ;;  %v20461_v63 = vrot.slane %v17066_v42, 3  ;;  %v466_v11 = vshll.u32 %v463_v32, 16  ;;  %v465_v62 = vmul.u32 58254, %v460_v29  ;;  %v7108_v39 = vsel %vm6623_vm5, %v16999_v43, %v17063_v16 }
 0x4b1   : > { %v6216_v31 = vadd.f32 %v6172_v18, %v16972_v20  ;;  %v6561_v33 = vpop.f32.mrf.mxu1  ;;  %v468_v18 = vshll.u32 %v17058_v28, 16  ;;  %v450_v41 = vadd.s32 %v449_v22, %v440_v37  ;;  %v17088_v20 = vadd.f32 %v16952_v19, %v16944_v45 }
 0x4b2   : > { %vm470_vm9 = vc.u32 %v462_v58, %v466_v11  ;;  %v472_v55 = vadd.s32 %v466_v11, %v462_v58  ;;  %v20610_v34 = vrot.slane %v17002_v30, 3  ;;  %v20611_v37 = vrot.slane %v16960_v17, 3 }
 0x4b3   : > { %v17061_v7 = vadd.f32 %v6561_v33, %v6216_v31  ;;  %v17080_v31 = vadd.s32 19, %v357_v35  ;;  %v20612_v58 = vrot.slane %v16937_v48, 3  ;;  %v7112_v19 = vrot.slane %v7110_v27, 2 }
 0x4b4   : > { %v7431_v46 = vsel %vm7416_vm6, %v20610_v34, %v20461_v63  ;;  %vm474_vm10 = vc.u32 %v472_v55, %v468_v18  ;;  %v7115_v11 = vrot.slane %v7113_v13, 3  ;;  %v17111_v34 = vadd.f32 %v16968_v44, %v16954_v36 }
 0x4b5   : > { %v7694_v45 = vsel %vm7416_vm6, %v20612_v58, %v20611_v37  ;;  %v488_v30 = vand.u32 65535, %v17080_v31  ;;  %v17115_v48 = vadd.f32 %v16987_v14, %v16965_v60  ;;  %v467_v27 = vshrl.u32 %v463_v32, 16  ;;  %v17131_v60 = vld [vmem:[%s14966_s18 + $0x68] sm:$0xff] }
 0x4b6   : > { %v5793_v33 = vpop.f32.mrf.mxu3  ;;  %v17119_v55 = vadd.f32 %v17016_v4, %v16977_v6  ;;  %v7119_v44 = vshrl.u32 %v17131_v60, 16  ;;  %v7122_v6 = vshll.u32 %v17131_v60, 16  ;;  %v6956_v4 = vpop.f32.mrf.mxu2  ;;  %v17136_v32 = vor.u32 %v7115_v11, %v7112_v19 }
 0x4b7   : > { %v17091_v0 = vadd.f32 %v5793_v33, %v16600_v5  ;;  %v20613_v5 = vmov 0   ;;  %v451_v33 = vshrl.u32 %v450_v41, 4  ;;  %v491_v13 = vmul.u32 14564, %v488_v30 }
 0x4b8   : > { %v6175_v29 = vpop.f32.mrf.mxu0  ;;  %v471_v35 = vsel %vm470_vm9, 1, %v20613_v5  ;;  %20614 = vst [vmem:[#allocation9_spill] sm:$0xff] %v17119_v55  ;;  %v475_v36 = vsel %vm474_vm10, 1, %v20613_v5  ;;  %v492_v41 = vmul.u32 58254, %v488_v30  ;;  %v358_v58 = vadd.s32 24, %v16992_v3 }
 0x4b9   : > { %v6217_v22 = vadd.f32 %v6175_v29, %v16990_v57  ;;  %v6564_v43 = vpop.f32.mrf.mxu1  ;;  %v473_v37 = vadd.s32 %v471_v35, %v465_v62  ;;  %v17122_v57 = vadd.f32 %v6953_v61, %v16994_v59  ;;  %v489_v59 = vshrl.u32 %v17080_v31, 16  ;;  %v14799_v35 = vld [vmem:[%s14947_s28 + $0x50] sm:$0xff] }
 0x4ba   : > { %v452_v61 = vmul.u32 18, %v451_v33  ;;  %v7121_v19 = vrot.slane %v7119_v44, 2  ;;  %v7124_v11 = vrot.slane %v7122_v6, 3  ;;  %v17144_v63 = vadd.s32 19, %v358_v58 }
 0x4bb   : > { %20615 = vst [vmem:[#allocation16_spill] sm:$0xff] %v17122_v57  ;;  %v17124_v18 = vadd.f32 %v6564_v43, %v6217_v22  ;;  %13577 = vmatmul.msk.bf16.gmra.mxu3 %vm1853_vm1, %v7108_v39  ;;  %13617 = vmatmul.msk.bf16.gmra.mxu0 %vm1853_vm1, %v7431_v46  ;;  %v477_v14 = vadd.s32 %v475_v36, %v473_v37  ;;  %v469_v39 = vshrl.u32 %v17058_v28, 16  ;;  %v493_v29 = vmul.u32 14564, %v489_v59 }
 0x4bc   : > { %13659 = vmatmul.msk.bf16.gmra.mxu1 %vm1853_vm1, %v7694_v45  ;;  %v7432_v22 = vrot.slane %v14799_v35, 3  ;;  %v494_v43 = vmul.u32 58254, %v489_v59  ;;  %v495_v37 = vshll.u32 %v492_v41, 16  ;;  %v517_v59 = vand.u32 65535, %v17144_v63 }
 0x4bd   : > { %v478_v46 = vadd.s32 %v477_v14, %v467_v27  ;;  %v497_v33 = vshll.u32 %v493_v29, 16  ;;  %v453_v27 = vsub.s32 %v16997_v56, %v452_v61  ;;  %v518_v6 = vshrl.u32 %v17144_v63, 16 }
 0x4be   : > { %v7277_v62 = vpop.f32.mrf.mxu3  ;;  %vm499_vm11 = vc.u32 %v491_v13, %v495_v37  ;;  %v501_v14 = vadd.s32 %v495_v37, %v491_v13  ;;  %v7695_v56 = vrot.slane %v16983_v52, 3  ;;  %v17158_v13 = vmul.u32 58254, %v517_v59 }
 0x4bf   : > { %v17141_v45 = vadd.f32 %v7277_v62, %v16617_v51  ;;  %v479_v57 = vadd.s32 %v478_v46, %v469_v39  ;;  %v496_v51 = vshrl.u32 %v492_v41, 16  ;;  %v500_v62 = vsel %vm499_vm11, 1, %v20613_v5 }
 0x4c0   : > { %v6177_v36 = vpop.f32.mrf.mxu0  ;;  %v502_v44 = vadd.s32 %v500_v62, %v494_v43  ;;  %vm503_vm12 = vc.u32 %v501_v14, %v497_v33  ;;  %v20616_v41 = vrot.slane %v17066_v42, 3  ;;  %v498_v46 = vshrl.u32 %v493_v29, 16  ;;  %v6958_v33 = vpop.f32.mrf.mxu2 }
 0x4c1   : > { %v6218_v30 = vadd.f32 %v6177_v36, %v17008_v54  ;;  %v6566_v28 = vpop.f32.mrf.mxu1  ;;  %v7117_v54 = vsel %vm6623_vm5, %v17063_v16, %v17136_v32  ;;  %v504_v61 = vsel %vm503_vm12, 1, %v20613_v5  ;;  %v359_v43 = vadd.s32 32, %v16992_v3 }
 0x4c2   : > { %v7433_v39 = vsel %vm7416_vm6, %v20616_v41, %v7432_v22  ;;  %v506_v58 = vadd.s32 %v504_v61, %v502_v44  ;;  %vm1471_vm13 = vcmp.ge.s32.totalorder %v453_v27, 1  ;;  %vm1507_vm14 = vcmp.le.s32.totalorder %v453_v27, 16 }
 0x4c3   : > { %v17150_v35 = vadd.f32 %v6566_v28, %v6218_v30  ;;  %v17164_v36 = vor.u32 %v7124_v11, %v7121_v19  ;;  %v480_v16 = vshrl.u32 %v479_v57, 4  ;;  %v17170_v30 = vld [vmem:[%s14947_s28 + $0x58] sm:$0xff]  ;;  %v17173_v14 = vmul.u32 14564, %v518_v6  ;;  %vm1543_vm15 = vmand %vm1471_vm13, %vm1507_vm14 }
 0x4c4   : > { %v20463_v42 = vrot.slane %v17170_v30, 3  ;;  %v507_v28 = vadd.s32 %v506_v58, %v496_v51  ;;  %v20617_v62 = vrot.slane %v16960_v17, 3  ;;  %v20462_v19 = vrot.slane %v17022_v1, 3 }
 0x4c5   : > { %v520_v11 = vmul.u32 14564, %v517_v59  ;;  %v524_v57 = vshll.u32 %v17158_v13, 16  ;;  %v17183_v51 = vadd.s32 19, %v359_v43  ;;  %v17186_v58 = vadd.f32 %v6956_v4, %v17027_v40 }
 0x4c6   : > { %v7279_v37 = vpop.f32.mrf.mxu3  ;;  %v7696_v44 = vsel %vm7416_vm6, %v20617_v62, %v7695_v56  ;;  %v508_v41 = vadd.s32 %v507_v28, %v498_v46  ;;  %v17189_v17 = vadd.f32 %v6958_v33, %v17061_v7  ;;  %v523_v59 = vmul.u32 58254, %v518_v6 }
 0x4c7   : > { %v17167_v52 = vadd.f32 %v7279_v37, %v16623_v24  ;;  %20618 = vst [vmem:[#allocation17_spill] sm:$0xff] %v17186_v58  ;;  %v481_v37 = vmul.u32 18, %v480_v16  ;;  %v17203_v40 = vsel %vm7416_vm6, %v7432_v22, %v20463_v42  ;;  %v526_v7 = vshll.u32 %v17173_v14, 16 }
 0x4c8   : > { %v6180_v29 = vpop.f32.mrf.mxu0  ;;  %20619 = vst [vmem:[#allocation18_spill] sm:$0xff] %v17189_v17  ;;  %v20464_v4 = vmov 0.0   ;;  %v17213_v6 = vsel %vm7416_vm6, %v7695_v56, %v20462_v19  ;;  %vm528_vm7 = vc.u32 %v520_v11, %v524_v57  ;;  %v509_v22 = vshrl.u32 %v508_v41, 4 }
 0x4c9   : > { %v6219_v24 = vadd.f32 %v6180_v29, %v17040_v2  ;;  %v6569_v61 = vpop.f32.mrf.mxu1  ;;  %v17198_v2 = vsel %vm6623_vm5, %v17136_v32, %v17164_v36  ;;  %v17208_v27 = vsel %vm1543_vm15, 1.0, %v20464_v4  ;;  %v17216_v32 = vld [vmem:[%s14966_s18 + $0x70] sm:$0xff]  ;;  %v530_v46 = vadd.s32 %v524_v57, %v520_v11 }
 0x4ca   : > { %20620 = vst [vmem:[#allocation19_spill] sm:$0xff] %v17208_v27  ;;  %v546_v43 = vand.u32 65535, %v17183_v51  ;;  %v482_v33 = vsub.s32 %v17033_v9, %v481_v37  ;;  %v7131_v28 = vshll.u32 %v17216_v32, 16  ;;  %v547_v56 = vshrl.u32 %v17183_v51, 16 }
 0x4cb   : > { %v17191_v62 = vadd.f32 %v6569_v61, %v6219_v24  ;;  %13578 = vmatmul.msk.bf16.gmra.mxu3 %vm1853_vm1, %v7117_v54  ;;  %13618 = vmatmul.msk.bf16.gmra.mxu0 %vm1853_vm1, %v7433_v39  ;;  %v7128_v54 = vshrl.u32 %v17216_v32, 16  ;;  %v529_v39 = vsel %vm528_vm7, 1, %v20613_v5  ;;  %v525_v24 = vshrl.u32 %v17158_v13, 16 }
 0x4cc   : > { %13660 = vmatmul.msk.bf16.gmra.mxu1 %vm1853_vm1, %v7696_v44  ;;  %v531_v29 = vadd.s32 %v529_v39, %v523_v59  ;;  %vm532_vm8 = vc.u32 %v530_v46, %v526_v7  ;;  %v360_v61 = vadd.s32 40, %v16992_v3  ;;  %v549_v57 = vmul.u32 14564, %v546_v43 }
 0x4cd   : > { %v533_v11 = vsel %vm532_vm8, 1, %v20613_v5  ;;  %v550_v19 = vmul.u32 58254, %v546_v43  ;;  %v551_v42 = vmul.u32 14564, %v547_v56  ;;  %v510_v59 = vmul.u32 18, %v509_v22 }
 0x4ce   : > { %v7282_v16 = vpop.f32.mrf.mxu3  ;;  %v527_v39 = vshrl.u32 %v17173_v14, 16  ;;  %v535_v4 = vadd.s32 %v533_v11, %v531_v29  ;;  %vm1472_vm9 = vcmp.ge.s32.totalorder %v482_v33, 1  ;;  %v7133_v46 = vrot.slane %v7131_v28, 3 }
 0x4cf   : > { %v17225_v44 = vadd.f32 %v7282_v16, %v16639_v21  ;;  %v7130_v21 = vrot.slane %v7128_v54, 2  ;;  %v552_v16 = vmul.u32 58254, %v547_v56  ;;  %v553_v17 = vshll.u32 %v550_v19, 16 }
 0x4d0   : > { %v6182_v41 = vpop.f32.mrf.mxu0  ;;  %v555_v13 = vshll.u32 %v551_v42, 16  ;;  %v536_v58 = vadd.s32 %v535_v4, %v525_v24  ;;  %vm1508_vm10 = vcmp.le.s32.totalorder %v482_v33, 16  ;;  %v17234_v55 = vadd.s32 19, %v360_v61  ;;  %v17245_v61 = vld [vmem:[%s14966_s18 + $0x78] sm:$0xff] }
 0x4d1   : > { %v6220_v9 = vadd.f32 %v6182_v41, %v17091_v0  ;;  %v6571_v37 = vpop.f32.mrf.mxu1  ;;  %vm557_vm11 = vc.u32 %v549_v57, %v553_v17  ;;  %v559_v43 = vadd.s32 %v553_v17, %v549_v57  ;;  %v6961_v0 = vpop.f32.mrf.mxu2  ;;  %v511_v22 = vsub.s32 %v17080_v31, %v510_v59  ;;  %vm17256_vm14 = vmand %vm1472_vm9, %vm1508_vm10 }
 0x4d2   : > { %v537_v14 = vadd.s32 %v536_v58, %v527_v39  ;;  %v554_v29 = vshrl.u32 %v550_v19, 16  ;;  %v558_v54 = vsel %vm557_vm11, 1, %v20613_v5  ;;  %v575_v28 = vand.u32 65535, %v17234_v55 }
 0x4d3   : > { %v17232_v7 = vadd.f32 %v6571_v37, %v6220_v9  ;;  %v560_v41 = vadd.s32 %v558_v54, %v552_v16  ;;  %vm561_vm12 = vc.u32 %v559_v43, %v555_v13  ;;  %v576_v4 = vshrl.u32 %v17234_v55, 16 }
 0x4d4   : > { %v562_v17 = vsel %vm561_vm12, 1, %v20613_v5  ;;  %v7137_v31 = vshrl.u32 %v17245_v61, 16  ;;  %v7140_v19 = vshll.u32 %v17245_v61, 16  ;;  %v17250_v58 = vadd.f32 %v6961_v0, %v17124_v18 }
 0x4d5   : > { %20621 = vst [vmem:[#allocation20_spill] sm:$0xff] %v17232_v7  ;;  %v7134_v57 = vor.u32 %v7133_v46, %v7130_v21  ;;  %v556_v9 = vshrl.u32 %v551_v42, 16  ;;  %v564_v37 = vadd.s32 %v562_v17, %v560_v41  ;;  %vm1473_vm13 = vcmp.ge.s32.totalorder %v511_v22, 1 }
 0x4d6   : > { %v7284_v56 = vpop.f32.mrf.mxu3  ;;  %v538_v13 = vshrl.u32 %v537_v14, 4  ;;  %v578_v18 = vmul.u32 14564, %v575_v28  ;;  %v579_v0 = vmul.u32 58254, %v575_v28  ;;  %vm1509_vm15 = vcmp.le.s32.totalorder %v511_v22, 16 }
 0x4d7   : > { %v17241_v24 = vadd.f32 %v7284_v56, %v16645_v26  ;;  %v14803_v26 = vld [vmem:[%s14947_s28 + $0x60] sm:$0xff]  ;;  %v565_v54 = vadd.s32 %v564_v37, %v554_v29  ;;  %v17260_v56 = vmul.u32 14564, %v576_v4  ;;  %v7142_v33 = vrot.slane %v7140_v19, 3  ;;  %vm17282_vm7 = vmand %vm1473_vm13, %vm1509_vm15 }
 0x4d8   : > { %v7541_v11 = vpop.f32.mrf.mxu0  ;;  %v7436_v16 = vrot.slane %v14803_v26, 3  ;;  %v581_v46 = vmul.u32 58254, %v576_v4  ;;  %v582_v14 = vshll.u32 %v579_v0, 16  ;;  %v361_v29 = vadd.s32 48, %v16992_v3 }
 0x4d9   : > { %v7631_v59 = vadd.f32 %v7541_v11, %v17141_v45  ;;  %v7804_v39 = vpop.f32.mrf.mxu1  ;;  %v7139_v45 = vrot.slane %v7137_v31, 2  ;;  %v566_v21 = vadd.s32 %v565_v54, %v556_v9  ;;  %v20625_v41 = vmov 0.0  }
 0x4da   : > { %v17274_v28 = vsel %vm17256_vm14, 1.0, %v20625_v41  ;;  %v539_v17 = vmul.u32 18, %v538_v13  ;;  %v20629_v4 = vrot.slane %v17170_v30, 3  ;;  %v584_v9 = vshll.u32 %v17260_v56, 16 }
 0x4db   : > { %v17262_v42 = vadd.f32 %v7804_v39, %v7631_v59  ;;  %13579 = vmatmul.msk.bf16.gmra.mxu3 %vm1853_vm1, %v17198_v2  ;;  %13619 = vmatmul.msk.bf16.gmra.mxu0 %vm1853_vm1, %v17203_v40  ;;  %20626 = vst [vmem:[#allocation22_spill] sm:$0xff] %v17274_v28  ;;  %v17278_v2 = vsel %vm6623_vm5, %v17164_v36, %v7134_v57  ;;  %v20467_v40 = vrot.slane %v17071_v8, 3  ;;  %v567_v11 = vshrl.u32 %v566_v21, 4  ;;  %v17296_v59 = vld [vmem:[%s14947_s28 + $0x68] sm:$0xff] }
 0x4dc   : > { %13661 = vmatmul.msk.bf16.gmra.mxu1 %vm1853_vm1, %v17213_v6  ;;  %v7437_v19 = vsel %vm7416_vm6, %v20629_v4, %v7436_v16  ;;  %vm586_vm8 = vc.u32 %v578_v18, %v582_v14  ;;  %v17293_v37 = vor.u32 %v7142_v33, %v7139_v45  ;;  %v20466_v22 = vrot.slane %v17296_v59, 3 }
 0x4dd   : > { %20624 = vst [vmem:[#allocation21_spill] sm:$0xff] %v17262_v42  ;;  %v587_v39 = vsel %vm586_vm8, 1, %v20613_v5  ;;  %v568_v13 = vmul.u32 18, %v567_v11  ;;  %v588_v30 = vadd.s32 %v582_v14, %v578_v18  ;;  %v17300_v54 = vadd.s32 19, %v361_v29 }
 0x4de   : > { %v7287_v31 = vpop.f32.mrf.mxu3  ;;  %v589_v43 = vadd.s32 %v587_v39, %v581_v46  ;;  %v20631_v45 = vrot.slane %v17022_v1, 3  ;;  %v583_v18 = vshrl.u32 %v579_v0, 16  ;;  %v17321_v29 = vsel %vm7416_vm6, %v7436_v16, %v20466_v22 }
 0x4df   : > { %v17291_v36 = vadd.f32 %v7287_v31, %v16663_v50  ;;  %v17306_v50 = vsel %vm17282_vm7, 1.0, %v20625_v41  ;;  %v540_v31 = vsub.s32 %v17144_v63, %v539_v17  ;;  %vm590_vm9 = vc.u32 %v588_v30, %v584_v9 }
 0x4e0   : > { %v7543_v26 = vpop.f32.mrf.mxu0  ;;  %20630 = vst [vmem:[#allocation23_spill] sm:$0xff] %v17306_v50  ;;  %v7700_v33 = vsel %vm7416_vm6, %v20631_v45, %v20467_v40  ;;  %v604_v46 = vand.u32 65535, %v17300_v54  ;;  %v20468_v6 = vrot.slane %v17131_v60, 3  ;;  %v591_v1 = vsel %vm590_vm9, 1, %v20613_v5 }
 0x4e1   : > { %v7632_v21 = vadd.f32 %v7543_v26, %v17167_v52  ;;  %v7806_v4 = vpop.f32.mrf.mxu1  ;;  %v605_v52 = vshrl.u32 %v17300_v54, 16  ;;  %v569_v11 = vsub.s32 %v17183_v51, %v568_v13  ;;  %v17328_v63 = vsel %vm6623_vm5, %v7134_v57, %v17293_v37 }
 0x4e2   : > { %v593_v0 = vadd.s32 %v591_v1, %v589_v43  ;;  %v362_v17 = vadd.s32 56, %v16992_v3  ;;  %v585_v9 = vshrl.u32 %v17260_v56, 16  ;;  %v607_v39 = vmul.u32 14564, %v604_v46 }
 0x4e3   : > { %v17316_v14 = vadd.f32 %v7806_v4, %v7632_v21  ;;  %v608_v26 = vmul.u32 58254, %v604_v46  ;;  %v609_v30 = vmul.u32 14564, %v605_v52  ;;  %v7930_v16 = vmul.f32 %v17208_v27, %v17262_v42 }
 0x4e4   : > { %vm1474_vm10 = vcmp.ge.s32.totalorder %v540_v31, 1  ;;  %vm1510_vm11 = vcmp.le.s32.totalorder %v540_v31, 16  ;;  %v594_v4 = vadd.s32 %v593_v0, %v583_v18  ;;  %v610_v57 = vmul.u32 58254, %v605_v52 }
 0x4e5   : > { %20632 = vst [vmem:[#allocation24_spill] sm:$0xff] %v17316_v14  ;;  %v611_v13 = vshll.u32 %v608_v26, 16  ;;  %v363_v43 = vadd.s32 64, %v16992_v3  ;;  %vm1475_vm12 = vcmp.ge.s32.totalorder %v569_v11, 1  ;;  %vm1511_vm13 = vcmp.le.s32.totalorder %v569_v11, 16  ;;  %vm17341_vm14 = vmand %vm1474_vm10, %vm1510_vm11 }
 0x4e6   : > { %v7289_v21 = vpop.f32.mrf.mxu3  ;;  %v613_v56 = vshll.u32 %v609_v30, 16  ;;  %v17338_v46 = vadd.s32 19, %v362_v17  ;;  %v7931_v52 = vmul.f32 %v17274_v28, %v17316_v14  ;;  %vm1547_vm8 = vmand %vm1475_vm12, %vm1511_vm13 }
 0x4e7   : > { %v17335_v51 = vadd.f32 %v7289_v21, %v16671_v10  ;;  %v595_v10 = vadd.s32 %v594_v4, %v585_v9  ;;  %vm615_vm15 = vc.u32 %v607_v39, %v611_v13  ;;  %v617_v18 = vadd.s32 %v611_v13, %v607_v39  ;;  %v17349_v21 = vld [vmem:[%s14966_s18 + $0x80] sm:$0xff] }
 0x4e8   : > { %v7546_v45 = vpop.f32.mrf.mxu0  ;;  %v616_v0 = vsel %vm615_vm15, 1, %v20613_v5  ;;  %v7146_v17 = vshrl.u32 %v17349_v21, 16  ;;  %v7149_v40 = vshll.u32 %v17349_v21, 16  ;;  %v612_v9 = vshrl.u32 %v608_v26, 16 }
 0x4e9   : > { %v7633_v1 = vadd.f32 %v7546_v45, %v17225_v44  ;;  %v7809_v22 = vpop.f32.mrf.mxu1  ;;  %v618_v39 = vadd.s32 %v616_v0, %v610_v57  ;;  %vm619_vm7 = vc.u32 %v617_v18, %v613_v56  ;;  %v8009_v4 = vmul.f32 %v7930_v16, %v17262_v42 }
 0x4ea   : > { %v17363_v13 = vsel %vm17341_vm14, 1.0, %v20625_v41  ;;  %v596_v26 = vshrl.u32 %v595_v10, 4  ;;  %v633_v45 = vand.u32 65535, %v17338_v46  ;;  %v8010_v56 = vmul.f32 %v7931_v52, %v17316_v14 }
 0x4eb   : > { %v17353_v44 = vadd.f32 %v7809_v22, %v7633_v1  ;;  %13580 = vmatmul.msk.bf16.gmra.mxu3 %vm1853_vm1, %v17278_v2  ;;  %13620 = vmatmul.msk.bf16.gmra.mxu0 %vm1853_vm1, %v7437_v19  ;;  %20635 = vst [vmem:[#allocation25_spill] sm:$0xff] %v17363_v13  ;;  %v20636_v2 = vrot.slane %v17071_v8, 3  ;;  %v620_v22 = vsel %vm619_vm7, 1, %v20613_v5  ;;  %v7148_v11 = vrot.slane %v7146_v17, 2 }
 0x4ec   : > { %13662 = vmatmul.msk.bf16.gmra.mxu1 %vm1853_vm1, %v7700_v33  ;;  %v614_v33 = vshrl.u32 %v609_v30, 16  ;;  %v622_v57 = vadd.s32 %v620_v22, %v618_v39  ;;  %v7151_v31 = vrot.slane %v7149_v40, 3  ;;  %v634_v18 = vshrl.u32 %v17338_v46, 16  ;;  %v17387_v39 = vld [vmem:[%s14947_s28 + $0x70] sm:$0xff] }
 0x4ed   : > { %v17372_v19 = vsel %vm7416_vm6, %v20636_v2, %v20468_v6  ;;  %v17382_v0 = vsel %vm1547_vm8, 1.0, %v20625_v41  ;;  %v17384_v6 = vadd.s32 19, %v363_v43  ;;  %v7966_v30 = vadd.f32 %v7931_v52, %v7930_v16 }
 0x4ee   : > { %v7292_v1 = vpop.f32.mrf.mxu3  ;;  %20637 = vst [vmem:[#allocation26_spill] sm:$0xff] %v17382_v0  ;;  %v623_v2 = vadd.s32 %v622_v57, %v612_v9  ;;  %v636_v28 = vmul.u32 14564, %v633_v45  ;;  %v637_v17 = vmul.u32 58254, %v633_v45  ;;  %v597_v14 = vmul.u32 18, %v596_v26 }
 0x4ef   : > { %v17379_v8 = vadd.f32 %v7292_v1, %v16690_v25  ;;  %v638_v1 = vmul.u32 14564, %v634_v18  ;;  %v17391_v42 = vadd.f32 %v8010_v56, %v8009_v4  ;;  %v17393_v7 = vor.u32 %v7151_v31, %v7148_v11 }
 0x4f0   : > { %v7548_v10 = vpop.f32.mrf.mxu0  ;;  %v624_v25 = vadd.s32 %v623_v2, %v614_v33  ;;  %v639_v43 = vmul.u32 58254, %v634_v18  ;;  %v640_v9 = vshll.u32 %v637_v17, 16  ;;  %v20475_v57 = vrot.slane %v17216_v32, 3 }
 0x4f1   : > { %v7634_v40 = vadd.f32 %v7548_v10, %v17241_v24  ;;  %v7811_v27 = vpop.f32.mrf.mxu1  ;;  %v642_v22 = vshll.u32 %v638_v1, 16  ;;  %v662_v24 = vand.u32 65535, %v17384_v6  ;;  %v663_v26 = vshrl.u32 %v17384_v6, 16 }
 0x4f2   : > { %v625_v52 = vshrl.u32 %v624_v25, 4  ;;  %vm644_vm9 = vc.u32 %v636_v28, %v640_v9  ;;  %v646_v45 = vadd.s32 %v640_v9, %v636_v28  ;;  %v7932_v4 = vmul.f32 %v17306_v50, %v17353_v44 }
 0x4f3   : > { %v17395_v16 = vadd.f32 %v7811_v27, %v7634_v40  ;;  %v598_v33 = vsub.s32 %v17234_v55, %v597_v14  ;;  %v20638_v56 = vrot.slane %v17387_v39, 3  ;;  %v20639_v27 = vrot.slane %v17296_v59, 3 }
 0x4f4   : > { %v645_v31 = vsel %vm644_vm9, 1, %v20613_v5  ;;  %v17414_v28 = vsel %vm6623_vm5, %v17293_v37, %v17393_v7  ;;  %vm648_vm10 = vc.u32 %v646_v45, %v642_v22  ;;  %v666_v10 = vmul.u32 58254, %v662_v24 }
 0x4f5   : > { %v17408_v11 = vsel %vm7416_vm6, %v20639_v27, %v20638_v56  ;;  %v647_v2 = vadd.s32 %v645_v31, %v639_v43  ;;  %v20640_v59 = vrot.slane %v17131_v60, 3  ;;  %v641_v40 = vshrl.u32 %v637_v17, 16 }
 0x4f6   : > { %v7294_v18 = vpop.f32.mrf.mxu3  ;;  %v665_v25 = vmul.u32 14564, %v662_v24  ;;  %v626_v56 = vmul.u32 18, %v625_v52  ;;  %v649_v37 = vsel %vm648_vm10, 1, %v20613_v5  ;;  %v667_v27 = vmul.u32 14564, %v663_v26  ;;  %v17438_v52 = vld [vmem:[%s14966_s18 + $0x88] sm:$0xff] }
 0x4f7   : > { %v17417_v55 = vadd.f32 %v7294_v18, %v16702_v53  ;;  %v17424_v14 = vsel %vm7416_vm6, %v20640_v59, %v20475_v57  ;;  %v669_v22 = vshll.u32 %v666_v10, 16  ;;  %v7967_v43 = vadd.f32 %v7966_v30, %v7932_v4 }
 0x4f8   : > { %v7551_v9 = vpop.f32.mrf.mxu0  ;;  %v8011_v53 = vmul.f32 %v7932_v4, %v17353_v44  ;;  %v668_v18 = vmul.u32 58254, %v663_v26  ;;  %v7933_v60 = vmul.f32 %v17363_v13, %v17395_v16  ;;  %v643_v59 = vshrl.u32 %v638_v1, 16 }
 0x4f9   : > { %v7635_v45 = vadd.f32 %v7551_v9, %v17291_v36  ;;  %v7814_v31 = vpop.f32.mrf.mxu1  ;;  %v651_v17 = vadd.s32 %v649_v37, %v647_v2  ;;  %v671_v24 = vshll.u32 %v667_v27, 16  ;;  %vm673_vm11 = vc.u32 %v665_v25, %v669_v22 }
 0x4fa   : > { %v675_v30 = vadd.s32 %v669_v22, %v665_v25  ;;  %v7155_v36 = vshrl.u32 %v17438_v52, 16  ;;  %v627_v1 = vsub.s32 %v17300_v54, %v626_v56  ;;  %v674_v4 = vsel %vm673_vm11, 1, %v20613_v5  ;;  %v20641_v54 = vld [vmem:[#allocation6_spill] sm:$0xff] }
 0x4fb   : > { %v17431_v57 = vadd.f32 %v7814_v31, %v7635_v45  ;;  %13581 = vmatmul.msk.bf16.gmra.mxu3 %vm1853_vm1, %v17328_v63  ;;  %13621 = vmatmul.msk.bf16.gmra.mxu0 %vm1853_vm1, %v17321_v29  ;;  %v652_v26 = vadd.s32 %v651_v17, %v641_v40  ;;  %v7158_v2 = vshll.u32 %v17438_v52, 16  ;;  %vm1476_vm12 = vcmp.ge.s32.totalorder %v598_v33, 1 }
 0x4fc   : > { %13663 = vmatmul.msk.bf16.gmra.mxu1 %vm1853_vm1, %v17372_v19  ;;  %v670_v63 = vshrl.u32 %v666_v10, 16  ;;  %v676_v9 = vadd.s32 %v674_v4, %v668_v18  ;;  %vm677_vm13 = vc.u32 %v675_v30, %v671_v24  ;;  %v8012_v29 = vmul.f32 %v7933_v60, %v17395_v16 }
 0x4fd   : > { %vm1512_vm14 = vcmp.le.s32.totalorder %v598_v33, 16  ;;  %v653_v37 = vadd.s32 %v652_v26, %v643_v59  ;;  %v678_v22 = vsel %vm677_vm13, 1, %v20613_v5  ;;  %v7934_v19 = vmul.f32 %v17382_v0, %v17431_v57 }
 0x4fe   : > { %v7297_v25 = vpop.f32.mrf.mxu3  ;;  %v672_v56 = vshrl.u32 %v667_v27, 16  ;;  %v680_v45 = vadd.s32 %v678_v22, %v676_v9  ;;  %vm1477_vm15 = vcmp.ge.s32.totalorder %v627_v1, 1  ;;  %vm1513_vm7 = vcmp.le.s32.totalorder %v627_v1, 16  ;;  %vm17455_vm8 = vmand %vm1476_vm12, %vm1512_vm14  ;;  %v17462_v9 = vld [vmem:[%s14947_s28 + $0x78] sm:$0xff] }
 0x4ff   : > { %v17451_v40 = vadd.f32 %v7297_v25, %v20641_v54  ;;  %v7157_v10 = vrot.slane %v7155_v36, 2  ;;  %v7160_v18 = vrot.slane %v7158_v2, 3  ;;  %v654_v30 = vshrl.u32 %v653_v37, 4  ;;  %vm1549_vm9 = vmand %vm1477_vm15, %vm1513_vm7 }
 0x500   : > { %v7553_v31 = vpop.f32.mrf.mxu0  ;;  %v681_v26 = vadd.s32 %v680_v45, %v670_v63  ;;  %v364_v4 = vadd.s32 72, %v16992_v3  ;;  %v8046_v27 = vadd.f32 %v17391_v42, %v8011_v53  ;;  %v20476_v25 = vrot.slane %v17462_v9, 3 }
 0x501   : > { %v7636_v17 = vadd.f32 %v7553_v31, %v17335_v51  ;;  %v7816_v24 = vpop.f32.mrf.mxu1  ;;  %v20479_v36 = vrot.slane %v17245_v61, 3  ;;  %v365_v51 = vadd.s32 80, %v16992_v3  ;;  %v8013_v33 = vmul.f32 %v7934_v19, %v17431_v57 }
 0x502   : > { %v682_v63 = vadd.s32 %v681_v26, %v672_v56  ;;  %v17472_v37 = vadd.s32 19, %v364_v4  ;;  %v7968_v22 = vadd.f32 %v7967_v43, %v7933_v60  ;;  %v8047_v42 = vadd.f32 %v8046_v27, %v8012_v29 }
 0x503   : > { %v17468_v2 = vadd.f32 %v7816_v24, %v7636_v17  ;;  %v17477_v53 = vsel %vm17455_vm8, 1.0, %v20625_v41  ;;  %v17479_v54 = vadd.s32 19, %v365_v51  ;;  %v655_v45 = vmul.u32 18, %v654_v30 }
 0x504   : > { %20645 = vst [vmem:[#allocation27_spill] sm:$0xff] %v17477_v53  ;;  %v17481_v31 = vor.u32 %v7160_v18, %v7157_v10  ;;  %v691_v17 = vand.u32 65535, %v17472_v37  ;;  %v692_v1 = vshrl.u32 %v17472_v37, 16  ;;  %v7969_v24 = vadd.f32 %v7968_v22, %v7934_v19  ;;  %v20649_v19 = vld [vmem:[#allocation10_spill] sm:$0xff] }
 0x505   : > { %20644 = vst [vmem:[#allocation6_spill] sm:$0xff] %v17468_v2  ;;  %v17486_v26 = vsel %vm1549_vm9, 1.0, %v20625_v41  ;;  %v20647_v43 = vrot.slane %v17387_v39, 3  ;;  %v20648_v29 = vrot.slane %v17216_v32, 3  ;;  %v8048_v18 = vadd.f32 %v8047_v42, %v8013_v33 }
 0x506   : > { %v7299_v56 = vpop.f32.mrf.mxu3  ;;  %20646 = vst [vmem:[#allocation28_spill] sm:$0xff] %v17486_v26  ;;  %v683_v30 = vshrl.u32 %v682_v63, 4  ;;  %v720_v4 = vand.u32 65535, %v17479_v54  ;;  %v694_v51 = vmul.u32 14564, %v691_v17  ;;  %v695_v39 = vmul.u32 58254, %v691_v17 }
 0x507   : > { %v17493_v60 = vsel %vm7416_vm6, %v20647_v43, %v20476_v25  ;;  %v17500_v10 = vsel %vm7416_vm6, %v20648_v29, %v20479_v36  ;;  %v17503_v59 = vadd.f32 %v7299_v56, %v20649_v19  ;;  %v696_v22 = vmul.u32 14564, %v692_v1 }
 0x508   : > { %v7556_v27 = vpop.f32.mrf.mxu0  ;;  %v721_v43 = vshrl.u32 %v17479_v54, 16  ;;  %v656_v32 = vsub.s32 %v17338_v46, %v655_v45  ;;  %v17512_v33 = vsel %vm6623_vm5, %v17393_v7, %v17481_v31  ;;  %v366_v63 = vadd.s32 88, %v16992_v3 }
 0x509   : > { %v7637_v25 = vadd.f32 %v7556_v27, %v17379_v8  ;;  %v7819_v0 = vpop.f32.mrf.mxu1  ;;  %v697_v42 = vmul.u32 58254, %v692_v1  ;;  %v698_v56 = vshll.u32 %v695_v39, 16  ;;  %v700_v29 = vshll.u32 %v696_v22, 16 }
 0x50a   : > { %v17516_v17 = vadd.s32 96, %v16992_v3  ;;  %v7935_v19 = vmul.f32 %v17477_v53, %v17468_v2  ;;  %v684_v7 = vmul.u32 18, %v683_v30  ;;  %v723_v46 = vmul.u32 14564, %v720_v4  ;;  %v20651_v30 = vld [vmem:[#allocation11_spill] sm:$0xff] }
 0x50b   : > { %v17520_v8 = vadd.f32 %v7819_v0, %v7637_v25  ;;  %13582 = vmatmul.msk.bf16.gmra.mxu3 %vm1853_vm1, %v17414_v28  ;;  %13622 = vmatmul.msk.bf16.gmra.mxu0 %vm1853_vm1, %v17408_v11  ;;  %vm702_vm10 = vc.u32 %v694_v51, %v698_v56  ;;  %v704_v45 = vadd.s32 %v698_v56, %v694_v51  ;;  %v724_v1 = vmul.u32 58254, %v720_v4 }
 0x50c   : > { %13664 = vmatmul.msk.bf16.gmra.mxu1 %vm1853_vm1, %v17424_v14  ;;  %v725_v27 = vmul.u32 14564, %v721_v43  ;;  %vm1478_vm11 = vcmp.ge.s32.totalorder %v656_v32, 1  ;;  %vm1514_vm12 = vcmp.le.s32.totalorder %v656_v32, 16  ;;  %v699_v36 = vshrl.u32 %v695_v39, 16 }
 0x50d   : > { %20650 = vst [vmem:[#allocation10_spill] sm:$0xff] %v17520_v8  ;;  %v703_v0 = vsel %vm702_vm10, 1, %v20613_v5  ;;  %vm706_vm13 = vc.u32 %v704_v45, %v700_v29  ;;  %v726_v28 = vmul.u32 58254, %v721_v43  ;;  %v727_v13 = vshll.u32 %v724_v1, 16  ;;  %vm1550_vm14 = vmand %vm1478_vm11, %vm1514_vm12 }
 0x50e   : > { %v7302_v25 = vpop.f32.mrf.mxu3  ;;  %v705_v53 = vadd.s32 %v703_v0, %v697_v42  ;;  %v8014_v11 = vmul.f32 %v7935_v19, %v17468_v2  ;;  %v685_v14 = vsub.s32 %v17384_v6, %v684_v7  ;;  %v707_v4 = vsel %vm706_vm13, 1, %v20613_v5 }
 0x50f   : > { %v17531_v50 = vadd.f32 %v7302_v25, %v20651_v30  ;;  %v701_v32 = vshrl.u32 %v696_v22, 16  ;;  %v729_v56 = vshll.u32 %v725_v27, 16  ;;  %vm731_vm15 = vc.u32 %v723_v46, %v727_v13 }
 0x510   : > { %v7558_v51 = vpop.f32.mrf.mxu0  ;;  %v709_v39 = vadd.s32 %v707_v4, %v705_v53  ;;  %v7936_v42 = vmul.f32 %v17486_v26, %v17520_v8  ;;  %v732_v45 = vsel %vm731_vm15, 1, %v20613_v5  ;;  %v733_v0 = vadd.s32 %v727_v13, %v723_v46 }
 0x511   : > { %v7638_v43 = vadd.f32 %v7558_v51, %v17417_v55  ;;  %v7821_v29 = vpop.f32.mrf.mxu1  ;;  %v7970_v25 = vadd.f32 %v7969_v24, %v7935_v19  ;;  %v734_v6 = vadd.s32 %v732_v45, %v726_v28  ;;  %v17539_v7 = vadd.s32 19, %v366_v63  ;;  %v17550_v19 = vld [vmem:[%s14966_s18 + $0x90] sm:$0xff] }
 0x512   : > { %v710_v30 = vadd.s32 %v709_v39, %v699_v36  ;;  %v17542_v22 = vsel %vm1550_vm14, 1.0, %v20625_v41  ;;  %v728_v4 = vshrl.u32 %v724_v1, 16  ;;  %vm735_vm7 = vc.u32 %v733_v0, %v729_v56 }
 0x513   : > { %20652 = vst [vmem:[#allocation11_spill] sm:$0xff] %v17542_v22  ;;  %v17544_v53 = vadd.f32 %v7821_v29, %v7638_v43  ;;  %v8049_v26 = vadd.f32 %v8048_v18, %v8014_v11  ;;  %vm1479_vm8 = vcmp.ge.s32.totalorder %v685_v14, 1  ;;  %v736_v51 = vsel %vm735_vm7, 1, %v20613_v5  ;;  %v20654_v11 = vld [vmem:[#allocation7_spill] sm:$0xff] }
 0x514   : > { %v711_v55 = vadd.s32 %v710_v30, %v701_v32  ;;  %v17547_v2 = vadd.f32 %v7970_v25, %v7936_v42  ;;  %vm1515_vm9 = vcmp.le.s32.totalorder %v685_v14, 16  ;;  %v730_v13 = vshrl.u32 %v725_v27, 16  ;;  %v17561_v29 = vld [vmem:[%s14947_s28 + $0x80] sm:$0xff] }
 0x515   : > { %20653 = vst [vmem:[#allocation29_spill] sm:$0xff] %v17544_v53  ;;  %v738_v36 = vadd.s32 %v736_v51, %v734_v6  ;;  %v7164_v46 = vshrl.u32 %v17550_v19, 16  ;;  %v749_v1 = vand.u32 65535, %v17539_v7  ;;  %v750_v18 = vshrl.u32 %v17539_v7, 16  ;;  %vm17567_vm10 = vmand %vm1479_vm8, %vm1515_vm9 }
 0x516   : > { %v7304_v24 = vpop.f32.mrf.mxu3  ;;  %v712_v63 = vshrl.u32 %v711_v55, 4  ;;  %v8015_v28 = vmul.f32 %v7936_v42, %v17520_v8  ;;  %v7167_v56 = vshll.u32 %v17550_v19, 16  ;;  %v20490_v45 = vrot.slane %v17561_v29, 3 }
 0x517   : > { %v17557_v32 = vadd.f32 %v7304_v24, %v20654_v11  ;;  %v739_v39 = vadd.s32 %v738_v36, %v728_v4  ;;  %v752_v0 = vmul.u32 14564, %v749_v1  ;;  %v753_v25 = vmul.u32 58254, %v749_v1  ;;  %v14600_v36 = vld [vmem:[%s20443_s6 + $0x78] sm:$0xff] }
 0x518   : > { %v7561_v27 = vpop.f32.mrf.mxu0  ;;  %v713_v43 = vmul.u32 18, %v712_v63  ;;  %v20489_v55 = vrot.slane %v17349_v21, 3  ;;  %v754_v51 = vmul.u32 14564, %v750_v18  ;;  %v7166_v63 = vrot.slane %v7164_v46, 2  ;;  %9086 = vmatpush.bf16.msra.mxu2 %v14600_v36 }
 0x519   : > { %v7639_v30 = vadd.f32 %v7561_v27, %v17451_v40  ;;  %v7824_v6 = vpop.f32.mrf.mxu1  ;;  %v740_v4 = vadd.s32 %v739_v39, %v730_v13  ;;  %v755_v1 = vmul.u32 58254, %v750_v18  ;;  %v756_v40 = vshll.u32 %v753_v25, 16 }
 0x51a   : > { %v714_v24 = vsub.s32 %v17472_v37, %v713_v43  ;;  %v7169_v13 = vrot.slane %v7167_v56, 3  ;;  %v758_v39 = vshll.u32 %v754_v51, 16  ;;  %v7937_v27 = vmul.f32 %v17542_v22, %v17544_v53 }
 0x51b   : > { %v17576_v11 = vadd.f32 %v7824_v6, %v7639_v30  ;;  %13583 = vmatmul.msk.bf16.gmra.mxu3 %vm1853_vm1, %v17512_v33  ;;  %13623 = vmatmul.msk.bf16.gmra.mxu0 %vm1853_vm1, %v17493_v60  ;;  %v741_v14 = vshrl.u32 %v740_v4, 4  ;;  %v17587_v37 = vsel %vm17567_vm10, 1.0, %v20625_v41  ;;  %vm760_vm11 = vc.u32 %v752_v0, %v756_v40 }
 0x51c   : > { %20658 = vst [vmem:[#allocation30_spill] sm:$0xff] %v17587_v37  ;;  %13665 = vmatmul.msk.bf16.gmra.mxu1 %vm1853_vm1, %v17500_v10  ;;  %v762_v46 = vadd.s32 %v756_v40, %v752_v0  ;;  %vm1480_vm12 = vcmp.ge.s32.totalorder %v714_v24, 1  ;;  %vm1516_vm13 = vcmp.le.s32.totalorder %v714_v24, 16  ;;  %v761_v60 = vsel %vm760_vm11, 1, %v20613_v5  ;;  %v20660_v0 = vld [vmem:[#allocation3_spill] sm:$0xff] }
 0x51d   : > { %20657 = vst [vmem:[#allocation7_spill] sm:$0xff] %v17576_v11  ;;  %v17593_v33 = vadd.s32 19, %v17516_v17  ;;  %v8050_v18 = vadd.f32 %v8049_v26, %v8015_v28  ;;  %v20659_v43 = vrot.slane %v17462_v9, 3  ;;  %v763_v10 = vadd.s32 %v761_v60, %v755_v1  ;;  %vm1552_vm15 = vmand %vm1480_vm12, %vm1516_vm13 }
 0x51e   : > { %v7307_v56 = vpop.f32.mrf.mxu3  ;;  %vm764_vm14 = vc.u32 %v762_v46, %v758_v39  ;;  %v742_v6 = vmul.u32 18, %v741_v14  ;;  %v17605_v4 = vor.u32 %v7169_v13, %v7166_v63  ;;  %v20661_v26 = vrot.slane %v17245_v61, 3 }
 0x51f   : > { %v17600_v30 = vsel %vm7416_vm6, %v20659_v43, %v20490_v45  ;;  %v17603_v42 = vadd.f32 %v7307_v56, %v20660_v0  ;;  %v757_v9 = vshrl.u32 %v753_v25, 16  ;;  %v765_v36 = vsel %vm764_vm14, 1, %v20613_v5 }
 0x520   : > { %v7708_v17 = vsel %vm7416_vm6, %v20661_v26, %v20489_v55  ;;  %v7563_v28 = vpop.f32.mrf.mxu0  ;;  %v778_v24 = vand.u32 65535, %v17593_v33  ;;  %v779_v1 = vshrl.u32 %v17593_v33, 16  ;;  %v8016_v40 = vmul.f32 %v7937_v27, %v17544_v53 }
 0x521   : > { %v7938_v63 = vmul.f32 %v17587_v37, %v17576_v11  ;;  %v7640_v14 = vadd.f32 %v7563_v28, %v17503_v59  ;;  %v7826_v13 = vpop.f32.mrf.mxu1  ;;  %v759_v61 = vshrl.u32 %v754_v51, 16  ;;  %v767_v39 = vadd.s32 %v765_v36, %v763_v10  ;;  %v17631_v36 = vld [vmem:[%s14966_s18 + $0x98] sm:$0xff] }
 0x522   : > { %v781_v46 = vmul.u32 14564, %v778_v24  ;;  %v782_v60 = vmul.u32 58254, %v778_v24  ;;  %v783_v25 = vmul.u32 14564, %v779_v1  ;;  %v7972_v56 = vadd.f32 %v17547_v2, %v7937_v27 }
 0x523   : > { %v17621_v43 = vsel %vm1552_vm15, 1.0, %v20625_v41  ;;  %v17623_v0 = vadd.f32 %v7826_v13, %v7640_v14  ;;  %v743_v26 = vsub.s32 %v17479_v54, %v742_v6  ;;  %v768_v55 = vadd.s32 %v767_v39, %v757_v9 }
 0x524   : > { %20662 = vst [vmem:[#allocation3_spill] sm:$0xff] %v17621_v43  ;;  %v784_v45 = vmul.u32 58254, %v779_v1  ;;  %v785_v37 = vshll.u32 %v782_v60, 16  ;;  %v787_v59 = vshll.u32 %v783_v25, 16  ;;  %v8051_v28 = vadd.f32 %v8050_v18, %v8016_v40 }
 0x525   : > { %20663 = vst [vmem:[#allocation31_spill] sm:$0xff] %v17623_v0  ;;  %v8017_v51 = vmul.f32 %v7938_v63, %v17576_v11  ;;  %v7171_v10 = vsel %vm6623_vm5, %v17481_v31, %v17605_v4  ;;  %v7173_v2 = vshrl.u32 %v17631_v36, 16  ;;  %v769_v24 = vadd.s32 %v768_v55, %v759_v61  ;;  %v17645_v11 = vld [vmem:[%s14947_s28 + $0x88] sm:$0xff] }
 0x526   : > { %v7309_v27 = vpop.f32.mrf.mxu3  ;;  %vm789_vm7 = vc.u32 %v781_v46, %v785_v37  ;;  %v791_v14 = vadd.s32 %v785_v37, %v781_v46  ;;  %v7176_v54 = vshll.u32 %v17631_v36, 16  ;;  %v7939_v6 = vmul.f32 %v17621_v43, %v17623_v0 }
 0x527   : > { %vm1481_vm8 = vcmp.ge.s32.totalorder %v743_v26, 1  ;;  %vm1517_vm9 = vcmp.le.s32.totalorder %v743_v26, 16  ;;  %v790_v18 = vsel %vm789_vm7, 1, %v20613_v5  ;;  %v770_v31 = vshrl.u32 %v769_v24, 4 }
 0x528   : > { %v7566_v9 = vpop.f32.mrf.mxu0  ;;  %v786_v1 = vshrl.u32 %v782_v60, 16  ;;  %v792_v40 = vadd.s32 %v790_v18, %v784_v45  ;;  %vm793_vm10 = vc.u32 %v791_v14, %v787_v59  ;;  %v788_v61 = vshrl.u32 %v783_v25, 16  ;;  %vm17640_vm11 = vmand %vm1481_vm8, %vm1517_vm9 }
 0x529   : > { %v7641_v13 = vadd.f32 %v7566_v9, %v17531_v50  ;;  %v7829_v55 = vpop.f32.mrf.mxu1  ;;  %v794_v37 = vsel %vm793_vm10, 1, %v20613_v5  ;;  %v7175_v39 = vrot.slane %v7173_v2, 2  ;;  %v771_v26 = vmul.u32 18, %v770_v31 }
 0x52a   : > { %v796_v43 = vadd.s32 %v794_v37, %v792_v40  ;;  %v7178_v22 = vrot.slane %v7176_v54, 3  ;;  %v20499_v60 = vrot.slane %v17645_v11, 3  ;;  %v8018_v45 = vmul.f32 %v7939_v6, %v17623_v0 }
 0x52b   : > { %v17649_v59 = vadd.f32 %v7829_v55, %v7641_v13  ;;  %13584 = vmatmul.msk.bf16.gmra.mxu3 %vm1853_vm1, %v7171_v10  ;;  %13624 = vmatmul.msk.bf16.gmra.mxu0 %vm1853_vm1, %v17600_v30  ;;  %v368_v50 = vadd.s32 104, %v16992_v3  ;;  %v369_v25 = vadd.s32 112, %v16992_v3  ;;  %v7973_v2 = vadd.f32 %v7972_v56, %v7938_v63  ;;  %v7007_v13 = vld [vmem:[%s14966_s18 + $0xa0] sm:$0x3] }
 0x52c   : > { %v8052_v24 = vadd.f32 %v8051_v28, %v8017_v51  ;;  %13666 = vmatmul.msk.bf16.gmra.mxu1 %vm1853_vm1, %v7708_v17  ;;  %v772_v14 = vsub.s32 %v17539_v7, %v771_v26  ;;  %v797_v54 = vadd.s32 %v796_v43, %v786_v1  ;;  %v17661_v18 = vsel %vm17640_vm11, 1.0, %v20625_v41  ;;  %v20668_v28 = vld [vmem:[#allocation4_spill] sm:$0xff] }
 0x52d   : > { %20666 = vst [vmem:[#allocation32_spill] sm:$0xff] %v17649_v59  ;;  %v20498_v10 = vrot.slane %v17438_v52, 3  ;;  %v17664_v30 = vadd.s32 19, %v368_v50  ;;  %v17666_v9 = vadd.s32 19, %v369_v25  ;;  %v17668_v31 = vadd.f32 %v7973_v2, %v7939_v6 }
 0x52e   : > { %20667 = vst [vmem:[#allocation33_spill] sm:$0xff] %v17661_v18  ;;  %v17671_v63 = vadd.f32 %v7309_v27, %v17037_v15  ;;  %v7312_v17 = vpop.f32.mrf.mxu3  ;;  %v798_v56 = vadd.s32 %v797_v54, %v788_v61  ;;  %v17673_v7 = vor.u32 %v7178_v22, %v7175_v39  ;;  %v17675_v43 = vadd.f32 %v8052_v24, %v8018_v45 }
 0x52f   : > { %v17678_v51 = vadd.f32 %v7312_v17, %v20668_v28  ;;  %v20669_v1 = vrot.slane %v17561_v29, 3  ;;  %v807_v6 = vand.u32 65535, %v17664_v30  ;;  %vm1482_vm12 = vcmp.ge.s32.totalorder %v772_v14, 1 }
 0x530   : > { %v7568_v15 = vpop.f32.mrf.mxu0  ;;  %v799_v27 = vshrl.u32 %v798_v56, 4  ;;  %v808_v22 = vshrl.u32 %v17664_v30, 16  ;;  %v836_v55 = vand.u32 65535, %v17666_v9  ;;  %vm1518_vm13 = vcmp.le.s32.totalorder %v772_v14, 16 }
 0x531   : > { %v7447_v40 = vsel %vm7416_vm6, %v20669_v1, %v20499_v60  ;;  %v7642_v61 = vadd.f32 %v7568_v15, %v17557_v32  ;;  %v7831_v37 = vpop.f32.mrf.mxu1  ;;  %v810_v39 = vmul.u32 14564, %v807_v6  ;;  %v811_v46 = vmul.u32 58254, %v807_v6  ;;  %vm17699_vm14 = vmand %vm1482_vm12, %vm1518_vm13  ;;  %v17711_v15 = vld [vmem:[%s14947_s28 + $0x90] sm:$0xff] }
 0x532   : > { %v7180_v29 = vsel %vm6623_vm5, %v17605_v4, %v17673_v7  ;;  %v812_v26 = vmul.u32 14564, %v808_v22  ;;  %v837_v45 = vshrl.u32 %v17666_v9, 16  ;;  %v7018_v50 = vunpack.c.l.b16 %v7007_v13 }
 0x533   : > { %v7940_v25 = vmul.f32 %v17661_v18, %v17649_v59  ;;  %v17696_v2 = vadd.f32 %v7831_v37, %v7642_v61  ;;  %v813_v24 = vmul.u32 58254, %v808_v22  ;;  %v814_v32 = vshll.u32 %v811_v46, 16 }
 0x534   : > { %v800_v17 = vmul.u32 18, %v799_v27  ;;  %v20672_v4 = vrot.slane %v17349_v21, 3  ;;  %v816_v28 = vshll.u32 %v812_v26, 16  ;;  %v840_v1 = vmul.u32 58254, %v836_v55 }
 0x535   : > { %vm818_vm15 = vc.u32 %v810_v39, %v814_v32  ;;  %v820_v6 = vadd.s32 %v814_v32, %v810_v39  ;;  %v17708_v13 = vmul.u32 14564, %v837_v45  ;;  %v839_v61 = vmul.u32 14564, %v836_v55 }
 0x536   : > { %v7710_v56 = vsel %vm7416_vm6, %v20672_v4, %v20498_v10  ;;  %v17714_v22 = vpop.f32.mrf.mxu3  ;;  %v819_v27 = vsel %vm818_vm15, 1, %v20613_v5  ;;  %v17717_v37 = vpack.c.b16 %v7018_v50, %v7018_v50  ;;  %v8019_v4 = vmul.f32 %v7940_v25, %v17649_v59 }
 0x537   : > { %v17724_v39 = vsel %vm17699_vm14, 1.0, %v20625_v41  ;;  %v815_v32 = vshrl.u32 %v811_v46, 16  ;;  %v821_v10 = vadd.s32 %v819_v27, %v813_v24  ;;  %v801_v14 = vsub.s32 %v17593_v33, %v800_v17 }
 0x538   : > { %20673 = vst [vmem:[#allocation4_spill] sm:$0xff] %v17724_v39  ;;  %v7571_v60 = vpop.f32.mrf.mxu0  ;;  %vm822_vm7 = vc.u32 %v820_v6, %v816_v28  ;;  %v842_v18 = vmul.u32 58254, %v837_v45  ;;  %v843_v0 = vshll.u32 %v840_v1, 16  ;;  %v817_v53 = vshrl.u32 %v812_v26, 16 }
 0x539   : > { %v7643_v55 = vadd.f32 %v7571_v60, %v17603_v42  ;;  %v7834_v50 = vpop.f32.mrf.mxu1  ;;  %v823_v21 = vsel %vm822_vm7, 1, %v20613_v5  ;;  %v845_v59 = vshll.u32 %v17708_v13, 16  ;;  %v7941_v54 = vmul.f32 %v17724_v39, %v17696_v2 }
 0x53a   : > { %v825_v8 = vadd.s32 %v823_v21, %v821_v10  ;;  %vm847_vm8 = vc.u32 %v839_v61, %v843_v0  ;;  %v849_v46 = vadd.s32 %v843_v0, %v839_v61  ;;  %v7182_v42 = vshrl.u32 %v17717_v37, 16 }
 0x53b   : > { %v17732_v24 = vadd.f32 %v7834_v50, %v7643_v55  ;;  %13585 = vmatmul.msk.bf16.gmra.mxu3 %vm1853_vm1, %v7180_v29  ;;  %13625 = vmatmul.msk.bf16.gmra.mxu0 %vm1853_vm1, %v7447_v40  ;;  %v848_v33 = vsel %vm847_vm8, 1, %v20613_v5  ;;  %v7185_v60 = vshll.u32 %v17717_v37, 16  ;;  %v844_v45 = vshrl.u32 %v840_v1, 16  ;;  %v14599_v1 = vld [vmem:[%s20443_s6 + $0x70] sm:$0xff] }
 0x53c   : > { %13667 = vmatmul.msk.bf16.gmra.mxu1 %vm1853_vm1, %v7710_v56  ;;  %v826_v26 = vadd.s32 %v825_v8, %v815_v32  ;;  %v850_v17 = vadd.s32 %v848_v33, %v842_v18  ;;  %vm851_vm9 = vc.u32 %v849_v46, %v845_v59  ;;  %vm1483_vm10 = vcmp.ge.s32.totalorder %v801_v14, 1  ;;  %v20674_v56 = vld [vmem:[#allocation5_spill] sm:$0xff]  ;;  %9087 = vmatpush.bf16.msra.mxu2 %v14599_v1 }
 0x53d   : > { %vm1519_vm11 = vcmp.le.s32.totalorder %v801_v14, 16  ;;  %v846_v0 = vshrl.u32 %v17708_v13, 16  ;;  %v852_v10 = vsel %vm851_vm9, 1, %v20613_v5  ;;  %v370_v6 = vadd.s32 120, %v16992_v3 }
 0x53e   : > { %v7317_v29 = vpop.f32.mrf.mxu3  ;;  %v827_v40 = vadd.s32 %v826_v26, %v817_v53  ;;  %v854_v28 = vadd.s32 %v852_v10, %v850_v17  ;;  %v371_v27 = vadd.s32 128, %v16992_v3  ;;  %v7975_v61 = vadd.f32 %v17668_v31, %v7940_v25  ;;  %vm17751_vm12 = vmand %vm1483_vm10, %vm1519_vm11 }
 0x53f   : > { %v17746_v8 = vadd.f32 %v7317_v29, %v20674_v56  ;;  %v7184_v18 = vrot.slane %v7182_v42, 2  ;;  %v7187_v59 = vrot.slane %v7185_v60, 3  ;;  %v17755_v32 = vadd.s32 19, %v370_v6 }
 0x540   : > { %v7573_v53 = vpop.f32.mrf.mxu0  ;;  %v828_v14 = vshrl.u32 %v827_v40, 4  ;;  %v855_v21 = vadd.s32 %v854_v28, %v844_v45  ;;  %v17757_v55 = vadd.s32 19, %v371_v27  ;;  %v8054_v31 = vadd.f32 %v17675_v43, %v8019_v4 }
 0x541   : > { %v17760_v25 = vadd.f32 %v7975_v61, %v7941_v54  ;;  %v8020_v50 = vmul.f32 %v7941_v54, %v17696_v2  ;;  %v7836_v46 = vpop.f32.mrf.mxu1  ;;  %v20677_v33 = vrot.slane %v17711_v15, 3  ;;  %v20678_v42 = vrot.slane %v17645_v11, 3 }
 0x542   : > { %v829_v26 = vmul.u32 18, %v828_v14  ;;  %v856_v45 = vadd.s32 %v855_v21, %v846_v0  ;;  %v865_v17 = vand.u32 65535, %v17755_v32  ;;  %v866_v10 = vshrl.u32 %v17755_v32, 16 }
 0x543   : > { %v7449_v60 = vsel %vm7416_vm6, %v20678_v42, %v20677_v33  ;;  %v17773_v43 = vsel %vm17751_vm12, 1.0, %v20625_v41  ;;  %v7644_v4 = vadd.f32 %v7573_v53, %v17671_v63  ;;  %v7188_v54 = vor.u32 %v7187_v59, %v7184_v18 }
 0x544   : > { %20679 = vst [vmem:[#allocation5_spill] sm:$0xff] %v17773_v43  ;;  %v894_v29 = vand.u32 65535, %v17757_v55  ;;  %v830_v11 = vsub.s32 %v17664_v30, %v829_v26  ;;  %v857_v40 = vshrl.u32 %v856_v45, 4  ;;  %v868_v28 = vmul.u32 14564, %v865_v17 }
 0x545   : > { %v869_v6 = vmul.u32 58254, %v865_v17  ;;  %v20680_v0 = vrot.slane %v17550_v19, 3  ;;  %v20681_v27 = vrot.slane %v17438_v52, 3  ;;  %v870_v56 = vmul.u32 14564, %v866_v10 }
 0x546   : > { %v871_v1 = vmul.u32 58254, %v866_v10  ;;  %v895_v13 = vshrl.u32 %v17757_v55, 16  ;;  %vm1484_vm13 = vcmp.ge.s32.totalorder %v830_v11, 1  ;;  %vm1520_vm14 = vcmp.le.s32.totalorder %v830_v11, 16  ;;  %v17784_v63 = vpop.f32.mrf.mxu3 }
 0x547   : > { %v7712_v61 = vsel %vm7416_vm6, %v20681_v27, %v20680_v0  ;;  %v858_v18 = vmul.u32 18, %v857_v40  ;;  %v872_v59 = vshll.u32 %v869_v6, 16  ;;  %v7942_v30 = vmul.f32 %v17773_v43, %v17732_v24  ;;  %vm1556_vm15 = vmand %vm1484_vm13, %vm1520_vm14 }
 0x548   : > { %v17788_v53 = vadd.f32 %v7836_v46, %v7644_v4  ;;  %v7189_v52 = vsel %vm6623_vm5, %v17673_v7, %v7188_v54  ;;  %v874_v14 = vshll.u32 %v870_v56, 16  ;;  %v7576_v21 = vpop.f32.mrf.mxu0  ;;  %v897_v42 = vmul.u32 14564, %v894_v29 }
 0x549   : > { %vm876_vm7 = vc.u32 %v868_v28, %v872_v59  ;;  %v878_v33 = vadd.s32 %v872_v59, %v868_v28  ;;  %v898_v26 = vmul.u32 58254, %v894_v29  ;;  %v7645_v45 = vadd.f32 %v7576_v21, %v17678_v51  ;;  %v7839_v10 = vpop.f32.mrf.mxu1 }
 0x54a   : > { %v859_v17 = vsub.s32 %v17666_v9, %v858_v18  ;;  %v877_v11 = vsel %vm876_vm7, 1, %v20613_v5  ;;  %v899_v40 = vmul.u32 14564, %v895_v13  ;;  %v17796_v46 = vsel %vm1556_vm15, 1.0, %v20625_v41 }
 0x54b   : > { %20682 = vst [vmem:[#allocation34_spill] sm:$0xff] %v17796_v46  ;;  %v873_v4 = vshrl.u32 %v869_v6, 16  ;;  %v879_v0 = vadd.s32 %v877_v11, %v871_v1  ;;  %vm880_vm8 = vc.u32 %v878_v33, %v874_v14  ;;  %v7382_v7 = vadd.f32 %v17714_v22, %v17045_v47  ;;  %13586 = vmatmul.msk.bf16.gmra.mxu3 %vm1853_vm1, %v7189_v52  ;;  %v20683_v14 = vld [vmem:[#allocation12_spill] sm:$0xff] }
 0x54c   : > { %v8021_v54 = vmul.f32 %v7942_v30, %v17732_v24  ;;  %v17801_v29 = vadd.f32 %v7839_v10, %v7645_v45  ;;  %13626 = vmatmul.msk.bf16.gmra.mxu0 %vm1853_vm1, %v7449_v60  ;;  %v881_v9 = vsel %vm880_vm8, 1, %v20613_v5  ;;  %13668 = vmatmul.msk.bf16.gmra.mxu1 %vm1853_vm1, %v7712_v61  ;;  %v875_v51 = vshrl.u32 %v870_v56, 16 }
 0x54d   : > { %v883_v28 = vadd.s32 %v881_v9, %v879_v0  ;;  %v900_v6 = vmul.u32 58254, %v895_v13  ;;  %v901_v27 = vshll.u32 %v898_v26, 16  ;;  %v7943_v47 = vmul.f32 %v17796_v46, %v17788_v53  ;;  %v17815_v13 = vld [vmem:[%s14947_s28 + $0x98] sm:$0xff] }
 0x54e   : > { %vm1485_vm9 = vcmp.ge.s32.totalorder %v859_v17, 1  ;;  %vm1521_vm10 = vcmp.le.s32.totalorder %v859_v17, 16  ;;  %v903_v22 = vshll.u32 %v899_v40, 16  ;;  %v8055_v1 = vadd.f32 %v8054_v31, %v8020_v50  ;;  %v7322_v18 = vpop.f32.mrf.mxu3 }
 0x54f   : > { %v884_v59 = vadd.s32 %v883_v28, %v873_v4  ;;  %vm905_vm11 = vc.u32 %v897_v42, %v901_v27  ;;  %v907_v60 = vadd.s32 %v901_v27, %v897_v42  ;;  %v7977_v52 = vadd.f32 %v17760_v25, %v7942_v30  ;;  %vm1557_vm12 = vmand %vm1485_vm9, %vm1521_vm10 }
 0x550   : > { %v17811_v61 = vadd.f32 %v7322_v18, %v20683_v14  ;;  %v906_v56 = vsel %vm905_vm11, 1, %v20613_v5  ;;  %v7450_v21 = vrot.slane %v17815_v13, 3  ;;  %v7578_v33 = vpop.f32.mrf.mxu0  ;;  %v902_v17 = vshrl.u32 %v898_v26, 16 }
 0x551   : > { %v885_v45 = vadd.s32 %v884_v59, %v875_v51  ;;  %v908_v31 = vadd.s32 %v906_v56, %v900_v6  ;;  %vm909_vm13 = vc.u32 %v907_v60, %v903_v22  ;;  %v8056_v50 = vadd.f32 %v8055_v1, %v8021_v54  ;;  %v7841_v10 = vpop.f32.mrf.mxu1 }
 0x552   : > { %v8022_v42 = vmul.f32 %v7943_v47, %v17788_v53  ;;  %v910_v25 = vsel %vm909_vm13, 1, %v20613_v5  ;;  %v372_v30 = vadd.s32 136, %v16992_v3  ;;  %v904_v4 = vshrl.u32 %v899_v40, 16 }
 0x553   : > { %v886_v11 = vshrl.u32 %v885_v45, 4  ;;  %v912_v0 = vadd.s32 %v910_v25, %v908_v31  ;;  %v373_v9 = vadd.s32 144, %v16992_v3  ;;  %v17823_v28 = vsel %vm1557_vm12, 1.0, %v20625_v41 }
 0x554   : > { %20684 = vst [vmem:[#allocation12_spill] sm:$0xff] %v17823_v28  ;;  %v20685_v26 = vrot.slane %v17711_v15, 3  ;;  %v7713_v51 = vrot.slane %v17631_v36, 3  ;;  %v17831_v6 = vadd.s32 19, %v372_v30  ;;  %v7646_v27 = vadd.f32 %v7578_v33, %v7382_v7 }
 0x555   : > { %v887_v22 = vmul.u32 18, %v886_v11  ;;  %v913_v1 = vadd.s32 %v912_v0, %v902_v17  ;;  %v17833_v40 = vadd.s32 19, %v373_v9  ;;  %v17835_v18 = vadd.f32 %v7977_v52, %v7943_v47 }
 0x556   : > { %v7451_v54 = vsel %vm7416_vm6, %v20685_v26, %v7450_v21  ;;  %v17839_v59 = vadd.f32 %v17784_v63, %v17049_v38  ;;  %v923_v60 = vand.u32 65535, %v17831_v6  ;;  %v924_v15 = vshrl.u32 %v17831_v6, 16  ;;  %v17850_v33 = vpop.f32.mrf.mxu3  ;;  %v20687_v26 = vld [vmem:[#allocation8_spill] sm:$0xff] }
 0x557   : > { %v17843_v14 = vadd.f32 %v8056_v50, %v8022_v42  ;;  %v17847_v56 = vmul.f32 %v17823_v28, %v17801_v29  ;;  %v888_v7 = vsub.s32 %v17755_v32, %v887_v22  ;;  %v914_v47 = vadd.s32 %v913_v1, %v904_v4 }
 0x558   : > { %v20686_v38 = vrot.slane %v17550_v19, 3  ;;  %v926_v52 = vmul.u32 14564, %v923_v60  ;;  %v927_v45 = vmul.u32 58254, %v923_v60  ;;  %v928_v17 = vmul.u32 14564, %v924_v15  ;;  %v7581_v50 = vpop.f32.mrf.mxu0 }
 0x559   : > { %v17857_v31 = vadd.f32 %v7841_v10, %v7646_v27  ;;  %v915_v42 = vshrl.u32 %v914_v47, 4  ;;  %v952_v25 = vand.u32 65535, %v17833_v40  ;;  %v953_v32 = vshrl.u32 %v17833_v40, 16  ;;  %v7844_v11 = vpop.f32.mrf.mxu1 }
 0x55a   : > { %v7714_v63 = vsel %vm7416_vm6, %v20686_v38, %v7713_v51  ;;  %v7647_v30 = vadd.f32 %v7581_v50, %v17746_v8  ;;  %v929_v4 = vmul.u32 58254, %v924_v15  ;;  %v930_v0 = vshll.u32 %v927_v45, 16 }
 0x55b   : > { %v932_v9 = vshll.u32 %v928_v17, 16  ;;  %vm1486_vm14 = vcmp.ge.s32.totalorder %v888_v7, 1  ;;  %vm1522_vm15 = vcmp.le.s32.totalorder %v888_v7, 16  ;;  %v916_v19 = vmul.u32 18, %v915_v42 }
 0x55c   : > { %v7452_v22 = vrot.slane %v20687_v26, 3  ;;  %v17863_v1 = vadd.f32 %v7844_v11, %v7647_v30  ;;  %13627 = vmatmul.msk.bf16.gmra.mxu0 %vm1853_vm1, %v7451_v54  ;;  %vm934_vm7 = vc.u32 %v926_v52, %v930_v0  ;;  %v936_v10 = vadd.s32 %v930_v0, %v926_v52  ;;  %13669 = vmatmul.msk.bf16.gmra.mxu1 %vm1853_vm1, %v7714_v63  ;;  %vm1558_vm8 = vmand %vm1486_vm14, %vm1522_vm15 }
 0x55d   : > { %v7715_v27 = vrot.slane %v17717_v37, 3  ;;  %v917_v60 = vsub.s32 %v17757_v55, %v916_v19  ;;  %v935_v8 = vsel %vm934_vm7, 1, %v20613_v5  ;;  %v956_v15 = vmul.u32 58254, %v952_v25  ;;  %v20688_v55 = vld [vmem:[#allocation13_spill] sm:$0xff] }
 0x55e   : > { %v17870_v47 = vmul.u32 14564, %v953_v32  ;;  %v931_v7 = vshrl.u32 %v927_v45, 16  ;;  %v937_v38 = vadd.s32 %v935_v8, %v929_v4  ;;  %vm938_vm9 = vc.u32 %v936_v10, %v932_v9  ;;  %v7327_v54 = vpop.f32.mrf.mxu3 }
 0x55f   : > { %v955_v50 = vmul.u32 14564, %v952_v25  ;;  %vm1487_vm10 = vcmp.ge.s32.totalorder %v917_v60, 1  ;;  %vm1523_vm11 = vcmp.le.s32.totalorder %v917_v60, 16  ;;  %v939_v52 = vsel %vm938_vm9, 1, %v20613_v5 }
 0x560   : > { %v374_v37 = vadd.s32 152, %v16992_v3  ;;  %v17875_v42 = vadd.f32 %v7327_v54, %v20688_v55  ;;  %v933_v63 = vshrl.u32 %v928_v17, 16  ;;  %v941_v30 = vadd.s32 %v939_v52, %v937_v38  ;;  %vm1559_vm12 = vmand %vm1487_vm10, %vm1523_vm11  ;;  %v7583_v25 = vpop.f32.mrf.mxu0 }
 0x561   : > { %v959_v11 = vshll.u32 %v956_v15, 16  ;;  %v17879_v0 = vmul.f32 %v17847_v56, %v17801_v29  ;;  %v17882_v45 = vsel %vm1558_vm8, 1.0, %v20625_v41  ;;  %v958_v4 = vmul.u32 58254, %v953_v32  ;;  %v7846_v26 = vpop.f32.mrf.mxu1 }
 0x562   : > { %20689 = vst [vmem:[#allocation8_spill] sm:$0xff] %v17882_v45  ;;  %v961_v9 = vshll.u32 %v17870_v47, 16  ;;  %v942_v19 = vadd.s32 %v941_v30, %v931_v7  ;;  %v7453_v17 = vsel %vm7416_vm6, %v7450_v21, %v7452_v22  ;;  %v7716_v10 = vsel %vm7416_vm6, %v7713_v51, %v7715_v27 }
 0x563   : > { %vm963_vm13 = vc.u32 %v955_v50, %v959_v11  ;;  %v965_v8 = vadd.s32 %v959_v11, %v955_v50  ;;  %v17892_v38 = vadd.s32 19, %v374_v37  ;;  %v375_v32 = vadd.s32 160, %v16992_v3 }
 0x564   : > { %v964_v60 = vsel %vm963_vm13, 1, %v20613_v5  ;;  %v17897_v7 = vmul.f32 %v17882_v45, %v17857_v31  ;;  %v17900_v54 = vsel %vm1559_vm12, 1.0, %v20625_v41  ;;  %v943_v13 = vadd.s32 %v942_v19, %v933_v63 }
 0x565   : > { %20690 = vst [vmem:[#allocation13_spill] sm:$0xff] %v17900_v54  ;;  %v960_v21 = vshrl.u32 %v956_v15, 16  ;;  %v966_v22 = vadd.s32 %v964_v60, %v958_v4  ;;  %vm967_vm14 = vc.u32 %v965_v8, %v961_v9  ;;  %v981_v36 = vand.u32 65535, %v17892_v38 }
 0x566   : > { %v982_v51 = vshrl.u32 %v17892_v38, 16  ;;  %v944_v27 = vshrl.u32 %v943_v13, 4  ;;  %v962_v50 = vshrl.u32 %v17870_v47, 16  ;;  %v968_v52 = vsel %vm967_vm14, 1, %v20613_v5  ;;  %v17908_v55 = vpop.f32.mrf.mxu3 }
 0x567   : > { %v17906_v37 = vadd.s32 19, %v375_v32  ;;  %v970_v30 = vadd.s32 %v968_v52, %v966_v22  ;;  %v984_v11 = vmul.u32 14564, %v981_v36  ;;  %v985_v45 = vmul.u32 58254, %v981_v36 }
 0x568   : > { %v986_v63 = vmul.u32 14564, %v982_v51  ;;  %v8024_v15 = vmul.f32 %v17897_v7, %v17857_v31  ;;  %v17914_v4 = vmul.f32 %v17900_v54, %v17863_v1  ;;  %v945_v9 = vmul.u32 18, %v944_v27  ;;  %v7586_v47 = vpop.f32.mrf.mxu0  ;;  %v14598_v27 = vld [vmem:[%s20443_s6 + $0x68] sm:$0xff] }
 0x569   : > { %v987_v19 = vmul.u32 58254, %v982_v51  ;;  %v971_v60 = vadd.s32 %v970_v30, %v960_v21  ;;  %v988_v8 = vshll.u32 %v985_v45, 16  ;;  %v1010_v13 = vand.u32 65535, %v17906_v37  ;;  %v7849_v28 = vpop.f32.mrf.mxu1  ;;  %9088 = vmatpush.bf16.msra.mxu2 %v14598_v27 }
 0x56a   : > { %v990_v32 = vshll.u32 %v986_v63, 16  ;;  %v7648_v22 = vadd.f32 %v7583_v25, %v17839_v59  ;;  %v946_v36 = vsub.s32 %v17831_v6, %v945_v9  ;;  %v7649_v52 = vadd.f32 %v7586_v47, %v17811_v61 }
 0x56b   : > { %v1011_v46 = vshrl.u32 %v17906_v37, 16  ;;  %v972_v51 = vadd.s32 %v971_v60, %v962_v50  ;;  %v989_v54 = vshrl.u32 %v985_v45, 16  ;;  %vm992_vm15 = vc.u32 %v984_v11, %v988_v8 }
 0x56c   : > { %v994_v21 = vadd.s32 %v988_v8, %v984_v11  ;;  %vm1488_vm7 = vcmp.ge.s32.totalorder %v946_v36, 1  ;;  %vm1524_vm8 = vcmp.le.s32.totalorder %v946_v36, 16  ;;  %v17924_v30 = vadd.f32 %v7849_v28, %v7649_v52  ;;  %13628 = vmatmul.msk.bf16.gmra.mxu0 %vm1853_vm1, %v7453_v17  ;;  %13670 = vmatmul.msk.bf16.gmra.mxu1 %vm1853_vm1, %v7716_v10 }
 0x56d   : > { %v993_v6 = vsel %vm992_vm15, 1, %v20613_v5  ;;  %vm17928_vm9 = vmand %vm1488_vm7, %vm1524_vm8  ;;  %v973_v59 = vshrl.u32 %v972_v51, 4  ;;  %v1014_v45 = vmul.u32 58254, %v1010_v13  ;;  %v17933_v50 = vadd.f32 %v7846_v26, %v7648_v22 }
 0x56e   : > { %v995_v25 = vadd.s32 %v993_v6, %v987_v19  ;;  %vm996_vm10 = vc.u32 %v994_v21, %v990_v32  ;;  %v1013_v11 = vmul.u32 14564, %v1010_v13  ;;  %v1015_v9 = vmul.u32 14564, %v1011_v46  ;;  %v7332_v47 = vpop.f32.mrf.mxu3  ;;  %v20694_v19 = vld [vmem:[#allocation14_spill] sm:$0xff] }
 0x56f   : > { %v997_v28 = vsel %vm996_vm10, 1, %v20613_v5  ;;  %v974_v17 = vmul.u32 18, %v973_v59  ;;  %v991_v60 = vshrl.u32 %v986_v63, 16  ;;  %v1017_v36 = vshll.u32 %v1014_v45, 16 }
 0x570   : > { %v999_v8 = vadd.s32 %v997_v28, %v995_v25  ;;  %v7979_v52 = vadd.f32 %v17835_v18, %v17847_v56  ;;  %v17941_v10 = vsel %vm17928_vm9, 1.0, %v20625_v41  ;;  %v17944_v26 = vadd.f32 %v7332_v47, %v20694_v19  ;;  %v7588_v63 = vpop.f32.mrf.mxu0 }
 0x571   : > { %20693 = vst [vmem:[#allocation35_spill] sm:$0xff] %v17941_v10  ;;  %v1019_v32 = vshll.u32 %v1015_v9, 16  ;;  %v8058_v13 = vadd.f32 %v17843_v14, %v17879_v0  ;;  %v975_v22 = vsub.s32 %v17833_v40, %v974_v17  ;;  %v1016_v51 = vmul.u32 58254, %v1011_v46  ;;  %v17950_v18 = vpop.f32.mrf.mxu1  ;;  %v6963_v40 = vpop.f32.mrf.mxu2 }
 0x572   : > { %v1000_v27 = vadd.s32 %v999_v8, %v989_v54  ;;  %v7980_v21 = vadd.f32 %v7979_v52, %v17897_v7  ;;  %vm1021_vm1 = vc.u32 %v1013_v11, %v1017_v36  ;;  %v1023_v56 = vadd.s32 %v1017_v36, %v1013_v11 }
 0x573   : > { %v376_v6 = vadd.s32 168, %v16992_v3  ;;  %v8059_v61 = vadd.f32 %v8058_v13, %v8024_v15  ;;  %v8025_v59 = vmul.f32 %v17914_v4, %v17863_v1  ;;  %v7947_v14 = vmul.f32 %v17941_v10, %v17933_v50 }
 0x574   : > { %v1001_v0 = vadd.s32 %v1000_v27, %v991_v60  ;;  %v1018_v25 = vshrl.u32 %v1014_v45, 16  ;;  %v1022_v46 = vsel %vm1021_vm1, 1, %v20613_v5  ;;  %vm1025_vm11 = vc.u32 %v1023_v56, %v1019_v32 }
 0x575   : > { %v17958_v7 = vadd.s32 19, %v376_v6  ;;  %vm1489_vm12 = vcmp.ge.s32.totalorder %v975_v22, 1  ;;  %v1024_v28 = vadd.s32 %v1022_v46, %v1016_v51  ;;  %v1026_v11 = vsel %vm1025_vm11, 1, %v20613_v5 }
 0x576   : > { %v1002_v54 = vshrl.u32 %v1001_v0, 4  ;;  %vm1525_vm13 = vcmp.le.s32.totalorder %v975_v22, 16  ;;  %v377_v47 = vadd.s32 176, %v16992_v3  ;;  %v17965_v60 = vadd.f32 %v6963_v40, %v17150_v35  ;;  %v17967_v8 = vpop.f32.mrf.mxu3 }
 0x577   : > { %v1039_v15 = vand.u32 65535, %v17958_v7  ;;  %v1040_v17 = vshrl.u32 %v17958_v7, 16  ;;  %v1020_v36 = vshrl.u32 %v1015_v9, 16  ;;  %v1028_v52 = vadd.s32 %v1026_v11, %v1024_v28  ;;  %vm1561_vm14 = vmand %vm1489_vm12, %vm1525_vm13 }
 0x578   : > { %v1003_v45 = vmul.u32 18, %v1002_v54  ;;  %v7386_v19 = vadd.f32 %v17850_v33, %v17055_v23  ;;  %v7981_v32 = vadd.f32 %v7980_v21, %v17914_v4  ;;  %v8060_v13 = vadd.f32 %v8059_v61, %v8025_v59  ;;  %v7591_v56 = vpop.f32.mrf.mxu0 }
 0x579   : > { %v1042_v27 = vmul.u32 14564, %v1039_v15  ;;  %v1029_v6 = vadd.s32 %v1028_v52, %v1018_v25  ;;  %v1043_v35 = vmul.u32 58254, %v1039_v15  ;;  %v1044_v0 = vmul.u32 14564, %v1040_v17  ;;  %v7854_v33 = vpop.f32.mrf.mxu1 }
 0x57a   : > { %v1004_v51 = vsub.s32 %v17892_v38, %v1003_v45  ;;  %v8026_v40 = vmul.f32 %v7947_v14, %v17933_v50  ;;  %v17977_v9 = vadd.f32 %v17908_v55, %v17077_v12  ;;  %v7651_v23 = vadd.f32 %v7591_v56, %v17875_v42 }
 0x57b   : > { %v17980_v4 = vadd.s32 19, %v377_v47  ;;  %v7650_v21 = vadd.f32 %v7588_v63, %v7386_v19  ;;  %v1030_v22 = vadd.s32 %v1029_v6, %v1020_v36  ;;  %v1045_v61 = vmul.u32 58254, %v1040_v17  ;;  %v20696_v36 = vld [vmem:[#allocation15_spill] sm:$0xff] }
 0x57c   : > { %v1046_v59 = vshll.u32 %v1043_v35, 16  ;;  %v17983_v38 = vsel %vm1561_vm14, 1.0, %v20625_v41  ;;  %v17985_v25 = vadd.f32 %v7854_v33, %v7651_v23  ;;  %v1048_v46 = vshll.u32 %v1044_v0, 16 }
 0x57d   : > { %20695 = vst [vmem:[#allocation14_spill] sm:$0xff] %v17983_v38  ;;  %v378_v54 = vadd.s32 184, %v16992_v3  ;;  %vm1490_vm15 = vcmp.ge.s32.totalorder %v1004_v51, 1  ;;  %v1031_v12 = vshrl.u32 %v1030_v22, 4  ;;  %vm1526_vm8 = vcmp.le.s32.totalorder %v1004_v51, 16 }
 0x57e   : > { %vm1050_vm7 = vc.u32 %v1042_v27, %v1046_v59  ;;  %v1052_v55 = vadd.s32 %v1046_v59, %v1042_v27  ;;  %v1068_v63 = vand.u32 65535, %v17980_v4  ;;  %v1069_v28 = vshrl.u32 %v17980_v4, 16  ;;  %v7337_v15 = vpop.f32.mrf.mxu3  ;;  %vm1562_vm10 = vmand %vm1490_vm15, %vm1526_vm8 }
 0x57f   : > { %v1051_v42 = vsel %vm1050_vm7, 1, %v20613_v5  ;;  %v1032_v11 = vmul.u32 18, %v1031_v12  ;;  %v1047_v17 = vshrl.u32 %v1043_v35, 16  ;;  %v7982_v45 = vadd.f32 %v7981_v32, %v7947_v14 }
 0x580   : > { %v1053_v47 = vadd.s32 %v1051_v42, %v1045_v61  ;;  %vm1054_vm9 = vc.u32 %v1052_v55, %v1048_v46  ;;  %v17992_v52 = vadd.f32 %v7337_v15, %v20696_v36  ;;  %v1049_v19 = vshrl.u32 %v1044_v0, 16  ;;  %v7593_v6 = vpop.f32.mrf.mxu0 }
 0x581   : > { %v1055_v56 = vsel %vm1054_vm9, 1, %v20613_v5  ;;  %v1033_v27 = vsub.s32 %v17906_v37, %v1032_v11  ;;  %v1071_v33 = vmul.u32 14564, %v1068_v63  ;;  %v1072_v22 = vmul.u32 58254, %v1068_v63  ;;  %v17999_v61 = vpop.f32.mrf.mxu1 }
 0x582   : > { %v1057_v23 = vadd.s32 %v1055_v56, %v1053_v47  ;;  %v8061_v59 = vadd.f32 %v8060_v13, %v8026_v40  ;;  %v7948_v35 = vmul.f32 %v17983_v38, %v17924_v30  ;;  %v1073_v14 = vmul.u32 14564, %v1069_v28 }
 0x583   : > { %v18001_v32 = vadd.s32 19, %v378_v54  ;;  %v18004_v0 = vadd.f32 %v17950_v18, %v7650_v21  ;;  %v1074_v46 = vmul.u32 58254, %v1069_v28  ;;  %v1075_v12 = vshll.u32 %v1072_v22, 16 }
 0x584   : > { %v1058_v51 = vadd.s32 %v1057_v23, %v1047_v17  ;;  %v18007_v37 = vsel %vm1562_vm10, 1.0, %v20625_v41  ;;  %vm1491_vm1 = vcmp.ge.s32.totalorder %v1033_v27, 1  ;;  %v1077_v55 = vshll.u32 %v1073_v14, 16 }
 0x585   : > { %20697 = vst [vmem:[#allocation15_spill] sm:$0xff] %v18007_v37  ;;  %v379_v13 = vadd.s32 192, %v16992_v3  ;;  %vm1527_vm11 = vcmp.le.s32.totalorder %v1033_v27, 16  ;;  %vm1079_vm12 = vc.u32 %v1071_v33, %v1075_v12  ;;  %v1081_v42 = vadd.s32 %v1075_v12, %v1071_v33 }
 0x586   : > { %v1059_v40 = vadd.s32 %v1058_v51, %v1049_v19  ;;  %v8027_v54 = vmul.f32 %v7948_v35, %v17924_v30  ;;  %v1080_v63 = vsel %vm1079_vm12, 1, %v20613_v5  ;;  %v1097_v18 = vand.u32 65535, %v18001_v32  ;;  %v18014_v11 = vpop.f32.mrf.mxu3  ;;  %vm1563_vm14 = vmand %vm1491_vm1, %vm1527_vm11 }
 0x587   : > { %v1098_v21 = vshrl.u32 %v18001_v32, 16  ;;  %v1076_v15 = vshrl.u32 %v1072_v22, 16  ;;  %v1082_v17 = vadd.s32 %v1080_v63, %v1074_v46  ;;  %vm1083_vm13 = vc.u32 %v1081_v42, %v1077_v55 }
 0x588   : > { %v1060_v28 = vshrl.u32 %v1059_v40, 4  ;;  %v7949_v47 = vmul.f32 %v18007_v37, %v18004_v0  ;;  %v1078_v36 = vshrl.u32 %v1073_v14, 16  ;;  %v1084_v19 = vsel %vm1083_vm13, 1, %v20613_v5  ;;  %v7596_v33 = vpop.f32.mrf.mxu0 }
 0x589   : > { %v18020_v56 = vadd.s32 19, %v379_v13  ;;  %v1086_v51 = vadd.s32 %v1084_v19, %v1082_v17  ;;  %v1100_v12 = vmul.u32 14564, %v1097_v18  ;;  %v1101_v40 = vmul.u32 58254, %v1097_v18  ;;  %v7859_v46 = vpop.f32.mrf.mxu1 }
 0x58a   : > { %v1061_v23 = vmul.u32 18, %v1060_v28  ;;  %v7983_v38 = vadd.f32 %v7982_v45, %v7948_v35  ;;  %v8062_v10 = vadd.f32 %v8061_v59, %v8027_v54  ;;  %v7653_v22 = vadd.f32 %v7596_v33, %v17944_v26  ;;  %v14597_v45 = vld [vmem:[%s20443_s6 + $0x60] sm:$0xff] }
 0x58b   : > { %v1102_v55 = vmul.u32 14564, %v1098_v21  ;;  %v18024_v42 = vsel %vm1563_vm14, 1.0, %v20625_v41  ;;  %v1087_v27 = vadd.s32 %v1086_v51, %v1076_v15  ;;  %v1103_v14 = vmul.u32 58254, %v1098_v21  ;;  %9089 = vmatpush.bf16.msra.mxu2 %v14597_v45  ;;  %v6966_v15 = vpop.f32.mrf.mxu2 }
 0x58c   : > { %20698 = vst [vmem:[#allocation36_spill] sm:$0xff] %v18024_v42  ;;  %v1104_v63 = vshll.u32 %v1101_v40, 16  ;;  %v1062_v13 = vsub.s32 %v17958_v7, %v1061_v23  ;;  %v18027_v37 = vadd.f32 %v7859_v46, %v7653_v22  ;;  %v1126_v17 = vand.u32 65535, %v18020_v56 }
 0x58d   : > { %v1106_v28 = vshll.u32 %v1102_v55, 16  ;;  %v8028_v26 = vmul.f32 %v7949_v47, %v18004_v0  ;;  %v7652_v59 = vadd.f32 %v7593_v6, %v17977_v9  ;;  %v1088_v35 = vadd.s32 %v1087_v27, %v1078_v36 }
 0x58e   : > { %vm1108_vm15 = vc.u32 %v1100_v12, %v1104_v63  ;;  %v7950_v54 = vmul.f32 %v18024_v42, %v17985_v25  ;;  %v1110_v18 = vadd.s32 %v1104_v63, %v1100_v12  ;;  %v1127_v21 = vshrl.u32 %v18020_v56, 16  ;;  %v7342_v23 = vpop.f32.mrf.mxu3 }
 0x58f   : > { %v1109_v7 = vsel %vm1108_vm15, 1, %v20613_v5  ;;  %v1089_v19 = vshrl.u32 %v1088_v35, 4  ;;  %v1105_v33 = vshrl.u32 %v1101_v40, 16  ;;  %v1130_v22 = vmul.u32 58254, %v1126_v17 }
 0x590   : > { %v1111_v51 = vadd.s32 %v1109_v7, %v1103_v14  ;;  %vm1492_vm7 = vcmp.ge.s32.totalorder %v1062_v13, 1  ;;  %vm1112_vm8 = vc.u32 %v1110_v18, %v1106_v28  ;;  %v1129_v9 = vmul.u32 14564, %v1126_v17  ;;  %v7598_v46 = vpop.f32.mrf.mxu0 }
 0x591   : > { %v1131_v6 = vmul.u32 14564, %v1127_v21  ;;  %vm1528_vm9 = vcmp.le.s32.totalorder %v1062_v13, 16  ;;  %v1090_v36 = vmul.u32 18, %v1089_v19  ;;  %v1113_v27 = vsel %vm1112_vm8, 1, %v20613_v5  ;;  %v18043_v35 = vpop.f32.mrf.mxu1 }
 0x592   : > { %v1133_v42 = vshll.u32 %v1130_v22, 16  ;;  %v18041_v12 = vadd.f32 %v6966_v15, %v17191_v62  ;;  %v1107_v63 = vshrl.u32 %v1102_v55, 16  ;;  %v1115_v45 = vadd.s32 %v1113_v27, %v1111_v51  ;;  %vm1564_vm10 = vmand %vm1492_vm7, %vm1528_vm9 }
 0x593   : > { %v1132_v40 = vmul.u32 58254, %v1127_v21  ;;  %v7984_v14 = vadd.f32 %v7983_v38, %v7949_v47  ;;  %v8063_v7 = vadd.f32 %v8062_v10, %v8028_v26  ;;  %v7390_v28 = vadd.f32 %v17967_v8, %v17084_v49 }
 0x594   : > { %v1135_v17 = vshll.u32 %v1131_v6, 16  ;;  %v18049_v18 = vadd.f32 %v17999_v61, %v7652_v59  ;;  %v1091_v19 = vsub.s32 %v17980_v4, %v1090_v36  ;;  %v1116_v62 = vadd.s32 %v1115_v45, %v1105_v33 }
 0x595   : > { %vm1137_vm1 = vc.u32 %v1129_v9, %v1133_v42  ;;  %v7985_v55 = vadd.f32 %v7984_v14, %v7950_v54  ;;  %v8029_v15 = vmul.f32 %v7950_v54, %v17985_v25  ;;  %v1139_v38 = vadd.s32 %v1133_v42, %v1129_v9 }
 0x596   : > { %v1138_v21 = vsel %vm1137_vm1, 1, %v20613_v5  ;;  %v1117_v10 = vadd.s32 %v1116_v62, %v1107_v63  ;;  %v380_v49 = vadd.s32 200, %v16992_v3  ;;  %v381_v8 = vadd.s32 208, %v16992_v3  ;;  %v18063_v61 = vpop.f32.mrf.mxu3 }
 0x597   : > { %v1140_v47 = vadd.s32 %v1138_v21, %v1132_v40  ;;  %v18057_v13 = vsel %vm1564_vm10, 1.0, %v20625_v41  ;;  %v18061_v4 = vadd.f32 %v18014_v11, %v17088_v20  ;;  %v1134_v26 = vshrl.u32 %v1130_v22, 16 }
 0x598   : > { %20699 = vst [vmem:[#allocation37_spill] sm:$0xff] %v18057_v13  ;;  %vm1141_vm11 = vc.u32 %v1139_v38, %v1135_v17  ;;  %vm1493_vm12 = vcmp.ge.s32.totalorder %v1091_v19, 1  ;;  %vm1529_vm13 = vcmp.le.s32.totalorder %v1091_v19, 16  ;;  %v1118_v42 = vshrl.u32 %v1117_v10, 4  ;;  %v7601_v54 = vpop.f32.mrf.mxu0 }
 0x599   : > { %v1142_v59 = vsel %vm1141_vm11, 1, %v20613_v5  ;;  %v1136_v33 = vshrl.u32 %v1131_v6, 16  ;;  %v18066_v9 = vadd.s32 19, %v380_v49  ;;  %v18068_v36 = vadd.s32 19, %v381_v8  ;;  %v7864_v63 = vpop.f32.mrf.mxu1  ;;  %vm1565_vm14 = vmand %vm1493_vm12, %vm1529_vm13 }
 0x59a   : > { %v1144_v51 = vadd.s32 %v1142_v59, %v1140_v47  ;;  %v8064_v27 = vadd.f32 %v8063_v7, %v8029_v15  ;;  %v7951_v20 = vmul.f32 %v18057_v13, %v18049_v18  ;;  %v1119_v11 = vmul.u32 18, %v1118_v42 }
 0x59b   : > { %v7655_v22 = vadd.f32 %v7601_v54, %v17992_v52  ;;  %v18074_v45 = vadd.f32 %v7342_v23, %v17111_v34  ;;  %v1155_v6 = vand.u32 65535, %v18066_v9  ;;  %v1156_v14 = vshrl.u32 %v18066_v9, 16 }
 0x59c   : > { %v1145_v40 = vadd.s32 %v1144_v51, %v1134_v26  ;;  %v7654_v17 = vadd.f32 %v7598_v46, %v7390_v28  ;;  %v1120_v19 = vsub.s32 %v18001_v32, %v1119_v11  ;;  %v1184_v62 = vand.u32 65535, %v18068_v36 }
 0x59d   : > { %v18079_v7 = vadd.f32 %v7864_v63, %v7655_v22  ;;  %v1158_v21 = vmul.u32 14564, %v1155_v6  ;;  %v1159_v52 = vmul.u32 58254, %v1155_v6  ;;  %v1160_v38 = vmul.u32 14564, %v1156_v14 }
 0x59e   : > { %v1146_v15 = vadd.s32 %v1145_v40, %v1136_v33  ;;  %v18083_v10 = vsel %vm1565_vm14, 1.0, %v20625_v41  ;;  %vm1494_vm15 = vcmp.ge.s32.totalorder %v1120_v19, 1  ;;  %vm1530_vm7 = vcmp.le.s32.totalorder %v1120_v19, 16  ;;  %v18090_v54 = vpop.f32.mrf.mxu3 }
 0x59f   : > { %20700 = vst [vmem:[#allocation38_spill] sm:$0xff] %v18083_v10  ;;  %v1185_v34 = vshrl.u32 %v18068_v36, 16  ;;  %v1161_v47 = vmul.u32 58254, %v1156_v14  ;;  %v1162_v46 = vshll.u32 %v1159_v52, 16  ;;  %v382_v32 = vadd.s32 216, %v16992_v3  ;;  %vm1566_vm8 = vmand %vm1494_vm15, %vm1530_vm7 }
 0x5a0   : > { %v1147_v23 = vshrl.u32 %v1146_v15, 4  ;;  %v7986_v28 = vadd.f32 %v7985_v55, %v7951_v20  ;;  %v8030_v49 = vmul.f32 %v7951_v20, %v18049_v18  ;;  %v1164_v8 = vshll.u32 %v1160_v38, 16  ;;  %v7603_v33 = vpop.f32.mrf.mxu0 }
 0x5a1   : > { %v1188_v26 = vmul.u32 58254, %v1184_v62  ;;  %v7952_v42 = vmul.f32 %v18083_v10, %v18027_v37  ;;  %vm1166_vm9 = vc.u32 %v1158_v21, %v1162_v46  ;;  %v1168_v51 = vadd.s32 %v1162_v46, %v1158_v21  ;;  %v18096_v55 = vpop.f32.mrf.mxu1 }
 0x5a2   : > { %v1148_v59 = vmul.u32 18, %v1147_v23  ;;  %v18093_v11 = vadd.f32 %v18043_v35, %v7654_v17  ;;  %v1167_v22 = vsel %vm1166_vm9, 1, %v20613_v5  ;;  %v1187_v20 = vmul.u32 14564, %v1184_v62 }
 0x5a3   : > { %v1189_v63 = vmul.u32 14564, %v1185_v34  ;;  %v18099_v40 = vsel %vm1566_vm8, 1.0, %v20625_v41  ;;  %v1163_v6 = vshrl.u32 %v1159_v52, 16  ;;  %v1169_v14 = vadd.s32 %v1167_v22, %v1161_v47 }
 0x5a4   : > { %20701 = vst [vmem:[#allocation39_spill] sm:$0xff] %v18099_v40  ;;  %v18101_v19 = vadd.s32 19, %v382_v32  ;;  %v1149_v15 = vsub.s32 %v18020_v56, %v1148_v59  ;;  %vm1170_vm10 = vc.u32 %v1168_v51, %v1164_v8  ;;  %v1190_v21 = vmul.u32 58254, %v1185_v34 }
 0x5a5   : > { %v1191_v23 = vshll.u32 %v1188_v26, 16  ;;  %v8065_v35 = vadd.f32 %v8064_v27, %v8030_v49  ;;  %v8031_v17 = vmul.f32 %v7952_v42, %v18027_v37  ;;  %v1171_v46 = vsel %vm1170_vm10, 1, %v20613_v5 }
 0x5a6   : > { %v383_v62 = vadd.s32 224, %v16992_v3  ;;  %v1165_v10 = vshrl.u32 %v1160_v38, 16  ;;  %v1173_v13 = vadd.s32 %v1171_v46, %v1169_v14  ;;  %v1193_v43 = vshll.u32 %v1189_v63, 16  ;;  %v7349_v46 = vpop.f32.mrf.mxu3 }
 0x5a7   : > { %vm1195_vm1 = vc.u32 %v1187_v20, %v1191_v23  ;;  %v7953_v52 = vmul.f32 %v18099_v40, %v18093_v11  ;;  %v1197_v56 = vadd.s32 %v1191_v23, %v1187_v20  ;;  %v1213_v34 = vand.u32 65535, %v18101_v19 }
 0x5a8   : > { %v1196_v47 = vsel %vm1195_vm1, 1, %v20613_v5  ;;  %vm1495_vm11 = vcmp.ge.s32.totalorder %v1149_v15, 1  ;;  %vm1531_vm12 = vcmp.le.s32.totalorder %v1149_v15, 16  ;;  %v1174_v27 = vadd.s32 %v1173_v13, %v1163_v6  ;;  %v18111_v49 = vpop.f32.mrf.mxu0 }
 0x5a9   : > { %v1198_v32 = vadd.s32 %v1196_v47, %v1190_v21  ;;  %vm1199_vm13 = vc.u32 %v1197_v56, %v1193_v43  ;;  %v1214_v38 = vshrl.u32 %v18101_v19, 16  ;;  %v1216_v8 = vmul.u32 14564, %v1213_v34  ;;  %v18118_v23 = vpop.f32.mrf.mxu1  ;;  %vm1567_vm14 = vmand %vm1495_vm11, %vm1531_vm12 }
 0x5aa   : > { %v1217_v59 = vmul.u32 58254, %v1213_v34  ;;  %v7987_v51 = vadd.f32 %v7986_v28, %v7952_v42  ;;  %v18116_v22 = vadd.f32 %v18063_v61, %v17115_v48  ;;  %v1175_v14 = vadd.s32 %v1174_v27, %v1165_v10 }
 0x5ab   : > { %v1192_v20 = vshrl.u32 %v1188_v26, 16  ;;  %v1200_v13 = vsel %vm1199_vm13, 1, %v20613_v5  ;;  %v1218_v6 = vmul.u32 14564, %v1214_v38  ;;  %v1219_v21 = vmul.u32 58254, %v1214_v38 }
 0x5ac   : > { %v1220_v47 = vshll.u32 %v1217_v59, 16  ;;  %v8066_v43 = vadd.f32 %v8065_v35, %v8031_v17  ;;  %v1176_v56 = vshrl.u32 %v1175_v14, 4  ;;  %v1194_v28 = vshrl.u32 %v1189_v63, 16 }
 0x5ad   : > { %v1202_v42 = vadd.s32 %v1200_v13, %v1198_v32  ;;  %v8032_v48 = vmul.f32 %v7953_v52, %v18093_v11  ;;  %v7656_v61 = vadd.f32 %v7603_v33, %v18061_v4  ;;  %v1222_v10 = vshll.u32 %v1218_v6, 16 }
 0x5ae   : > { %vm1224_vm15 = vc.u32 %v1216_v8, %v1220_v47  ;;  %v1177_v26 = vmul.u32 18, %v1176_v56  ;;  %v1226_v40 = vadd.s32 %v1220_v47, %v1216_v8  ;;  %v18127_v38 = vsel %vm1567_vm14, 1.0, %v20625_v41 }
 0x5af   : > { %v1203_v34 = vadd.s32 %v1202_v42, %v1192_v20  ;;  %v1225_v27 = vsel %vm1224_vm15, 1, %v20613_v5  ;;  %20702 = vst [vmem:[#allocation40_spill] sm:$0xff] %v18127_v38  ;;  %v18129_v15 = vadd.s32 19, %v383_v62  ;;  %v384_v63 = vadd.s32 232, %v16992_v3  ;;  %v20703_v42 = vld [vmem:[#allocation9_spill] sm:$0xff] }
 0x5b0   : > { %v1227_v35 = vadd.s32 %v1225_v27, %v1219_v21  ;;  %v1178_v17 = vsub.s32 %v18066_v9, %v1177_v26  ;;  %v1221_v14 = vshrl.u32 %v1217_v59, 16  ;;  %vm1228_vm7 = vc.u32 %v1226_v40, %v1222_v10  ;;  %v7608_v4 = vpop.f32.mrf.mxu0  ;;  %v7352_v27 = vpop.f32.mrf.mxu3 }
 0x5b1   : > { %v1204_v32 = vadd.s32 %v1203_v34, %v1194_v28  ;;  %v1223_v33 = vshrl.u32 %v1218_v6, 16  ;;  %v1229_v20 = vsel %vm1228_vm7, 1, %v20613_v5  ;;  %v1242_v13 = vand.u32 65535, %v18129_v15  ;;  %v7871_v62 = vpop.f32.mrf.mxu1 }
 0x5b2   : > { %v1243_v8 = vshrl.u32 %v18129_v15, 16  ;;  %vm1496_vm8 = vcmp.ge.s32.totalorder %v1178_v17, 1  ;;  %vm1532_vm9 = vcmp.le.s32.totalorder %v1178_v17, 16  ;;  %v18136_v47 = vadd.s32 19, %v384_v63 }
 0x5b3   : > { %v1205_v21 = vshrl.u32 %v1204_v32, 4  ;;  %vm1568_vm10 = vmand %vm1496_vm8, %vm1532_vm9  ;;  %v1231_v56 = vadd.s32 %v1229_v20, %v1227_v35  ;;  %v1245_v9 = vmul.u32 14564, %v1242_v13  ;;  %v1246_v28 = vmul.u32 58254, %v1242_v13 }
 0x5b4   : > { %v18138_v59 = vmul.u32 14564, %v1243_v8  ;;  %v7988_v40 = vadd.f32 %v7987_v51, %v7953_v52  ;;  %v7954_v6 = vmul.f32 %v18127_v38, %v18079_v7  ;;  %v18144_v10 = vadd.f32 %v18090_v54, %v20703_v42  ;;  %v20705_v52 = vld [vmem:[#allocation16_spill] sm:$0xff] }
 0x5b5   : > { %v1206_v26 = vmul.u32 18, %v1205_v21  ;;  %v18147_v34 = vadd.f32 %v18096_v55, %v7656_v61  ;;  %v1232_v63 = vadd.s32 %v1231_v56, %v1221_v14  ;;  %v1248_v17 = vmul.u32 58254, %v1243_v8  ;;  %v14596_v61 = vld [vmem:[%s20443_s6 + $0x58] sm:$0xff] }
 0x5b6   : > { %v1249_v35 = vshll.u32 %v1246_v28, 16  ;;  %v8067_v32 = vadd.f32 %v8066_v43, %v8032_v48  ;;  %v18150_v20 = vsel %vm1568_vm10, 1.0, %v20625_v41  ;;  %v18153_v51 = vadd.f32 %v7349_v46, %v20705_v52  ;;  %9090 = vmatpush.bf16.msra.mxu2 %v14596_v61 }
 0x5b7   : > { %20704 = vst [vmem:[#allocation9_spill] sm:$0xff] %v18150_v20  ;;  %v1207_v13 = vsub.s32 %v18068_v36, %v1206_v26  ;;  %v1233_v38 = vadd.s32 %v1232_v63, %v1223_v33  ;;  %v1251_v54 = vshll.u32 %v18138_v59, 16  ;;  %v1271_v55 = vand.u32 65535, %v18136_v47 }
 0x5b8   : > { %vm1253_vm1 = vc.u32 %v1245_v9, %v1249_v35  ;;  %v18161_v14 = vadd.f32 %v7988_v40, %v7954_v6  ;;  %v8033_v43 = vmul.f32 %v7954_v6, %v18079_v7  ;;  %v7657_v46 = vadd.f32 %v18111_v49, %v18074_v45  ;;  %v7611_v8 = vpop.f32.mrf.mxu0 }
 0x5b9   : > { %v1254_v48 = vsel %vm1253_vm1, 1, %v20613_v5  ;;  %v7658_v36 = vadd.f32 %v7608_v4, %v18116_v22  ;;  %v1234_v33 = vshrl.u32 %v1233_v38, 4  ;;  %v1255_v21 = vadd.s32 %v1249_v35, %v1245_v9  ;;  %v7874_v63 = vpop.f32.mrf.mxu1 }
 0x5ba   : > { %v1256_v56 = vadd.s32 %v1254_v48, %v1248_v17  ;;  %v7955_v42 = vmul.f32 %v18150_v20, %v18147_v34  ;;  %vm1497_vm11 = vcmp.ge.s32.totalorder %v1207_v13, 1  ;;  %vm1533_vm12 = vcmp.le.s32.totalorder %v1207_v13, 16 }
 0x5bb   : > { %v1272_v40 = vshrl.u32 %v18136_v47, 16  ;;  %v1235_v6 = vmul.u32 18, %v1234_v33  ;;  %v1250_v26 = vshrl.u32 %v1246_v28, 16  ;;  %vm1257_vm13 = vc.u32 %v1255_v21, %v1251_v54  ;;  %vm1569_vm14 = vmand %vm1497_vm11, %vm1533_vm12  ;;  %v20707_v33 = vld [vmem:[#allocation17_spill] sm:$0xff] }
 0x5bc   : > { %v1275_v45 = vmul.u32 58254, %v1271_v55  ;;  %v1258_v49 = vsel %vm1257_vm13, 1, %v20613_v5  ;;  %v1274_v22 = vmul.u32 14564, %v1271_v55  ;;  %v385_v4 = vadd.s32 240, %v16992_v3 }
 0x5bd   : > { %v1276_v38 = vmul.u32 14564, %v1272_v40  ;;  %v8068_v9 = vadd.f32 %v8067_v32, %v8033_v43  ;;  %v1236_v17 = vsub.s32 %v18101_v19, %v1235_v6  ;;  %v1252_v35 = vshrl.u32 %v18138_v59, 16  ;;  %v7354_v32 = vpop.f32.mrf.mxu3 }
 0x5be   : > { %v1260_v52 = vadd.s32 %v1258_v49, %v1256_v56  ;;  %v18176_v13 = vadd.f32 %v18118_v23, %v7657_v46  ;;  %v1277_v28 = vmul.u32 58254, %v1272_v40  ;;  %v1278_v54 = vshll.u32 %v1275_v45, 16 }
 0x5bf   : > { %v1280_v61 = vshll.u32 %v1276_v38, 16  ;;  %v8034_v48 = vmul.f32 %v7955_v42, %v18147_v34  ;;  %v18180_v55 = vadd.f32 %v7352_v27, %v20707_v33  ;;  %v18182_v21 = vadd.f32 %v7871_v62, %v7658_v36 }
 0x5c0   : > { %20706 = vst [vmem:[#allocation16_spill] sm:$0xff] %v18176_v13  ;;  %v1261_v43 = vadd.s32 %v1260_v52, %v1250_v26  ;;  %v18185_v19 = vsel %vm1569_vm14, 1.0, %v20625_v41  ;;  %vm1282_vm15 = vc.u32 %v1274_v22, %v1278_v54  ;;  %v1284_v59 = vadd.s32 %v1278_v54, %v1274_v22  ;;  %v18189_v46 = vpop.f32.mrf.mxu0 }
 0x5c1   : > { %20708 = vst [vmem:[#allocation17_spill] sm:$0xff] %v18185_v19  ;;  %v18187_v56 = vadd.s32 19, %v385_v4  ;;  %vm1498_vm7 = vcmp.ge.s32.totalorder %v1236_v17, 1  ;;  %vm1534_vm8 = vcmp.le.s32.totalorder %v1236_v17, 16  ;;  %v1283_v40 = vsel %vm1282_vm15, 1, %v20613_v5 }
 0x5c2   : > { %v1262_v23 = vadd.s32 %v1261_v43, %v1252_v35  ;;  %v1279_v27 = vshrl.u32 %v1275_v45, 16  ;;  %v1285_v6 = vadd.s32 %v1283_v40, %v1277_v28  ;;  %vm1286_vm9 = vc.u32 %v1284_v59, %v1280_v61  ;;  %vm1570_vm10 = vmand %vm1498_vm7, %vm1534_vm8  ;;  %v20709_v43 = vld [vmem:[#allocation18_spill] sm:$0xff]  ;;  %v18203_v40 = vpop.f32.mrf.mxu1 }
 0x5c3   : > { %v386_v62 = vadd.s32 248, %v16992_v3  ;;  %v1287_v26 = vsel %vm1286_vm9, 1, %v20613_v5  ;;  %v1300_v49 = vand.u32 65535, %v18187_v56  ;;  %v1301_v22 = vshrl.u32 %v18187_v56, 16 }
 0x5c4   : > { %v1263_v36 = vshrl.u32 %v1262_v23, 4  ;;  %v7956_v4 = vmul.f32 %v18185_v19, %v18176_v13  ;;  %v7659_v17 = vadd.f32 %v7611_v8, %v18144_v10  ;;  %v1281_v35 = vshrl.u32 %v1276_v38, 16 }
 0x5c5   : > { %v1289_v52 = vadd.s32 %v1287_v26, %v1285_v6  ;;  %v1303_v28 = vmul.u32 14564, %v1300_v49  ;;  %v1304_v54 = vmul.u32 58254, %v1300_v49  ;;  %v1305_v61 = vmul.u32 14564, %v1301_v22 }
 0x5c6   : > { %v1264_v45 = vmul.u32 18, %v1263_v36  ;;  %v7990_v33 = vadd.f32 %v18161_v14, %v7955_v42  ;;  %v18201_v59 = vadd.f32 %v7354_v32, %v20709_v43  ;;  %v18205_v20 = vadd.s32 19, %v386_v62  ;;  %v7357_v32 = vpop.f32.mrf.mxu3 }
 0x5c7   : > { %v1290_v23 = vadd.s32 %v1289_v52, %v1279_v27  ;;  %v18208_v19 = vsel %vm1570_vm10, 1.0, %v20625_v41  ;;  %v1306_v10 = vmul.u32 58254, %v1301_v22  ;;  %v1307_v8 = vshll.u32 %v1304_v54, 16 }
 0x5c8   : > { %20710 = vst [vmem:[#allocation18_spill] sm:$0xff] %v18208_v19  ;;  %v1309_v38 = vshll.u32 %v1305_v61, 16  ;;  %v8069_v6 = vadd.f32 %v8068_v9, %v8034_v48  ;;  %v1265_v36 = vsub.s32 %v18129_v15, %v1264_v45  ;;  %v18211_v26 = vadd.f32 %v7874_v63, %v7659_v17 }
 0x5c9   : > { %v1291_v14 = vadd.s32 %v1290_v23, %v1281_v35  ;;  %v8035_v42 = vmul.f32 %v7956_v4, %v18176_v13  ;;  %v7616_v27 = vpop.f32.mrf.mxu0  ;;  %vm1311_vm1 = vc.u32 %v1303_v28, %v1307_v8  ;;  %v1313_v49 = vadd.s32 %v1307_v8, %v1303_v28 }
 0x5ca   : > { %v1329_v62 = vand.u32 65535, %v18205_v20  ;;  %v7957_v52 = vmul.f32 %v18208_v19, %v18182_v21  ;;  %v1312_v43 = vsel %vm1311_vm1, 1, %v20613_v5  ;;  %v1330_v9 = vshrl.u32 %v18205_v20, 16 }
 0x5cb   : > { %v1292_v22 = vshrl.u32 %v1291_v14, 4  ;;  %v1308_v15 = vshrl.u32 %v1304_v54, 16  ;;  %v1310_v63 = vshrl.u32 %v1305_v61, 16  ;;  %v1314_v48 = vadd.s32 %v1312_v43, %v1306_v10 }
 0x5cc   : > { %vm1315_vm11 = vc.u32 %v1313_v49, %v1309_v38  ;;  %vm1499_vm12 = vcmp.ge.s32.totalorder %v1265_v36, 1  ;;  %vm1535_vm13 = vcmp.le.s32.totalorder %v1265_v36, 16  ;;  %v1332_v28 = vmul.u32 14564, %v1329_v62 }
 0x5cd   : > { %v1293_v17 = vmul.u32 18, %v1292_v22  ;;  %v1316_v35 = vsel %vm1315_vm11, 1, %v20613_v5  ;;  %v1333_v23 = vmul.u32 58254, %v1329_v62  ;;  %v1334_v8 = vmul.u32 14564, %v1330_v9  ;;  %vm1571_vm14 = vmand %vm1499_vm12, %vm1535_vm13 }
 0x5ce   : > { %v1318_v45 = vadd.s32 %v1316_v35, %v1314_v48  ;;  %v7991_v39 = vadd.f32 %v7990_v33, %v7956_v4  ;;  %v8070_v19 = vadd.f32 %v8069_v6, %v8035_v42  ;;  %v387_v13 = vadd.s32 256, %v16992_v3  ;;  %v7879_v4 = vpop.f32.mrf.mxu1 }
 0x5cf   : > { %v1294_v14 = vsub.s32 %v18136_v47, %v1293_v17  ;;  %v1335_v61 = vmul.u32 58254, %v1330_v9  ;;  %v1336_v10 = vshll.u32 %v1333_v23, 16  ;;  %v1338_v38 = vshll.u32 %v1334_v8, 16 }
 0x5d0   : > { %v1319_v54 = vadd.s32 %v1318_v45, %v1308_v15  ;;  %v18222_v49 = vadd.f32 %v7991_v39, %v7957_v52  ;;  %v18225_v36 = vadd.f32 %v7357_v32, %v17250_v58  ;;  %v7660_v62 = vadd.f32 %v18189_v46, %v18153_v51  ;;  %v7359_v58 = vpop.f32.mrf.mxu3 }
 0x5d1   : > { %vm1500_vm15 = vcmp.ge.s32.totalorder %v1294_v14, 1  ;;  %vm1536_vm7 = vcmp.le.s32.totalorder %v1294_v14, 16  ;;  %vm1340_vm8 = vc.u32 %v1332_v28, %v1336_v10  ;;  %v1342_v47 = vadd.s32 %v1336_v10, %v1332_v28  ;;  %v7618_v43 = vpop.f32.mrf.mxu0 }
 0x5d2   : > { %v1320_v33 = vadd.s32 %v1319_v54, %v1310_v63  ;;  %v8036_v6 = vmul.f32 %v7957_v52, %v18182_v21  ;;  %v18231_v42 = vsel %vm1571_vm14, 1.0, %v20625_v41  ;;  %v1341_v39 = vsel %vm1340_vm8, 1, %v20613_v5  ;;  %vm1572_vm10 = vmand %vm1500_vm15, %vm1536_vm7 }
 0x5d3   : > { %20711 = vst [vmem:[#allocation41_spill] sm:$0xff] %v18231_v42  ;;  %v18234_v22 = vadd.s32 19, %v387_v13  ;;  %v1337_v9 = vshrl.u32 %v1333_v23, 16  ;;  %v1343_v51 = vadd.s32 %v1341_v39, %v1335_v61  ;;  %vm1344_vm9 = vc.u32 %v1342_v47, %v1338_v38 }
 0x5d4   : > { %v1321_v32 = vshrl.u32 %v1320_v33, 4  ;;  %v7661_v46 = vadd.f32 %v7616_v27, %v18180_v55  ;;  %v1345_v15 = vsel %vm1344_vm9, 1, %v20613_v5  ;;  %v7958_v13 = vmul.f32 %v18231_v42, %v18211_v26 }
 0x5d5   : > { %v1358_v52 = vand.u32 65535, %v18234_v22  ;;  %v1359_v63 = vshrl.u32 %v18234_v22, 16  ;;  %v1339_v17 = vshrl.u32 %v1334_v8, 16  ;;  %v1347_v35 = vadd.s32 %v1345_v15, %v1343_v51 }
 0x5d6   : > { %v1322_v48 = vmul.u32 18, %v1321_v32  ;;  %v18244_v45 = vadd.f32 %v18203_v40, %v7660_v62  ;;  %v8071_v54 = vadd.f32 %v8070_v19, %v8036_v6  ;;  %v18247_v55 = vsel %vm1572_vm10, 1.0, %v20625_v41  ;;  %v7881_v6 = vpop.f32.mrf.mxu1 }
 0x5d7   : > { %v1361_v28 = vmul.u32 14564, %v1358_v52  ;;  %v1362_v23 = vmul.u32 58254, %v1358_v52  ;;  %v1363_v14 = vmul.u32 14564, %v1359_v63  ;;  %20712 = vst [vmem:[#allocation42_spill] sm:$0xff] %v18247_v55  ;;  %v1348_v27 = vadd.s32 %v1347_v35, %v1337_v9 }
 0x5d8   : > { %v388_v61 = vadd.s32 264, %v16992_v3  ;;  %v1323_v10 = vsub.s32 %v18187_v56, %v1322_v48  ;;  %v1364_v38 = vmul.u32 58254, %v1359_v63  ;;  %v8037_v8 = vmul.f32 %v7958_v13, %v18211_v26  ;;  %v14595_v56 = vld [vmem:[%s20443_s6 + $0x50] sm:$0xff] }
 0x5d9   : > { %v1365_v33 = vshll.u32 %v1362_v23, 16  ;;  %v1367_v47 = vshll.u32 %v1363_v14, 16  ;;  %v18253_v40 = vadd.f32 %v7359_v58, %v17965_v60  ;;  %v18255_v62 = vadd.f32 %v7879_v4, %v7661_v46  ;;  %9091 = vmatpush.bf16.msra.mxu2 %v14595_v56  ;;  %v7621_v52 = vpop.f32.mrf.mxu0 }
 0x5da   : > { %v1349_v39 = vadd.s32 %v1348_v27, %v1339_v17  ;;  %v7662_v19 = vadd.f32 %v7618_v43, %v18201_v59  ;;  %v18258_v9 = vadd.s32 19, %v388_v61  ;;  %v7959_v51 = vmul.f32 %v18247_v55, %v18244_v45  ;;  %v7362_v43 = vpop.f32.mrf.mxu3 }
 0x5db   : > { %vm1369_vm1 = vc.u32 %v1361_v28, %v1365_v33  ;;  %v1371_v32 = vadd.s32 %v1365_v33, %v1361_v28  ;;  %v389_v4 = vadd.s32 272, %v16992_v3  ;;  %vm1501_vm11 = vcmp.ge.s32.totalorder %v1323_v10, 1 }
 0x5dc   : > { %v1350_v15 = vshrl.u32 %v1349_v39, 4  ;;  %v1370_v60 = vsel %vm1369_vm1, 1, %v20613_v5  ;;  %v1366_v58 = vshrl.u32 %v1362_v23, 16  ;;  %v1387_v48 = vand.u32 65535, %v18258_v9 }
 0x5dd   : > { %v1372_v59 = vadd.s32 %v1370_v60, %v1364_v38  ;;  %vm1373_vm12 = vc.u32 %v1371_v32, %v1367_v47  ;;  %v1388_v17 = vshrl.u32 %v18258_v9, 16  ;;  %vm1537_vm13 = vcmp.le.s32.totalorder %v1323_v10, 16 }
 0x5de   : > { %v1351_v46 = vmul.u32 18, %v1350_v15  ;;  %v1374_v63 = vsel %vm1373_vm12, 1, %v20613_v5  ;;  %v1368_v35 = vshrl.u32 %v1363_v14, 16  ;;  %v18270_v27 = vadd.s32 19, %v389_v4  ;;  %vm1573_vm14 = vmand %vm1501_vm11, %vm1537_vm13  ;;  %v7884_v10 = vpop.f32.mrf.mxu1 }
 0x5df   : > { %v1376_v28 = vadd.s32 %v1374_v63, %v1372_v59  ;;  %v1390_v23 = vmul.u32 14564, %v1387_v48  ;;  %v1391_v38 = vmul.u32 58254, %v1387_v48  ;;  %v1392_v33 = vmul.u32 14564, %v1388_v17 }
 0x5e0   : > { %v1352_v61 = vsub.s32 %v18205_v20, %v1351_v46  ;;  %v7993_v47 = vadd.f32 %v18222_v49, %v7958_v13  ;;  %v8072_v39 = vadd.f32 %v8071_v54, %v8037_v8  ;;  %v18275_v32 = vadd.f32 %v7362_v43, %v18041_v12 }
 0x5e1   : > { %v1377_v56 = vadd.s32 %v1376_v28, %v1366_v58  ;;  %v18278_v15 = vadd.f32 %v7881_v6, %v7662_v19  ;;  %v1393_v14 = vmul.u32 58254, %v1388_v17  ;;  %v1394_v60 = vshll.u32 %v1391_v38, 16  ;;  %v7623_v28 = vpop.f32.mrf.mxu0 }
 0x5e2   : > { %v1416_v4 = vand.u32 65535, %v18270_v27  ;;  %v7994_v59 = vadd.f32 %v7993_v47, %v7959_v51  ;;  %vm1502_vm15 = vcmp.ge.s32.totalorder %v1352_v61, 1  ;;  %v1396_v46 = vshll.u32 %v1392_v33, 16 }
 0x5e3   : > { %v1378_v20 = vadd.s32 %v1377_v56, %v1368_v35  ;;  %vm1538_vm7 = vcmp.le.s32.totalorder %v1352_v61, 16  ;;  %vm1398_vm8 = vc.u32 %v1390_v23, %v1394_v60  ;;  %v1400_v49 = vadd.s32 %v1394_v60, %v1390_v23 }
 0x5e4   : > { %v1417_v13 = vshrl.u32 %v18270_v27, 16  ;;  %v18283_v12 = vsel %vm1573_vm14, 1.0, %v20625_v41  ;;  %v1395_v8 = vshrl.u32 %v1391_v38, 16  ;;  %v1399_v19 = vsel %vm1398_vm8, 1, %v20613_v5  ;;  %vm1574_vm10 = vmand %vm1502_vm15, %vm1538_vm7 }
 0x5e5   : > { %20713 = vst [vmem:[#allocation43_spill] sm:$0xff] %v18283_v12  ;;  %v1379_v54 = vshrl.u32 %v1378_v20, 4  ;;  %v1401_v6 = vadd.s32 %v1399_v19, %v1393_v14  ;;  %vm1402_vm9 = vc.u32 %v1400_v49, %v1396_v46  ;;  %v1419_v58 = vmul.u32 14564, %v1416_v4 }
 0x5e6   : > { %v1420_v43 = vmul.u32 58254, %v1416_v4  ;;  %v7663_v63 = vadd.f32 %v7621_v52, %v18225_v36  ;;  %v1397_v17 = vshrl.u32 %v1392_v33, 16  ;;  %v1403_v35 = vsel %vm1402_vm9, 1, %v20613_v5 }
 0x5e7   : > { %v1380_v48 = vmul.u32 18, %v1379_v54  ;;  %v1405_v23 = vadd.s32 %v1403_v35, %v1401_v6  ;;  %v1421_v47 = vmul.u32 14564, %v1417_v13  ;;  %v1422_v56 = vmul.u32 58254, %v1417_v13 }
 0x5e8   : > { %v1423_v60 = vshll.u32 %v1420_v43, 16  ;;  %v8038_v38 = vmul.f32 %v7959_v51, %v18244_v45  ;;  %v7960_v14 = vmul.f32 %v18283_v12, %v18255_v62  ;;  %v390_v61 = vadd.s32 280, %v16992_v3 }
 0x5e9   : > { %v1381_v4 = vsub.s32 %v18234_v22, %v1380_v48  ;;  %v18295_v36 = vsel %vm1574_vm10, 1.0, %v20625_v41  ;;  %v1406_v52 = vadd.s32 %v1405_v23, %v1395_v8  ;;  %v1425_v33 = vshll.u32 %v1421_v47, 16 }
 0x5ea   : > { %20714 = vst [vmem:[#allocation44_spill] sm:$0xff] %v18295_v36  ;;  %vm1427_vm1 = vc.u32 %v1419_v58, %v1423_v60  ;;  %v18297_v20 = vadd.f32 %v7884_v10, %v7663_v63  ;;  %v1429_v49 = vadd.s32 %v1423_v60, %v1419_v58  ;;  %v18300_v54 = vadd.s32 19, %v390_v61 }
 0x5eb   : > { %vm1503_vm11 = vcmp.ge.s32.totalorder %v1381_v4, 1  ;;  %vm1539_vm12 = vcmp.le.s32.totalorder %v1381_v4, 16  ;;  %v1428_v46 = vsel %vm1427_vm1, 1, %v20613_v5  ;;  %v1407_v51 = vadd.s32 %v1406_v52, %v1397_v17  ;;  %v7886_v17 = vpop.f32.mrf.mxu1 }
 0x5ec   : > { %vm1575_vm13 = vmand %vm1503_vm11, %vm1539_vm12  ;;  %v1430_v13 = vadd.s32 %v1428_v46, %v1422_v56  ;;  %v8039_v3 = vmul.f32 %v7960_v14, %v18255_v62  ;;  %v7961_v22 = vmul.f32 %v18295_v36, %v18278_v15  ;;  %v7664_v19 = vadd.f32 %v7623_v28, %v18253_v40 }
 0x5ed   : > { %v18306_v8 = vsel %vm1575_vm13, 1.0, %v20625_v41  ;;  %v1408_v10 = vshrl.u32 %v1407_v51, 4  ;;  %v1424_v6 = vshrl.u32 %v1420_v43, 16  ;;  %vm1431_vm14 = vc.u32 %v1429_v49, %v1425_v33 }
 0x5ee   : > { %20715 = vst [vmem:[#allocation45_spill] sm:$0xff] %v18306_v8  ;;  %v1445_v63 = vand.u32 65535, %v18300_v54  ;;  %v8073_v48 = vadd.f32 %v8072_v39, %v8038_v38  ;;  %v7995_v58 = vadd.f32 %v7994_v59, %v7960_v14  ;;  %v1432_v35 = vsel %vm1431_vm14, 1, %v20613_v5  ;;  %v7626_v38 = vpop.f32.mrf.mxu0 }
 0x5ef   : > { %v1446_v23 = vshrl.u32 %v18300_v54, 16  ;;  %v7962_v56 = vmul.f32 %v18306_v8, %v18297_v20  ;;  %v1409_v60 = vmul.u32 18, %v1408_v10  ;;  %v1426_v4 = vshrl.u32 %v1421_v47, 16 }
 0x5f0   : > { %v1434_v61 = vadd.s32 %v1432_v35, %v1430_v13  ;;  %v8040_v40 = vmul.f32 %v7961_v22, %v18278_v15  ;;  %v1448_v28 = vmul.u32 14564, %v1445_v63  ;;  %v1449_v43 = vmul.u32 58254, %v1445_v63 }
 0x5f1   : > { %v1450_v52 = vmul.u32 14564, %v1446_v23  ;;  %v8074_v33 = vadd.f32 %v8073_v48, %v8039_v3  ;;  %v1410_v39 = vsub.s32 %v18258_v9, %v1409_v60  ;;  %v18316_v59 = vadd.f32 %v7886_v17, %v7664_v19 }
 0x5f2   : > { %v1435_v14 = vadd.s32 %v1434_v61, %v1424_v6  ;;  %v7996_v46 = vadd.f32 %v7995_v58, %v7961_v22  ;;  %v1451_v51 = vmul.u32 58254, %v1446_v23  ;;  %v1452_v49 = vshll.u32 %v1449_v43, 16 }
 0x5f3   : > { %v1454_v36 = vshll.u32 %v1450_v52, 16  ;;  %v8041_v10 = vmul.f32 %v7962_v56, %v18297_v20  ;;  %vm1504_vm15 = vcmp.ge.s32.totalorder %v1410_v39, 1  ;;  %vm1540_vm7 = vcmp.le.s32.totalorder %v1410_v39, 16  ;;  %v7889_v61 = vpop.f32.mrf.mxu1  ;;  %v7364_v39 = vpop.f32.mrf.mxu3 }
 0x5f4   : > { %v1436_v47 = vadd.s32 %v1435_v14, %v1426_v4  ;;  %v8075_v13 = vadd.f32 %v8074_v33, %v8040_v40  ;;  %vm1576_vm8 = vmand %vm1504_vm15, %vm1540_vm7  ;;  %v7665_v63 = vadd.f32 %v7626_v38, %v18275_v32  ;;  %vm1456_vm9 = vc.u32 %v1448_v28, %v1452_v49  ;;  %v6968_v32 = vpop.f32.mrf.mxu2 }
 0x5f5   : > { %v1458_v3 = vadd.s32 %v1452_v49, %v1448_v28  ;;  %v7997_v9 = vadd.f32 %v7996_v46, %v7962_v56  ;;  %v18321_v19 = vsel %vm1576_vm8, 1.0, %v20625_v41  ;;  %v1457_v22 = vsel %vm1456_vm9, 1, %v20613_v5  ;;  %v20717_v46 = vld [vmem:[#allocation20_spill] sm:$0xff] }
 0x5f6   : > { %20716 = vst [vmem:[#allocation46_spill] sm:$0xff] %v18321_v19  ;;  %v1437_v6 = vshrl.u32 %v1436_v47, 4  ;;  %v7963_v48 = vmul.f32 %v18321_v19, %v18316_v59  ;;  %v1453_v58 = vshrl.u32 %v1449_v43, 16  ;;  %v1459_v17 = vadd.s32 %v1457_v22, %v1451_v51  ;;  %v7628_v51 = vpop.f32.mrf.mxu0 }
 0x5f7   : > { %vm1460_vm10 = vc.u32 %v1458_v3, %v1454_v36  ;;  %v8076_v35 = vadd.f32 %v8075_v13, %v8041_v10  ;;  %v1455_v40 = vshrl.u32 %v1450_v52, 16  ;;  %v18329_v14 = vadd.f32 %v7889_v61, %v7665_v63 }
 0x5f8   : > { %v1438_v23 = vmul.u32 18, %v1437_v6  ;;  %v1461_v60 = vsel %vm1460_vm10, 1, %v20613_v5  ;;  %v7998_v4 = vadd.f32 %v7997_v9, %v7963_v48  ;;  %v8042_v56 = vmul.f32 %v7963_v48, %v18316_v59 }
 0x5f9   : > { %v1463_v28 = vadd.s32 %v1461_v60, %v1459_v17  ;;  %v7006_v36 = vadd.f32 %v6968_v32, %v20717_v46  ;;  %vm8549_vm10 = vcmask 1040384  }
 0x5fa   : > { %v1439_v33 = vsub.s32 %v18270_v27, %v1438_v23  ;;  %v8077_v38 = vadd.f32 %v8076_v35, %v8042_v56 }
 0x5fb   : > { %v1464_v43 = vadd.s32 %v1463_v28, %v1453_v58  ;;  %v7402_v10 = vadd.f32 %v7364_v39, %v7006_v36  ;;  %v7891_v48 = vpop.f32.mrf.mxu1 }
 0x5fc   : > { %vm1505_vm1 = vcmp.ge.s32.totalorder %v1439_v33, 1  ;;  %vm1541_vm11 = vcmp.le.s32.totalorder %v1439_v33, 16 }
 0x5fd   : > { %vm1577_vm12 = vmand %vm1505_vm1, %vm1541_vm11  ;;  %v1465_v49 = vadd.s32 %v1464_v43, %v1455_v40  ;;  %v7666_v13 = vadd.f32 %v7628_v51, %v7402_v10  ;;  %vm8550_vm1 = vsmask.f32 256  ;;  %vm8382_vm11 = vsmask.f32 1280 }
 0x5fe   : > { %v18333_v47 = vsel %vm1577_vm12, 1.0, %v20625_v41  ;;  %vm8551_vm12 = vmand %vm8549_vm10, %vm8550_vm1 }
 0x5ff   : > { %20718 = vst [vmem:[#allocation20_spill] sm:$0xff] %v18333_v47  ;;  %v7964_v52 = vmul.f32 %v18333_v47, %v18329_v14  ;;  %v1466_v27 = vshrl.u32 %v1465_v49, 4  ;;  %v7929_v58 = vadd.f32 %v7891_v48, %v7666_v13 }
 0x601   : > { %v7999_v3 = vadd.f32 %v7998_v4, %v7964_v52  ;;  %v8043_v63 = vmul.f32 %v7964_v52, %v18329_v14  ;;  %v1467_v9 = vmul.u32 18, %v1466_v27 }
 0x603   : > { %v8078_v6 = vadd.f32 %v8077_v38, %v8043_v63  ;;  %v1468_v22 = vsub.s32 %v18300_v54, %v1467_v9 }
 0x605   : > { %vm1506_vm13 = vcmp.ge.s32.totalorder %v1468_v22, 1  ;;  %vm1542_vm14 = vcmp.le.s32.totalorder %v1468_v22, 16 }
 0x606   : > { %vm1578_vm15 = vmand %vm1506_vm13, %vm1542_vm14  ;;  %vm8546_vm13 = vcmask 1041408  }
 0x607   : > { %v18340_v17 = vsel %vm1578_vm15, 1.0, %v20625_v41  ;;  %vm8547_vm14 = vmand %vm8546_vm13, %vm8382_vm11  ;;  %v14688_v41 = vld [vmem:[%s20443_s6 + $0x198] sm:$0xff] }
 0x608   : > { %20719 = vst [vmem:[#allocation47_spill] sm:$0xff] %v18340_v17  ;;  %v7965_v35 = vmul.f32 %v18340_v17, %v7929_v58 }
 0x60a   : > { %v8001_v23 = vsel %vm5318_vm4, %v7965_v35, 0.0  ;;  %v8044_v60 = vmul.f32 %v7965_v35, %v7929_v58 }
 0x60b   : > { %v8002_v32 = vadd.f32 %v8001_v23, %v7999_v3 }
 0x60c   : > { %v8079_v4 = vsel %vm5318_vm4, %v8044_v60, 0.0  ;;  %v8103_v60 = vld [vmem:[%s20441_s4] sm:$0x1] }
 0x60d   : > { %v8003_v56 = vrot.slane %v8002_v32, 4  ;;  %v8080_v61 = vadd.f32 %v8079_v4, %v8078_v6 }
 0x60f   : > { %v8004_v40 = vadd.f32 %v8003_v56, %v8002_v32  ;;  %v8081_v54 = vrot.slane %v8080_v61, 4  ;;  %v8105_v56 = vld [vmem:[%s20442_s5] sm:$0x1] }
 0x611   : > { %v8005_v28 = vrot.slane %v8004_v40, 2  ;;  %v8082_v33 = vadd.f32 %v8081_v54, %v8080_v61 }
 0x613   : > { %v8006_v39 = vadd.f32 %v8005_v28, %v8004_v40  ;;  %v8083_v38 = vrot.slane %v8082_v33, 2 }
 0x615   : > { %v8007_v43 = vrot.slane %v8006_v39, 1  ;;  %v8084_v46 = vadd.f32 %v8083_v38, %v8082_v33 }
 0x617   : > { %v8008_v36 = vadd.f32 %v8007_v43, %v8006_v39  ;;  %v8085_v51 = vrot.slane %v8084_v46, 1  ;;  %v20720_v43 = vld [vmem:[#allocation21_spill] sm:$0xff] }
 0x619   : > { %v8086_v49 = vadd.f32 %v8085_v51, %v8084_v46  ;;  %v8087_v10 = vmul.f32 0.00390625, %v8008_v36  ;;  %v20721_v36 = vld [vmem:[#allocation24_spill] sm:$0xff] }
 0x61b   : > { %v8088_v52 = vmul.f32 0.00390625, %v8086_v49  ;;  %v8089_v27 = vmul.f32 %v8087_v10, %v8087_v10 }
 0x61d   : > { %v8090_v13 = vsub.f32 %v8088_v52, %v8089_v27  ;;  %v20723_v52 = vld [vmem:[#allocation10_spill] sm:$0xff] }
 0x61f   : > { %v8091_v3 = vmax.f32 %v8090_v13, 0.0  ;;  %v20724_v13 = vld [vmem:[#allocation29_spill] sm:$0xff] }
 0x621   : > { %v8092_v63 = vadd.f32 1e-05, %v8091_v3 }
 0x623   : > { %14754 = vrsqrt.f32 %v8092_v63  ;;  %vm8099_vm8 = vweird.f32 %v8092_v63 }
 0x629   : > { %v14755_v9 = vpop.eup %14754 }
 0x62a   : > { %v8094_v6 = vmul.f32 %v14755_v9, %v8092_v63  ;;  %vm8100_vm7 = vweird.f32 %v14755_v9  ;;  %v20725_v63 = vld [vmem:[#allocation7_spill] sm:$0xff] }
 0x62b   : > { %vm8101_vm9 = vmor %vm8099_vm8, %vm8100_vm7 }
 0x62c   : > { %v8095_v22 = vmul.f32 %v14755_v9, %v8094_v6 }
 0x62e   : > { %v8096_v48 = vmul.f32 0.5, %v8095_v22 }
 0x630   : > { %v8097_v35 = vsub.f32 1.5, %v8096_v48 }
 0x632   : > { %v8098_v23 = vmul.f32 %v14755_v9, %v8097_v35  ;;  %v20727_v35 = vld [vmem:[#allocation32_spill] sm:$0xff] }
 0x634   : > { %v8102_v32 = vsel %vm8101_vm9, %v14755_v9, %v8098_v23  ;;  %v20726_v9 = vld [vmem:[#allocation31_spill] sm:$0xff] }
 0x635   : > { %v8104_v4 = vmul.f32 %v8103_v60, %v8102_v32 }
 0x637   : > { %v8106_v61 = vmul.f32 %v8104_v4, %v8087_v10  ;;  %v18351_v40 = vperm.slane %v8104_v4, 0 }
 0x639   : > { %v8107_v54 = vsub.f32 %v8105_v56, %v8106_v61  ;;  %v8141_v28 = vmul.f32 %v18351_v40, %v18297_v20  ;;  %v8142_v33 = vmul.f32 %v18351_v40, %v18316_v59  ;;  %v8143_v39 = vmul.f32 %v18351_v40, %v18329_v14  ;;  %v20722_v14 = vld [vmem:[#allocation6_spill] sm:$0xff] }
 0x63a   : > { %v8144_v38 = vmul.f32 %v18351_v40, %v7929_v58  ;;  %v8109_v46 = vmul.f32 %v18351_v40, %v20720_v43  ;;  %v8110_v51 = vmul.f32 %v18351_v40, %v20721_v36  ;;  %v8111_v49 = vmul.f32 %v18351_v40, %v17353_v44 }
 0x63b   : > { %v18366_v10 = vperm.slane %v8107_v54, 0  ;;  %v8112_v20 = vmul.f32 %v18351_v40, %v17395_v16  ;;  %v8113_v59 = vmul.f32 %v18351_v40, %v17431_v57  ;;  %v8114_v58 = vmul.f32 %v18351_v40, %v20722_v14 }
 0x63c   : > { %v8115_v27 = vmul.f32 %v18351_v40, %v20723_v52  ;;  %v8116_v3 = vmul.f32 %v18351_v40, %v20724_v13  ;;  %v18380_v44 = vmul.f32 %v18351_v40, %v20725_v63  ;;  %v18384_v6 = vmul.f32 %v18351_v40, %v20726_v9 }
 0x63d   : > { %v8180_v16 = vadd.f32 %v18366_v10, %v8141_v28  ;;  %v8181_v57 = vadd.f32 %v18366_v10, %v8142_v33  ;;  %v8182_v22 = vadd.f32 %v18366_v10, %v8143_v39  ;;  %v8183_v48 = vadd.f32 %v18366_v10, %v8144_v38 }
 0x63e   : > { %v8119_v23 = vmul.f32 %v18351_v40, %v20727_v35  ;;  %v8120_v60 = vmul.f32 %v18351_v40, %v17696_v2  ;;  %v18396_v32 = vmul.f32 %v18351_v40, %v17732_v24  ;;  %v18400_v4 = vmul.f32 %v18351_v40, %v17788_v53 }
 0x63f   : > { %v8216_v56 = vmax.f32 %v8180_v16, 0.0  ;;  %v8217_v61 = vmax.f32 %v8181_v57, 0.0  ;;  %v8218_v54 = vmax.f32 %v8182_v22, 0.0  ;;  %v8219_v28 = vmax.f32 %v8183_v48, 0.0  ;;  %v20728_v48 = vld [vmem:[#allocation16_spill] sm:$0xff] }
 0x640   : > { %v8123_v33 = vmul.f32 %v18351_v40, %v17801_v29  ;;  %v18406_v2 = vmul.f32 %v18351_v40, %v17857_v31  ;;  %v8125_v24 = vmul.f32 %v18351_v40, %v17863_v1  ;;  %v8126_v53 = vmul.f32 %v18351_v40, %v17933_v50 }
 0x641   : > { %v8252_v39 = vmul.f32 %v18306_v8, %v8216_v56  ;;  %v8253_v38 = vmul.f32 %v18321_v19, %v8217_v61  ;;  %v8254_v43 = vmul.f32 %v18333_v47, %v8218_v54  ;;  %v8255_v36 = vmul.f32 %v18340_v17, %v8219_v28 }
 0x642   : > { %v8127_v29 = vmul.f32 %v18351_v40, %v17924_v30  ;;  %v8128_v31 = vmul.f32 %v18351_v40, %v18004_v0  ;;  %v8129_v1 = vmul.f32 %v18351_v40, %v17985_v25  ;;  %v8130_v50 = vmul.f32 %v18351_v40, %v18049_v18 }
 0x643   : > { %v8288_v14 = vpack.c.bf16 %v8252_v39, %v8252_v39  ;;  %v8289_v52 = vpack.c.bf16 %v8253_v38, %v8253_v38  ;;  %v8290_v13 = vpack.c.bf16 %v8254_v43, %v8254_v43  ;;  %v8291_v63 = vpack.c.bf16 %v8255_v36, %v8255_v36 }
 0x644   : > { %v8131_v9 = vmul.f32 %v18351_v40, %v18027_v37  ;;  %v8132_v30 = vmul.f32 %v18351_v40, %v18093_v11  ;;  %v8133_v0 = vmul.f32 %v18351_v40, %v18079_v7  ;;  %v8134_v25 = vmul.f32 %v18351_v40, %v18147_v34 }
 0x645   : > { %v8360_v16 = vunpack.c.l.b16 %v8288_v14  ;;  %v8361_v57 = vunpack.c.l.b16 %v8289_v52  ;;  %v8362_v18 = vunpack.c.l.b16 %v8290_v13  ;;  %v8363_v22 = vunpack.c.l.b16 %v8291_v63 }
 0x646   : > { %v8135_v35 = vmul.f32 %v18351_v40, %v20728_v48  ;;  %v8136_v56 = vmul.f32 %v18351_v40, %v18182_v21  ;;  %v8137_v37 = vmul.f32 %v18351_v40, %v18211_v26  ;;  %v8138_v11 = vmul.f32 %v18351_v40, %v18244_v45 }
 0x647   : > { %v8380_v7 = vpack.c.b16 %v8361_v57, %v8360_v16  ;;  %v8381_v61 = vpack.c.b16 %v8363_v22, %v8362_v18  ;;  %v8139_v34 = vmul.f32 %v18351_v40, %v18255_v62  ;;  %v8140_v54 = vmul.f32 %v18351_v40, %v18278_v15 }
 0x648   : > { %v18445_v28 = vadd.f32 %v18366_v10, %v8109_v46  ;;  %v18448_v39 = vadd.f32 %v18366_v10, %v8110_v51  ;;  %v18451_v21 = vadd.f32 %v18366_v10, %v8111_v49  ;;  %v18454_v26 = vadd.f32 %v18366_v10, %v8112_v20 }
 0x649   : > { %v8527_v45 = vshrl.u32 %v8380_v7, 16  ;;  %v8530_v38 = vshll.u32 %v8380_v7, 16  ;;  %v8536_v43 = vshrl.u32 %v8381_v61, 16  ;;  %v8539_v36 = vshll.u32 %v8381_v61, 16 }
 0x64a   : > { %v18459_v62 = vadd.f32 %v18366_v10, %v8113_v59  ;;  %v18462_v15 = vadd.f32 %v18366_v10, %v8114_v58  ;;  %v18465_v40 = vadd.f32 %v18366_v10, %v8115_v27  ;;  %v18468_v46 = vadd.f32 %v18366_v10, %v8116_v3 }
 0x64b   : > { %v8529_v51 = vrot.slane %v8527_v45, 6  ;;  %v8532_v49 = vrot.slane %v8530_v38, 7  ;;  %v8538_v20 = vrot.slane %v8536_v43, 6  ;;  %v8541_v14 = vrot.slane %v8539_v36, 7 }
 0x64c   : > { %v18472_v52 = vadd.f32 %v18366_v10, %v18380_v44  ;;  %v18476_v59 = vadd.f32 %v18366_v10, %v18384_v6  ;;  %v18479_v58 = vadd.f32 %v18366_v10, %v8119_v23  ;;  %v18482_v27 = vadd.f32 %v18366_v10, %v8120_v60 }
 0x64d   : > { %v18484_v3 = vor.u32 %v8532_v49, %v8529_v51  ;;  %v8542_v13 = vor.u32 %v8541_v14, %v8538_v20  ;;  %v8552_v63 = vsel %vm8551_vm12, %v8538_v20, 0  ;;  %v18488_v16 = vadd.f32 %v18366_v10, %v18396_v32 }
 0x64e   : > { %v8594_v44 = vunpack.c.l.b16 %v8552_v63  ;;  %v8595_v57 = vunpack.c.h.b16 %v8552_v63  ;;  %v18492_v6 = vadd.f32 %v18366_v10, %v18400_v4  ;;  %v18495_v23 = vadd.f32 %v18366_v10, %v8123_v33 }
 0x64f   : > { %v8543_v60 = vsel %vm8382_vm11, %v18484_v3, %v8542_v13  ;;  %v18501_v18 = vadd.f32 %v18366_v10, %v18406_v2  ;;  %v18504_v22 = vadd.f32 %v18366_v10, %v8125_v24  ;;  %v18507_v32 = vadd.f32 %v18366_v10, %v8126_v53 }
 0x650   : > { %v8592_v48 = vunpack.c.l.b16 %v8543_v60  ;;  %v8593_v7 = vunpack.c.h.b16 %v8543_v60  ;;  %v8634_v4 = vpack.c.b16 %v8594_v44, %v8594_v44  ;;  %v8635_v61 = vpack.c.b16 %v8595_v57, %v8595_v57 }
 0x651   : > { %v18510_v33 = vadd.f32 %v18366_v10, %v8127_v29  ;;  %v18513_v45 = vadd.f32 %v18366_v10, %v8128_v31  ;;  %v18516_v38 = vadd.f32 %v18366_v10, %v8129_v1  ;;  %v18519_v2 = vadd.f32 %v18366_v10, %v8130_v50 }
 0x652   : > { %v8632_v24 = vpack.c.b16 %v8592_v48, %v8592_v48  ;;  %v8633_v43 = vpack.c.b16 %v8593_v7, %v8593_v7  ;;  %8714 = vst [vmem:[#allocation2 + $0x98] sm:$0xf] %v8634_v4  ;;  %v18522_v53 = vadd.f32 %v18366_v10, %v8131_v9  ;;  %v18525_v36 = vadd.f32 %v18366_v10, %v8132_v30  ;;  %v20730_v48 = vld [vmem:[#allocation22_spill] sm:$0xff]  ;;  %v20731_v4 = vld [vmem:[#allocation23_spill] sm:$0xff] }
 0x653   : > { %8715 = vst [vmem:[#allocation2 + $0x9c] sm:$0xf] %v8635_v61  ;;  %v18528_v29 = vadd.f32 %v18366_v10, %v8133_v0  ;;  %v18531_v31 = vadd.f32 %v18366_v10, %v8134_v25  ;;  %v18534_v1 = vadd.f32 %v18366_v10, %v8135_v35  ;;  %v18537_v50 = vadd.f32 %v18366_v10, %v8136_v56 }
 0x654   : > { %8712 = vst [vmem:[#allocation2 + $0x90] sm:$0xf] %v8632_v24  ;;  %v18540_v9 = vadd.f32 %v18366_v10, %v8137_v37  ;;  %v18543_v30 = vadd.f32 %v18366_v10, %v8138_v11  ;;  %v18546_v51 = vadd.f32 %v18366_v10, %v8139_v34  ;;  %v18549_v0 = vadd.f32 %v18366_v10, %v8140_v54  ;;  %v20734_v24 = vld [vmem:[#allocation27_spill] sm:$0xff] }
 0x655   : > { %8713 = vst [vmem:[#allocation2 + $0x94] sm:$0xf] %v8633_v43  ;;  %v8184_v25 = vmax.f32 %v18445_v28, 0.0  ;;  %v8185_v35 = vmax.f32 %v18448_v39, 0.0  ;;  %v8186_v56 = vmax.f32 %v18451_v21, 0.0  ;;  %v8187_v49 = vmax.f32 %v18454_v26, 0.0 }
 0x656   : > { %v8188_v37 = vmax.f32 %v18459_v62, 0.0  ;;  %v8189_v11 = vmax.f32 %v18462_v15, 0.0  ;;  %v8190_v20 = vmax.f32 %v18465_v40, 0.0  ;;  %v8191_v34 = vmax.f32 %v18468_v46, 0.0 }
 0x657   : > { %v8192_v10 = vmax.f32 %v18472_v52, 0.0  ;;  %v8193_v54 = vmax.f32 %v18476_v59, 0.0  ;;  %v8194_v28 = vmax.f32 %v18479_v58, 0.0  ;;  %v8195_v39 = vmax.f32 %v18482_v27, 0.0 }
 0x658   : > { %v8196_v21 = vmax.f32 %v18488_v16, 0.0  ;;  %v8197_v26 = vmax.f32 %v18492_v6, 0.0  ;;  %v8198_v62 = vmax.f32 %v18495_v23, 0.0  ;;  %v8199_v15 = vmax.f32 %v18501_v18, 0.0 }
 0x659   : > { %v8200_v40 = vmax.f32 %v18504_v22, 0.0  ;;  %v8201_v46 = vmax.f32 %v18507_v32, 0.0  ;;  %v8202_v14 = vmax.f32 %v18510_v33, 0.0  ;;  %v8203_v52 = vmax.f32 %v18513_v45, 0.0  ;;  %v20729_v22 = vld [vmem:[#allocation19_spill] sm:$0xff]  ;;  %v20732_v33 = vld [vmem:[#allocation25_spill] sm:$0xff] }
 0x65a   : > { %v8204_v59 = vmax.f32 %v18516_v38, 0.0  ;;  %v8205_v58 = vmax.f32 %v18519_v2, 0.0  ;;  %v8206_v27 = vmax.f32 %v18522_v53, 0.0  ;;  %v8207_v13 = vmax.f32 %v18525_v36, 0.0  ;;  %v20733_v38 = vld [vmem:[#allocation26_spill] sm:$0xff]  ;;  %v20735_v53 = vld [vmem:[#allocation28_spill] sm:$0xff] }
 0x65b   : > { %v8208_v63 = vmax.f32 %v18528_v29, 0.0  ;;  %v8209_v16 = vmax.f32 %v18531_v31, 0.0  ;;  %v8210_v44 = vmax.f32 %v18534_v1, 0.0  ;;  %v8211_v57 = vmax.f32 %v18537_v50, 0.0  ;;  %v20736_v29 = vld [vmem:[#allocation11_spill] sm:$0xff]  ;;  %v20737_v1 = vld [vmem:[#allocation30_spill] sm:$0xff] }
 0x65c   : > { %v8212_v6 = vmax.f32 %v18540_v9, 0.0  ;;  %v8213_v23 = vmax.f32 %v18543_v30, 0.0  ;;  %v8214_v60 = vmax.f32 %v18546_v51, 0.0  ;;  %v8215_v18 = vmax.f32 %v18549_v0, 0.0  ;;  %v20738_v9 = vld [vmem:[#allocation3_spill] sm:$0xff]  ;;  %v20739_v51 = vld [vmem:[#allocation33_spill] sm:$0xff] }
 0x65d   : > { %v18584_v32 = vmul.f32 %v20729_v22, %v8184_v25  ;;  %v18587_v7 = vmul.f32 %v20730_v48, %v8185_v35  ;;  %v18590_v61 = vmul.f32 %v20731_v4, %v8186_v56  ;;  %v18593_v45 = vmul.f32 %v20732_v33, %v8187_v49  ;;  %v20740_v25 = vld [vmem:[#allocation4_spill] sm:$0xff]  ;;  %v20741_v56 = vld [vmem:[#allocation5_spill] sm:$0xff] }
 0x65e   : > { %v18596_v2 = vmul.f32 %v20733_v38, %v8188_v37  ;;  %v18599_v43 = vmul.f32 %v20734_v24, %v8189_v11  ;;  %v18602_v36 = vmul.f32 %v20735_v53, %v8190_v20  ;;  %v18605_v31 = vmul.f32 %v20736_v29, %v8191_v34  ;;  %v20742_v37 = vld [vmem:[#allocation34_spill] sm:$0xff]  ;;  %v20743_v20 = vld [vmem:[#allocation12_spill] sm:$0xff] }
 0x65f   : > { %v18608_v50 = vmul.f32 %v20737_v1, %v8192_v10  ;;  %v18611_v30 = vmul.f32 %v20738_v9, %v8193_v54  ;;  %v18614_v0 = vmul.f32 %v20739_v51, %v8194_v28  ;;  %v18617_v35 = vmul.f32 %v20740_v25, %v8195_v39  ;;  %v20744_v10 = vld [vmem:[#allocation8_spill] sm:$0xff]  ;;  %v20745_v54 = vld [vmem:[#allocation13_spill] sm:$0xff]  ;;  %v20746_v28 = vld [vmem:[#allocation35_spill] sm:$0xff] }
 0x660   : > { %v18620_v49 = vmul.f32 %v20741_v56, %v8196_v21  ;;  %v18623_v11 = vmul.f32 %v20742_v37, %v8197_v26  ;;  %v18626_v34 = vmul.f32 %v20743_v20, %v8198_v62  ;;  %v18629_v17 = vmul.f32 %v20744_v10, %v8199_v15  ;;  %v20747_v39 = vld [vmem:[#allocation14_spill] sm:$0xff]  ;;  %v20748_v21 = vld [vmem:[#allocation15_spill] sm:$0xff]  ;;  %v20749_v26 = vld [vmem:[#allocation36_spill] sm:$0xff] }
 0x661   : > { %v18632_v47 = vmul.f32 %v20745_v54, %v8200_v40  ;;  %v18635_v19 = vmul.f32 %v20746_v28, %v8201_v46  ;;  %v18638_v8 = vmul.f32 %v20747_v39, %v8202_v14  ;;  %v18641_v56 = vmul.f32 %v20748_v21, %v8203_v52  ;;  %v20750_v62 = vld [vmem:[#allocation37_spill] sm:$0xff]  ;;  %v20751_v15 = vld [vmem:[#allocation38_spill] sm:$0xff]  ;;  %v20752_v40 = vld [vmem:[#allocation39_spill] sm:$0xff] }
 0x662   : > { %v18644_v37 = vmul.f32 %v20749_v26, %v8204_v59  ;;  %v18647_v20 = vmul.f32 %v20750_v62, %v8205_v58  ;;  %v18650_v10 = vmul.f32 %v20751_v15, %v8206_v27  ;;  %v18653_v54 = vmul.f32 %v20752_v40, %v8207_v13  ;;  %v20753_v46 = vld [vmem:[#allocation40_spill] sm:$0xff]  ;;  %v20754_v14 = vld [vmem:[#allocation9_spill] sm:$0xff]  ;;  %v20756_v59 = vld [vmem:[#allocation18_spill] sm:$0xff] }
 0x663   : > { %v18656_v28 = vmul.f32 %v20753_v46, %v8208_v63  ;;  %v18659_v39 = vmul.f32 %v20754_v14, %v8209_v16  ;;  %v20755_v52 = vld [vmem:[#allocation17_spill] sm:$0xff]  ;;  %v18665_v26 = vmul.f32 %v20756_v59, %v8211_v57  ;;  %v18668_v58 = vmul.f32 %v18231_v42, %v8212_v6  ;;  %v20757_v63 = vld [vmem:[#allocation44_spill] sm:$0xff] }
 0x664   : > { %v18662_v21 = vmul.f32 %v20755_v52, %v8210_v44  ;;  %v18671_v27 = vmul.f32 %v18247_v55, %v8213_v23  ;;  %v18674_v13 = vmul.f32 %v18283_v12, %v8214_v60  ;;  %v18677_v46 = vmul.f32 %v20757_v63, %v8215_v18  ;;  %v14691_v4 = vld [vmem:[%s20443_s6 + $0x1b0] sm:$0xff] }
 0x665   : > { %v8256_v16 = vpack.c.bf16 %v18584_v32, %v18584_v32  ;;  %v8257_v44 = vpack.c.bf16 %v18587_v7, %v18587_v7  ;;  %v8258_v57 = vpack.c.bf16 %v18590_v61, %v18590_v61  ;;  %v8259_v6 = vpack.c.bf16 %v18593_v45, %v18593_v45 }
 0x666   : > { %v8260_v23 = vpack.c.bf16 %v18596_v2, %v18596_v2  ;;  %v8261_v60 = vpack.c.bf16 %v18599_v43, %v18599_v43  ;;  %v8262_v18 = vpack.c.bf16 %v18602_v36, %v18602_v36  ;;  %v8263_v32 = vpack.c.bf16 %v18605_v31, %v18605_v31 }
 0x667   : > { %v8264_v7 = vpack.c.bf16 %v18608_v50, %v18608_v50  ;;  %v8265_v61 = vpack.c.bf16 %v18611_v30, %v18611_v30  ;;  %v8266_v45 = vpack.c.bf16 %v18614_v0, %v18614_v0  ;;  %v8267_v2 = vpack.c.bf16 %v18617_v35, %v18617_v35 }
 0x668   : > { %v8268_v43 = vpack.c.bf16 %v18620_v49, %v18620_v49  ;;  %v8269_v36 = vpack.c.bf16 %v18623_v11, %v18623_v11  ;;  %v8270_v31 = vpack.c.bf16 %v18626_v34, %v18626_v34  ;;  %v8271_v50 = vpack.c.bf16 %v18629_v17, %v18629_v17 }
 0x669   : > { %v8272_v30 = vpack.c.bf16 %v18632_v47, %v18632_v47  ;;  %v8273_v0 = vpack.c.bf16 %v18635_v19, %v18635_v19  ;;  %v8274_v35 = vpack.c.bf16 %v18638_v8, %v18638_v8  ;;  %v8275_v49 = vpack.c.bf16 %v18641_v56, %v18641_v56 }
 0x66a   : > { %v8276_v11 = vpack.c.bf16 %v18644_v37, %v18644_v37  ;;  %v8277_v34 = vpack.c.bf16 %v18647_v20, %v18647_v20  ;;  %v8278_v17 = vpack.c.bf16 %v18650_v10, %v18650_v10  ;;  %v8279_v47 = vpack.c.bf16 %v18653_v54, %v18653_v54 }
 0x66b   : > { %v8280_v19 = vpack.c.bf16 %v18656_v28, %v18656_v28  ;;  %v8281_v8 = vpack.c.bf16 %v18659_v39, %v18659_v39  ;;  %v8282_v56 = vpack.c.bf16 %v18662_v21, %v18662_v21  ;;  %v8283_v37 = vpack.c.bf16 %v18665_v26, %v18665_v26 }
 0x66c   : > { %v8284_v20 = vpack.c.bf16 %v18668_v58, %v18668_v58  ;;  %v8285_v10 = vpack.c.bf16 %v18671_v27, %v18671_v27  ;;  %v8286_v54 = vpack.c.bf16 %v18674_v13, %v18674_v13  ;;  %v8287_v28 = vpack.c.bf16 %v18677_v46, %v18677_v46 }
 0x66d   : > { %v8328_v63 = vunpack.c.l.b16 %v8256_v16  ;;  %v8329_v39 = vunpack.c.l.b16 %v8257_v44  ;;  %v8330_v12 = vunpack.c.l.b16 %v8258_v57  ;;  %v8331_v55 = vunpack.c.l.b16 %v8259_v6 }
 0x66e   : > { %v8332_v21 = vunpack.c.l.b16 %v8260_v23  ;;  %v8333_v42 = vunpack.c.l.b16 %v8261_v60  ;;  %v8334_v59 = vunpack.c.l.b16 %v8262_v18  ;;  %v8335_v26 = vunpack.c.l.b16 %v8263_v32 }
 0x66f   : > { %v8336_v52 = vunpack.c.l.b16 %v8264_v7  ;;  %v8337_v14 = vunpack.c.l.b16 %v8265_v61  ;;  %v8338_v58 = vunpack.c.l.b16 %v8266_v45  ;;  %v8339_v40 = vunpack.c.l.b16 %v8267_v2 }
 0x670   : > { %v8340_v15 = vunpack.c.l.b16 %v8268_v43  ;;  %v8341_v27 = vunpack.c.l.b16 %v8269_v36  ;;  %v8342_v62 = vunpack.c.l.b16 %v8270_v31  ;;  %v8343_v25 = vunpack.c.l.b16 %v8271_v50  ;;  %v14592_v43 = vld [vmem:[%s20443_s6 + $0x38] sm:$0xff] }
 0x671   : > { %v8344_v13 = vunpack.c.l.b16 %v8272_v30  ;;  %v8345_v51 = vunpack.c.l.b16 %v8273_v0  ;;  %v8346_v9 = vunpack.c.l.b16 %v8274_v35  ;;  %v8347_v46 = vunpack.c.l.b16 %v8275_v49  ;;  %9254 = vmatpush.bf16.msrb.mxu3 %v14592_v43 }
 0x672   : > { %v8348_v16 = vunpack.c.l.b16 %v8276_v11  ;;  %v8349_v44 = vunpack.c.l.b16 %v8277_v34  ;;  %v8350_v57 = vunpack.c.l.b16 %v8278_v17  ;;  %v8351_v6 = vunpack.c.l.b16 %v8279_v47 }
 0x673   : > { %v8352_v23 = vunpack.c.l.b16 %v8280_v19  ;;  %v8353_v60 = vunpack.c.l.b16 %v8281_v8  ;;  %v8354_v18 = vunpack.c.l.b16 %v8282_v56  ;;  %v8355_v32 = vunpack.c.l.b16 %v8283_v37 }
 0x674   : > { %v8356_v7 = vunpack.c.l.b16 %v8284_v20  ;;  %v8357_v61 = vunpack.c.l.b16 %v8285_v10  ;;  %v8358_v45 = vunpack.c.l.b16 %v8286_v54  ;;  %v8359_v2 = vunpack.c.l.b16 %v8287_v28 }
 0x675   : > { %v8364_v36 = vpack.c.b16 %v8329_v39, %v8328_v63  ;;  %v8365_v31 = vpack.c.b16 %v8331_v55, %v8330_v12  ;;  %v8366_v50 = vpack.c.b16 %v8333_v42, %v8332_v21  ;;  %v8367_v30 = vpack.c.b16 %v8335_v26, %v8334_v59  ;;  %v14591_v12 = vld [vmem:[%s20443_s6 + $0x30] sm:$0xff]  ;;  %v14590_v21 = vld [vmem:[%s20443_s6 + $0x28] sm:$0xff] }
 0x676   : > { %v8368_v0 = vpack.c.b16 %v8337_v14, %v8336_v52  ;;  %v8369_v35 = vpack.c.b16 %v8339_v40, %v8338_v58  ;;  %v8370_v49 = vpack.c.b16 %v8341_v27, %v8340_v15  ;;  %v18746_v11 = vpack.c.b16 %v8343_v25, %v8342_v62  ;;  %9255 = vmatpush.bf16.msrb.mxu3 %v14591_v12 }
 0x677   : > { %v8372_v34 = vpack.c.b16 %v8345_v51, %v8344_v13  ;;  %v18748_v17 = vpack.c.b16 %v8347_v46, %v8346_v9  ;;  %v18750_v47 = vpack.c.b16 %v8349_v44, %v8348_v16  ;;  %v18752_v19 = vpack.c.b16 %v8351_v6, %v8350_v57 }
 0x678   : > { %v18754_v8 = vpack.c.b16 %v8353_v60, %v8352_v23  ;;  %v18756_v56 = vpack.c.b16 %v8355_v32, %v8354_v18  ;;  %v18758_v55 = vpack.c.b16 %v8357_v61, %v8356_v7  ;;  %v18760_v42 = vpack.c.b16 %v8359_v2, %v8358_v45  ;;  %v14589_v2 = vld [vmem:[%s20443_s6 + $0x20] sm:$0xff] }
 0x679   : > { %v8384_v25 = vshrl.u32 %v8364_v36, 16  ;;  %v8387_v51 = vshll.u32 %v8364_v36, 16  ;;  %v8392_v9 = vshrl.u32 %v8365_v31, 16  ;;  %v8395_v62 = vshll.u32 %v8365_v31, 16 }
 0x67a   : > { %v8401_v15 = vshrl.u32 %v8366_v50, 16  ;;  %v8404_v40 = vshll.u32 %v8366_v50, 16  ;;  %v8410_v14 = vshrl.u32 %v8367_v30, 16  ;;  %v8413_v52 = vshll.u32 %v8367_v30, 16  ;;  %9256 = vmatpush.bf16.msrb.mxu3 %v14590_v21 }
 0x67b   : > { %v8386_v59 = vrot.slane %v8384_v25, 6  ;;  %v8389_v63 = vrot.slane %v8387_v51, 7  ;;  %v8394_v37 = vrot.slane %v8392_v9, 6  ;;  %v8397_v20 = vrot.slane %v8395_v62, 7 }
 0x67c   : > { %v8403_v10 = vrot.slane %v8401_v15, 6  ;;  %v8406_v54 = vrot.slane %v8404_v40, 7  ;;  %v8412_v28 = vrot.slane %v8410_v14, 6  ;;  %v8415_v39 = vrot.slane %v8413_v52, 7 }
 0x67d   : > { %v18768_v26 = vor.u32 %v8389_v63, %v8386_v59  ;;  %v8398_v58 = vor.u32 %v8397_v20, %v8394_v37  ;;  %v8419_v27 = vshrl.u32 %v8368_v0, 16  ;;  %v8422_v13 = vshll.u32 %v8368_v0, 16 }
 0x67e   : > { %v8407_v46 = vor.u32 %v8406_v54, %v8403_v10  ;;  %v8416_v16 = vor.u32 %v8415_v39, %v8412_v28  ;;  %v8428_v44 = vshrl.u32 %v8369_v35, 16  ;;  %v8431_v57 = vshll.u32 %v8369_v35, 16  ;;  %9257 = vmatpush.bf16.msrb.mxu3 %v14589_v2 }
 0x67f   : > { %v18772_v6 = vsel %vm8382_vm11, %v18768_v26, %v8398_v58  ;;  %v8421_v23 = vrot.slane %v8419_v27, 6  ;;  %v8424_v60 = vrot.slane %v8422_v13, 7  ;;  %v8437_v18 = vshrl.u32 %v8370_v49, 16 }
 0x680   : > { %v18775_v32 = vsel %vm8382_vm11, %v8398_v58, %v8407_v46  ;;  %v18778_v7 = vsel %vm8382_vm11, %v8407_v46, %v8416_v16  ;;  %v8430_v61 = vrot.slane %v8428_v44, 6  ;;  %v8433_v45 = vrot.slane %v8431_v57, 7 }
 0x681   : > { %v8425_v43 = vor.u32 %v8424_v60, %v8421_v23  ;;  %v8439_v36 = vrot.slane %v8437_v18, 6  ;;  %v8440_v31 = vshll.u32 %v8370_v49, 16  ;;  %v8446_v50 = vshrl.u32 %v18746_v11, 16 }
 0x682   : > { %v8434_v30 = vor.u32 %v8433_v45, %v8430_v61  ;;  %v8449_v0 = vshll.u32 %v18746_v11, 16  ;;  %v8455_v35 = vshrl.u32 %v8372_v34, 16  ;;  %v8458_v12 = vshll.u32 %v8372_v34, 16  ;;  %v14588_v11 = vld [vmem:[%s20443_s6 + $0x18] sm:$0xff] }
 0x683   : > { %v18786_v25 = vsel %vm8382_vm11, %v8416_v16, %v8425_v43  ;;  %v8442_v51 = vrot.slane %v8440_v31, 7  ;;  %v8448_v9 = vrot.slane %v8446_v50, 6  ;;  %v8464_v62 = vshrl.u32 %v18748_v17, 16  ;;  %9258 = vmatpush.bf16.msrb.mxu3 %v14588_v11  ;;  %v14634_v16 = vld [vmem:[%s20443_s6 + $0xf8] sm:$0xff] }
 0x684   : > { %v18790_v15 = vsel %vm8382_vm11, %v8425_v43, %v8434_v30  ;;  %v8451_v49 = vrot.slane %v8449_v0, 7  ;;  %v8457_v40 = vrot.slane %v8455_v35, 6  ;;  %v8460_v14 = vrot.slane %v8458_v12, 7  ;;  %9854 = vmatpush.bf16.msrb.mxu1 %v14634_v16  ;;  %v14633_v12 = vld [vmem:[%s20443_s6 + $0xf0] sm:$0xff] }
 0x685   : > { %v8443_v34 = vor.u32 %v8442_v51, %v8439_v36  ;;  %v8466_v52 = vrot.slane %v8464_v62, 6  ;;  %v8467_v59 = vshll.u32 %v18748_v17, 16  ;;  %v8473_v63 = vshrl.u32 %v18750_v47, 16  ;;  %v14608_v17 = vld [vmem:[%s20443_s6 + $0xb8] sm:$0xff]  ;;  %v14586_v51 = vld [vmem:[%s20443_s6 + $0x8] sm:$0xff] }
 0x686   : > { %v8452_v37 = vor.u32 %v8451_v49, %v8448_v9  ;;  %v8461_v20 = vor.u32 %v8460_v14, %v8457_v40  ;;  %v8476_v10 = vshll.u32 %v18750_v47, 16  ;;  %v8482_v54 = vshrl.u32 %v18752_v19, 16  ;;  %9475 = vmatpush.bf16.msrb.mxu0 %v14608_v17 }
 0x687   : > { %v18800_v28 = vsel %vm8382_vm11, %v8434_v30, %v8443_v34  ;;  %v8469_v39 = vrot.slane %v8467_v59, 7  ;;  %v8475_v21 = vrot.slane %v8473_v63, 6  ;;  %v8485_v58 = vshll.u32 %v18752_v19, 16  ;;  %v14587_v19 = vld [vmem:[%s20443_s6 + $0x10] sm:$0xff] }
 0x688   : > { %v18807_v27 = vsel %vm8382_vm11, %v8443_v34, %v8452_v37  ;;  %v18810_v13 = vsel %vm8382_vm11, %v8452_v37, %v8461_v20  ;;  %v8478_v47 = vrot.slane %v8476_v10, 7  ;;  %v8484_v46 = vrot.slane %v8482_v54, 6  ;;  %9259 = vmatpush.bf16.msrb.mxu3 %v14587_v19  ;;  %9855 = vmatpush.bf16.msrb.mxu1 %v14633_v12 }
 0x689   : > { %v8470_v44 = vor.u32 %v8469_v39, %v8466_v52  ;;  %v8487_v57 = vrot.slane %v8485_v58, 7  ;;  %v8491_v23 = vshrl.u32 %v18754_v8, 16  ;;  %v8494_v60 = vshll.u32 %v18754_v8, 16  ;;  %v14607_v8 = vld [vmem:[%s20443_s6 + $0xb0] sm:$0xff] }
 0x68a   : > { %v8479_v18 = vor.u32 %v8478_v47, %v8475_v21  ;;  %v8500_v61 = vshrl.u32 %v18756_v56, 16  ;;  %v8503_v45 = vshll.u32 %v18756_v56, 16  ;;  %v8509_v2 = vshrl.u32 %v18758_v55, 16  ;;  %9476 = vmatpush.bf16.msrb.mxu0 %v14607_v8 }
 0x68b   : > { %v18824_v43 = vsel %vm8382_vm11, %v8461_v20, %v8470_v44  ;;  %v8488_v36 = vor.u32 %v8487_v57, %v8484_v46  ;;  %v8493_v31 = vrot.slane %v8491_v23, 6  ;;  %v8496_v50 = vrot.slane %v8494_v60, 7  ;;  %v14585_v20 = vld [vmem:[%s20443_s6] sm:$0xff] }
 0x68c   : > { %v18830_v30 = vsel %vm8382_vm11, %v8470_v44, %v8479_v18  ;;  %v8502_v0 = vrot.slane %v8500_v61, 6  ;;  %v8505_v35 = vrot.slane %v8503_v45, 7  ;;  %v8511_v56 = vrot.slane %v8509_v2, 6  ;;  %9260 = vmatpush.bf16.msrb.mxu3 %v14586_v51 }
 0x68d   : > { %v18839_v9 = vsel %vm8382_vm11, %v8479_v18, %v8488_v36  ;;  %v8497_v62 = vor.u32 %v8496_v50, %v8493_v31  ;;  %v8512_v49 = vshll.u32 %v18758_v55, 16  ;;  %v8518_v40 = vshrl.u32 %v18760_v42, 16  ;;  %v14606_v55 = vld [vmem:[%s20443_s6 + $0xa8] sm:$0xff] }
 0x68e   : > { %v8506_v14 = vor.u32 %v8505_v35, %v8502_v0  ;;  %v8521_v11 = vshll.u32 %v18760_v42, 16  ;;  %v14632_v42 = vld [vmem:[%s20443_s6 + $0xe8] sm:$0xff]  ;;  %9477 = vmatpush.bf16.msrb.mxu0 %v14606_v55  ;;  %v8548_v39 = vsel %vm8547_vm14, 0, %v18768_v26  ;;  %v8560_v46 = vunpack.c.l.b16 %v18772_v6  ;;  %v14631_v55 = vld [vmem:[%s20443_s6 + $0xe0] sm:$0xff] }
 0x68f   : > { %v18847_v34 = vsel %vm8382_vm11, %v8488_v36, %v8497_v62  ;;  %v8514_v52 = vrot.slane %v8512_v49, 7  ;;  %v8520_v59 = vrot.slane %v8518_v40, 6  ;;  %9856 = vmatpush.bf16.msrb.mxu1 %v14632_v42  ;;  %v8558_v17 = vunpack.c.l.b16 %v8548_v39  ;;  %v14593_v49 = vld [vmem:[%s20443_s6 + $0x40] sm:$0xff] }
 0x690   : > { %v18853_v63 = vsel %vm8382_vm11, %v8497_v62, %v8506_v14  ;;  %v8523_v37 = vrot.slane %v8521_v11, 7  ;;  %9261 = vmatpush.bf16.msrb.mxu3 %v14585_v20  ;;  %v8559_v47 = vunpack.c.h.b16 %v8548_v39  ;;  %v8561_v16 = vunpack.c.h.b16 %v18772_v6 }
 0x691   : > { %v8515_v10 = vor.u32 %v8514_v52, %v8511_v56  ;;  %v8562_v19 = vunpack.c.l.b16 %v18775_v32  ;;  %v8563_v44 = vunpack.c.h.b16 %v18775_v32  ;;  %v8564_v26 = vunpack.c.l.b16 %v18778_v7  ;;  %v14605_v52 = vld [vmem:[%s20443_s6 + $0xa0] sm:$0xff] }
 0x692   : > { %v18861_v54 = vor.u32 %v8523_v37, %v8520_v59  ;;  %v8598_v57 = vpack.c.b16 %v8558_v17, %v8558_v17  ;;  %v8565_v23 = vunpack.c.h.b16 %v18778_v7  ;;  %v8599_v60 = vpack.c.b16 %v8559_v47, %v8559_v47  ;;  %v14594_v7 = vld [vmem:[%s20443_s6 + $0x48] sm:$0xff]  ;;  %9478 = vmatpush.bf16.msrb.mxu0 %v14605_v52  ;;  %v14604_v17 = vld [vmem:[%s20443_s6 + $0x98] sm:$0xff] }
 0x693   : > { %v18865_v21 = vsel %vm8382_vm11, %v8506_v14, %v8515_v10  ;;  %v8600_v18 = vpack.c.b16 %v8560_v46, %v8560_v46  ;;  %v8601_v61 = vpack.c.b16 %v8561_v16, %v8561_v16  ;;  %v8566_v45 = vunpack.c.l.b16 %v18786_v25  ;;  %9092 = vmatpush.bf16.msra.mxu2 %v14594_v7  ;;  %9857 = vmatpush.bf16.msrb.mxu1 %v14631_v55  ;;  %v14630_v46 = vld [vmem:[%s20443_s6 + $0xd8] sm:$0xff] }
 0x694   : > { %v18869_v58 = vsel %vm8382_vm11, %v8515_v10, %v18861_v54  ;;  %v8602_v2 = vpack.c.b16 %v8562_v19, %v8562_v19  ;;  %8678 = vst [vmem:[#allocation2 + $0x8] sm:$0xf] %v8598_v57  ;;  %v8567_v36 = vunpack.c.h.b16 %v18786_v25  ;;  %v8603_v31 = vpack.c.b16 %v8563_v44, %v8563_v44  ;;  %v14629_v57 = vld [vmem:[%s20443_s6 + $0xd0] sm:$0xff] }
 0x695   : > { %8679 = vst [vmem:[#allocation2 + $0xc] sm:$0xf] %v8599_v60  ;;  %v8568_v6 = vunpack.c.l.b16 %v18790_v15  ;;  %v8604_v50 = vpack.c.b16 %v8564_v26, %v8564_v26  ;;  %v8569_v32 = vunpack.c.h.b16 %v18790_v15  ;;  %v8605_v8 = vpack.c.b16 %v8565_v23, %v8565_v23 }
 0x696   : > { %8680 = vst [vmem:[#allocation2 + $0x10] sm:$0xf] %v8600_v18  ;;  %v8570_v0 = vunpack.c.l.b16 %v18800_v28  ;;  %v8606_v35 = vpack.c.b16 %v8566_v45, %v8566_v45  ;;  %v8571_v25 = vunpack.c.h.b16 %v18800_v28  ;;  %v8607_v56 = vpack.c.b16 %v8567_v36, %v8567_v36  ;;  %9479 = vmatpush.bf16.msrb.mxu0 %v14604_v17 }
 0x697   : > { %8681 = vst [vmem:[#allocation2 + $0x14] sm:$0xf] %v8601_v61  ;;  %v8572_v12 = vunpack.c.l.b16 %v18807_v27  ;;  %v8608_v51 = vpack.c.b16 %v8568_v6, %v8568_v6  ;;  %v8573_v15 = vunpack.c.h.b16 %v18807_v27  ;;  %v8609_v62 = vpack.c.b16 %v8569_v32, %v8569_v32  ;;  %9093 = vmatpush.bf16.msra.mxu2 %v14593_v49  ;;  %9858 = vmatpush.bf16.msrb.mxu1 %v14630_v46 }
 0x698   : > { %8682 = vst [vmem:[#allocation2 + $0x18] sm:$0xf] %v8602_v2  ;;  %v8574_v40 = vunpack.c.l.b16 %v18810_v13  ;;  %v8610_v14 = vpack.c.b16 %v8570_v0, %v8570_v0  ;;  %v8575_v28 = vunpack.c.h.b16 %v18810_v13  ;;  %v8611_v11 = vpack.c.b16 %v8571_v25, %v8571_v25  ;;  %v14602_v2 = vld [vmem:[%s20443_s6 + $0x88] sm:$0xff] }
 0x699   : > { %8683 = vst [vmem:[#allocation2 + $0x1c] sm:$0xf] %v8603_v31  ;;  %v8576_v27 = vunpack.c.l.b16 %v18824_v43  ;;  %v8612_v59 = vpack.c.b16 %v8572_v12, %v8572_v12  ;;  %v8577_v37 = vunpack.c.h.b16 %v18824_v43  ;;  %v8613_v42 = vpack.c.b16 %v8573_v15, %v8573_v15  ;;  %v14627_v15 = vld [vmem:[%s20443_s6 + $0xc0] sm:$0xff] }
 0x69a   : > { %8684 = vst [vmem:[#allocation2 + $0x20] sm:$0xf] %v8604_v50  ;;  %v8578_v13 = vunpack.c.l.b16 %v18830_v30  ;;  %v8614_v20 = vpack.c.b16 %v8574_v40, %v8574_v40  ;;  %v8579_v10 = vunpack.c.h.b16 %v18830_v30  ;;  %v8615_v39 = vpack.c.b16 %v8575_v28, %v8575_v28  ;;  %v14603_v30 = vld [vmem:[%s20443_s6 + $0x90] sm:$0xff] }
 0x69b   : > { %8685 = vst [vmem:[#allocation2 + $0x24] sm:$0xf] %v8605_v8  ;;  %v8580_v47 = vunpack.c.l.b16 %v18839_v9  ;;  %v8616_v43 = vpack.c.b16 %v8576_v27, %v8576_v27  ;;  %v8581_v16 = vunpack.c.h.b16 %v18839_v9  ;;  %v8617_v19 = vpack.c.b16 %v8577_v37, %v8577_v37  ;;  %9480 = vmatpush.bf16.msrb.mxu0 %v14603_v30  ;;  %9859 = vmatpush.bf16.msrb.mxu1 %v14629_v57 }
 0x69c   : > { %8686 = vst [vmem:[#allocation2 + $0x28] sm:$0xf] %v8606_v35  ;;  %v8582_v44 = vunpack.c.l.b16 %v18847_v34  ;;  %v8618_v26 = vpack.c.b16 %v8578_v13, %v8578_v13  ;;  %v8583_v23 = vunpack.c.h.b16 %v18847_v34  ;;  %v8619_v60 = vpack.c.b16 %v8579_v10, %v8579_v10  ;;  %v14628_v34 = vld [vmem:[%s20443_s6 + $0xc8] sm:$0xff] }
 0x69d   : > { %8687 = vst [vmem:[#allocation2 + $0x2c] sm:$0xf] %v8607_v56  ;;  %v8584_v9 = vunpack.c.l.b16 %v18853_v63  ;;  %v8620_v18 = vpack.c.b16 %v8580_v47, %v8580_v47  ;;  %v8585_v61 = vunpack.c.h.b16 %v18853_v63  ;;  %v8621_v45 = vpack.c.b16 %v8581_v16, %v8581_v16 }
 0x69e   : > { %8688 = vst [vmem:[#allocation2 + $0x30] sm:$0xf] %v8608_v51  ;;  %v8586_v36 = vunpack.c.l.b16 %v18865_v21  ;;  %v8622_v31 = vpack.c.b16 %v8582_v44, %v8582_v44  ;;  %v8534_v63 = vsel %vm8382_vm11, %v18861_v54, %v18484_v3  ;;  %v8587_v6 = vunpack.c.h.b16 %v18865_v21  ;;  %v14601_v3 = vld [vmem:[%s20443_s6 + $0x80] sm:$0xff]  ;;  %v13881_v54 = vld [vmem:[#allocation2 + $0x8] sm:$0xe]  ;;  %v14610_v21 = vld [vmem:[#allocation2 + $0x10] sm:$0xff] }
 0x69f   : > { %8689 = vst [vmem:[#allocation2 + $0x34] sm:$0xf] %v8609_v62  ;;  %v8623_v50 = vpack.c.b16 %v8583_v23, %v8583_v23  ;;  %v8588_v32 = vunpack.c.l.b16 %v18869_v58  ;;  %v8624_v8 = vpack.c.b16 %v8584_v9, %v8584_v9  ;;  %v8589_v7 = vunpack.c.h.b16 %v18869_v58  ;;  %9481 = vmatpush.bf16.msrb.mxu0 %v14602_v2  ;;  %9860 = vmatpush.bf16.msrb.mxu1 %v14628_v34  ;;  %v14609_v62 = vld [vmem:[#allocation2 + $0x8] sm:$0xf0]  ;;  %v14658_v34 = vld [vmem:[%s20443_s6 + $0x130] sm:$0xff] }
 0x6a0   : > { %8690 = vst [vmem:[#allocation2 + $0x38] sm:$0xf] %v8610_v14  ;;  %v8625_v0 = vpack.c.b16 %v8585_v61, %v8585_v61  ;;  %v8590_v35 = vunpack.c.l.b16 %v8534_v63  ;;  %v8626_v25 = vpack.c.b16 %v8586_v36, %v8586_v36  ;;  %v8591_v56 = vunpack.c.h.b16 %v8534_v63  ;;  %v14611_v13 = vld [vmem:[#allocation2 + $0x18] sm:$0xff] }
 0x6a1   : > { %8691 = vst [vmem:[#allocation2 + $0x3c] sm:$0xf] %v8611_v11  ;;  %v8627_v12 = vpack.c.b16 %v8587_v6, %v8587_v6  ;;  %v8628_v51 = vpack.c.b16 %v8588_v32, %v8588_v32  ;;  %v8556_v58 = vunpack.c.l.b16 %v20613_v5  ;;  %v8629_v49 = vpack.c.b16 %v8589_v7, %v8589_v7  ;;  %v14659_v11 = vld [vmem:[%s20443_s6 + $0x138] sm:$0xff] }
 0x6a2   : > { %8692 = vst [vmem:[#allocation2 + $0x40] sm:$0xf] %v8612_v59  ;;  %v8557_v40 = vunpack.c.h.b16 %v20613_v5  ;;  %v13882_v14 = vor.u32 %v14609_v62, %v13881_v54  ;;  %v9754_v28 = vrot.slane %v14610_v21, 1  ;;  %v8630_v52 = vpack.c.b16 %v8590_v35, %v8590_v35  ;;  %10368 = vmatpush.bf16.msrb.mxu2 %v14659_v11  ;;  %v14612_v61 = vld [vmem:[#allocation2 + $0x20] sm:$0xff]  ;;  %v14571_v7 = vld [vmem:[#allocation2 + $0x18] sm:$0xff]  ;;  %v14657_v11 = vld [vmem:[%s20443_s6 + $0x128] sm:$0xff] }
 0x6a3   : > { %8693 = vst [vmem:[#allocation2 + $0x44] sm:$0xf] %v8613_v42  ;;  %9482 = vmatpush.bf16.msrb.mxu0 %v14601_v3  ;;  %9861 = vmatpush.bf16.msrb.mxu1 %v14627_v15  ;;  %v8631_v27 = vpack.c.b16 %v8591_v56, %v8591_v56  ;;  %v8596_v55 = vpack.c.b16 %v8556_v58, %v8556_v58  ;;  %v14569_v42 = vld [vmem:[#allocation2 + $0x8] sm:$0xff]  ;;  %v9379_v35 = vrot.slane %v14571_v7, 1  ;;  %v8901_v56 = vshll.u32 %v14571_v7, 16  ;;  %v14572_v15 = vld [vmem:[#allocation2 + $0x20] sm:$0xff] }
 0x6a4   : > { %8694 = vst [vmem:[#allocation2 + $0x48] sm:$0xf] %v8614_v20  ;;  %v9753_v59 = vrot.slane %v13882_v14, 1  ;;  %v8597_v37 = vpack.c.b16 %v8557_v40, %v8557_v40  ;;  %v8885_v10 = vshll.u32 %v14569_v42, 16  ;;  %v9375_v47 = vrot.slane %v14569_v42, 1 }
 0x6a5   : > { %8695 = vst [vmem:[#allocation2 + $0x4c] sm:$0xf] %v8615_v39  ;;  %v8889_v2 = vshrl.u32 %v14569_v42, 16  ;;  %v8903_v21 = vrot.slane %v8901_v56, 1  ;;  %v8905_v40 = vshrl.u32 %v14571_v7, 16  ;;  %v8909_v14 = vshll.u32 %v14572_v15, 16 }
 0x6a6   : > { %8696 = vst [vmem:[#allocation2 + $0x50] sm:$0xf] %v8616_v43  ;;  %v9755_v5 = vsel %vm2992_vm2, %v9753_v59, %v9754_v28  ;;  %10369 = vmatpush.bf16.msrb.mxu2 %v14658_v34  ;;  %v14614_v62 = vld [vmem:[#allocation2 + $0x30] sm:$0xff] }
 0x6a7   : > { %8697 = vst [vmem:[#allocation2 + $0x54] sm:$0xf] %v8617_v19  ;;  %9862 = vmatmul.bf16.vlgmr.msrb.gmra.mxu1 %v9755_v5  ;;  %v9756_v19 = vrot.slane %v14611_v13, 1  ;;  %v8911_v59 = vrot.slane %v8909_v14, 1  ;;  %v14573_v5 = vld [vmem:[#allocation2 + $0x28] sm:$0xff] }
 0x6a8   : > { %8698 = vst [vmem:[#allocation2 + $0x58] sm:$0xf] %v8618_v26  ;;  %v8887_v26 = vrot.slane %v8885_v10, 1  ;;  %v9383_v13 = vrot.slane %v14573_v5, 1  ;;  %v8917_v10 = vshll.u32 %v14573_v5, 16  ;;  %v14672_v56 = vld [vmem:[#allocation2 + $0x38] sm:$0xff] }
 0x6a9   : > { %8699 = vst [vmem:[#allocation2 + $0x5c] sm:$0xf] %v8619_v60  ;;  %v9757_v60 = vsel %vm2992_vm2, %v9754_v28, %v9756_v19  ;;  %v9762_v28 = vrot.slane %v14614_v62, 1 }
 0x6aa   : > { %8700 = vst [vmem:[#allocation2 + $0x60] sm:$0xf] %v8620_v18  ;;  %v14570_v18 = vld [vmem:[#allocation2 + $0x10] sm:$0xff]  ;;  %v8891_v63 = vor.u32 %v8889_v2, %v8887_v26  ;;  %10370 = vmatpush.bf16.msrb.mxu2 %v14657_v11  ;;  %v18970_v2 = vld [vmem:[#allocation2 + $0x38] sm:$0xff] }
 0x6ab   : > { %8701 = vst [vmem:[#allocation2 + $0x64] sm:$0xf] %v8621_v45  ;;  %v9377_v45 = vrot.slane %v14570_v18, 1  ;;  %v8893_v36 = vshll.u32 %v14570_v18, 16  ;;  %v8937_v14 = vshrl.u32 %v18970_v2, 16 }
 0x6ac   : > { %8702 = vst [vmem:[#allocation2 + $0x68] sm:$0xf] %v8622_v31  ;;  %v9758_v31 = vrot.slane %v14612_v61, 1 }
 0x6ad   : > { %8703 = vst [vmem:[#allocation2 + $0x6c] sm:$0xf] %v8623_v50  ;;  %v9378_v6 = vsel %vm2992_vm2, %v9375_v47, %v9377_v45  ;;  %v8895_v50 = vrot.slane %v8893_v36, 1  ;;  %v9380_v54 = vsel %vm2992_vm2, %v9377_v45, %v9379_v35  ;;  %v18972_v36 = vld [vmem:[#allocation2 + $0x48] sm:$0xff] }
 0x6ae   : > { %8704 = vst [vmem:[#allocation2 + $0x70] sm:$0xf] %v8624_v8  ;;  %v9759_v32 = vsel %vm2992_vm2, %v9756_v19, %v9758_v31  ;;  %v14574_v19 = vld [vmem:[#allocation2 + $0x30] sm:$0xff] }
 0x6af   : > { %8705 = vst [vmem:[#allocation2 + $0x74] sm:$0xf] %v8625_v0  ;;  %v8896_v8 = vsel %vm2287_vm0, %v8891_v63, %v8895_v50  ;;  %v14613_v0 = vld [vmem:[#allocation2 + $0x28] sm:$0xff]  ;;  %v8929_v34 = vshrl.u32 %v14574_v19, 16  ;;  %v8933_v63 = vshll.u32 %v18970_v2, 16 }
 0x6b0   : > { %8706 = vst [vmem:[#allocation2 + $0x78] sm:$0xf] %v8626_v25  ;;  %v8897_v25 = vshrl.u32 %v14570_v18, 16 }
 0x6b1   : > { %8707 = vst [vmem:[#allocation2 + $0x7c] sm:$0xf] %v8627_v12  ;;  %v9760_v12 = vrot.slane %v14613_v0, 1  ;;  %v18983_v0 = vld [vmem:[#allocation2 + $0x40] sm:$0xff] }
 0x6b2   : > { %8708 = vst [vmem:[#allocation2 + $0x80] sm:$0xf] %v8628_v51  ;;  %v8899_v3 = vor.u32 %v8897_v25, %v8895_v50  ;;  %v9768_v50 = vrot.slane %v18972_v36, 1  ;;  %v18988_v25 = vld [vmem:[#allocation2 + $0x30] sm:$0xff]  ;;  %v14677_v62 = vld [vmem:[#allocation2 + $0x60] sm:$0xff] }
 0x6b3   : > { %8709 = vst [vmem:[#allocation2 + $0x84] sm:$0xf] %v8629_v49  ;;  %v9761_v51 = vsel %vm2992_vm2, %v9758_v31, %v9760_v12  ;;  %v9381_v49 = vrot.slane %v14572_v15, 1  ;;  %v9387_v31 = vrot.slane %v18970_v2, 1 }
 0x6b4   : > { %8710 = vst [vmem:[#allocation2 + $0x88] sm:$0xf] %v8630_v52  ;;  %v8904_v58 = vsel %vm2287_vm0, %v8899_v3, %v8903_v21  ;;  %v8907_v52 = vor.u32 %v8905_v40, %v8903_v21  ;;  %v14674_v21 = vld [vmem:[#allocation2 + $0x48] sm:$0xff]  ;;  %v9389_v40 = vrot.slane %v18983_v0, 1 }
 0x6b5   : > { %8711 = vst [vmem:[#allocation2 + $0x8c] sm:$0xf] %v8631_v27  ;;  %v9382_v27 = vsel %vm2992_vm2, %v9379_v35, %v9381_v49 }
 0x6b6   : > { %8676 = vst [vmem:[#allocation2] sm:$0xf] %v8596_v55  ;;  %v14679_v11 = vld [vmem:[#allocation2 + $0x70] sm:$0xff] }
 0x6b7   : > { %8677 = vst [vmem:[#allocation2 + $0x4] sm:$0xf] %v8597_v37  ;;  %9867 = vmatmul.bf16.gmra.mxu1 %v9757_v60  ;;  %v8912_v37 = vsel %vm2287_vm0, %v8907_v52, %v8911_v59  ;;  %v20550_v52 = vrot.slane %v18988_v25, 3 }
 0x6b8   : > { %8716 = vst [vmem:[#allocation2 + $0xa0] sm:$0x3] %v8596_v55  ;;  %v9763_v55 = vsel %vm2992_vm2, %v9760_v12, %v9762_v28 }
 0x6b9   : > { %20758 = vst [vmem:[#allocation21_spill] sm:$0xff] %v18988_v25 }
 0x6bd   : > { %v14728_v20 = vld [vmem:[#allocation2] sm:$0xe] }
 0x6be   : > { %v14718_v39 = vld [vmem:[#allocation2] sm:$0xff]  }
 0x6bf   : > { %v14727_v17 = vld [vmem:[#allocation2] sm:$0xf0]  ;;  %v8878_v43 = vshrl.u32 %v14718_v39, 16  ;;  %v8880_v46 = vshll.u32 %v14718_v39, 16  ;;  %9262 = vmatmul.bf16.vlgmr.msrb.gmra.mxu3 %v14718_v39  ;;  %v11147_v12 = vld [vmem:[#allocation2 + $0xa0] sm:$0x3] }
 0x6c0   : > { %v14729_v16 = vor.u32 %v14728_v20, %v14727_v17  ;;  %v8913_v20 = vshrl.u32 %v14572_v15, 16 }
 0x6c1   : > { %v8882_v30 = vrot.slane %v8880_v46, 1 }
 0x6c2   : > { %v9374_v44 = vrot.slane %v14729_v16, 1  ;;  %v8915_v17 = vor.u32 %v8913_v20, %v8911_v59  ;;  %v8941_v59 = vshll.u32 %v18983_v0, 16 }
 0x6c3   : > { %v8883_v57 = vor.u32 %v8882_v30, %v8878_v43  ;;  %v8919_v43 = vrot.slane %v8917_v10, 1  ;;  %v14616_v30 = vld [vmem:[#allocation2 + $0x40] sm:$0xff]  ;;  %v14683_v10 = vld [vmem:[#allocation2 + $0x90] sm:$0xff] }
 0x6c4   : > { %v9376_v23 = vsel %vm2992_vm2, %v9374_v44, %v9375_v47  ;;  %v9384_v47 = vsel %vm2992_vm2, %v9381_v49, %v9383_v13  ;;  %v9385_v44 = vrot.slane %v14574_v19, 1  ;;  %v11166_v49 = vunpack.c.l.b16 %v11147_v12 }
 0x6c5   : > { %9483 = vmatmul.bf16.vlgmr.msrb.gmra.mxu0 %v9376_v23  ;;  %v8888_v9 = vsel %vm2287_vm0, %v8883_v57, %v8887_v26  ;;  %v8920_v16 = vsel %vm2287_vm0, %v8915_v17, %v8919_v43  ;;  %v8921_v26 = vshrl.u32 %v14573_v5, 16  ;;  %v8925_v57 = vshll.u32 %v14574_v19, 16 }
 0x6c6   : > { %9094 = vmatmul.bf16.vlgmr.msra.gmra.mxu2 %v8888_v9  ;;  %v9766_v23 = vrot.slane %v14616_v30, 1  ;;  %v9386_v9 = vsel %vm2992_vm2, %v9383_v13, %v9385_v44  ;;  %v11573_v13 = vrot.slane %v14674_v21, 3  ;;  %v11579_v30 = vrot.slane %v14677_v62, 3 }
 0x6c7   : > { %9872 = vmatmul.bf16.gmra.mxu1 %v9759_v32  ;;  %v8923_v60 = vor.u32 %v8921_v26, %v8919_v43 }
 0x6c8   : > { %v9769_v35 = vsel %vm2992_vm2, %v9766_v23, %v9768_v50 }
 0x6cf   : > { %9267 = vmatmul.bf16.gmra.mxu3 %v14569_v42  ;;  %v14615_v42 = vld [vmem:[#allocation2 + $0x38] sm:$0xff] }
 0x6d0   : > { %v9764_v39 = vrot.slane %v14615_v42, 1 }
 0x6d2   : > { %v9765_v46 = vsel %vm2992_vm2, %v9762_v28, %v9764_v39  ;;  %v9767_v61 = vsel %vm2992_vm2, %v9764_v39, %v9766_v23  ;;  %v14678_v28 = vld [vmem:[#allocation2 + $0x68] sm:$0xff]  ;;  %v14684_v39 = vld [vmem:[#allocation2 + $0x98] sm:$0xff]  ;;  %v11583_v23 = vrot.slane %v14679_v11, 3 }
 0x6d5   : > { %9488 = vmatmul.bf16.gmra.mxu0 %v9378_v6  ;;  %v14656_v6 = vld [vmem:[%s20443_s6 + $0x120] sm:$0xff] }
 0x6d6   : > { %9099 = vmatmul.bf16.gmra.mxu2 %v8896_v8  ;;  %v9388_v8 = vsel %vm2992_vm2, %v9385_v44, %v9387_v31 }
 0x6d7   : > { %9877 = vmatmul.bf16.gmra.mxu1 %v9761_v51  ;;  %10371 = vmatpush.bf16.msrb.mxu2 %v14656_v6  ;;  %v18991_v51 = vld [vmem:[#allocation2 + $0x50] sm:$0xff]  ;;  %v11593_v6 = vrot.slane %v14684_v39, 3 }
 0x6d8   : > { %v9770_v20 = vrot.slane %v18991_v51, 1 }
 0x6da   : > { %v9771_v62 = vsel %vm2992_vm2, %v9768_v50, %v9770_v20 }
 0x6df   : > { %9272 = vmatmul.bf16.gmra.mxu3 %v14570_v18  ;;  %v8927_v18 = vrot.slane %v8925_v57, 1  ;;  %v11581_v57 = vrot.slane %v14678_v28, 3  ;;  %v14619_v28 = vld [vmem:[#allocation2 + $0x58] sm:$0xff] }
 0x6e1   : > { %v8928_v45 = vsel %vm2287_vm0, %v8923_v60, %v8927_v18  ;;  %v8931_v32 = vor.u32 %v8929_v34, %v8927_v18  ;;  %v19024_v34 = vsel %vm7416_vm6, %v11581_v57, %v11583_v23 }
 0x6e2   : > { %20766 = vst [vmem:[#allocation16_spill] sm:$0xff] %v19024_v34  ;;  %v14685_v34 = vld [vmem:[%s20443_s6 + $0x180] sm:$0xff] }
 0x6e5   : > { %9493 = vmatmul.bf16.gmra.mxu0 %v9380_v54  ;;  %v14673_v54 = vld [vmem:[#allocation2 + $0x40] sm:$0xff] }
 0x6e6   : > { %9104 = vmatmul.bf16.gmra.mxu2 %v8904_v58  ;;  %v14675_v58 = vld [vmem:[#allocation2 + $0x50] sm:$0xff]  ;;  %v11571_v42 = vrot.slane %v14673_v54, 3 }
 0x6e7   : > { %9882 = vmatmul.bf16.gmra.mxu1 %v9763_v55  ;;  %v14680_v55 = vld [vmem:[#allocation2 + $0x78] sm:$0xff] }
 0x6ef   : > { %9277 = vmatmul.bf16.gmra.mxu3 %v14571_v7  ;;  %v8935_v7 = vrot.slane %v8933_v63, 1  ;;  %v11591_v63 = vrot.slane %v14683_v10, 3 }
 0x6f1   : > { %v8936_v3 = vsel %vm2287_vm0, %v8931_v32, %v8935_v7  ;;  %v8939_v54 = vor.u32 %v8937_v14, %v8935_v7  ;;  %v14577_v14 = vld [vmem:[#allocation2 + $0x48] sm:$0xff] }
 0x6f2   : > { %v9391_v11 = vrot.slane %v14577_v14, 1 }
 0x6f5   : > { %9498 = vmatmul.bf16.gmra.mxu0 %v9382_v27  ;;  %v11569_v27 = vrot.slane %v14672_v56, 3 }
 0x6f6   : > { %9109 = vmatmul.bf16.gmra.mxu2 %v8912_v37  ;;  %v14681_v37 = vld [vmem:[#allocation2 + $0x80] sm:$0xff] }
 0x6f7   : > { %9887 = vmatmul.bf16.gmra.mxu1 %v9765_v46  ;;  %v19001_v17 = vsel %vm7416_vm6, %v20550_v52, %v11569_v27  ;;  %v19003_v46 = vpack.c.b16 %v11166_v49, %v11166_v49  ;;  %v11587_v18 = vrot.slane %v14681_v37, 3  ;;  %v14655_v37 = vld [vmem:[%s20443_s6 + $0x118] sm:$0xff] }
 0x6f8   : > { %20759 = vst [vmem:[#allocation24_spill] sm:$0xff] %v19001_v17  ;;  %10372 = vmatpush.bf16.msrb.mxu2 %v14655_v37 }
 0x6f9   : > { %v11595_v56 = vrot.slane %v19003_v46, 3 }
 0x6fb   : > { %v19046_v51 = vsel %vm7416_vm6, %v11593_v6, %v11595_v56 }
 0x6fc   : > { %20772 = vst [vmem:[#allocation53_spill] sm:$0xff] %v19046_v51 }
 0x6ff   : > { %9282 = vmatmul.bf16.gmra.mxu3 %v14572_v15  ;;  %v14676_v15 = vld [vmem:[#allocation2 + $0x58] sm:$0xff] }
 0x700   : > { %v11577_v43 = vrot.slane %v14676_v15, 3  ;;  %v8943_v15 = vrot.slane %v8941_v59, 1 }
 0x702   : > { %v19018_v60 = vsel %vm7416_vm6, %v11577_v43, %v11579_v30  ;;  %v8944_v7 = vsel %vm2287_vm0, %v8939_v54, %v8943_v15 }
 0x703   : > { %20764 = vst [vmem:[#allocation31_spill] sm:$0xff] %v19018_v60 }
 0x705   : > { %9503 = vmatmul.bf16.gmra.mxu0 %v9384_v47  ;;  %v11575_v47 = vrot.slane %v14675_v58, 3  ;;  %v9390_v58 = vsel %vm2992_vm2, %v9387_v31, %v9389_v40  ;;  %v8949_v31 = vshll.u32 %v14577_v14, 16 }
 0x706   : > { %9114 = vmatmul.bf16.gmra.mxu2 %v8920_v16  ;;  %v19006_v16 = vsel %vm7416_vm6, %v11569_v27, %v11571_v42  ;;  %v9772_v27 = vrot.slane %v14619_v28, 1 }
 0x707   : > { %9892 = vmatmul.bf16.gmra.mxu1 %v9767_v61  ;;  %20760 = vst [vmem:[#allocation6_spill] sm:$0xff] %v19006_v16  ;;  %v19012_v44 = vsel %vm7416_vm6, %v11573_v13, %v11575_v47  ;;  %v19015_v26 = vsel %vm7416_vm6, %v11575_v47, %v11577_v43 }
 0x708   : > { %20762 = vst [vmem:[#allocation29_spill] sm:$0xff] %v19012_v44 }
 0x709   : > { %20763 = vst [vmem:[#allocation7_spill] sm:$0xff] %v19015_v26  ;;  %v19325_v26 = vld [vmem:[#allocation2 + $0x20] sm:$0xff] }
 0x70f   : > { %9287 = vmatmul.bf16.gmra.mxu3 %v14573_v5  ;;  %v14682_v5 = vld [vmem:[#allocation2 + $0x88] sm:$0xff] }
 0x710   : > { %v11589_v61 = vrot.slane %v14682_v5, 3  ;;  %v9392_v5 = vsel %vm2992_vm2, %v9389_v40, %v9391_v11 }
 0x712   : > { %v19038_v12 = vsel %vm7416_vm6, %v11589_v61, %v11591_v63 }
 0x713   : > { %20770 = vst [vmem:[#allocation51_spill] sm:$0xff] %v19038_v12 }
 0x715   : > { %9508 = vmatmul.bf16.gmra.mxu0 %v9386_v9  ;;  %v11585_v9 = vrot.slane %v14680_v55, 3 }
 0x716   : > { %9119 = vmatmul.bf16.gmra.mxu2 %v8928_v45  ;;  %v19021_v45 = vsel %vm7416_vm6, %v11579_v30, %v11581_v57 }
 0x717   : > { %9897 = vmatmul.bf16.gmra.mxu1 %v9769_v35  ;;  %20765 = vst [vmem:[#allocation32_spill] sm:$0xff] %v19021_v45  ;;  %v19028_v32 = vsel %vm7416_vm6, %v11583_v23, %v11585_v9  ;;  %v19034_v35 = vsel %vm7416_vm6, %v11587_v18, %v11589_v61  ;;  %v14578_v23 = vld [vmem:[#allocation2 + $0x50] sm:$0xff]  ;;  %v14708_v45 = vld [vmem:[%s20443_s6 + $0x238] sm:$0xff] }
 0x718   : > { %20767 = vst [vmem:[#allocation48_spill] sm:$0xff] %v19028_v32  ;;  %v9393_v40 = vrot.slane %v14578_v23, 1  ;;  %v8957_v61 = vshll.u32 %v14578_v23, 16  ;;  %v10503_v32 = vld [vmem:[#allocation2 + $0x8] sm:$0xc] }
 0x719   : > { %20769 = vst [vmem:[#allocation50_spill] sm:$0xff] %v19034_v35 }
 0x71f   : > { %9292 = vmatmul.bf16.gmra.mxu3 %v14574_v19  ;;  %v19009_v19 = vsel %vm7416_vm6, %v11571_v42, %v11573_v13  ;;  %v8951_v42 = vrot.slane %v8949_v31, 1  ;;  %v9773_v13 = vsel %vm2992_vm2, %v9770_v20, %v9772_v27 }
 0x720   : > { %20761 = vst [vmem:[#allocation10_spill] sm:$0xff] %v19009_v19 }
 0x724   : > { %v19043_v21 = vpop.f32.mrf.mxu1 }
 0x725   : > { %9513 = vmatmul.bf16.gmra.mxu0 %v9388_v8  ;;  %v19031_v8 = vsel %vm7416_vm6, %v11585_v9, %v11587_v18  ;;  %v14620_v9 = vld [vmem:[#allocation2 + $0x60] sm:$0xff]  ;;  %v8953_v18 = vshrl.u32 %v14577_v14, 16 }
 0x726   : > { %9124 = vmatmul.bf16.gmra.mxu2 %v8936_v3  ;;  %20768 = vst [vmem:[#allocation49_spill] sm:$0xff] %v19031_v8  ;;  %v19041_v3 = vsel %vm7416_vm6, %v11591_v63, %v11593_v6  ;;  %v9774_v20 = vrot.slane %v14620_v9, 1  ;;  %v9989_v8 = vld [vmem:[#allocation2 + $0x8] sm:$0xe] }
 0x727   : > { %20771 = vst [vmem:[#allocation52_spill] sm:$0xff] %v19041_v3  ;;  %9902 = vmatmul.bf16.gmra.mxu1 %v9771_v62  ;;  %v8955_v56 = vor.u32 %v8953_v18, %v8951_v42  ;;  %v9394_v62 = vsel %vm2992_vm2, %v9391_v11, %v9393_v40 }
 0x728   : > { %v9775_v28 = vsel %vm2992_vm2, %v9772_v27, %v9774_v20 }
 0x72c   : > { %v19057_v49 = vpop.f32.mrf.mxu1 }
 0x72f   : > { %9297 = vmatmul.bf16.gmra.mxu3 %v18970_v2  ;;  %v8945_v2 = vshrl.u32 %v18983_v0, 16 }
 0x731   : > { %v8947_v36 = vor.u32 %v8945_v2, %v8943_v15 }
 0x733   : > { %v8952_v10 = vsel %vm2287_vm0, %v8947_v36, %v8951_v42  ;;  %v14621_v42 = vld [vmem:[#allocation2 + $0x68] sm:$0xff] }
 0x734   : > { %v19061_v55 = vpop.f32.mrf.mxu1 }
 0x735   : > { %9518 = vmatmul.bf16.gmra.mxu0 %v9390_v58 }
 0x736   : > { %9129 = vmatmul.bf16.gmra.mxu2 %v8944_v7  ;;  %v8959_v7 = vrot.slane %v8957_v61, 1 }
 0x737   : > { %9907 = vmatmul.bf16.gmra.mxu1 %v9773_v13 }
 0x738   : > { %v8960_v31 = vsel %vm2287_vm0, %v8955_v56, %v8959_v7 }
 0x73c   : > { %v19071_v57 = vpop.f32.mrf.mxu1 }
 0x73f   : > { %9302 = vmatmul.bf16.gmra.mxu3 %v18983_v0 }
 0x742   : > { %v9484_v59 = vpop.f32.mrf.mxu0  ;;  %v9263_v50 = vpop.f32.mrf.mxu3 }
 0x744   : > { %v19073_v15 = vpop.f32.mrf.mxu1 }
 0x745   : > { %9523 = vmatmul.bf16.gmra.mxu0 %v9392_v5  ;;  %v14579_v5 = vld [vmem:[#allocation2 + $0x58] sm:$0xff] }
 0x746   : > { %9134 = vmatmul.bf16.gmra.mxu2 %v8952_v10  ;;  %v9395_v11 = vrot.slane %v14579_v5, 1  ;;  %v8961_v10 = vshrl.u32 %v14578_v23, 16  ;;  %v8965_v27 = vshll.u32 %v14579_v5, 16 }
 0x747   : > { %9912 = vmatmul.bf16.gmra.mxu1 %v9775_v28 }
 0x748   : > { %v9396_v56 = vsel %vm2992_vm2, %v9393_v40, %v9395_v11 }
 0x749   : > { %v9095_v39 = vpop.f32.mrf.mxu2 }
 0x74a   : > { %v9486_v47 = vpop.f32.mrf.mxu0  ;;  %v9265_v43 = vpop.f32.mrf.mxu3  ;;  %v9264_v30 = vadd.f32 %v9263_v50, %v9095_v39  ;;  %v9776_v39 = vrot.slane %v14621_v42, 1  ;;  %v8969_v42 = vshrl.u32 %v14579_v5, 16 }
 0x74c   : > { %v9574_v0 = vadd.f32 %v9484_v59, %v9264_v30  ;;  %v19078_v37 = vpop.f32.mrf.mxu1  ;;  %v8963_v30 = vor.u32 %v8961_v10, %v8959_v7 }
 0x74f   : > { %9307 = vmatmul.bf16.gmra.mxu3 %v14577_v14 }
 0x751   : > { %v9097_v63 = vpop.f32.mrf.mxu2 }
 0x752   : > { %v9489_v6 = vpop.f32.mrf.mxu0  ;;  %v9268_v54 = vpop.f32.mrf.mxu3  ;;  %v9266_v58 = vadd.f32 %v9265_v43, %v9097_v63  ;;  %v14654_v63 = vld [vmem:[%s20443_s6 + $0x110] sm:$0xff] }
 0x753   : > { %10373 = vmatpush.bf16.msrb.mxu2 %v14654_v63 }
 0x754   : > { %v9575_v2 = vadd.f32 %v9486_v47, %v9266_v58  ;;  %v19082_v61 = vpop.f32.mrf.mxu1 }
 0x755   : > { %9528 = vmatmul.bf16.gmra.mxu0 %v9394_v62 }
 0x756   : > { %9139 = vmatmul.bf16.gmra.mxu2 %v8960_v31 }
 0x759   : > { %v9100_v14 = vpop.f32.mrf.mxu2 }
 0x75a   : > { %v9491_v59 = vpop.f32.mrf.mxu0  ;;  %v9270_v36 = vpop.f32.mrf.mxu3  ;;  %v9269_v50 = vadd.f32 %v9268_v54, %v9100_v14  ;;  %v9777_v54 = vsel %vm2992_vm2, %v9774_v20, %v9776_v39  ;;  %v19097_v20 = vadd.f32 %v19043_v21, %v9574_v0  ;;  %v19107_v0 = vadd.f32 %v19057_v49, %v9575_v2 }
 0x75b   : > { %9917 = vmatmul.bf16.gmra.mxu1 %v9777_v54 }
 0x75c   : > { %v19080_v13 = vadd.f32 %v9489_v6, %v9269_v50  ;;  %v8967_v6 = vrot.slane %v8965_v27, 1  ;;  %v19092_v14 = vpop.f32.mrf.mxu1  ;;  %v14622_v50 = vld [vmem:[#allocation2 + $0x70] sm:$0xff] }
 0x75d   : > { %v9778_v27 = vrot.slane %v14622_v50, 1 }
 0x75e   : > { %v19115_v2 = vadd.f32 %v19061_v55, %v19080_v13 }
 0x75f   : > { %9312 = vmatmul.bf16.gmra.mxu3 %v14578_v23  ;;  %v8968_v23 = vsel %vm2287_vm0, %v8963_v30, %v8967_v6 }
 0x761   : > { %v9102_v47 = vpop.f32.mrf.mxu2 }
 0x762   : > { %v9494_v43 = vpop.f32.mrf.mxu0  ;;  %v9273_v9 = vpop.f32.mrf.mxu3  ;;  %v9271_v18 = vadd.f32 %v9270_v36, %v9102_v47  ;;  %v14580_v36 = vld [vmem:[#allocation2 + $0x60] sm:$0xff] }
 0x763   : > { %v8973_v10 = vshll.u32 %v14580_v36, 16 }
 0x764   : > { %v19089_v58 = vadd.f32 %v9491_v59, %v9271_v18  ;;  %v9397_v59 = vrot.slane %v14580_v36, 1  ;;  %v8971_v18 = vor.u32 %v8969_v42, %v8967_v6  ;;  %v14623_v42 = vld [vmem:[#allocation2 + $0x78] sm:$0xff] }
 0x765   : > { %9533 = vmatmul.bf16.gmra.mxu0 %v9396_v56 }
 0x766   : > { %9144 = vmatmul.bf16.gmra.mxu2 %v8968_v23  ;;  %v9398_v54 = vsel %vm2992_vm2, %v9395_v11, %v9397_v59  ;;  %v8975_v23 = vrot.slane %v8973_v10, 1  ;;  %v14581_v11 = vld [vmem:[#allocation2 + $0x68] sm:$0xff]  ;;  %v19126_v55 = vadd.f32 %v19071_v57, %v19089_v58 }
 0x768   : > { %v8976_v21 = vsel %vm2287_vm0, %v8971_v18, %v8975_v23 }
 0x769   : > { %v9105_v62 = vpop.f32.mrf.mxu2 }
 0x76a   : > { %v9496_v7 = vpop.f32.mrf.mxu0  ;;  %v9275_v28 = vpop.f32.mrf.mxu3  ;;  %v9274_v31 = vadd.f32 %v9273_v9, %v9105_v62 }
 0x76b   : > { %v19099_v9 = vpop.f32.mrf.mxu1 }
 0x76c   : > { %v19094_v40 = vadd.f32 %v9494_v43, %v9274_v31  ;;  %v9779_v43 = vsel %vm2992_vm2, %v9776_v39, %v9778_v27  ;;  %v9399_v39 = vrot.slane %v14581_v11, 1 }
 0x76d   : > { %9922 = vmatmul.bf16.gmra.mxu1 %v9779_v43 }
 0x76f   : > { %9317 = vmatmul.bf16.gmra.mxu3 %v14579_v5 }
 0x771   : > { %v9107_v47 = vpop.f32.mrf.mxu2 }
 0x772   : > { %v9499_v30 = vpop.f32.mrf.mxu0  ;;  %v9278_v63 = vpop.f32.mrf.mxu3  ;;  %v9276_v56 = vadd.f32 %v9275_v28, %v9107_v47  ;;  %v8981_v47 = vshll.u32 %v14581_v11, 16 }
 0x773   : > { %v19109_v50 = vpop.f32.mrf.mxu1 }
 0x774   : > { %v19103_v62 = vadd.f32 %v9496_v7, %v9276_v56  ;;  %v8977_v7 = vshrl.u32 %v14580_v36, 16  ;;  %v9780_v56 = vrot.slane %v14623_v42, 1 }
 0x775   : > { %9538 = vmatmul.bf16.gmra.mxu0 %v9398_v54 }
 0x776   : > { %9149 = vmatmul.bf16.gmra.mxu2 %v8976_v21  ;;  %v8979_v49 = vor.u32 %v8977_v7, %v8975_v23 }
 0x779   : > { %v9110_v5 = vpop.f32.mrf.mxu2 }
 0x77a   : > { %v9501_v6 = vpop.f32.mrf.mxu0  ;;  %v9280_v28 = vpop.f32.mrf.mxu3  ;;  %v9279_v31 = vadd.f32 %v9278_v63, %v9110_v5  ;;  %v9400_v5 = vsel %vm2992_vm2, %v9397_v59, %v9399_v39  ;;  %v14653_v59 = vld [vmem:[%s20443_s6 + $0x108] sm:$0xff] }
 0x77b   : > { %v19117_v21 = vpop.f32.mrf.mxu1  ;;  %10374 = vmatpush.bf16.msrb.mxu2 %v14653_v59 }
 0x77c   : > { %v19111_v10 = vadd.f32 %v9499_v30, %v9279_v31  ;;  %v8983_v30 = vrot.slane %v8981_v47, 1  ;;  %v9781_v31 = vsel %vm2992_vm2, %v9778_v27, %v9780_v56  ;;  %v14582_v27 = vld [vmem:[#allocation2 + $0x70] sm:$0xff] }
 0x77d   : > { %9927 = vmatmul.bf16.gmra.mxu1 %v9781_v31 }
 0x77f   : > { %9322 = vmatmul.bf16.gmra.mxu3 %v14580_v36  ;;  %v8984_v36 = vsel %vm2287_vm0, %v8979_v49, %v8983_v30  ;;  %v8985_v49 = vshrl.u32 %v14581_v11, 16 }
 0x781   : > { %v9112_v18 = vpop.f32.mrf.mxu2  ;;  %v8987_v31 = vor.u32 %v8985_v49, %v8983_v30 }
 0x782   : > { %v9504_v54 = vpop.f32.mrf.mxu0  ;;  %v9283_v43 = vpop.f32.mrf.mxu3  ;;  %v9281_v63 = vadd.f32 %v9280_v28, %v9112_v18  ;;  %v9401_v18 = vrot.slane %v14582_v27, 1 }
 0x783   : > { %v19128_v7 = vpop.f32.mrf.mxu1 }
 0x784   : > { %v19121_v52 = vadd.f32 %v9501_v6, %v9281_v63  ;;  %v14624_v6 = vld [vmem:[#allocation2 + $0x80] sm:$0xff]  ;;  %v8989_v63 = vshll.u32 %v14582_v27, 16  ;;  %v9402_v1 = vsel %vm2992_vm2, %v9399_v39, %v9401_v18  ;;  %v19148_v39 = vld [vmem:[#allocation2 + $0x78] sm:$0xff] }
 0x785   : > { %9543 = vmatmul.bf16.gmra.mxu0 %v9400_v5  ;;  %v9782_v5 = vrot.slane %v14624_v6, 1 }
 0x786   : > { %9154 = vmatmul.bf16.gmra.mxu2 %v8984_v36  ;;  %v8991_v29 = vrot.slane %v8989_v63, 1  ;;  %v14667_v63 = vld [vmem:[%s20443_s6 + $0x178] sm:$0xff] }
 0x787   : > { %v9783_v53 = vsel %vm2992_vm2, %v9780_v56, %v9782_v5  ;;  %v19150_v56 = vld [vmem:[#allocation2 + $0x88] sm:$0xff]  ;;  %10627 = vmatpush.bf16.msra.mxu3 %v14667_v63  ;;  %v14664_v63 = vld [vmem:[%s20443_s6 + $0x160] sm:$0xff] }
 0x789   : > { %v9115_v23 = vpop.f32.mrf.mxu2 }
 0x78a   : > { %v9506_v42 = vpop.f32.mrf.mxu0  ;;  %v9285_v13 = vpop.f32.mrf.mxu3  ;;  %v9284_v28 = vadd.f32 %v9283_v43, %v9115_v23 }
 0x78b   : > { %v19135_v23 = vpop.f32.mrf.mxu1 }
 0x78c   : > { %v19133_v47 = vadd.f32 %v9504_v54, %v9284_v28  ;;  %v19144_v28 = vadd.f32 %v19073_v15, %v19094_v40  ;;  %v8993_v15 = vshrl.u32 %v14582_v27, 16  ;;  %v8997_v40 = vshll.u32 %v19148_v39, 16 }
 0x78d   : > { %9932 = vmatmul.bf16.gmra.mxu1 %v9783_v53  ;;  %v19156_v53 = vadd.f32 %v19078_v37, %v19103_v62  ;;  %v14666_v62 = vld [vmem:[%s20443_s6 + $0x170] sm:$0xff] }
 0x78e   : > { %10628 = vmatpush.bf16.msra.mxu3 %v14666_v62  ;;  %v14652_v62 = vld [vmem:[%s20443_s6 + $0x100] sm:$0xff] }
 0x78f   : > { %9327 = vmatmul.bf16.gmra.mxu3 %v14581_v11  ;;  %v8992_v11 = vsel %vm2287_vm0, %v8987_v31, %v8991_v29  ;;  %10375 = vmatpush.bf16.msrb.mxu2 %v14652_v62 }
 0x791   : > { %v9117_v57 = vpop.f32.mrf.mxu2 }
 0x792   : > { %v9509_v58 = vpop.f32.mrf.mxu0  ;;  %v9288_v43 = vpop.f32.mrf.mxu3  ;;  %v9286_v36 = vadd.f32 %v9285_v13, %v9117_v57  ;;  %v9784_v57 = vrot.slane %v19150_v56, 1 }
 0x793   : > { %v19146_v49 = vpop.f32.mrf.mxu1  ;;  %11663 = vmatpush.bf16.msra.mxu2 %v14708_v45 }
 0x794   : > { %v19139_v54 = vadd.f32 %v9506_v42, %v9286_v36 }
 0x795   : > { %9548 = vmatmul.bf16.gmra.mxu0 %v9402_v1  ;;  %v9403_v1 = vrot.slane %v19148_v39, 1 }
 0x796   : > { %9159 = vmatmul.bf16.gmra.mxu2 %v8992_v11 }
 0x799   : > { %v9120_v30 = vpop.f32.mrf.mxu2 }
 0x79a   : > { %v9511_v13 = vpop.f32.mrf.mxu0  ;;  %v9290_v59 = vpop.f32.mrf.mxu3  ;;  %v9289_v6 = vadd.f32 %v9288_v43, %v9120_v30  ;;  %v8999_v30 = vrot.slane %v8997_v40, 1 }
 0x79b   : > { %v19164_v37 = vpop.f32.mrf.mxu1 }
 0x79c   : > { %v19152_v42 = vadd.f32 %v9509_v58, %v9289_v6  ;;  %v8995_v58 = vor.u32 %v8993_v15, %v8991_v29  ;;  %v9785_v6 = vsel %vm2992_vm2, %v9782_v5, %v9784_v57 }
 0x79d   : > { %9937 = vmatmul.bf16.gmra.mxu1 %v9785_v6 }
 0x79e   : > { %v9000_v29 = vsel %vm2287_vm0, %v8995_v58, %v8999_v30  ;;  %v19188_v58 = vld [vmem:[#allocation2 + $0x90] sm:$0xff] }
 0x79f   : > { %9332 = vmatmul.bf16.gmra.mxu3 %v14582_v27  ;;  %v9404_v27 = vsel %vm2992_vm2, %v9401_v18, %v9403_v1  ;;  %v19179_v18 = vadd.f32 %v19082_v61, %v19111_v10  ;;  %v9001_v10 = vshrl.u32 %v19148_v39, 16 }
 0x7a1   : > { %v9122_v31 = vpop.f32.mrf.mxu2 }
 0x7a2   : > { %v9514_v43 = vpop.f32.mrf.mxu0  ;;  %v9293_v36 = vpop.f32.mrf.mxu3  ;;  %v9291_v11 = vadd.f32 %v9290_v59, %v9122_v31  ;;  %v14665_v59 = vld [vmem:[%s20443_s6 + $0x168] sm:$0xff]  ;;  %v19186_v31 = vld [vmem:[#allocation2 + $0x80] sm:$0xff] }
 0x7a3   : > { %10629 = vmatpush.bf16.msra.mxu3 %v14665_v59  ;;  %v19181_v40 = vpop.f32.mrf.mxu1  ;;  %v9003_v59 = vor.u32 %v9001_v10, %v8999_v30  ;;  %v14700_v30 = vld [vmem:[%s20443_s6 + $0x1f8] sm:$0xff]  ;;  %v14662_v10 = vld [vmem:[%s20443_s6 + $0x150] sm:$0xff]  ;;  %v20773_v62 = vrot.slane %v19186_v31, 1 }
 0x7a4   : > { %v19171_v24 = vadd.f32 %v9511_v13, %v9291_v11  ;;  %11404 = vmatpush.bf16.msra.mxu1 %v14700_v30  ;;  %v14690_v30 = vld [vmem:[%s20443_s6 + $0x1a8] sm:$0xff] }
 0x7a5   : > { %9553 = vmatmul.bf16.gmra.mxu0 %v9404_v27  ;;  %v14663_v27 = vld [vmem:[%s20443_s6 + $0x158] sm:$0xff] }
 0x7a6   : > { %9164 = vmatmul.bf16.gmra.mxu2 %v9000_v29 }
 0x7a7   : > { %10630 = vmatpush.bf16.msra.mxu3 %v14664_v63 }
 0x7a9   : > { %v9125_v56 = vpop.f32.mrf.mxu2 }
 0x7aa   : > { %v9516_v15 = vpop.f32.mrf.mxu0  ;;  %v9295_v5 = vpop.f32.mrf.mxu3  ;;  %v9294_v13 = vadd.f32 %v9293_v36, %v9125_v56  ;;  %v9005_v36 = vshll.u32 %v19186_v31, 16  ;;  %v19203_v56 = vld [vmem:[#allocation2 + $0x88] sm:$0xff]  }
 0x7ab   : > { %10631 = vmatpush.bf16.msra.mxu3 %v14663_v27  ;;  %v19211_v38 = vpop.f32.mrf.mxu1 }
 0x7ac   : > { %v19190_v11 = vadd.f32 %v9514_v43, %v9294_v13  ;;  %v19205_v13 = vld [vmem:[#allocation2 + $0x88] sm:$0xf]   ;;  %v14692_v43 = vld [vmem:[%s20443_s6 + $0x1b8] sm:$0xff] }
 0x7ad   : > { %11012 = vmatpush.bf16.msra.mxu0 %v14692_v43 }
 0x7af   : > { %9337 = vmatmul.bf16.gmra.mxu3 %v19148_v39  ;;  %v19209_v39 = vadd.f32 %v19092_v14, %v19121_v52  ;;  %v9406_v52 = vsel %vm2992_vm2, %v9403_v1, %v20773_v62  ;;  %v9007_v14 = vrot.slane %v9005_v36, 1  ;;  %v14699_v1 = vld [vmem:[%s20443_s6 + $0x1f0] sm:$0xff] }
 0x7b0   : > { %10632 = vmatpush.bf16.msra.mxu3 %v14662_v10  ;;  %11405 = vmatpush.bf16.msra.mxu1 %v14699_v1  ;;  %v14660_v10 = vld [vmem:[%s20443_s6 + $0x140] sm:$0xff] }
 0x7b1   : > { %v9127_v6 = vpop.f32.mrf.mxu2  ;;  %v9008_v33 = vsel %vm2287_vm0, %v9003_v59, %v9007_v14  ;;  %11013 = vmatpush.bf16.msra.mxu0 %v14691_v4  ;;  %v10762_v4 = vld [vmem:[#allocation2 + $0x10] sm:$0xc]  ;;  %v14689_v1 = vld [vmem:[%s20443_s6 + $0x1a0] sm:$0xff] }
 0x7b2   : > { %v9519_v29 = vpop.f32.mrf.mxu0  ;;  %v9298_v63 = vpop.f32.mrf.mxu3  ;;  %v9296_v61 = vadd.f32 %v9295_v5, %v9127_v6  ;;  %v20774_v5 = vrot.slane %v19188_v58, 1 }
 0x7b3   : > { %v19240_v59 = vpop.f32.mrf.mxu1 }
 0x7b4   : > { %v9787_v27 = vsel %vm2992_vm2, %v9784_v57, %v20774_v5  ;;  %v19228_v6 = vadd.f32 %v9516_v15, %v9296_v61  ;;  %v14661_v57 = vld [vmem:[%s20443_s6 + $0x148] sm:$0xff] }
 0x7b5   : > { %9558 = vmatmul.bf16.gmra.mxu0 %v9406_v52  ;;  %9942 = vmatmul.bf16.gmra.mxu1 %v9787_v27  ;;  %v19253_v52 = vld [vmem:[#allocation2 + $0x14] sm:$0xf]  ;;  %v9009_v27 = vshrl.u32 %v19186_v31, 16 }
 0x7b6   : > { %9169 = vmatmul.bf16.gmra.mxu2 %v9008_v33  ;;  %10633 = vmatpush.bf16.msra.mxu3 %v14661_v57  ;;  %v14698_v33 = vld [vmem:[%s20443_s6 + $0x1e8] sm:$0xff]  ;;  %v10853_v57 = vunpack.c.l.b16 %v10762_v4  ;;  %v14696_v4 = vld [vmem:[%s20443_s6 + $0x1d8] sm:$0xff] }
 0x7b7   : > { %11014 = vmatpush.bf16.msra.mxu0 %v14690_v30  ;;  %11406 = vmatpush.bf16.msra.mxu1 %v14698_v33  ;;  %v9011_v33 = vor.u32 %v9009_v27, %v9007_v14  ;;  %v20776_v14 = vrot.slane %v19186_v31, 1  ;;  %v20777_v27 = vunpack.c.l.b16 %v19253_v52 }
 0x7b9   : > { %v9130_v15 = vpop.f32.mrf.mxu2 }
 0x7ba   : > { %v9521_v61 = vpop.f32.mrf.mxu0  ;;  %v9300_v36 = vpop.f32.mrf.mxu3  ;;  %v9299_v43 = vadd.f32 %v9298_v63, %v9130_v15  ;;  %v9013_v63 = vshll.u32 %v19203_v56, 16  ;;  %10634 = vmatpush.bf16.msra.mxu3 %v14660_v10  ;;  %v20775_v15 = vrot.slane %v19203_v56, 1 }
 0x7bb   : > { %11015 = vmatpush.bf16.msra.mxu0 %v14689_v1  ;;  %v19268_v48 = vpop.f32.mrf.mxu1  ;;  %v19283_v1 = vpack.c.b16 %v20777_v27, %v10853_v57  ;;  %v14695_v57 = vld [vmem:[%s20443_s6 + $0x1d0] sm:$0xff] }
 0x7bc   : > { %v19251_v62 = vadd.f32 %v9519_v29, %v9299_v43  ;;  %v14697_v29 = vld [vmem:[%s20443_s6 + $0x1e0] sm:$0xff]  ;;  %v19266_v10 = vrot.slane %v9013_v63, 1  ;;  %v9408_v63 = vsel %vm2992_vm2, %v20776_v14, %v20775_v15  ;;  %v19297_v15 = vld [vmem:[#allocation2 + $0x18] sm:$0xff] }
 0x7bd   : > { %11407 = vmatpush.bf16.msra.mxu1 %v14697_v29  ;;  %v20778_v29 = vrot.slane %v19188_v58, 1  ;;  %v11169_v58 = vshrl.u32 %v19283_v1, 16  ;;  %v10909_v19 = vrot.slane %v19283_v1, 2 }
 0x7bf   : > { %9342 = vmatmul.bf16.gmra.mxu3 %v19186_v31  ;;  %11016 = vmatpush.bf16.msra.mxu0 %v14688_v41  ;;  %v14687_v31 = vld [vmem:[%s20443_s6 + $0x190] sm:$0xff]  ;;  %v11177_v41 = vshrl.u32 %v19297_v15, 16  ;;  %v11171_v51 = vrot.slane %v11169_v58, 2 }
 0x7c1   : > { %v9132_v43 = vpop.f32.mrf.mxu2  ;;  %11408 = vmatpush.bf16.msra.mxu1 %v14696_v4  ;;  %v11180_v4 = vshll.u32 %v19297_v15, 16  ;;  %v11179_v35 = vrot.slane %v11177_v41, 2  ;;  %v10080_v41 = vunpack.c.l.b16 %v9989_v8 }
 0x7c2   : > { %v9524_v30 = vpop.f32.mrf.mxu0  ;;  %v9303_v5 = vpop.f32.mrf.mxu3  ;;  %v9301_v22 = vadd.f32 %v9300_v36, %v9132_v43  ;;  %v9016_v43 = vsel %vm2287_vm0, %v9011_v33, %v19266_v10 }
 0x7c3   : > { %11017 = vmatpush.bf16.msra.mxu0 %v14687_v31  ;;  %v19311_v31 = vpop.f32.mrf.mxu1 }
 0x7c4   : > { %v19285_v36 = vadd.f32 %v9521_v61, %v9301_v22  ;;  %v14849_v22 = vld [vmem:[#allocation2 + $0x88] sm:$0x70]  ;;  %v11172_v61 = vshll.u32 %v19283_v1, 16  ;;  %20779 = vst [vmem:[#allocation54_spill] sm:$0xff] %v19311_v31 }
 0x7c5   : > { %9563 = vmatmul.bf16.gmra.mxu0 %v9408_v63  ;;  %9947 = vmatmul.bf16.gmra.mxu1 %v20778_v29  ;;  %v14686_v29 = vld [vmem:[%s20443_s6 + $0x188] sm:$0xff] }
 0x7c6   : > { %9174 = vmatmul.bf16.gmra.mxu2 %v9016_v43  ;;  %11409 = vmatpush.bf16.msra.mxu1 %v14695_v57  ;;  %v14694_v43 = vld [vmem:[%s20443_s6 + $0x1c8] sm:$0xff]  ;;  %v11174_v3 = vrot.slane %v11172_v61, 3  ;;  %v14839_v57 = vor.u32 %v14849_v22, %v19205_v13 }
 0x7c7   : > { %11018 = vmatpush.bf16.msra.mxu0 %v14686_v29 }
 0x7c8   : > { %v11175_v58 = vor.u32 %v11174_v3, %v11171_v51 }
 0x7c9   : > { %v9135_v14 = vpop.f32.mrf.mxu2 }
 0x7ca   : > { %v9526_v33 = vpop.f32.mrf.mxu0  ;;  %v9305_v63 = vpop.f32.mrf.mxu3  ;;  %v9304_v27 = vadd.f32 %v9303_v5, %v9135_v14  ;;  %11410 = vmatpush.bf16.msra.mxu1 %v14694_v43  ;;  %v11182_v5 = vrot.slane %v11180_v4, 3  ;;  %v9990_v14 = vld [vmem:[#allocation2 + $0xc] sm:$0xf]  ;;  %v10522_v43 = vunpack.c.l.b16 %v10503_v32 }
 0x7cb   : > { %v10081_v13 = vunpack.c.l.b16 %v9990_v14  ;;  %11019 = vmatpush.bf16.msra.mxu0 %v14685_v34  ;;  %v20780_v34 = vrot.slane %v19203_v56, 1  ;;  %v19332_v51 = vpop.f32.mrf.mxu1  ;;  %v11189_v14 = vshll.u32 %v19325_v26, 16 }
 0x7cc   : > { %v19309_v12 = vadd.f32 %v9524_v30, %v9304_v27  ;;  %v14693_v30 = vld [vmem:[%s20443_s6 + $0x1c0] sm:$0xff]  ;;  %v11183_v22 = vor.u32 %v11182_v5, %v11179_v35  ;;  %20781 = vst [vmem:[#allocation55_spill] sm:$0xff] %v19332_v51  ;;  %v11186_v5 = vshrl.u32 %v19325_v26, 16 }
 0x7cd   : > { %v10117_v35 = vpack.c.b16 %v10081_v13, %v10080_v41  ;;  %v10523_v32 = vpack.c.b16 %v10081_v13, %v10522_v43  ;;  %v11191_v45 = vrot.slane %v11189_v14, 3 }
 0x7ce   : > { %11411 = vmatpush.bf16.msra.mxu1 %v14693_v30  ;;  %v11184_v60 = vsel %vm6623_vm5, %v11175_v58, %v11183_v22  ;;  %v11188_v41 = vrot.slane %v11186_v5, 2  ;;  %v10910_v5 = vrot.slane %v19297_v15, 2 }
 0x7cf   : > { %9347 = vmatmul.bf16.gmra.mxu3 %v14839_v57  ;;  %v9017_v57 = vshrl.u32 %v19203_v56, 16  ;;  %v10137_v58 = vshrl.u32 %v10117_v35, 16 }
 0x7d1   : > { %v9137_v61 = vpop.f32.mrf.mxu2  ;;  %v9019_v8 = vor.u32 %v9017_v57, %v19266_v10  ;;  %v10139_v57 = vrot.slane %v10137_v58, 1 }
 0x7d2   : > { %v9529_v27 = vpop.f32.mrf.mxu0  ;;  %v9308_v4 = vpop.f32.mrf.mxu3  ;;  %v9306_v29 = vadd.f32 %v9305_v63, %v9137_v61  ;;  %v14635_v63 = vld [vmem:[#allocation2 + $0x10] sm:$0xff]  ;;  %v10140_v61 = vshll.u32 %v10117_v35, 16  ;;  %v11192_v35 = vor.u32 %v11191_v45, %v11188_v41 }
 0x7d3   : > { %v10145_v10 = vshrl.u32 %v14635_v63, 16  ;;  %v10525_v13 = vrot.slane %v14635_v63, 2  ;;  %v19340_v51 = vpop.f32.mrf.mxu1 }
 0x7d4   : > { %v19327_v3 = vadd.f32 %v9526_v33, %v9306_v29  ;;  %v10524_v29 = vrot.slane %v10523_v32, 2  ;;  %20782 = vst [vmem:[#allocation56_spill] sm:$0xff] %v19340_v51 }
 0x7d5   : > { %9568 = vmatmul.bf16.gmra.mxu0 %v20780_v34  ;;  %11412 = vmatmul.bf16.vlgmr.msra.gmra.mxu1 %v11184_v60  ;;  %v10148_v60 = vshll.u32 %v14635_v63, 16  ;;  %v10147_v16 = vrot.slane %v10145_v10, 1 }
 0x7d6   : > { %9179 = vmatmul.bf16.gmra.mxu2 %v9019_v8  ;;  %v10142_v8 = vrot.slane %v10140_v61, 2  ;;  %v10526_v44 = vsel %vm5318_vm4, %v10524_v29, %v10525_v13  ;;  %v11193_v61 = vsel %vm6623_vm5, %v11183_v22, %v11192_v35  ;;  %v14636_v29 = vld [vmem:[#allocation2 + $0x18] sm:$0xff] }
 0x7d7   : > { %v10150_v17 = vrot.slane %v10148_v60, 2  ;;  %v10527_v22 = vrot.slane %v14636_v29, 2 }
 0x7d8   : > { %v10143_v14 = vor.u32 %v10142_v8, %v10139_v57 }
 0x7d9   : > { %v9140_v30 = vpop.f32.mrf.mxu2  ;;  %v10151_v58 = vor.u32 %v10150_v17, %v10147_v16  ;;  %v10157_v17 = vshll.u32 %v14636_v29, 16 }
 0x7da   : > { %v9531_v33 = vpop.f32.mrf.mxu0  ;;  %v9310_v56 = vpop.f32.mrf.mxu3  ;;  %v9309_v34 = vadd.f32 %v9308_v4, %v9140_v30  ;;  %v10911_v30 = vsel %vm5318_vm4, %v10909_v19, %v10910_v5  ;;  %v10154_v19 = vshrl.u32 %v14636_v29, 16 }
 0x7db   : > { %v19352_v45 = vpop.f32.mrf.mxu1 }
 0x7dc   : > { %v19336_v43 = vadd.f32 %v9529_v27, %v9309_v34  ;;  %v10152_v34 = vsel %vm4407_vm3, %v10143_v14, %v10151_v58  ;;  %20784 = vst [vmem:[#allocation58_spill] sm:$0xff] %v19352_v45  ;;  %v10159_v14 = vrot.slane %v10157_v17, 2  ;;  %v11207_v17 = vshll.u32 %v18988_v25, 16 }
 0x7df   : > { %10635 = vmatmul.bf16.vlgmr.msra.gmra.mxu3 %v10526_v44  ;;  %v19345_v44 = vld [vmem:[#allocation2 + $0x28] sm:$0xff] }
 0x7e0   : > { %v11195_v15 = vshrl.u32 %v19345_v44, 16  ;;  %v11198_v10 = vshll.u32 %v19345_v44, 16 }
 0x7e1   : > { %v9142_v4 = vpop.f32.mrf.mxu2 }
 0x7e2   : > { %v9534_v32 = vpop.f32.mrf.mxu0  ;;  %v9313_v63 = vpop.f32.mrf.mxu3  ;;  %v9311_v27 = vadd.f32 %v9310_v56, %v9142_v4  ;;  %v11200_v57 = vrot.slane %v11198_v10, 3  ;;  %v10156_v4 = vrot.slane %v10154_v19, 1  ;;  %v11204_v19 = vshrl.u32 %v18988_v25, 16 }
 0x7e4   : > { %v19347_v1 = vadd.f32 %v9531_v33, %v9311_v27  ;;  %v11197_v33 = vrot.slane %v11195_v15, 2  ;;  %v10528_v27 = vsel %vm5318_vm4, %v10525_v13, %v10527_v22  ;;  %v10160_v31 = vor.u32 %v10159_v14, %v10156_v4  ;;  %v19365_v13 = vpop.f32.mrf.mxu1 }
 0x7e5   : > { %11020 = vmatmul.bf16.vlgmr.msra.gmra.mxu0 %v10911_v30  ;;  %11417 = vmatmul.bf16.gmra.mxu1 %v11193_v61  ;;  %v10912_v30 = vrot.slane %v19325_v26, 2  ;;  %20787 = vst [vmem:[#allocation61_spill] sm:$0xff] %v19365_v13  ;;  %v14637_v26 = vld [vmem:[#allocation2 + $0x20] sm:$0xff]  ;;  %v11206_v4 = vrot.slane %v11204_v19, 2  ;;  %v11209_v14 = vrot.slane %v11207_v17, 3 }
 0x7e6   : > { %20783 = vst [vmem:[#allocation57_spill] sm:$0xff] %v19347_v1  ;;  %10376 = vmatmul.bf16.vlgmr.msrb.gmra.mxu2 %v10152_v34  ;;  %v11201_v61 = vor.u32 %v11200_v57, %v11197_v33  ;;  %v10166_v33 = vshll.u32 %v14637_v26, 16 }
 0x7e8   : > { %v11202_v15 = vsel %vm6623_vm5, %v11192_v35, %v11201_v61 }
 0x7e9   : > { %v9145_v56 = vpop.f32.mrf.mxu2 }
 0x7ea   : > { %v9536_v60 = vpop.f32.mrf.mxu0  ;;  %v9315_v16 = vpop.f32.mrf.mxu3  ;;  %v9314_v41 = vadd.f32 %v9313_v63, %v9145_v56  ;;  %v14707_v63 = vld [vmem:[%s20443_s6 + $0x230] sm:$0xff]  ;;  %v10161_v56 = vsel %vm4407_vm3, %v10151_v58, %v10160_v31 }
 0x7eb   : > { %11664 = vmatpush.bf16.msra.mxu2 %v14707_v63 }
 0x7ec   : > { %v19354_v8 = vadd.f32 %v9534_v32, %v9314_v41  ;;  %v10913_v32 = vsel %vm5318_vm4, %v10910_v5, %v10912_v30  ;;  %v10163_v5 = vshrl.u32 %v14637_v26, 16  ;;  %v19373_v63 = vpop.f32.mrf.mxu1 }
 0x7ed   : > { %20789 = vst [vmem:[#allocation63_spill] sm:$0xff] %v19373_v63 }
 0x7ee   : > { %20785 = vst [vmem:[#allocation59_spill] sm:$0xff] %v19354_v8 }
 0x7ef   : > { %10640 = vmatmul.bf16.gmra.mxu3 %v10528_v27 }
 0x7f1   : > { %v9147_v34 = vpop.f32.mrf.mxu2 }
 0x7f2   : > { %v9539_v51 = vpop.f32.mrf.mxu0  ;;  %v9318_v1 = vpop.f32.mrf.mxu3  ;;  %v9316_v29 = vadd.f32 %v9315_v16, %v9147_v34  ;;  %v10165_v34 = vrot.slane %v10163_v5, 1 }
 0x7f4   : > { %v19363_v10 = vadd.f32 %v9536_v60, %v9316_v29  ;;  %v10529_v60 = vrot.slane %v14637_v26, 2  ;;  %v10168_v29 = vrot.slane %v10166_v33, 2  ;;  %v19385_v33 = vpop.f32.mrf.mxu1 }
 0x7f5   : > { %11025 = vmatmul.bf16.gmra.mxu0 %v10913_v32  ;;  %11422 = vmatmul.bf16.gmra.mxu1 %v11202_v15  ;;  %v10914_v32 = vrot.slane %v19345_v44, 2  ;;  %v11210_v15 = vor.u32 %v11209_v14, %v11206_v4  ;;  %20791 = vst [vmem:[#allocation65_spill] sm:$0xff] %v19385_v33 }
 0x7f6   : > { %20786 = vst [vmem:[#allocation60_spill] sm:$0xff] %v19363_v10  ;;  %10381 = vmatmul.bf16.gmra.mxu2 %v10161_v56  ;;  %v10530_v58 = vsel %vm5318_vm4, %v10527_v22, %v10529_v60  ;;  %v10169_v13 = vor.u32 %v10168_v29, %v10165_v34  ;;  %v14638_v22 = vld [vmem:[#allocation2 + $0x28] sm:$0xff] }
 0x7f7   : > { %v10531_v4 = vrot.slane %v14638_v22, 2 }
 0x7f8   : > { %v10170_v17 = vsel %vm4407_vm3, %v10160_v31, %v10169_v13 }
 0x7f9   : > { %v9150_v16 = vpop.f32.mrf.mxu2 }
 0x7fa   : > { %v9541_v41 = vpop.f32.mrf.mxu0  ;;  %v9320_v35 = vpop.f32.mrf.mxu3  ;;  %v9319_v57 = vadd.f32 %v9318_v1, %v9150_v16  ;;  %v10915_v1 = vsel %vm5318_vm4, %v10912_v30, %v10914_v32  ;;  %v19381_v16 = vld [vmem:[#allocation2 + $0x38] sm:$0xff] }
 0x7fb   : > { %v11213_v44 = vshrl.u32 %v19381_v16, 16  ;;  %v11216_v5 = vshll.u32 %v19381_v16, 16 }
 0x7fc   : > { %v19370_v27 = vadd.f32 %v9539_v51, %v9319_v57  ;;  %v11211_v51 = vsel %vm6623_vm5, %v11201_v61, %v11210_v15  ;;  %v10172_v57 = vshrl.u32 %v14638_v22, 16  ;;  %v10175_v61 = vshll.u32 %v14638_v22, 16  ;;  %v19390_v8 = vpop.f32.mrf.mxu1 }
 0x7fd   : > { %v11215_v34 = vrot.slane %v11213_v44, 2  ;;  %v11218_v29 = vrot.slane %v11216_v5, 3  ;;  %20792 = vst [vmem:[#allocation66_spill] sm:$0xff] %v19390_v8  ;;  %v19397_v5 = vld [vmem:[#allocation2 + $0x40] sm:$0xff] }
 0x7fe   : > { %20788 = vst [vmem:[#allocation62_spill] sm:$0xff] %v19370_v27  ;;  %v10174_v31 = vrot.slane %v10172_v57, 1 }
 0x7ff   : > { %10645 = vmatmul.bf16.gmra.mxu3 %v10530_v58 }
 0x801   : > { %v9152_v56 = vpop.f32.mrf.mxu2 }
 0x802   : > { %v9544_v25 = vpop.f32.mrf.mxu0  ;;  %v9323_v45 = vpop.f32.mrf.mxu3  ;;  %v9321_v26 = vadd.f32 %v9320_v35, %v9152_v56  ;;  %v10177_v56 = vrot.slane %v10175_v61, 2 }
 0x804   : > { %v19378_v19 = vadd.f32 %v9541_v41, %v9321_v26  ;;  %v10532_v26 = vsel %vm5318_vm4, %v10529_v60, %v10531_v4  ;;  %v14639_v60 = vld [vmem:[#allocation2 + $0x30] sm:$0xff] }
 0x805   : > { %11030 = vmatmul.bf16.gmra.mxu0 %v10915_v1  ;;  %11427 = vmatmul.bf16.gmra.mxu1 %v11211_v51  ;;  %v14816_v1 = vld [vmem:[#allocation2 + $0x30] sm:$0xff] }
 0x806   : > { %20790 = vst [vmem:[#allocation64_spill] sm:$0xff] %v19378_v19  ;;  %10386 = vmatmul.bf16.gmra.mxu2 %v10170_v17  ;;  %v10916_v51 = vrot.slane %v14816_v1, 2  ;;  %v11219_v17 = vor.u32 %v11218_v29, %v11215_v34  ;;  %v10178_v19 = vor.u32 %v10177_v56, %v10174_v31  ;;  %v19406_v31 = vpop.f32.mrf.mxu1 }
 0x807   : > { %20795 = vst [vmem:[#allocation69_spill] sm:$0xff] %v19406_v31 }
 0x808   : > { %v10179_v44 = vsel %vm4407_vm3, %v10169_v13, %v10178_v19 }
 0x809   : > { %v9155_v35 = vpop.f32.mrf.mxu2 }
 0x80a   : > { %v9546_v30 = vpop.f32.mrf.mxu0  ;;  %v9325_v41 = vpop.f32.mrf.mxu3  ;;  %v9324_v14 = vadd.f32 %v9323_v45, %v9155_v35  ;;  %v10917_v45 = vsel %vm5318_vm4, %v10914_v32, %v10916_v51  ;;  %v11222_v35 = vshrl.u32 %v19397_v5, 16  ;;  %v10184_v32 = vshll.u32 %v14639_v60, 16 }
 0x80c   : > { %v19387_v58 = vadd.f32 %v9544_v25, %v9324_v14  ;;  %v11220_v25 = vsel %vm6623_vm5, %v11210_v15, %v11219_v17  ;;  %v10533_v15 = vrot.slane %v14639_v60, 2  ;;  %v11224_v34 = vrot.slane %v11222_v35, 2 }
 0x80e   : > { %v10534_v1 = vsel %vm5318_vm4, %v10531_v4, %v10533_v15 }
 0x80f   : > { %10650 = vmatmul.bf16.gmra.mxu3 %v10532_v26  ;;  %v10186_v26 = vrot.slane %v10184_v32, 2  ;;  %v19415_v32 = vpop.f32.mrf.mxu1 }
 0x810   : > { %20797 = vst [vmem:[#allocation71_spill] sm:$0xff] %v19415_v32 }
 0x811   : > { %v9157_v33 = vpop.f32.mrf.mxu2 }
 0x812   : > { %v9549_v63 = vpop.f32.mrf.mxu0  ;;  %v9328_v27 = vpop.f32.mrf.mxu3  ;;  %v9326_v10 = vadd.f32 %v9325_v41, %v9157_v33  ;;  %v11225_v33 = vshll.u32 %v19397_v5, 16  ;;  %v10181_v41 = vshrl.u32 %v14639_v60, 16 }
 0x814   : > { %v19394_v22 = vadd.f32 %v9546_v30, %v9326_v10  ;;  %v14706_v30 = vld [vmem:[%s20443_s6 + $0x228] sm:$0xff]  ;;  %v11227_v13 = vrot.slane %v11225_v33, 3  ;;  %v10183_v56 = vrot.slane %v10181_v41, 1  ;;  %v14640_v41 = vld [vmem:[#allocation2 + $0x38] sm:$0xff] }
 0x815   : > { %11035 = vmatmul.bf16.gmra.mxu0 %v10917_v45  ;;  %11432 = vmatmul.bf16.gmra.mxu1 %v11220_v25  ;;  %v10918_v45 = vrot.slane %v19381_v16, 2  ;;  %v19417_v16 = vld [vmem:[#allocation2 + $0x48] sm:$0xff] }
 0x816   : > { %20793 = vst [vmem:[#allocation67_spill] sm:$0xff] %v19394_v22  ;;  %10391 = vmatmul.bf16.gmra.mxu2 %v10179_v44  ;;  %v11228_v25 = vor.u32 %v11227_v13, %v11224_v34  ;;  %v10187_v44 = vor.u32 %v10186_v26, %v10183_v56  ;;  %v10190_v34 = vshrl.u32 %v14640_v41, 16 }
 0x817   : > { %11665 = vmatpush.bf16.msra.mxu2 %v14706_v30  ;;  %v10919_v35 = vsel %vm5318_vm4, %v10916_v51, %v10918_v45  ;;  %v19425_v32 = vpop.f32.mrf.mxu1 }
 0x818   : > { %v10188_v4 = vsel %vm4407_vm3, %v10178_v19, %v10187_v44  ;;  %v10192_v19 = vrot.slane %v10190_v34, 1  ;;  %20798 = vst [vmem:[#allocation72_spill] sm:$0xff] %v19425_v32 }
 0x819   : > { %v9160_v57 = vpop.f32.mrf.mxu2 }
 0x81a   : > { %v9551_v61 = vpop.f32.mrf.mxu0  ;;  %v9330_v14 = vpop.f32.mrf.mxu3  ;;  %v9329_v10 = vadd.f32 %v9328_v27, %v9160_v57 }
 0x81c   : > { %v19404_v29 = vadd.f32 %v9549_v63, %v9329_v10  ;;  %v11229_v63 = vsel %vm6623_vm5, %v11219_v17, %v11228_v25  ;;  %v11231_v10 = vshrl.u32 %v19417_v16, 16  ;;  %v10193_v17 = vshll.u32 %v14640_v41, 16 }
 0x81e   : > { %20794 = vst [vmem:[#allocation68_spill] sm:$0xff] %v19404_v29  ;;  %v11233_v56 = vrot.slane %v11231_v10, 2 }
 0x81f   : > { %10655 = vmatmul.bf16.gmra.mxu3 %v10534_v1 }
 0x821   : > { %v9162_v27 = vpop.f32.mrf.mxu2 }
 0x822   : > { %v9554_v60 = vpop.f32.mrf.mxu0  ;;  %v9333_v57 = vpop.f32.mrf.mxu3  ;;  %v9331_v8 = vadd.f32 %v9330_v14, %v9162_v27  ;;  %v11234_v14 = vshll.u32 %v19417_v16, 16  ;;  %v10195_v27 = vrot.slane %v10193_v17, 2 }
 0x824   : > { %v19412_v33 = vadd.f32 %v9551_v61, %v9331_v8  ;;  %v10535_v61 = vrot.slane %v14640_v41, 2  ;;  %v11236_v26 = vrot.slane %v11234_v14, 3  ;;  %v10196_v29 = vor.u32 %v10195_v27, %v10192_v19 }
 0x825   : > { %11040 = vmatmul.bf16.gmra.mxu0 %v10919_v35  ;;  %11437 = vmatmul.bf16.gmra.mxu1 %v11229_v63  ;;  %v10920_v63 = vrot.slane %v19397_v5, 2  ;;  %v19432_v5 = vld [vmem:[#allocation2 + $0x50] sm:$0xff] }
 0x826   : > { %20796 = vst [vmem:[#allocation70_spill] sm:$0xff] %v19412_v33  ;;  %10396 = vmatmul.bf16.gmra.mxu2 %v10188_v4  ;;  %v10536_v35 = vsel %vm5318_vm4, %v10533_v15, %v10535_v61  ;;  %v11237_v4 = vor.u32 %v11236_v26, %v11233_v56  ;;  %v14641_v15 = vld [vmem:[#allocation2 + $0x40] sm:$0xff]  ;;  %v10197_v14 = vsel %vm4407_vm3, %v10187_v44, %v10196_v29  ;;  %v11243_v34 = vshll.u32 %v19432_v5, 16 }
 0x828   : > { %v11245_v19 = vrot.slane %v11243_v34, 3 }
 0x829   : > { %v9165_v30 = vpop.f32.mrf.mxu2 }
 0x82a   : > { %v9556_v51 = vpop.f32.mrf.mxu0  ;;  %v9335_v8 = vpop.f32.mrf.mxu3  ;;  %v9334_v13 = vadd.f32 %v9333_v57, %v9165_v30  ;;  %v10921_v57 = vsel %vm5318_vm4, %v10918_v45, %v10920_v63  ;;  %v11240_v30 = vshrl.u32 %v19432_v5, 16 }
 0x82c   : > { %v19421_v1 = vadd.f32 %v9554_v60, %v9334_v13  ;;  %v11238_v60 = vsel %vm6623_vm5, %v11228_v25, %v11237_v4  ;;  %v19436_v13 = vpop.f32.mrf.mxu1  ;;  %v10537_v25 = vrot.slane %v14641_v15, 2  ;;  %v11242_v26 = vrot.slane %v11240_v30, 2 }
 0x82d   : > { %20800 = vst [vmem:[#allocation74_spill] sm:$0xff] %v19436_v13 }
 0x82f   : > { %10660 = vmatmul.bf16.gmra.mxu3 %v10536_v35 }
 0x831   : > { %v9167_v31 = vpop.f32.mrf.mxu2 }
 0x832   : > { %v9559_v33 = vpop.f32.mrf.mxu0  ;;  %v9338_v22 = vpop.f32.mrf.mxu3  ;;  %v9336_v41 = vadd.f32 %v9335_v8, %v9167_v31  ;;  %v10199_v31 = vshrl.u32 %v14641_v15, 16  ;;  %v10202_v8 = vshll.u32 %v14641_v15, 16 }
 0x834   : > { %v19429_v10 = vadd.f32 %v9556_v51, %v9336_v41  ;;  %v10201_v44 = vrot.slane %v10199_v31, 1  ;;  %v10204_v35 = vrot.slane %v10202_v8, 2  ;;  %v10538_v41 = vsel %vm5318_vm4, %v10535_v61, %v10537_v25  ;;  %v14642_v31 = vld [vmem:[#allocation2 + $0x48] sm:$0xff] }
 0x835   : > { %11045 = vmatmul.bf16.gmra.mxu0 %v10921_v57  ;;  %11442 = vmatmul.bf16.gmra.mxu1 %v11238_v60  ;;  %v10922_v57 = vrot.slane %v19417_v16, 2  ;;  %v14705_v60 = vld [vmem:[%s20443_s6 + $0x220] sm:$0xff] }
 0x836   : > { %20799 = vst [vmem:[#allocation73_spill] sm:$0xff] %v19429_v10  ;;  %10401 = vmatmul.bf16.gmra.mxu2 %v10197_v14  ;;  %v11246_v14 = vor.u32 %v11245_v19, %v11242_v26  ;;  %v10205_v15 = vor.u32 %v10204_v35, %v10201_v44  ;;  %v10539_v44 = vrot.slane %v14642_v31, 2 }
 0x837   : > { %11666 = vmatpush.bf16.msra.mxu2 %v14705_v60 }
 0x838   : > { %v11247_v34 = vsel %vm6623_vm5, %v11237_v4, %v11246_v14  ;;  %v10206_v8 = vsel %vm4407_vm3, %v10196_v29, %v10205_v15  ;;  %v10211_v4 = vshll.u32 %v14642_v31, 16 }
 0x839   : > { %v9170_v17 = vpop.f32.mrf.mxu2 }
 0x83a   : > { %v9340_v45 = vpop.f32.mrf.mxu3  ;;  %v9339_v51 = vadd.f32 %v9338_v22, %v9170_v17  ;;  %v9561_v56 = vpop.f32.mrf.mxu0 }
 0x83b   : > { %v19447_v17 = vpop.f32.mrf.mxu1 }
 0x83c   : > { %v19438_v27 = vadd.f32 %v9559_v33, %v9339_v51  ;;  %v10923_v33 = vsel %vm5318_vm4, %v10920_v63, %v10922_v57  ;;  %20802 = vst [vmem:[#allocation76_spill] sm:$0xff] %v19447_v17  ;;  %v19452_v51 = vld [vmem:[#allocation2 + $0x58] sm:$0xff]  ;;  %v10924_v17 = vrot.slane %v19432_v5, 2 }
 0x83d   : > { %v11249_v26 = vshrl.u32 %v19452_v51, 16 }
 0x83e   : > { %20801 = vst [vmem:[#allocation75_spill] sm:$0xff] %v19438_v27 }
 0x83f   : > { %10665 = vmatmul.bf16.gmra.mxu3 %v10538_v41  ;;  %v11251_v35 = vrot.slane %v11249_v26, 2 }
 0x841   : > { %v9172_v13 = vpop.f32.mrf.mxu2 }
 0x842   : > { %v9343_v22 = vpop.f32.mrf.mxu3  ;;  %v9341_v30 = vadd.f32 %v9340_v45, %v9172_v13  ;;  %v9564_v16 = vpop.f32.mrf.mxu0  ;;  %v11252_v45 = vshll.u32 %v19452_v51, 16  ;;  %v10208_v13 = vshrl.u32 %v14642_v31, 16 }
 0x843   : > { %v19458_v29 = vpop.f32.mrf.mxu1 }
 0x844   : > { %v19449_v61 = vadd.f32 %v9561_v56, %v9341_v30  ;;  %v11254_v41 = vrot.slane %v11252_v45, 3  ;;  %v10210_v30 = vrot.slane %v10208_v13, 1  ;;  %20805 = vst [vmem:[#allocation79_spill] sm:$0xff] %v19458_v29  ;;  %v14643_v45 = vld [vmem:[#allocation2 + $0x50] sm:$0xff] }
 0x845   : > { %11050 = vmatmul.bf16.gmra.mxu0 %v10923_v33  ;;  %11447 = vmatmul.bf16.gmra.mxu1 %v11247_v34  ;;  %v10213_v33 = vrot.slane %v10211_v4, 2  ;;  %v10540_v34 = vsel %vm5318_vm4, %v10537_v25, %v10539_v44 }
 0x846   : > { %20803 = vst [vmem:[#allocation77_spill] sm:$0xff] %v19449_v61  ;;  %10406 = vmatmul.bf16.gmra.mxu2 %v10206_v8  ;;  %v11255_v61 = vor.u32 %v11254_v41, %v11251_v35  ;;  %v10541_v35 = vrot.slane %v14643_v45, 2 }
 0x847   : > { %v10214_v32 = vor.u32 %v10213_v33, %v10210_v30 }
 0x849   : > { %v9175_v63 = vpop.f32.mrf.mxu2  ;;  %v10215_v25 = vsel %vm4407_vm3, %v10205_v15, %v10214_v32 }
 0x84a   : > { %v9345_v19 = vpop.f32.mrf.mxu3  ;;  %v9344_v56 = vadd.f32 %v9343_v22, %v9175_v63  ;;  %v9566_v8 = vpop.f32.mrf.mxu0  ;;  %v10925_v22 = vsel %vm5318_vm4, %v10922_v57, %v10924_v17  ;;  %v19467_v63 = vld [vmem:[#allocation2 + $0x60] sm:$0xff] }
 0x84b   : > { %v11258_v5 = vshrl.u32 %v19467_v63, 16  ;;  %v11261_v13 = vshll.u32 %v19467_v63, 16  ;;  %v19471_v4 = vpop.f32.mrf.mxu1 }
 0x84c   : > { %v19456_v60 = vadd.f32 %v9564_v16, %v9344_v56  ;;  %v11256_v16 = vsel %vm6623_vm5, %v11246_v14, %v11255_v61  ;;  %20807 = vst [vmem:[#allocation81_spill] sm:$0xff] %v19471_v4  ;;  %v10220_v14 = vshll.u32 %v14643_v45, 16 }
 0x84d   : > { %v11260_v30 = vrot.slane %v11258_v5, 2  ;;  %v11263_v33 = vrot.slane %v11261_v13, 3 }
 0x84e   : > { %20804 = vst [vmem:[#allocation78_spill] sm:$0xff] %v19456_v60 }
 0x84f   : > { %10670 = vmatmul.bf16.gmra.mxu3 %v10540_v34 }
 0x851   : > { %v9177_v27 = vpop.f32.mrf.mxu2 }
 0x852   : > { %v9348_v10 = vpop.f32.mrf.mxu3  ;;  %v9346_v31 = vadd.f32 %v9345_v19, %v9177_v27  ;;  %v9569_v27 = vpop.f32.mrf.mxu0  ;;  %v10217_v19 = vshrl.u32 %v14643_v45, 16 }
 0x854   : > { %v19464_v26 = vadd.f32 %v9566_v8, %v9346_v31  ;;  %v10219_v15 = vrot.slane %v10217_v19, 1  ;;  %v10222_v8 = vrot.slane %v10220_v14, 2  ;;  %v10542_v31 = vsel %vm5318_vm4, %v10539_v44, %v10541_v35 }
 0x855   : > { %11055 = vmatmul.bf16.gmra.mxu0 %v10925_v22  ;;  %11452 = vmatmul.bf16.gmra.mxu1 %v11256_v16  ;;  %v10926_v22 = vrot.slane %v19452_v51, 2  ;;  %v11264_v16 = vor.u32 %v11263_v33, %v11260_v30  ;;  %v14644_v51 = vld [vmem:[#allocation2 + $0x58] sm:$0xff] }
 0x856   : > { %20806 = vst [vmem:[#allocation80_spill] sm:$0xff] %v19464_v26  ;;  %10411 = vmatmul.bf16.gmra.mxu2 %v10215_v25  ;;  %v10223_v4 = vor.u32 %v10222_v8, %v10219_v15  ;;  %v19477_v26 = vpop.f32.mrf.mxu1 }
 0x857   : > { %v10927_v5 = vsel %vm5318_vm4, %v10924_v17, %v10926_v22  ;;  %v11265_v13 = vsel %vm6623_vm5, %v11255_v61, %v11264_v16  ;;  %v10229_v17 = vshll.u32 %v14644_v51, 16  ;;  %v10543_v61 = vrot.slane %v14644_v51, 2 }
 0x859   : > { %v9180_v57 = vpop.f32.mrf.mxu2 }
 0x85a   : > { %v9350_v56 = vpop.f32.mrf.mxu3  ;;  %v9349_v41 = vadd.f32 %v9348_v10, %v9180_v57  ;;  %v14704_v10 = vld [vmem:[%s20443_s6 + $0x218] sm:$0xff]  ;;  %v9571_v45 = vpop.f32.mrf.mxu0  ;;  %v19487_v57 = vld [vmem:[#allocation2 + $0x68] sm:$0xff] }
 0x85b   : > { %11667 = vmatpush.bf16.msra.mxu2 %v14704_v10  ;;  %v11267_v19 = vshrl.u32 %v19487_v57, 16  ;;  %v11270_v14 = vshll.u32 %v19487_v57, 16  ;;  %v10544_v10 = vsel %vm5318_vm4, %v10541_v35, %v10543_v61 }
 0x85c   : > { %v19473_v34 = vadd.f32 %v9569_v27, %v9349_v41  ;;  %v10224_v27 = vsel %vm4407_vm3, %v10214_v32, %v10223_v4  ;;  %v10226_v41 = vshrl.u32 %v14644_v51, 16 }
 0x85d   : > { %v11269_v33 = vrot.slane %v11267_v19, 2  ;;  %v11272_v15 = vrot.slane %v11270_v14, 3 }
 0x85e   : > { %v19492_v8 = vpop.f32.mrf.mxu1 }
 0x85f   : > { %10675 = vmatmul.bf16.gmra.mxu3 %v10542_v31  ;;  %v10228_v31 = vrot.slane %v10226_v41, 1 }
 0x861   : > { %v9182_v25 = vpop.f32.mrf.mxu2 }
 0x862   : > { %v10636_v29 = vpop.f32.mrf.mxu3  ;;  %v9351_v60 = vadd.f32 %v9350_v56, %v9182_v25  ;;  %v10231_v25 = vrot.slane %v10229_v17, 2 }
 0x864   : > { %v19484_v44 = vadd.f32 %v9571_v45, %v9351_v60  ;;  %v10928_v45 = vrot.slane %v19467_v63, 2  ;;  %v19506_v63 = vld [vmem:[#allocation2 + $0x70] sm:$0xff] }
 0x865   : > { %11060 = vmatmul.bf16.gmra.mxu0 %v10927_v5  ;;  %11457 = vmatmul.bf16.gmra.mxu1 %v11265_v13  ;;  %v11273_v5 = vor.u32 %v11272_v15, %v11269_v33  ;;  %v11276_v41 = vshrl.u32 %v19506_v63, 16 }
 0x866   : > { %20808 = vst [vmem:[#allocation82_spill] sm:$0xff] %v19484_v44  ;;  %10416 = vmatmul.bf16.gmra.mxu2 %v10224_v27  ;;  %v10232_v27 = vor.u32 %v10231_v25, %v10228_v31 }
 0x867   : > { %v11274_v19 = vsel %vm6623_vm5, %v11264_v16, %v11273_v5  ;;  %v11278_v15 = vrot.slane %v11276_v41, 2 }
 0x868   : > { %v10233_v35 = vsel %vm4407_vm3, %v10223_v4, %v10232_v27 }
 0x869   : > { %v10377_v56 = vpop.f32.mrf.mxu2 }
 0x86a   : > { %v10638_v30 = vpop.f32.mrf.mxu3  ;;  %v10467_v60 = vadd.f32 %v10377_v56, %v19097_v20  ;;  %v10929_v20 = vsel %vm5318_vm4, %v10926_v22, %v10928_v45  ;;  %v19504_v56 = vpop.f32.mrf.mxu1 }
 0x86b   : > { %20810 = vst [vmem:[#allocation84_spill] sm:$0xff] %v19504_v56 }
 0x86c   : > { %v19494_v32 = vadd.f32 %v10636_v29, %v10467_v60  ;;  %v14645_v29 = vld [vmem:[#allocation2 + $0x60] sm:$0xff] }
 0x86d   : > { %v10235_v22 = vshrl.u32 %v14645_v29, 16  ;;  %v10238_v60 = vshll.u32 %v14645_v29, 16 }
 0x86f   : > { %10680 = vmatmul.bf16.gmra.mxu3 %v10544_v10  ;;  %v10237_v4 = vrot.slane %v10235_v22, 1  ;;  %v10240_v10 = vrot.slane %v10238_v60, 2 }
 0x871   : > { %v10379_v13 = vpop.f32.mrf.mxu2 }
 0x872   : > { %v10641_v44 = vpop.f32.mrf.mxu3  ;;  %v10468_v51 = vadd.f32 %v10379_v13, %v19107_v0  ;;  %v11279_v0 = vshll.u32 %v19506_v63, 16 }
 0x874   : > { %v19501_v14 = vadd.f32 %v10638_v30, %v10468_v51  ;;  %v10545_v30 = vrot.slane %v14645_v29, 2  ;;  %v11281_v31 = vrot.slane %v11279_v0, 3  ;;  %v10930_v51 = vrot.slane %v19487_v57, 2  ;;  %v14646_v57 = vld [vmem:[#allocation2 + $0x68] sm:$0xff] }
 0x875   : > { %11065 = vmatmul.bf16.gmra.mxu0 %v10929_v20  ;;  %11462 = vmatmul.bf16.gmra.mxu1 %v11274_v19  ;;  %v19515_v19 = vpop.f32.mrf.mxu1 }
 0x876   : > { %20809 = vst [vmem:[#allocation83_spill] sm:$0xff] %v19501_v14  ;;  %10421 = vmatmul.bf16.gmra.mxu2 %v10233_v35  ;;  %v10546_v13 = vsel %vm5318_vm4, %v10543_v61, %v10545_v30  ;;  %v11282_v20 = vor.u32 %v11281_v31, %v11278_v15  ;;  %v10241_v14 = vor.u32 %v10240_v10, %v10237_v4  ;;  %v10547_v31 = vrot.slane %v14646_v57, 2 }
 0x878   : > { %v11283_v41 = vsel %vm6623_vm5, %v11273_v5, %v11282_v20  ;;  %v10242_v0 = vsel %vm4407_vm3, %v10232_v27, %v10241_v14  ;;  %v10247_v5 = vshll.u32 %v14646_v57, 16 }
 0x879   : > { %v10382_v17 = vpop.f32.mrf.mxu2 }
 0x87a   : > { %v10643_v16 = vpop.f32.mrf.mxu3  ;;  %v10469_v33 = vadd.f32 %v10382_v17, %v19115_v2  ;;  %v14703_v2 = vld [vmem:[%s20443_s6 + $0x210] sm:$0xff]  ;;  %v19526_v17 = vpop.f32.mrf.mxu0 }
 0x87b   : > { %11668 = vmatpush.bf16.msra.mxu2 %v14703_v2  ;;  %v10548_v2 = vsel %vm5318_vm4, %v10545_v30, %v10547_v31  ;;  %v14647_v30 = vld [vmem:[#allocation2 + $0x70] sm:$0xff] }
 0x87c   : > { %v19511_v25 = vadd.f32 %v10641_v44, %v10469_v33  ;;  %v10931_v44 = vsel %vm5318_vm4, %v10928_v45, %v10930_v51  ;;  %v10244_v33 = vshrl.u32 %v14646_v57, 16 }
 0x87e   : > { %20811 = vst [vmem:[#allocation85_spill] sm:$0xff] %v19511_v25 }
 0x87f   : > { %10685 = vmatmul.bf16.gmra.mxu3 %v10546_v13 }
 0x881   : > { %v10384_v35 = vpop.f32.mrf.mxu2 }
 0x882   : > { %v10646_v56 = vpop.f32.mrf.mxu3  ;;  %v10470_v29 = vadd.f32 %v10384_v35, %v19126_v55  ;;  %v19528_v55 = vld [vmem:[#allocation2 + $0x78] sm:$0xff]  ;;  %v10246_v35 = vrot.slane %v10244_v33, 1 }
 0x883   : > { %v11285_v22 = vshrl.u32 %v19528_v55, 16  ;;  %v11288_v60 = vshll.u32 %v19528_v55, 16 }
 0x884   : > { %v19523_v61 = vadd.f32 %v10643_v16, %v10470_v29  ;;  %v19532_v16 = vpop.f32.mrf.mxu1  ;;  %v10249_v29 = vrot.slane %v10247_v5, 2  ;;  %v10256_v5 = vshll.u32 %v14647_v30, 16 }
 0x885   : > { %11070 = vmatmul.bf16.gmra.mxu0 %v10931_v44  ;;  %11467 = vmatmul.bf16.gmra.mxu1 %v11283_v41  ;;  %20813 = vst [vmem:[#allocation87_spill] sm:$0xff] %v19532_v16  ;;  %v11287_v27 = vrot.slane %v11285_v22, 2  ;;  %v11290_v10 = vrot.slane %v11288_v60, 3  ;;  %v10932_v44 = vrot.slane %v19506_v63, 2 }
 0x886   : > { %20812 = vst [vmem:[#allocation86_spill] sm:$0xff] %v19523_v61  ;;  %10426 = vmatmul.bf16.gmra.mxu2 %v10242_v0  ;;  %v19539_v0 = vpop.f32.mrf.mxu0  ;;  %v10250_v16 = vor.u32 %v10249_v29, %v10246_v35 }
 0x887   : > { %v11291_v41 = vor.u32 %v11290_v10, %v11287_v27 }
 0x888   : > { %v10251_v63 = vsel %vm4407_vm3, %v10241_v14, %v10250_v16 }
 0x889   : > { %v10387_v45 = vpop.f32.mrf.mxu2 }
 0x88a   : > { %v10648_v15 = vpop.f32.mrf.mxu3  ;;  %v10471_v4 = vadd.f32 %v10387_v45, %v19144_v28  ;;  %v10933_v28 = vsel %vm5318_vm4, %v10930_v51, %v10932_v44  ;;  %v19549_v45 = vld [vmem:[#allocation2 + $0x80] sm:$0xff]  ;;  %v10253_v51 = vshrl.u32 %v14647_v30, 16 }
 0x88b   : > { %v11294_v33 = vshrl.u32 %v19549_v45, 16 }
 0x88c   : > { %v19535_v13 = vadd.f32 %v10646_v56, %v10471_v4  ;;  %v11292_v56 = vsel %vm6623_vm5, %v11282_v20, %v11291_v41  ;;  %v19544_v22 = vpop.f32.mrf.mxu1  ;;  %v10255_v14 = vrot.slane %v10253_v51, 1 }
 0x88d   : > { %20815 = vst [vmem:[#allocation89_spill] sm:$0xff] %v19544_v22  ;;  %v11296_v10 = vrot.slane %v11294_v33, 2 }
 0x88e   : > { %20814 = vst [vmem:[#allocation88_spill] sm:$0xff] %v19535_v13  ;;  %v19553_v20 = vpop.f32.mrf.mxu0 }
 0x88f   : > { %10690 = vmatmul.bf16.gmra.mxu3 %v10548_v2  ;;  %v10258_v2 = vrot.slane %v10256_v5, 2 }
 0x891   : > { %v10389_v61 = vpop.f32.mrf.mxu2  ;;  %v10259_v13 = vor.u32 %v10258_v2, %v10255_v14 }
 0x892   : > { %v10651_v25 = vpop.f32.mrf.mxu3  ;;  %v10472_v57 = vadd.f32 %v10389_v61, %v19156_v53  ;;  %v11297_v53 = vshll.u32 %v19549_v45, 16 }
 0x894   : > { %v19546_v60 = vadd.f32 %v10648_v15, %v10472_v57  ;;  %v10549_v15 = vrot.slane %v14647_v30, 2  ;;  %v11299_v35 = vrot.slane %v11297_v53, 3  ;;  %v19558_v57 = vpop.f32.mrf.mxu1 }
 0x895   : > { %11075 = vmatmul.bf16.gmra.mxu0 %v10933_v28  ;;  %11472 = vmatmul.bf16.gmra.mxu1 %v11292_v56  ;;  %v10934_v56 = vrot.slane %v19528_v55, 2  ;;  %v19570_v55 = vld [vmem:[#allocation2 + $0x88] sm:$0xff] }
 0x896   : > { %20816 = vst [vmem:[#allocation90_spill] sm:$0xff] %v19546_v60  ;;  %10431 = vmatmul.bf16.gmra.mxu2 %v10251_v63  ;;  %v10550_v28 = vsel %vm5318_vm4, %v10547_v31, %v10549_v15  ;;  %v11300_v63 = vor.u32 %v11299_v35, %v11296_v10  ;;  %v19565_v33 = vpop.f32.mrf.mxu0  ;;  %v14648_v31 = vld [vmem:[#allocation2 + $0x78] sm:$0xff]  ;;  %v11303_v51 = vshrl.u32 %v19570_v55, 16 }
 0x897   : > { %v10262_v5 = vshrl.u32 %v14648_v31, 16  ;;  %v10551_v10 = vrot.slane %v14648_v31, 2 }
 0x898   : > { %v11305_v14 = vrot.slane %v11303_v51, 2 }
 0x899   : > { %v10392_v61 = vpop.f32.mrf.mxu2 }
 0x89a   : > { %v10653_v4 = vpop.f32.mrf.mxu3  ;;  %v10473_v27 = vadd.f32 %v10392_v61, %v19179_v18  ;;  %v10935_v18 = vsel %vm5318_vm4, %v10932_v44, %v10934_v56  ;;  %v10260_v61 = vsel %vm4407_vm3, %v10250_v16, %v10259_v13  ;;  %v9961_v44 = vadd.f32 %v19099_v9, %v19133_v47  ;;  %v14702_v16 = vld [vmem:[%s20443_s6 + $0x208] sm:$0xff] }
 0x89b   : > { %11669 = vmatpush.bf16.msra.mxu2 %v14702_v16  ;;  %v10552_v9 = vsel %vm5318_vm4, %v10549_v15, %v10551_v10  ;;  %v10936_v47 = vrot.slane %v19549_v45, 2  ;;  %v14649_v15 = vld [vmem:[#allocation2 + $0x80] sm:$0xff]  ;;  %v19596_v16 = vld [vmem:[#allocation2 + $0x90] sm:$0xff] }
 0x89c   : > { %v19556_v29 = vadd.f32 %v10651_v25, %v10473_v27  ;;  %v11301_v25 = vsel %vm6623_vm5, %v11291_v41, %v11300_v63 }
 0x89f   : > { %10695 = vmatmul.bf16.gmra.mxu3 %v10550_v28 }
 0x8a1   : > { %v10394_v60 = vpop.f32.mrf.mxu2 }
 0x8a2   : > { %v10656_v22 = vpop.f32.mrf.mxu3  ;;  %v10474_v30 = vadd.f32 %v10394_v60, %v19209_v39  ;;  %v11306_v39 = vshll.u32 %v19570_v55, 16  ;;  %v19574_v60 = vpop.f32.mrf.mxu1 }
 0x8a4   : > { %v19567_v53 = vadd.f32 %v10653_v4, %v10474_v30  ;;  %v10265_v4 = vshll.u32 %v14648_v31, 16  ;;  %v11308_v2 = vrot.slane %v11306_v39, 3  ;;  %v10264_v30 = vrot.slane %v10262_v5, 1 }
 0x8a5   : > { %11080 = vmatmul.bf16.gmra.mxu0 %v10935_v18  ;;  %11477 = vmatmul.bf16.gmra.mxu1 %v11301_v25  ;;  %v19583_v25 = vpop.f32.mrf.mxu0  ;;  %v10937_v5 = vsel %vm5318_vm4, %v10934_v56, %v10936_v47  ;;  %v9963_v56 = vadd.f32 %v19117_v21, %v19152_v42  ;;  %v9964_v42 = vadd.f32 %v19128_v7, %v19171_v24 }
 0x8a6   : > { %10436 = vmatmul.bf16.gmra.mxu2 %v10260_v61  ;;  %v10267_v18 = vrot.slane %v10265_v4, 2  ;;  %v11309_v31 = vor.u32 %v11308_v2, %v11305_v14  ;;  %v9962_v61 = vadd.f32 %v19109_v50, %v19139_v54  ;;  %v11312_v50 = vshrl.u32 %v19596_v16, 16 }
 0x8a7   : > { %v11315_v54 = vshll.u32 %v19596_v16, 16  ;;  %v10274_v2 = vshll.u32 %v14649_v15, 16  ;;  %v9965_v24 = vadd.f32 %v19135_v23, %v19190_v11 }
 0x8a8   : > { %v11310_v4 = vsel %vm6623_vm5, %v11300_v63, %v11309_v31 }
 0x8a9   : > { %v10397_v41 = vpop.f32.mrf.mxu2 }
 0x8aa   : > { %v10658_v27 = vpop.f32.mrf.mxu3  ;;  %v10475_v35 = vadd.f32 %v10397_v41, %v9961_v44  ;;  %v10268_v41 = vor.u32 %v10267_v18, %v10264_v30  ;;  %v19589_v51 = vpop.f32.mrf.mxu1  ;;  %v10553_v18 = vrot.slane %v14649_v15, 2 }
 0x8ac   : > { %v19581_v28 = vadd.f32 %v10656_v22, %v10475_v35  ;;  %v10269_v45 = vsel %vm4407_vm3, %v10259_v13, %v10268_v41  ;;  %v11317_v13 = vrot.slane %v11315_v54, 3 }
 0x8ad   : > { %v19600_v14 = vpop.f32.mrf.mxu0 }
 0x8ae   : > { %20817 = vst [vmem:[#allocation91_spill] sm:$0xff] %v19581_v28 }
 0x8af   : > { %10700 = vmatmul.bf16.gmra.mxu3 %v10552_v9 }
 0x8b1   : > { %v10399_v44 = vpop.f32.mrf.mxu2 }
 0x8b2   : > { %v10661_v22 = vpop.f32.mrf.mxu3  ;;  %v10476_v39 = vadd.f32 %v10399_v44, %v9962_v61  ;;  %v11314_v61 = vrot.slane %v11312_v50, 2  ;;  %v19604_v44 = vpop.f32.mrf.mxu1 }
 0x8b4   : > { %v19593_v35 = vadd.f32 %v10658_v27, %v10476_v39  ;;  %v10271_v27 = vshrl.u32 %v14649_v15, 16  ;;  %v11318_v21 = vor.u32 %v11317_v13, %v11314_v61  ;;  %v19623_v61 = vld [vmem:[#allocation2 + $0x98] sm:$0xff] }
 0x8b5   : > { %11085 = vmatmul.bf16.gmra.mxu0 %v10937_v5  ;;  %11482 = vmatmul.bf16.gmra.mxu1 %v11310_v4  ;;  %v10276_v4 = vrot.slane %v10274_v2, 2 }
 0x8b6   : > { %20818 = vst [vmem:[#allocation92_spill] sm:$0xff] %v19593_v35  ;;  %10441 = vmatmul.bf16.gmra.mxu2 %v10269_v45  ;;  %v10273_v5 = vrot.slane %v10271_v27, 1  ;;  %v10554_v45 = vsel %vm5318_vm4, %v10551_v10, %v10553_v18  ;;  %v10938_v35 = vrot.slane %v19570_v55, 2  ;;  %v14650_v10 = vld [vmem:[#allocation2 + $0x88] sm:$0xff] }
 0x8b7   : > { %v10555_v13 = vrot.slane %v14650_v10, 2 }
 0x8b8   : > { %v10277_v15 = vor.u32 %v10276_v4, %v10273_v5 }
 0x8b9   : > { %v10402_v63 = vpop.f32.mrf.mxu2  ;;  %v10556_v11 = vsel %vm5318_vm4, %v10553_v18, %v10555_v13 }
 0x8ba   : > { %v10663_v30 = vpop.f32.mrf.mxu3  ;;  %v10477_v9 = vadd.f32 %v10402_v63, %v9963_v56  ;;  %v19612_v56 = vpop.f32.mrf.mxu0  ;;  %v11319_v63 = vsel %vm6623_vm5, %v11309_v31, %v11318_v21  ;;  %v10278_v55 = vsel %vm4407_vm3, %v10268_v41, %v10277_v15  ;;  %v11324_v31 = vshll.u32 %v19623_v61, 16 }
 0x8bb   : > { %v19619_v2 = vpop.f32.mrf.mxu1 }
 0x8bc   : > { %v19606_v39 = vadd.f32 %v10661_v22, %v10477_v9  ;;  %v10939_v22 = vsel %vm5318_vm4, %v10936_v47, %v10938_v35  ;;  %v10280_v9 = vshrl.u32 %v14650_v10, 16  ;;  %v11321_v47 = vshrl.u32 %v19623_v61, 16 }
 0x8bd   : > { %v11326_v23 = vrot.slane %v11324_v31, 3  ;;  %v14651_v31 = vld [vmem:[#allocation2 + $0x90] sm:$0xff] }
 0x8bf   : > { %10705 = vmatmul.bf16.gmra.mxu3 %v10554_v45  ;;  %v10282_v45 = vrot.slane %v10280_v9, 1 }
 0x8c1   : > { %v10404_v28 = vpop.f32.mrf.mxu2 }
 0x8c2   : > { %v10666_v50 = vpop.f32.mrf.mxu3  ;;  %v10478_v54 = vadd.f32 %v10404_v28, %v9964_v42  ;;  %v10283_v28 = vshll.u32 %v14650_v10, 16  ;;  %v19627_v4 = vpop.f32.mrf.mxu0  ;;  %v9966_v10 = vadd.f32 %v19146_v49, %v19228_v6  ;;  %v11330_v49 = vshrl.u32 %v19003_v46, 16 }
 0x8c3   : > { %v11333_v6 = vshll.u32 %v19003_v46, 16  ;;  %v10025_v46 = vld [vmem:[#allocation2 + $0x98] sm:$0x1] }
 0x8c4   : > { %v19616_v27 = vadd.f32 %v10663_v30, %v10478_v54  ;;  %v10285_v42 = vrot.slane %v10283_v28, 2  ;;  %v11323_v54 = vrot.slane %v11321_v47, 2 }
 0x8c5   : > { %11090 = vmatmul.bf16.gmra.mxu0 %v10939_v22  ;;  %11487 = vmatmul.bf16.gmra.mxu1 %v11319_v63  ;;  %v10940_v22 = vrot.slane %v19596_v16, 2  ;;  %v14701_v63 = vld [vmem:[%s20443_s6 + $0x200] sm:$0xff] }
 0x8c6   : > { %10446 = vmatmul.bf16.gmra.mxu2 %v10278_v55  ;;  %v19636_v55 = vpop.f32.mrf.mxu1 }
 0x8c7   : > { %11670 = vmatpush.bf16.msra.mxu2 %v14701_v63  ;;  %v10941_v18 = vsel %vm5318_vm4, %v10938_v35, %v10940_v22 }
 0x8c9   : > { %v10407_v7 = vpop.f32.mrf.mxu2 }
 0x8ca   : > { %v10668_v30 = vpop.f32.mrf.mxu3  ;;  %v10479_v5 = vadd.f32 %v10407_v7, %v9965_v24  ;;  %v10286_v24 = vor.u32 %v10285_v42, %v10282_v45  ;;  %v11327_v7 = vor.u32 %v11326_v23, %v11323_v54  ;;  %v9967_v45 = vadd.f32 %v19164_v37, %v19251_v62 }
 0x8cb   : > { %v10289_v42 = vshrl.u32 %v14651_v31, 16  ;;  %v10557_v23 = vrot.slane %v14651_v31, 2  ;;  %v9968_v62 = vadd.f32 %v19181_v40, %v19285_v36 }
 0x8cc   : > { %v19629_v41 = vadd.f32 %v10666_v50, %v10479_v5  ;;  %v11328_v47 = vsel %vm6623_vm5, %v11318_v21, %v11327_v7  ;;  %v10287_v5 = vsel %vm4407_vm3, %v10277_v15, %v10286_v24  ;;  %v10292_v21 = vshll.u32 %v14651_v31, 16 }
 0x8cd   : > { %v11335_v15 = vrot.slane %v11333_v6, 3  ;;  %v10942_v31 = vrot.slane %v19623_v61, 2 }
 0x8cf   : > { %10710 = vmatmul.bf16.gmra.mxu3 %v10556_v11  ;;  %v19645_v11 = vpop.f32.mrf.mxu0 }
 0x8d1   : > { %v10409_v50 = vpop.f32.mrf.mxu2 }
 0x8d2   : > { %v10671_v9 = vpop.f32.mrf.mxu3  ;;  %v10480_v28 = vadd.f32 %v10409_v50, %v9966_v10  ;;  %v11332_v10 = vrot.slane %v11330_v49, 2 }
 0x8d4   : > { %v19642_v16 = vadd.f32 %v10668_v30, %v10480_v28  ;;  %v19651_v30 = vpop.f32.mrf.mxu1  ;;  %v10291_v28 = vrot.slane %v10289_v42, 1 }
 0x8d5   : > { %11095 = vmatmul.bf16.gmra.mxu0 %v10941_v18  ;;  %11492 = vmatmul.bf16.gmra.mxu1 %v11328_v47  ;;  %v10294_v18 = vrot.slane %v10292_v21, 2  ;;  %v10558_v47 = vsel %vm5318_vm4, %v10555_v13, %v10557_v23 }
 0x8d6   : > { %20819 = vst [vmem:[#allocation93_spill] sm:$0xff] %v19642_v16  ;;  %10451 = vmatmul.bf16.gmra.mxu2 %v10287_v5  ;;  %v11336_v5 = vor.u32 %v11335_v15, %v11332_v10 }
 0x8d7   : > { %v19656_v37 = vpop.f32.mrf.mxu0 }
 0x8d8   : > { %v11337_v42 = vsel %vm6623_vm5, %v11327_v7, %v11336_v5  ;;  %v9970_v5 = vadd.f32 %v19240_v59, %v19327_v3 }
 0x8d9   : > { %v10412_v35 = vpop.f32.mrf.mxu2 }
 0x8da   : > { %v10673_v54 = vpop.f32.mrf.mxu3  ;;  %v10481_v63 = vadd.f32 %v10412_v35, %v9967_v45  ;;  %v10295_v45 = vor.u32 %v10294_v18, %v10291_v28  ;;  %v10943_v35 = vsel %vm5318_vm4, %v10940_v22, %v10942_v31 }
 0x8dc   : > { %v19653_v50 = vadd.f32 %v10671_v9, %v10481_v63  ;;  %v10116_v9 = vunpack.c.l.b16 %v10025_v46  ;;  %v19663_v13 = vpop.f32.mrf.mxu1  ;;  %v10798_v63 = vld [vmem:[#allocation2 + $0xa0] sm:$0x1]  ;;  %v10296_v40 = vsel %vm4407_vm3, %v10286_v24, %v10295_v45 }
 0x8dd   : > { %v10889_v61 = vunpack.c.l.b16 %v10798_v63  ;;  %v9971_v63 = vadd.f32 %v19268_v48, %v19336_v43 }
 0x8de   : > { %v10135_v36 = vpack.c.b16 %v10116_v9, %v10116_v9 }
 0x8df   : > { %10715 = vmatmul.bf16.gmra.mxu3 %v10558_v47  ;;  %v19670_v15 = vpop.f32.mrf.mxu0  ;;  %v10908_v18 = vpack.c.b16 %v10889_v61, %v10889_v61 }
 0x8e0   : > { %v10559_v7 = vrot.slane %v10135_v36, 2  ;;  %v10298_v47 = vshll.u32 %v10135_v36, 16 }
 0x8e1   : > { %v10414_v16 = vpop.f32.mrf.mxu2  ;;  %v10944_v24 = vrot.slane %v10908_v18, 2 }
 0x8e2   : > { %v10676_v49 = vpop.f32.mrf.mxu3  ;;  %v10482_v6 = vadd.f32 %v10414_v16, %v9968_v62  ;;  %v9969_v16 = vadd.f32 %v19211_v38, %v19309_v12  ;;  %v10560_v46 = vsel %vm5318_vm4, %v10557_v23, %v10559_v7  ;;  %v11539_v23 = vld [vmem:[#allocation2 + $0x10] sm:$0x8] }
 0x8e3   : > { %v10945_v9 = vsel %vm5318_vm4, %v10942_v31, %v10944_v24  ;;  %v11558_v59 = vunpack.c.l.b16 %v11539_v23  ;;  %v20821_v31 = vunpack.c.l.b16 %v19253_v52  ;;  %v20825_v52 = vld [vmem:[#allocation59_spill] sm:$0xff] }
 0x8e4   : > { %v19665_v21 = vadd.f32 %v10673_v54, %v10482_v6  ;;  %v10300_v6 = vrot.slane %v10298_v47, 2 }
 0x8e5   : > { %11100 = vmatmul.bf16.gmra.mxu0 %v10943_v35  ;;  %11497 = vmatmul.bf16.gmra.mxu1 %v11337_v42 }
 0x8e6   : > { %10456 = vmatmul.bf16.gmra.mxu2 %v10296_v40 }
 0x8e7   : > { %v19678_v35 = vpop.f32.mrf.mxu0 }
 0x8e9   : > { %v10417_v10 = vpop.f32.mrf.mxu2 }
 0x8ea   : > { %v10678_v22 = vpop.f32.mrf.mxu3  ;;  %v10483_v28 = vadd.f32 %v10417_v10, %v9969_v16  ;;  %v11559_v16 = vpack.c.b16 %v20821_v31, %v11558_v59  ;;  %v20822_v10 = vld [vmem:[#allocation57_spill] sm:$0xff]  ;;  %v20829_v59 = vld [vmem:[#allocation56_spill] sm:$0xff] }
 0x8ec   : > { %v19672_v54 = vadd.f32 %v10676_v49, %v10483_v28  ;;  %v10301_v49 = vsel %vm4407_vm3, %v10295_v45, %v10300_v6  ;;  %v11560_v18 = vrot.slane %v11559_v16, 3  ;;  %v20826_v6 = vld [vmem:[#allocation55_spill] sm:$0xff] }
 0x8ed   : > { %v14830_v16 = vld [vmem:[#allocation2 + $0x20] sm:$0xff] }
 0x8ef   : > { %10720 = vmatmul.bf16.gmra.mxu3 %v10560_v46  ;;  %v14829_v46 = vld [vmem:[#allocation2 + $0x18] sm:$0xff]  ;;  %v19693_v48 = vpop.f32.mrf.mxu0 }
 0x8f0   : > { %v11561_v24 = vrot.slane %v14829_v46, 3 }
 0x8f1   : > { %v10419_v62 = vpop.f32.mrf.mxu2 }
 0x8f2   : > { %v10681_v38 = vpop.f32.mrf.mxu3  ;;  %v10484_v12 = vadd.f32 %v10419_v62, %v9970_v5  ;;  %v11562_v43 = vsel %vm7416_vm6, %v11560_v18, %v11561_v24  ;;  %v19696_v62 = vpop.f32.mrf.mxu1 }
 0x8f4   : > { %v19680_v42 = vadd.f32 %v10678_v22, %v10484_v12  ;;  %v20823_v22 = vld [vmem:[#allocation54_spill] sm:$0xff] }
 0x8f5   : > { %11105 = vmatmul.bf16.gmra.mxu0 %v10945_v9  ;;  %v9972_v7 = vadd.f32 %v20823_v22, %v20822_v10  ;;  %v11563_v10 = vrot.slane %v14830_v16, 3 }
 0x8f6   : > { %10461 = vmatmul.bf16.gmra.mxu2 %v10301_v49 }
 0x8f9   : > { %v10422_v40 = vpop.f32.mrf.mxu2 }
 0x8fa   : > { %v10683_v3 = vpop.f32.mrf.mxu3  ;;  %v10485_v36 = vadd.f32 %v10422_v40, %v9971_v63  ;;  %v19702_v63 = vpop.f32.mrf.mxu0  ;;  %v20828_v40 = vld [vmem:[#allocation60_spill] sm:$0xff] }
 0x8fc   : > { %v19685_v61 = vadd.f32 %v10681_v38, %v10485_v36  ;;  %v9973_v38 = vadd.f32 %v20826_v6, %v20825_v52  ;;  %v19706_v36 = vpop.f32.mrf.mxu1 }
 0x8fe   : > { %20820 = vst [vmem:[#allocation94_spill] sm:$0xff] %v19685_v61 }
 0x901   : > { %v10424_v28 = vpop.f32.mrf.mxu2 }
 0x902   : > { %v10486_v45 = vadd.f32 %v10424_v28, %v9972_v7  ;;  %v10686_v47 = vpop.f32.mrf.mxu3  ;;  %v11564_v28 = vsel %vm7416_vm6, %v11561_v24, %v11563_v10 }
 0x904   : > { %v19691_v5 = vadd.f32 %v10683_v3, %v10486_v45  ;;  %v9974_v3 = vadd.f32 %v20829_v59, %v20828_v40  ;;  %v20831_v45 = vld [vmem:[#allocation62_spill] sm:$0xff]  ;;  %v20835_v40 = vld [vmem:[#allocation61_spill] sm:$0xff] }
 0x906   : > { %20824 = vst [vmem:[#allocation57_spill] sm:$0xff] %v19691_v5  ;;  %11671 = vmatmul.bf16.vlgmr.msra.gmra.mxu2 %v11562_v43  ;;  %v19713_v43 = vpop.f32.mrf.mxu0  ;;  %v20846_v5 = vld [vmem:[#allocation70_spill] sm:$0xff] }
 0x909   : > { %v10427_v12 = vpop.f32.mrf.mxu2 }
 0x90a   : > { %v10487_v9 = vadd.f32 %v10427_v12, %v9973_v38  ;;  %v10688_v23 = vpop.f32.mrf.mxu3  ;;  %v19715_v38 = vpop.f32.mrf.mxu1 }
 0x90c   : > { %v19700_v49 = vadd.f32 %v10686_v47, %v10487_v9  ;;  %v20832_v47 = vld [vmem:[#allocation58_spill] sm:$0xff]  ;;  %v20834_v9 = vld [vmem:[#allocation64_spill] sm:$0xff] }
 0x90d   : > { %v9975_v46 = vadd.f32 %v20832_v47, %v20831_v45  ;;  %v9976_v59 = vadd.f32 %v20835_v40, %v20834_v9 }
 0x90e   : > { %20827 = vst [vmem:[#allocation54_spill] sm:$0xff] %v19700_v49 }
 0x911   : > { %v10429_v31 = vpop.f32.mrf.mxu2 }
 0x912   : > { %v10488_v22 = vadd.f32 %v10429_v31, %v9974_v3  ;;  %v10691_v18 = vpop.f32.mrf.mxu3  ;;  %v14831_v31 = vld [vmem:[#allocation2 + $0x28] sm:$0xff]  ;;  %v19725_v45 = vpop.f32.mrf.mxu1 }
 0x913   : > { %v11565_v24 = vrot.slane %v14831_v31, 3 }
 0x914   : > { %v19708_v7 = vadd.f32 %v10688_v23, %v10488_v22  ;;  %v19721_v22 = vpop.f32.mrf.mxu0 }
 0x915   : > { %v11566_v47 = vsel %vm7416_vm6, %v11563_v10, %v11565_v24 }
 0x916   : > { %20830 = vst [vmem:[#allocation59_spill] sm:$0xff] %v19708_v7  ;;  %11676 = vmatmul.bf16.gmra.mxu2 %v11564_v28  ;;  %v20841_v7 = vld [vmem:[#allocation21_spill] sm:$0xff] }
 0x917   : > { %v20842_v10 = vrot.slane %v20841_v7, 3 }
 0x919   : > { %v10432_v52 = vpop.f32.mrf.mxu2 }
 0x91a   : > { %v10489_v6 = vadd.f32 %v10432_v52, %v9975_v46  ;;  %v10693_v23 = vpop.f32.mrf.mxu3  ;;  %v19732_v31 = vpop.f32.mrf.mxu1 }
 0x91c   : > { %v19717_v12 = vadd.f32 %v10691_v18, %v10489_v6  ;;  %v20837_v18 = vld [vmem:[#allocation63_spill] sm:$0xff] }
 0x91d   : > { %v9977_v46 = vadd.f32 %v20837_v18, %v19387_v58  ;;  %v20843_v18 = vld [vmem:[#allocation68_spill] sm:$0xff] }
 0x91e   : > { %20833 = vst [vmem:[#allocation55_spill] sm:$0xff] %v19717_v12  ;;  %v19730_v12 = vpop.f32.mrf.mxu0 }
 0x921   : > { %v10434_v3 = vpop.f32.mrf.mxu2 }
 0x922   : > { %v10490_v16 = vadd.f32 %v10434_v3, %v9976_v59  ;;  %v10696_v9 = vpop.f32.mrf.mxu3  ;;  %v20838_v59 = vld [vmem:[#allocation67_spill] sm:$0xff]  ;;  %v20839_v3 = vld [vmem:[#allocation65_spill] sm:$0xff] }
 0x924   : > { %v19723_v28 = vadd.f32 %v10693_v23, %v10490_v16  ;;  %v9978_v23 = vadd.f32 %v20839_v3, %v20838_v59  ;;  %v20847_v59 = vld [vmem:[#allocation69_spill] sm:$0xff] }
 0x925   : > { %v9980_v3 = vadd.f32 %v20847_v59, %v20846_v5  ;;  %v20856_v5 = vld [vmem:[#allocation73_spill] sm:$0xff]  ;;  %v20857_v59 = vld [vmem:[#allocation72_spill] sm:$0xff] }
 0x926   : > { %20836 = vst [vmem:[#allocation60_spill] sm:$0xff] %v19723_v28  ;;  %11681 = vmatmul.bf16.gmra.mxu2 %v11566_v47  ;;  %v11568_v47 = vsel %vm7416_vm6, %v11565_v24, %v20842_v10  ;;  %v19741_v58 = vpop.f32.mrf.mxu0  ;;  %v20851_v10 = vld [vmem:[#allocation24_spill] sm:$0xff] }
 0x929   : > { %v10437_v52 = vpop.f32.mrf.mxu2 }
 0x92a   : > { %v10491_v6 = vadd.f32 %v10437_v52, %v9977_v46  ;;  %v20844_v46 = vld [vmem:[#allocation66_spill] sm:$0xff] }
 0x92b   : > { %v9979_v52 = vadd.f32 %v20844_v46, %v20843_v18 }
 0x92c   : > { %v10750_v40 = vadd.f32 %v10696_v9, %v10491_v6  ;;  %v19745_v6 = vpop.f32.mrf.mxu1 }
 0x931   : > { %v10439_v16 = vpop.f32.mrf.mxu2 }
 0x932   : > { %v19736_v28 = vadd.f32 %v10439_v16, %v9978_v23  ;;  %v19751_v23 = vpop.f32.mrf.mxu0 }
 0x933   : > { %20848 = vst [vmem:[#allocation58_spill] sm:$0xff] %v19751_v23 }
 0x934   : > { %20840 = vst [vmem:[#allocation56_spill] sm:$0xff] %v19736_v28  ;;  %v19755_v24 = vpop.f32.mrf.mxu1 }
 0x935   : > { %20850 = vst [vmem:[#allocation61_spill] sm:$0xff] %v19755_v24  ;;  %v20866_v24 = vld [vmem:[#allocation76_spill] sm:$0xff] }
 0x936   : > { %11686 = vmatmul.bf16.gmra.mxu2 %v11568_v47  ;;  %v20852_v47 = vld [vmem:[#allocation71_spill] sm:$0xff] }
 0x937   : > { %v9981_v18 = vadd.f32 %v20852_v47, %v19421_v1  ;;  %v20862_v1 = vld [vmem:[#allocation75_spill] sm:$0xff]  ;;  %v20863_v47 = vld [vmem:[#allocation74_spill] sm:$0xff] }
 0x939   : > { %v10442_v9 = vpop.f32.mrf.mxu2 }
 0x93a   : > { %v19747_v49 = vadd.f32 %v10442_v9, %v9979_v52  ;;  %v19762_v52 = vpop.f32.mrf.mxu0 }
 0x93b   : > { %20854 = vst [vmem:[#allocation67_spill] sm:$0xff] %v19762_v52 }
 0x93c   : > { %20845 = vst [vmem:[#allocation62_spill] sm:$0xff] %v19747_v49  ;;  %v19764_v9 = vpop.f32.mrf.mxu1  ;;  %v9982_v49 = vadd.f32 %v20857_v59, %v20856_v5 }
 0x93d   : > { %20855 = vst [vmem:[#allocation65_spill] sm:$0xff] %v19764_v9  ;;  %v20865_v9 = vld [vmem:[#allocation77_spill] sm:$0xff] }
 0x93e   : > { %v9984_v5 = vadd.f32 %v20866_v24, %v20865_v9 }
 0x941   : > { %v10444_v16 = vpop.f32.mrf.mxu2 }
 0x942   : > { %v19753_v7 = vadd.f32 %v10444_v16, %v9980_v3  ;;  %v19770_v16 = vpop.f32.mrf.mxu0 }
 0x943   : > { %20859 = vst [vmem:[#allocation68_spill] sm:$0xff] %v19770_v16 }
 0x944   : > { %20849 = vst [vmem:[#allocation64_spill] sm:$0xff] %v19753_v7  ;;  %v20860_v7 = vld [vmem:[#allocation6_spill] sm:$0xff] }
 0x946   : > { %11691 = vmatmul.bf16.gmra.mxu2 %v20851_v10  ;;  %v19773_v10 = vpop.f32.mrf.mxu1 }
 0x947   : > { %20861 = vst [vmem:[#allocation66_spill] sm:$0xff] %v19773_v10  ;;  %v20871_v10 = vld [vmem:[#allocation79_spill] sm:$0xff] }
 0x949   : > { %v10447_v46 = vpop.f32.mrf.mxu2 }
 0x94a   : > { %v19760_v28 = vadd.f32 %v10447_v46, %v9981_v18  ;;  %v9983_v18 = vadd.f32 %v20863_v47, %v20862_v1  ;;  %v19779_v52 = vpop.f32.mrf.mxu0 }
 0x94c   : > { %20853 = vst [vmem:[#allocation63_spill] sm:$0xff] %v19760_v28 }
 0x94e   : > { %v19783_v59 = vpop.f32.mrf.mxu1 }
 0x94f   : > { %20867 = vst [vmem:[#allocation69_spill] sm:$0xff] %v19783_v59 }
 0x951   : > { %v10449_v23 = vpop.f32.mrf.mxu2 }
 0x952   : > { %v19768_v3 = vadd.f32 %v10449_v23, %v9982_v49  ;;  %v19790_v61 = vpop.f32.mrf.mxu0 }
 0x954   : > { %20858 = vst [vmem:[#allocation21_spill] sm:$0xff] %v19768_v3  ;;  %v20869_v3 = vld [vmem:[#allocation10_spill] sm:$0xff] }
 0x956   : > { %11696 = vmatmul.bf16.gmra.mxu2 %v20860_v7  ;;  %v20870_v7 = vld [vmem:[#allocation78_spill] sm:$0xff] }
 0x957   : > { %v9985_v16 = vadd.f32 %v20871_v10, %v20870_v7  ;;  %v9987_v10 = vadd.f32 %v19477_v26, %v19473_v34  ;;  %v20880_v26 = vld [vmem:[#allocation84_spill] sm:$0xff] }
 0x959   : > { %v10452_v46 = vpop.f32.mrf.mxu2 }
 0x95a   : > { %v19777_v28 = vadd.f32 %v10452_v46, %v9983_v18  ;;  %v19794_v18 = vpop.f32.mrf.mxu1  ;;  %v20874_v46 = vld [vmem:[#allocation80_spill] sm:$0xff] }
 0x95b   : > { %20873 = vst [vmem:[#allocation73_spill] sm:$0xff] %v19794_v18  ;;  %v20878_v18 = vld [vmem:[#allocation82_spill] sm:$0xff] }
 0x95c   : > { %20864 = vst [vmem:[#allocation70_spill] sm:$0xff] %v19777_v28  ;;  %v20875_v28 = vld [vmem:[#allocation81_spill] sm:$0xff] }
 0x95d   : > { %v9986_v24 = vadd.f32 %v20875_v28, %v20874_v46  ;;  %v9988_v28 = vadd.f32 %v19492_v8, %v20878_v18  ;;  %v20884_v18 = vld [vmem:[#allocation85_spill] sm:$0xff] }
 0x961   : > { %v10454_v49 = vpop.f32.mrf.mxu2 }
 0x962   : > { %v19785_v23 = vadd.f32 %v10454_v49, %v9984_v5  ;;  %v19800_v5 = vpop.f32.mrf.mxu0  ;;  %v19802_v49 = vpop.f32.mrf.mxu1 }
 0x964   : > { %20868 = vst [vmem:[#allocation24_spill] sm:$0xff] %v19785_v23 }
 0x966   : > { %11701 = vmatmul.bf16.gmra.mxu2 %v20869_v3  ;;  %v20877_v3 = vld [vmem:[#allocation29_spill] sm:$0xff] }
 0x969   : > { %v10457_v1 = vpop.f32.mrf.mxu2 }
 0x96a   : > { %v19792_v47 = vadd.f32 %v10457_v1, %v9985_v16  ;;  %v11081_v1 = vpop.f32.mrf.mxu0  ;;  %v11473_v23 = vpop.f32.mrf.mxu1 }
 0x96c   : > { %20872 = vst [vmem:[#allocation71_spill] sm:$0xff] %v19792_v47  ;;  %v11135_v47 = vadd.f32 %v11081_v1, %v10750_v40  ;;  %v20882_v40 = vld [vmem:[#allocation83_spill] sm:$0xff] }
 0x96d   : > { %v11112_v1 = vadd.f32 %v19539_v0, %v20882_v40 }
 0x96e   : > { %v19811_v46 = vadd.f32 %v11473_v23, %v11135_v47 }
 0x96f   : > { %v11504_v8 = vadd.f32 %v19515_v19, %v11112_v1  ;;  %v20891_v1 = vld [vmem:[#allocation88_spill] sm:$0xff] }
 0x971   : > { %v10459_v9 = vpop.f32.mrf.mxu2 }
 0x972   : > { %v19798_v59 = vadd.f32 %v10459_v9, %v9986_v24 }
 0x974   : > { %20876 = vst [vmem:[#allocation72_spill] sm:$0xff] %v19798_v59  ;;  %v20879_v59 = vld [vmem:[#allocation7_spill] sm:$0xff] }
 0x976   : > { %11706 = vmatmul.bf16.gmra.mxu2 %v20877_v3  ;;  %v11111_v3 = vadd.f32 %v19526_v17, %v19494_v32  ;;  %v20886_v32 = vld [vmem:[#allocation87_spill] sm:$0xff] }
 0x978   : > { %v11503_v34 = vadd.f32 %v20880_v26, %v11111_v3  ;;  %v20888_v26 = vld [vmem:[#allocation86_spill] sm:$0xff] }
 0x979   : > { %v10462_v7 = vpop.f32.mrf.mxu2 }
 0x97a   : > { %v19807_v16 = vadd.f32 %v10462_v7, %v9987_v10 }
 0x981   : > { %v10464_v24 = vpop.f32.mrf.mxu2 }
 0x982   : > { %v19813_v9 = vadd.f32 %v10464_v24, %v9988_v28  ;;  %v11113_v28 = vadd.f32 %v19553_v20, %v20884_v18  ;;  %v20885_v24 = vld [vmem:[#allocation31_spill] sm:$0xff] }
 0x984   : > { %v11505_v17 = vadd.f32 %v20886_v32, %v11113_v28 }
 0x986   : > { %11711 = vmatmul.bf16.gmra.mxu2 %v20879_v59 }
 0x989   : > { %v11672_v10 = vpop.f32.mrf.mxu2 }
 0x98a   : > { %v19819_v7 = vadd.f32 %v11672_v10, %v11503_v34  ;;  %v11114_v34 = vadd.f32 %v19565_v33, %v20888_v26  ;;  %v20889_v10 = vld [vmem:[#allocation89_spill] sm:$0xff]  ;;  %v11117_v26 = vadd.f32 %v19612_v56, %v19556_v29 }
 0x98c   : > { %20881 = vst [vmem:[#allocation6_spill] sm:$0xff] %v19819_v7  ;;  %v11506_v0 = vadd.f32 %v20889_v10, %v11114_v34  ;;  %v20895_v34 = vld [vmem:[#allocation16_spill] sm:$0xff] }
 0x991   : > { %v11674_v23 = vpop.f32.mrf.mxu2 }
 0x992   : > { %v19824_v47 = vadd.f32 %v11674_v23, %v11504_v8  ;;  %v11115_v8 = vadd.f32 %v19583_v25, %v20891_v1  ;;  %v20892_v23 = vld [vmem:[#allocation32_spill] sm:$0xff]  ;;  %v11509_v25 = vadd.f32 %v19589_v51, %v11117_v26  ;;  %v20898_v1 = vld [vmem:[#allocation91_spill] sm:$0xff] }
 0x994   : > { %20883 = vst [vmem:[#allocation75_spill] sm:$0xff] %v19824_v47  ;;  %v11507_v20 = vadd.f32 %v19558_v57, %v11115_v8  ;;  %v11119_v8 = vadd.f32 %v19645_v11, %v20898_v1  ;;  %v11126_v1 = vadd.f32 %v19721_v22, %v19665_v21 }
 0x996   : > { %11716 = vmatmul.bf16.gmra.mxu2 %v20885_v24  ;;  %v20893_v24 = vld [vmem:[#allocation90_spill] sm:$0xff]  ;;  %v11511_v29 = vadd.f32 %v19619_v2, %v11119_v8 }
 0x997   : > { %v11116_v32 = vadd.f32 %v19600_v14, %v20893_v24  ;;  %v11121_v24 = vadd.f32 %v19670_v15, %v19606_v39 }
 0x999   : > { %v11677_v59 = vpop.f32.mrf.mxu2  ;;  %v11508_v33 = vadd.f32 %v19574_v60, %v11116_v32  ;;  %v20903_v32 = vld [vmem:[#allocation49_spill] sm:$0xff]  ;;  %v11513_v11 = vadd.f32 %v19651_v30, %v11121_v24 }
 0x99a   : > { %v19830_v3 = vadd.f32 %v11677_v59, %v11505_v17 }
 0x99c   : > { %20887 = vst [vmem:[#allocation74_spill] sm:$0xff] %v19830_v3 }
 0x9a1   : > { %v11679_v40 = vpop.f32.mrf.mxu2 }
 0x9a2   : > { %v19835_v19 = vadd.f32 %v11679_v40, %v11506_v0  ;;  %v11118_v0 = vadd.f32 %v19627_v4, %v19567_v53 }
 0x9a4   : > { %20890 = vst [vmem:[#allocation77_spill] sm:$0xff] %v19835_v19  ;;  %v11510_v14 = vadd.f32 %v19604_v44, %v11118_v0 }
 0x9a6   : > { %11721 = vmatmul.bf16.gmra.mxu2 %v20892_v23  ;;  %v20899_v23 = vld [vmem:[#allocation48_spill] sm:$0xff] }
 0x9a9   : > { %v11682_v18 = vpop.f32.mrf.mxu2 }
 0x9aa   : > { %v19841_v28 = vadd.f32 %v11682_v18, %v11507_v20  ;;  %v20901_v20 = vld [vmem:[#allocation92_spill] sm:$0xff] }
 0x9ab   : > { %v11120_v18 = vadd.f32 %v19656_v37, %v20901_v20  ;;  %v20914_v20 = vld [vmem:[#allocation94_spill] sm:$0xff] }
 0x9ad   : > { %v11512_v53 = vadd.f32 %v19636_v55, %v11120_v18  ;;  %v20915_v18 = vld [vmem:[#allocation58_spill] sm:$0xff] }
 0x9b1   : > { %v11684_v17 = vpop.f32.mrf.mxu2 }
 0x9b2   : > { %v19846_v59 = vadd.f32 %v11684_v17, %v11508_v33  ;;  %v11122_v17 = vadd.f32 %v19678_v35, %v19616_v27 }
 0x9b4   : > { %20894 = vst [vmem:[#allocation76_spill] sm:$0xff] %v19846_v59  ;;  %v11514_v37 = vadd.f32 %v19663_v13, %v11122_v17  ;;  %v20921_v17 = vld [vmem:[#allocation65_spill] sm:$0xff] }
 0x9b6   : > { %11726 = vmatmul.bf16.gmra.mxu2 %v20895_v34  ;;  %v11123_v34 = vadd.f32 %v19693_v48, %v19629_v41 }
 0x9b8   : > { %v11515_v39 = vadd.f32 %v19696_v62, %v11123_v34  ;;  %v20924_v34 = vld [vmem:[#allocation68_spill] sm:$0xff] }
 0x9b9   : > { %v11687_v10 = vpop.f32.mrf.mxu2 }
 0x9ba   : > { %v19852_v57 = vadd.f32 %v11687_v10, %v11509_v25  ;;  %v20905_v25 = vld [vmem:[#allocation50_spill] sm:$0xff]  ;;  %v20907_v10 = vld [vmem:[#allocation93_spill] sm:$0xff] }
 0x9bb   : > { %v11124_v0 = vadd.f32 %v19702_v63, %v20907_v10  ;;  %v11518_v63 = vadd.f32 %v19725_v45, %v11126_v1  ;;  %v19949_v1 = vpop.f32.mrf.mxu3 }
 0x9bc   : > { %20896 = vst [vmem:[#allocation10_spill] sm:$0xff] %v19852_v57 }
 0x9bd   : > { %v11516_v27 = vadd.f32 %v19706_v36, %v11124_v0 }
 0x9c1   : > { %v11689_v40 = vpop.f32.mrf.mxu2 }
 0x9c2   : > { %v19857_v60 = vadd.f32 %v11689_v40, %v11510_v14  ;;  %v11125_v14 = vadd.f32 %v19713_v43, %v19653_v50  ;;  %v20909_v40 = vld [vmem:[#allocation51_spill] sm:$0xff] }
 0x9c4   : > { %20897 = vst [vmem:[#allocation78_spill] sm:$0xff] %v19857_v60  ;;  %v11517_v41 = vadd.f32 %v19715_v38, %v11125_v14  ;;  %v20927_v14 = vld [vmem:[#allocation69_spill] sm:$0xff] }
 0x9c6   : > { %11731 = vmatmul.bf16.gmra.mxu2 %v20899_v23  ;;  %v11127_v23 = vadd.f32 %v19730_v12, %v19672_v54  ;;  %v20916_v54 = vld [vmem:[#allocation53_spill] sm:$0xff] }
 0x9c7   : > { %v20917_v12 = vld [vmem:[#allocation61_spill] sm:$0xff] }
 0x9c8   : > { %v11519_v50 = vadd.f32 %v19732_v31, %v11127_v23  ;;  %v19953_v23 = vpop.f32.mrf.mxu0 }
 0x9c9   : > { %v11692_v56 = vpop.f32.mrf.mxu2 }
 0x9ca   : > { %v19863_v51 = vadd.f32 %v11692_v56, %v11511_v29  ;;  %v20912_v29 = vld [vmem:[#allocation52_spill] sm:$0xff]  ;;  %v11128_v56 = vadd.f32 %v19741_v58, %v19680_v42 }
 0x9cc   : > { %20900 = vst [vmem:[#allocation79_spill] sm:$0xff] %v19863_v51  ;;  %v11520_v21 = vadd.f32 %v19745_v6, %v11128_v56 }
 0x9d1   : > { %v11694_v4 = vpop.f32.mrf.mxu2 }
 0x9d2   : > { %v19868_v44 = vadd.f32 %v11694_v4, %v11512_v53  ;;  %v11129_v53 = vadd.f32 %v20915_v18, %v20914_v20  ;;  %v19962_v20 = vpop.f32.mrf.mxu3 }
 0x9d4   : > { %20902 = vst [vmem:[#allocation80_spill] sm:$0xff] %v19868_v44  ;;  %v11521_v4 = vadd.f32 %v20917_v12, %v11129_v53  ;;  %v19965_v53 = vpop.f32.mrf.mxu0 }
 0x9d6   : > { %11736 = vmatmul.bf16.gmra.mxu2 %v20903_v32  ;;  %v20919_v32 = vld [vmem:[#allocation57_spill] sm:$0xff] }
 0x9d9   : > { %v11697_v33 = vpop.f32.mrf.mxu2 }
 0x9da   : > { %v19874_v2 = vadd.f32 %v11697_v33, %v11513_v11  ;;  %v20920_v11 = vld [vmem:[#allocation67_spill] sm:$0xff] }
 0x9db   : > { %v11130_v33 = vadd.f32 %v20920_v11, %v20919_v32 }
 0x9dc   : > { %20904 = vst [vmem:[#allocation81_spill] sm:$0xff] %v19874_v2  ;;  %v19976_v11 = vpop.f32.mrf.mxu0 }
 0x9dd   : > { %v11522_v42 = vadd.f32 %v20921_v17, %v11130_v33 }
 0x9e1   : > { %v11699_v26 = vpop.f32.mrf.mxu2 }
 0x9e2   : > { %v19879_v55 = vadd.f32 %v11699_v26, %v11514_v37  ;;  %v20922_v37 = vmov 0.0   ;;  %v20923_v26 = vld [vmem:[#allocation54_spill] sm:$0xff] }
 0x9e3   : > { %12235 = vst [vmem:[%s19929_s23] sm:$0xff] %v20922_v37 }
 0x9e4   : > { %12236 = vst [vmem:[%s19929_s23 + $0x8] sm:$0xff] %v20922_v37  ;;  %v19984_v17 = vpop.f32.mrf.mxu0 }
 0x9e5   : > { %12274 = vst [vmem:[%s19929_s23 + $0x138] sm:$0xff] %v20922_v37 }
 0x9e6   : > { %11741 = vmatmul.bf16.gmra.mxu2 %v20905_v25  ;;  %v11131_v25 = vadd.f32 %v20924_v34, %v20923_v26  ;;  %12275 = vst [vmem:[%s19929_s23 + $0x140] sm:$0xf] %v20922_v37  ;;  %v20931_v26 = vld [vmem:[#allocation22_spill] sm:$0xff]  ;;  %v20932_v34 = vld [vmem:[#allocation19_spill] sm:$0xff] }
 0x9e9   : > { %v11702_v15 = vpop.f32.mrf.mxu2 }
 0x9ea   : > { %v19885_v30 = vadd.f32 %v11702_v15, %v11515_v39  ;;  %v20925_v39 = vld [vmem:[#allocation66_spill] sm:$0xff] }
 0x9eb   : > { %v11523_v15 = vadd.f32 %v20925_v39, %v11131_v25  ;;  %v11798_v25 = vmul.f32 %v20932_v34, %v19819_v7  ;;  %v20933_v39 = vld [vmem:[#allocation23_spill] sm:$0xff] }
 0x9ec   : > { %20906 = vst [vmem:[#allocation29_spill] sm:$0xff] %v19885_v30 }
 0x9f1   : > { %v11704_v35 = vpop.f32.mrf.mxu2 }
 0x9f2   : > { %v19890_v13 = vadd.f32 %v11704_v35, %v11516_v27  ;;  %v20926_v27 = vld [vmem:[#allocation59_spill] sm:$0xff] }
 0x9f3   : > { %v11132_v35 = vadd.f32 %v19779_v52, %v20926_v27  ;;  %v20930_v52 = vld [vmem:[#allocation60_spill] sm:$0xff] }
 0x9f4   : > { %20908 = vst [vmem:[#allocation82_spill] sm:$0xff] %v19890_v13 }
 0x9f6   : > { %11746 = vmatmul.bf16.gmra.mxu2 %v20909_v40  ;;  %v11524_v40 = vadd.f32 %v20927_v14, %v11132_v35  ;;  %v20934_v35 = vld [vmem:[#allocation25_spill] sm:$0xff] }
 0x9f7   : > { %v11801_v14 = vmul.f32 %v20934_v35, %v19835_v19  ;;  %v20937_v35 = vld [vmem:[#allocation28_spill] sm:$0xff] }
 0x9f9   : > { %v11707_v48 = vpop.f32.mrf.mxu2 }
 0x9fa   : > { %v19896_v62 = vadd.f32 %v11707_v48, %v11517_v41 }
 0x9fc   : > { %20910 = vst [vmem:[#allocation7_spill] sm:$0xff] %v19896_v62 }
 0xa01   : > { %v11709_v8 = vpop.f32.mrf.mxu2 }
 0xa02   : > { %v19901_v36 = vadd.f32 %v11709_v8, %v11518_v63  ;;  %v20928_v63 = vld [vmem:[#allocation55_spill] sm:$0xff] }
 0xa03   : > { %v11133_v8 = vadd.f32 %v19790_v61, %v20928_v63 }
 0xa04   : > { %20911 = vst [vmem:[#allocation84_spill] sm:$0xff] %v19901_v36 }
 0xa06   : > { %11751 = vmatmul.bf16.gmra.mxu2 %v20912_v29  ;;  %v20929_v29 = vld [vmem:[#allocation73_spill] sm:$0xff] }
 0xa09   : > { %v11712_v43 = vpop.f32.mrf.mxu2 }
 0xa0a   : > { %v19907_v38 = vadd.f32 %v11712_v43, %v11519_v50  ;;  %v11525_v50 = vadd.f32 %v20929_v29, %v11133_v8  ;;  %v20935_v8 = vld [vmem:[#allocation26_spill] sm:$0xff] }
 0xa0b   : > { %v11802_v29 = vmul.f32 %v20935_v8, %v19841_v28 }
 0xa11   : > { %v11714_v22 = vpop.f32.mrf.mxu2 }
 0xa12   : > { %v19912_v45 = vadd.f32 %v11714_v22, %v11520_v21  ;;  %v19958_v21 = vpop.f32.mrf.mxu1  ;;  %v11134_v22 = vadd.f32 %v19800_v5, %v20930_v52 }
 0xa14   : > { %20913 = vst [vmem:[#allocation83_spill] sm:$0xff] %v19912_v45  ;;  %v11526_v18 = vadd.f32 %v19802_v49, %v11134_v22  ;;  %v11879_v22 = vmul.f32 %v11801_v14, %v19835_v19 }
 0xa16   : > { %11756 = vmatmul.bf16.gmra.mxu2 %v20916_v54 }
 0xa19   : > { %v11717_v24 = vpop.f32.mrf.mxu2 }
 0xa1a   : > { %v19918_v31 = vadd.f32 %v11717_v24, %v11521_v4  ;;  %v19969_v12 = vpop.f32.mrf.mxu1  ;;  %v19971_v4 = vpop.f32.mrf.mxu3 }
 0xa1c   : > { %20918 = vst [vmem:[#allocation85_spill] sm:$0xff] %v19918_v31 }
 0xa21   : > { %v11719_v58 = vpop.f32.mrf.mxu2 }
 0xa22   : > { %v19924_v6 = vadd.f32 %v11719_v58, %v11522_v42  ;;  %v19978_v5 = vpop.f32.mrf.mxu1  ;;  %v19980_v33 = vpop.f32.mrf.mxu3 }
 0xa29   : > { %v11722_v10 = vpop.f32.mrf.mxu2 }
 0xa2a   : > { %v19942_v0 = vadd.f32 %v11722_v10, %v11523_v15  ;;  %v19986_v42 = vpop.f32.mrf.mxu1  ;;  %v19990_v37 = vpop.f32.mrf.mxu3  ;;  %v11800_v15 = vmul.f32 %v20933_v39, %v19830_v3  ;;  %v11880_v39 = vmul.f32 %v11802_v29, %v19841_v28 }
 0xa2b   : > { %v19998_v10 = vpop.f32.mrf.mxu0 }
 0xa2c   : > { %v11878_v63 = vmul.f32 %v11800_v15, %v19830_v3  ;;  %v11804_v3 = vmul.f32 %v20937_v35, %v19852_v57 }
 0xa31   : > { %v11724_v41 = vpop.f32.mrf.mxu2 }
 0xa32   : > { %v19947_v48 = vadd.f32 %v11724_v41, %v11524_v40  ;;  %v11876_v41 = vmul.f32 %v11798_v25, %v19819_v7 }
 0xa39   : > { %v11727_v43 = vpop.f32.mrf.mxu2 }
 0xa3a   : > { %v19956_v56 = vadd.f32 %v11727_v43, %v11525_v50  ;;  %v20009_v50 = vpop.f32.mrf.mxu1 }
 0xa41   : > { %v11729_v54 = vpop.f32.mrf.mxu2 }
 0xa42   : > { %v19967_v61 = vadd.f32 %v11729_v54, %v11526_v18  ;;  %v20936_v18 = vld [vmem:[#allocation27_spill] sm:$0xff] }
 0xa43   : > { %v11803_v54 = vmul.f32 %v20936_v18, %v19846_v59 }
 0xa45   : > { %v11881_v7 = vmul.f32 %v11803_v54, %v19846_v59 }
 0xa49   : > { %v11732_v24 = vpop.f32.mrf.mxu2 }
 0xa4a   : > { %v19974_v32 = vadd.f32 %v11732_v24, %v19811_v46  ;;  %v11799_v46 = vmul.f32 %v20931_v26, %v19824_v47  ;;  %v20014_v24 = vpop.f32.mrf.mxu3 }
 0xa4c   : > { %v11877_v27 = vmul.f32 %v11799_v46, %v19824_v47  ;;  %v11834_v43 = vadd.f32 %v11799_v46, %v11798_v25  ;;  %v20938_v46 = vld [vmem:[#allocation11_spill] sm:$0xff] }
 0xa4d   : > { %v11805_v25 = vmul.f32 %v20938_v46, %v19857_v60 }
 0xa4e   : > { %v11912_v52 = vadd.f32 %v11877_v27, %v11876_v41  ;;  %v11835_v26 = vadd.f32 %v11834_v43, %v11800_v15  ;;  %v20022_v27 = vpop.f32.mrf.mxu0  ;;  %v11882_v15 = vmul.f32 %v11804_v3, %v19852_v57 }
 0xa50   : > { %v11913_v34 = vadd.f32 %v11912_v52, %v11878_v63  ;;  %v11836_v47 = vadd.f32 %v11835_v26, %v11801_v14  ;;  %v20939_v63 = vld [vmem:[#allocation30_spill] sm:$0xff]  ;;  %v11883_v14 = vmul.f32 %v11805_v25, %v19857_v60 }
 0xa51   : > { %v19982_v49 = vpop.f32.mrf.mxu2  ;;  %v11806_v43 = vmul.f32 %v20939_v63, %v19863_v51 }
 0xa52   : > { %v11914_v8 = vadd.f32 %v11913_v34, %v11879_v22  ;;  %v11837_v41 = vadd.f32 %v11836_v47, %v11802_v29  ;;  %v20940_v22 = vld [vmem:[#allocation3_spill] sm:$0xff]  ;;  %v20032_v34 = vpop.f32.mrf.mxu1  ;;  %v20941_v29 = vld [vmem:[#allocation33_spill] sm:$0xff] }
 0xa53   : > { %v11807_v26 = vmul.f32 %v20940_v22, %v19868_v44  ;;  %v11884_v47 = vmul.f32 %v11806_v43, %v19863_v51 }
 0xa54   : > { %v11915_v19 = vadd.f32 %v11914_v8, %v11880_v39  ;;  %v11838_v52 = vadd.f32 %v11837_v41, %v11803_v54  ;;  %v11808_v39 = vmul.f32 %v20941_v29, %v19874_v2  ;;  %v20037_v8 = vpop.f32.mrf.mxu3 }
 0xa56   : > { %v11916_v35 = vadd.f32 %v11915_v19, %v11881_v7  ;;  %v11839_v46 = vadd.f32 %v11838_v52, %v11804_v3  ;;  %v11885_v7 = vmul.f32 %v11807_v26, %v19868_v44  ;;  %v20942_v19 = vld [vmem:[#allocation4_spill] sm:$0xff]  ;;  %v11886_v3 = vmul.f32 %v11808_v39, %v19874_v2 }
 0xa57   : > { %v11809_v54 = vmul.f32 %v20942_v19, %v19879_v55 }
 0xa58   : > { %v11917_v59 = vadd.f32 %v11916_v35, %v11882_v15  ;;  %v11840_v57 = vadd.f32 %v11839_v46, %v11805_v25  ;;  %v20943_v15 = vld [vmem:[#allocation5_spill] sm:$0xff]  ;;  %v20047_v35 = vpop.f32.mrf.mxu0  ;;  %v20944_v25 = vld [vmem:[#allocation34_spill] sm:$0xff] }
 0xa59   : > { %v19988_v58 = vpop.f32.mrf.mxu2  ;;  %v11810_v52 = vmul.f32 %v20943_v15, %v19885_v30 }
 0xa5a   : > { %v11918_v63 = vadd.f32 %v11917_v59, %v11883_v14  ;;  %v11841_v41 = vadd.f32 %v11840_v57, %v11806_v43  ;;  %v11887_v59 = vmul.f32 %v11809_v54, %v19879_v55  ;;  %v11811_v14 = vmul.f32 %v20944_v25, %v19890_v13  ;;  %v20945_v43 = vld [vmem:[#allocation12_spill] sm:$0xff] }
 0xa5b   : > { %v11888_v57 = vmul.f32 %v11810_v52, %v19885_v30 }
 0xa5c   : > { %v11919_v60 = vadd.f32 %v11918_v63, %v11884_v47  ;;  %v11842_v29 = vadd.f32 %v11841_v41, %v11807_v26  ;;  %v11812_v47 = vmul.f32 %v20945_v43, %v19896_v62  ;;  %v20055_v63 = vpop.f32.mrf.mxu1  ;;  %v11889_v44 = vmul.f32 %v11811_v14, %v19890_v13  ;;  %v20949_v13 = vld [vmem:[#allocation56_spill] sm:$0xff] }
 0xa5e   : > { %v11920_v51 = vadd.f32 %v11919_v60, %v11885_v7  ;;  %v11843_v46 = vadd.f32 %v11842_v29, %v11808_v39  ;;  %v20946_v60 = vld [vmem:[#allocation8_spill] sm:$0xff]  ;;  %v20060_v7 = vpop.f32.mrf.mxu3  ;;  %v11890_v39 = vmul.f32 %v11812_v47, %v19896_v62 }
 0xa5f   : > { %v11813_v26 = vmul.f32 %v20946_v60, %v19901_v36 }
 0xa60   : > { %v11921_v19 = vadd.f32 %v11920_v51, %v11886_v3  ;;  %v11844_v2 = vadd.f32 %v11843_v46, %v11809_v54  ;;  %v20947_v3 = vld [vmem:[#allocation13_spill] sm:$0xff] }
 0xa61   : > { %v20003_v40 = vpop.f32.mrf.mxu2  ;;  %v11814_v29 = vmul.f32 %v20947_v3, %v19907_v38  ;;  %v11891_v54 = vmul.f32 %v11813_v26, %v19901_v36  ;;  %v20951_v3 = vld [vmem:[#allocation62_spill] sm:$0xff] }
 0xa62   : > { %v11922_v15 = vadd.f32 %v11921_v19, %v11887_v59  ;;  %v11845_v41 = vadd.f32 %v11844_v2, %v11810_v52  ;;  %v20948_v59 = vld [vmem:[#allocation35_spill] sm:$0xff]  ;;  %v20070_v19 = vpop.f32.mrf.mxu0  ;;  %v10751_v2 = vadd.f32 %v19949_v1, %v20949_v13 }
 0xa63   : > { %v11815_v46 = vmul.f32 %v20948_v59, %v19912_v45  ;;  %v20952_v59 = vld [vmem:[#allocation15_spill] sm:$0xff] }
 0xa64   : > { %v11923_v51 = vadd.f32 %v11922_v15, %v11888_v57  ;;  %v11846_v43 = vadd.f32 %v11845_v41, %v11811_v14  ;;  %v11892_v57 = vmul.f32 %v11814_v29, %v19907_v38  ;;  %v20950_v15 = vld [vmem:[#allocation14_spill] sm:$0xff]  ;;  %v11817_v36 = vmul.f32 %v20952_v59, %v19924_v6  ;;  %v20084_v13 = vpop.f32.mrf.mxu1 }
 0xa65   : > { %v11816_v62 = vmul.f32 %v20950_v15, %v19918_v31 }
 0xa66   : > { %v11924_v30 = vadd.f32 %v11923_v51, %v11889_v44  ;;  %v11847_v60 = vadd.f32 %v11846_v43, %v11812_v47  ;;  %v10752_v44 = vadd.f32 %v19962_v20, %v20951_v3  ;;  %v11893_v51 = vmul.f32 %v11815_v46, %v19912_v45  ;;  %v20953_v47 = vld [vmem:[#allocation64_spill] sm:$0xff]  ;;  %v10718_v3 = vpop.f32.mrf.mxu3 }
 0xa67   : > { %v10753_v43 = vadd.f32 %v19971_v4, %v20953_v47  ;;  %v11894_v15 = vmul.f32 %v11816_v62, %v19918_v31  ;;  %v20954_v20 = vld [vmem:[#allocation36_spill] sm:$0xff] }
 0xa68   : > { %v11925_v52 = vadd.f32 %v11924_v30, %v11890_v39  ;;  %v11848_v14 = vadd.f32 %v11847_v60, %v11813_v26  ;;  %v11818_v26 = vmul.f32 %v20954_v20, %v19942_v0  ;;  %v20955_v60 = vld [vmem:[#allocation63_spill] sm:$0xff]  ;;  %v11137_v4 = vadd.f32 %v19965_v53, %v10752_v44 }
 0xa69   : > { %v20024_v18 = vpop.f32.mrf.mxu2  ;;  %v11138_v31 = vadd.f32 %v19976_v11, %v10753_v43  ;;  %v20959_v43 = vld [vmem:[#allocation39_spill] sm:$0xff] }
 0xa6a   : > { %v11926_v41 = vadd.f32 %v11925_v52, %v11891_v54  ;;  %v11849_v30 = vadd.f32 %v11848_v14, %v11814_v29  ;;  %v11136_v54 = vadd.f32 %v19953_v23, %v10751_v2  ;;  %v10754_v52 = vadd.f32 %v19980_v33, %v20955_v60  ;;  %v20956_v14 = vld [vmem:[#allocation37_spill] sm:$0xff]  ;;  %v20957_v23 = vld [vmem:[#allocation38_spill] sm:$0xff]  ;;  %v11103_v44 = vpop.f32.mrf.mxu0 }
 0xa6b   : > { %v11895_v29 = vmul.f32 %v11817_v36, %v19924_v6  ;;  %v11896_v20 = vmul.f32 %v11818_v26, %v19942_v0  ;;  %v11820_v2 = vmul.f32 %v20957_v23, %v19956_v56 }
 0xa6c   : > { %v11927_v39 = vadd.f32 %v11926_v41, %v11892_v57  ;;  %v11850_v59 = vadd.f32 %v11849_v30, %v11815_v46  ;;  %v11819_v57 = vmul.f32 %v20956_v14, %v19947_v48  ;;  %v11528_v33 = vadd.f32 %v19958_v21, %v11136_v54  ;;  %v20958_v46 = vld [vmem:[#allocation21_spill] sm:$0xff] }
 0xa6d   : > { %v10755_v53 = vadd.f32 %v19990_v37, %v20958_v46  ;;  %v11529_v30 = vadd.f32 %v19969_v12, %v11137_v4  ;;  %v11530_v37 = vadd.f32 %v19978_v5, %v11138_v31  ;;  %v11898_v12 = vmul.f32 %v11820_v2, %v19956_v56  ;;  %v20962_v4 = vld [vmem:[#allocation24_spill] sm:$0xff] }
 0xa6e   : > { %v11928_v47 = vadd.f32 %v11927_v39, %v11893_v51  ;;  %v11851_v41 = vadd.f32 %v11850_v59, %v11816_v62  ;;  %v11139_v39 = vadd.f32 %v19984_v17, %v10754_v52  ;;  %v11897_v11 = vmul.f32 %v11819_v57, %v19947_v48  ;;  %v20960_v59 = vld [vmem:[#allocation70_spill] sm:$0xff] }
 0xa6f   : > { %v20111_v60 = vadd.f32 %v19982_v49, %v11528_v33  ;;  %v10756_v21 = vadd.f32 %v20014_v24, %v20960_v59  ;;  %v20120_v52 = vadd.f32 %v19988_v58, %v11529_v30  ;;  %v10757_v49 = vadd.f32 %v20037_v8, %v20962_v4  ;;  %v10721_v58 = vpop.f32.mrf.mxu3  ;;  %v20964_v33 = vld [vmem:[#allocation71_spill] sm:$0xff]  ;;  %v20967_v59 = vld [vmem:[#allocation18_spill] sm:$0xff] }
 0xa70   : > { %v11929_v45 = vadd.f32 %v11928_v47, %v11894_v15  ;;  %v11852_v51 = vadd.f32 %v11851_v41, %v11817_v36  ;;  %v11821_v15 = vmul.f32 %v20959_v43, %v19967_v61  ;;  %v11531_v24 = vadd.f32 %v19986_v42, %v11139_v39  ;;  %v20963_v41 = vld [vmem:[#allocation9_spill] sm:$0xff]  ;;  %v20966_v39 = vld [vmem:[#allocation72_spill] sm:$0xff] }
 0xa71   : > { %v20042_v22 = vpop.f32.mrf.mxu2  ;;  %v20130_v23 = vadd.f32 %v20003_v40, %v11530_v37  ;;  %v10758_v46 = vadd.f32 %v20060_v7, %v20964_v33  ;;  %v11142_v43 = vadd.f32 %v20047_v35, %v10757_v49  ;;  %v10760_v7 = vadd.f32 %v10721_v58, %v19807_v16  ;;  %v20968_v16 = vld [vmem:[#allocation41_spill] sm:$0xff] }
 0xa72   : > { %v11930_v62 = vadd.f32 %v11929_v45, %v11895_v29  ;;  %v11853_v54 = vadd.f32 %v11852_v51, %v11818_v26  ;;  %v20961_v45 = vld [vmem:[#allocation40_spill] sm:$0xff]  ;;  %v11495_v29 = vpop.f32.mrf.mxu1  ;;  %v11140_v26 = vadd.f32 %v19998_v10, %v10755_v53  ;;  %v11899_v5 = vmul.f32 %v11821_v15, %v19967_v61  ;;  %v20965_v10 = vld [vmem:[#allocation17_spill] sm:$0xff] }
 0xa73   : > { %v11822_v17 = vmul.f32 %v20961_v45, %v19974_v32  ;;  %v11824_v53 = vmul.f32 %v20965_v10, %v20120_v52  ;;  %v20139_v30 = vadd.f32 %v20024_v18, %v11531_v24 }
 0xa74   : > { %v11931_v47 = vadd.f32 %v11930_v62, %v11896_v20  ;;  %v11854_v14 = vadd.f32 %v11853_v54, %v11819_v57  ;;  %v11823_v20 = vmul.f32 %v20963_v41, %v20111_v60  ;;  %v11141_v57 = vadd.f32 %v20022_v27, %v10756_v21  ;;  %v11106_v54 = vpop.f32.mrf.mxu0 }
 0xa75   : > { %v11900_v42 = vmul.f32 %v11822_v17, %v19974_v32  ;;  %v10759_v62 = vadd.f32 %v10718_v3, %v20966_v39  ;;  %v11825_v21 = vmul.f32 %v20967_v59, %v20130_v23  ;;  %v11902_v35 = vmul.f32 %v11824_v53, %v20120_v52 }
 0xa76   : > { %v11932_v31 = vadd.f32 %v11931_v47, %v11897_v11  ;;  %v11855_v8 = vadd.f32 %v11854_v14, %v11820_v2  ;;  %v11532_v11 = vadd.f32 %v20009_v50, %v11140_v26  ;;  %v11901_v27 = vmul.f32 %v11823_v20, %v20111_v60  ;;  %v20969_v26 = vld [vmem:[#allocation42_spill] sm:$0xff] }
 0xa77   : > { %v11533_v3 = vadd.f32 %v20032_v34, %v11141_v57  ;;  %v11144_v49 = vadd.f32 %v11103_v44, %v10759_v62  ;;  %v11903_v14 = vmul.f32 %v11825_v21, %v20130_v23  ;;  %v11145_v34 = vadd.f32 %v11106_v54, %v10760_v7  ;;  %v10723_v58 = vpop.f32.mrf.mxu3  ;;  %v20970_v44 = vld [vmem:[#allocation43_spill] sm:$0xff]  ;;  %v20973_v54 = vld [vmem:[#allocation46_spill] sm:$0xff] }
 0xa78   : > { %v11933_v51 = vadd.f32 %v11932_v31, %v11898_v12  ;;  %v11856_v40 = vadd.f32 %v11855_v8, %v11821_v15  ;;  %v20149_v18 = vadd.f32 %v20042_v22, %v11532_v11  ;;  %v11143_v15 = vadd.f32 %v20070_v19, %v10758_v46 }
 0xa79   : > { %v20062_v25 = vpop.f32.mrf.mxu2  ;;  %v11826_v12 = vmul.f32 %v20968_v16, %v20139_v30  ;;  %v11536_v8 = vadd.f32 %v11495_v29, %v11144_v49  ;;  %v10761_v57 = vadd.f32 %v10723_v58, %v19813_v9  ;;  %v20972_v29 = vld [vmem:[#allocation45_spill] sm:$0xff] }
 0xa7a   : > { %v11934_v2 = vadd.f32 %v11933_v51, %v11899_v5  ;;  %v11857_v37 = vadd.f32 %v11856_v40, %v11822_v17  ;;  %v20157_v4 = vadd.f32 %v20062_v25, %v11533_v3  ;;  %v11534_v17 = vadd.f32 %v20055_v63, %v11142_v43  ;;  %v11498_v24 = vpop.f32.mrf.mxu1 }
 0xa7b   : > { %v11827_v31 = vmul.f32 %v20969_v26, %v20149_v18  ;;  %v11535_v41 = vadd.f32 %v20084_v13, %v11143_v15  ;;  %v11904_v25 = vmul.f32 %v11826_v12, %v20139_v30  ;;  %v20971_v13 = vld [vmem:[#allocation44_spill] sm:$0xff]  ;;  %v20975_v26 = vld [vmem:[#allocation47_spill] sm:$0xff] }
 0xa7c   : > { %v11935_v47 = vadd.f32 %v11934_v2, %v11900_v42  ;;  %v11858_v45 = vadd.f32 %v11857_v37, %v11823_v20  ;;  %v11828_v33 = vmul.f32 %v20970_v44, %v20157_v4  ;;  %v11537_v42 = vadd.f32 %v11498_v24, %v11145_v34  ;;  %v11108_v11 = vpop.f32.mrf.mxu0 }
 0xa7d   : > { %v11146_v2 = vadd.f32 %v11108_v11, %v10761_v57 }
 0xa7e   : > { %v11936_v22 = vadd.f32 %v11935_v47, %v11901_v27  ;;  %v11859_v19 = vadd.f32 %v11858_v45, %v11824_v53 }
 0xa80   : > { %v11937_v20 = vadd.f32 %v11936_v22, %v11902_v35  ;;  %v11860_v63 = vadd.f32 %v11859_v19, %v11825_v21  ;;  %v20974_v35 = vld [vmem:[#allocation20_spill] sm:$0xff] }
 0xa81   : > { %v20086_v1 = vpop.f32.mrf.mxu2 }
 0xa82   : > { %v20164_v5 = vadd.f32 %v20086_v1, %v11534_v17  ;;  %v11938_v51 = vadd.f32 %v11937_v20, %v11903_v14  ;;  %v11861_v10 = vadd.f32 %v11860_v63, %v11826_v12  ;;  %v11905_v1 = vmul.f32 %v11827_v31, %v20149_v18  ;;  %v11500_v3 = vpop.f32.mrf.mxu1 }
 0xa83   : > { %v11538_v12 = vadd.f32 %v11500_v3, %v11146_v2 }
 0xa84   : > { %v11829_v53 = vmul.f32 %v20971_v13, %v20164_v5  ;;  %v11939_v40 = vadd.f32 %v11938_v51, %v11904_v25  ;;  %v11862_v43 = vadd.f32 %v11861_v10, %v11827_v31 }
 0xa86   : > { %v11940_v27 = vadd.f32 %v11939_v40, %v11905_v1  ;;  %v11863_v59 = vadd.f32 %v11862_v43, %v11828_v33  ;;  %v11907_v21 = vmul.f32 %v11829_v53, %v20164_v5 }
 0xa89   : > { %v11752_v36 = vpop.f32.mrf.mxu2 }
 0xa8a   : > { %v20170_v46 = vadd.f32 %v11752_v36, %v11535_v41  ;;  %v11906_v36 = vmul.f32 %v11828_v33, %v20157_v4 }
 0xa8c   : > { %v11830_v7 = vmul.f32 %v20972_v29, %v20170_v46  ;;  %v11941_v15 = vadd.f32 %v11940_v27, %v11906_v36 }
 0xa8e   : > { %v11908_v47 = vmul.f32 %v11830_v7, %v20170_v46  ;;  %v11942_v45 = vadd.f32 %v11941_v15, %v11907_v21 }
 0xa90   : > { %v11943_v34 = vadd.f32 %v11942_v45, %v11908_v47 }
 0xa91   : > { %v11754_v50 = vpop.f32.mrf.mxu2 }
 0xa92   : > { %v20176_v39 = vadd.f32 %v11754_v50, %v11536_v8  ;;  %v11864_v50 = vadd.f32 %v11863_v59, %v11829_v53 }
 0xa94   : > { %v11831_v37 = vmul.f32 %v20973_v54, %v20176_v39  ;;  %v11865_v17 = vadd.f32 %v11864_v50, %v11830_v7 }
 0xa96   : > { %v11909_v49 = vmul.f32 %v11831_v37, %v20176_v39  ;;  %v11866_v24 = vadd.f32 %v11865_v17, %v11831_v37 }
 0xa98   : > { %v11944_v41 = vadd.f32 %v11943_v34, %v11909_v49  ;;  %v11972_v49 = vld [vmem:[%s20445_s8] sm:$0x1] }
 0xa99   : > { %v11757_v62 = vpop.f32.mrf.mxu2 }
 0xa9a   : > { %v20181_v9 = vadd.f32 %v11757_v62, %v11537_v42 }
 0xa9c   : > { %v11832_v16 = vmul.f32 %v20974_v35, %v20181_v9 }
 0xa9e   : > { %v11910_v19 = vmul.f32 %v11832_v16, %v20181_v9  ;;  %v11867_v20 = vadd.f32 %v11866_v24, %v11832_v16  ;;  %v11970_v16 = vld [vmem:[%s20444_s7] sm:$0x1] }
 0xa9f   : > { %v20976_v24 = vld [vmem:[#allocation6_spill] sm:$0xff] }
 0xaa0   : > { %v11945_v63 = vadd.f32 %v11944_v41, %v11910_v19  ;;  %v20978_v41 = vld [vmem:[#allocation74_spill] sm:$0xff] }
 0xaa1   : > { %v11759_v22 = vpop.f32.mrf.mxu2 }
 0xaa2   : > { %v11797_v14 = vadd.f32 %v11759_v22, %v11538_v12 }
 0xaa4   : > { %v11833_v31 = vmul.f32 %v20975_v26, %v11797_v14  ;;  %v20977_v26 = vld [vmem:[#allocation75_spill] sm:$0xff] }
 0xaa6   : > { %v11868_v25 = vsel %vm5318_vm4, %v11833_v31, 0.0  ;;  %v11911_v58 = vmul.f32 %v11833_v31, %v11797_v14 }
 0xaa7   : > { %v11869_v44 = vadd.f32 %v11868_v25, %v11867_v20  ;;  %v20979_v25 = vld [vmem:[#allocation77_spill] sm:$0xff] }
 0xaa8   : > { %v11946_v33 = vsel %vm5318_vm4, %v11911_v58, 0.0  ;;  %vm12123_vm4 = vcmask 1042432  }
 0xaa9   : > { %v11870_v8 = vrot.slane %v11869_v44, 4  ;;  %v11947_v57 = vadd.f32 %v11946_v33, %v11945_v63 }
 0xaab   : > { %v11871_v51 = vadd.f32 %v11870_v8, %v11869_v44  ;;  %v11948_v42 = vrot.slane %v11947_v57, 4  ;;  %v20980_v44 = vld [vmem:[#allocation76_spill] sm:$0xff]  ;;  %v20981_v8 = vld [vmem:[#allocation10_spill] sm:$0xff] }
 0xaad   : > { %v11872_v10 = vrot.slane %v11871_v51, 2  ;;  %v11949_v1 = vadd.f32 %v11948_v42, %v11947_v57 }
 0xaaf   : > { %v11873_v13 = vadd.f32 %v11872_v10, %v11871_v51  ;;  %v11950_v53 = vrot.slane %v11949_v1, 2  ;;  %v20982_v51 = vld [vmem:[#allocation78_spill] sm:$0xff]  ;;  %v20983_v10 = vld [vmem:[#allocation79_spill] sm:$0xff] }
 0xab1   : > { %v11874_v62 = vrot.slane %v11873_v13, 1  ;;  %v11951_v40 = vadd.f32 %v11950_v53, %v11949_v1  ;;  %v20985_v53 = vld [vmem:[#allocation81_spill] sm:$0xff] }
 0xab3   : > { %v11875_v11 = vadd.f32 %v11874_v62, %v11873_v13  ;;  %v11952_v43 = vrot.slane %v11951_v40, 1 }
 0xab5   : > { %v11953_v36 = vadd.f32 %v11952_v43, %v11951_v40  ;;  %v11954_v29 = vmul.f32 0.00390625, %v11875_v11  ;;  %v20986_v11 = vld [vmem:[#allocation29_spill] sm:$0xff] }
 0xab7   : > { %v11955_v7 = vmul.f32 0.00390625, %v11953_v36  ;;  %v11956_v2 = vmul.f32 %v11954_v29, %v11954_v29  ;;  %v20987_v36 = vld [vmem:[#allocation82_spill] sm:$0xff] }
 0xab9   : > { %v11957_v27 = vsub.f32 %v11955_v7, %v11956_v2 }
 0xabb   : > { %v11958_v59 = vmax.f32 %v11957_v27, 0.0  ;;  %v20989_v27 = vld [vmem:[#allocation84_spill] sm:$0xff] }
 0xabd   : > { %v11959_v21 = vadd.f32 1e-05, %v11958_v59 }
 0xabf   : > { %14756 = vrsqrt.f32 %v11959_v21  ;;  %vm11966_vm2 = vweird.f32 %v11959_v21 }
 0xac5   : > { %v14757_v54 = vpop.eup %14756 }
 0xac6   : > { %v11961_v37 = vmul.f32 %v14757_v54, %v11959_v21  ;;  %vm11967_vm0 = vweird.f32 %v14757_v54 }
 0xac7   : > { %vm11968_vm3 = vmor %vm11966_vm2, %vm11967_vm0 }
 0xac8   : > { %v11962_v3 = vmul.f32 %v14757_v54, %v11961_v37 }
 0xaca   : > { %v11963_v15 = vmul.f32 0.5, %v11962_v3  ;;  %v20991_v3 = vld [vmem:[#allocation85_spill] sm:$0xff] }
 0xacc   : > { %v11964_v50 = vsub.f32 1.5, %v11963_v15 }
 0xace   : > { %v11965_v47 = vmul.f32 %v14757_v54, %v11964_v50 }
 0xad0   : > { %v11969_v35 = vsel %vm11968_vm3, %v14757_v54, %v11965_v47  ;;  %v20990_v54 = vld [vmem:[#allocation83_spill] sm:$0xff] }
 0xad1   : > { %v11971_v12 = vmul.f32 %v11970_v16, %v11969_v35 }
 0xad3   : > { %v11975_v45 = vperm.slane %v11971_v12, 0  ;;  %v11973_v17 = vmul.f32 %v11971_v12, %v11954_v29 }
 0xad5   : > { %v12011_v22 = vmul.f32 %v11975_v45, %v11797_v14  ;;  %v11974_v34 = vsub.f32 %v11972_v49, %v11973_v17  ;;  %v11976_v19 = vmul.f32 %v11975_v45, %v20976_v24  ;;  %v11977_v31 = vmul.f32 %v11975_v45, %v20977_v26  ;;  %v20984_v14 = vld [vmem:[#allocation80_spill] sm:$0xff] }
 0xad6   : > { %v11978_v20 = vmul.f32 %v11975_v45, %v20978_v41  ;;  %v11979_v58 = vmul.f32 %v11975_v45, %v20979_v25  ;;  %v11980_v63 = vmul.f32 %v11975_v45, %v19841_v28  ;;  %v11981_v33 = vmul.f32 %v11975_v45, %v20980_v44  ;;  %v20988_v28 = vld [vmem:[#allocation7_spill] sm:$0xff] }
 0xad7   : > { %v11982_v57 = vmul.f32 %v11975_v45, %v20981_v8  ;;  %v11983_v42 = vmul.f32 %v11975_v45, %v20982_v51  ;;  %v11984_v1 = vmul.f32 %v11975_v45, %v20983_v10  ;;  %v11985_v13 = vmul.f32 %v11975_v45, %v20984_v14 }
 0xad8   : > { %v11986_v62 = vmul.f32 %v11975_v45, %v20985_v53  ;;  %v11987_v40 = vmul.f32 %v11975_v45, %v19879_v55  ;;  %v11988_v43 = vmul.f32 %v11975_v45, %v20986_v11  ;;  %v11989_v29 = vmul.f32 %v11975_v45, %v20987_v36 }
 0xad9   : > { %v20214_v7 = vperm.slane %v11974_v34, 0  ;;  %v11990_v2 = vmul.f32 %v11975_v45, %v20988_v28  ;;  %v11991_v59 = vmul.f32 %v11975_v45, %v20989_v27  ;;  %v11992_v21 = vmul.f32 %v11975_v45, %v19907_v38 }
 0xada   : > { %v11993_v37 = vmul.f32 %v11975_v45, %v20990_v54  ;;  %v11994_v15 = vmul.f32 %v11975_v45, %v20991_v3  ;;  %v11995_v50 = vmul.f32 %v11975_v45, %v19924_v6  ;;  %v20223_v55 = vmul.f32 %v11975_v45, %v19942_v0 }
 0xadb   : > { %v20226_v47 = vmul.f32 %v11975_v45, %v19947_v48  ;;  %v20229_v35 = vmul.f32 %v11975_v45, %v19956_v56  ;;  %v20232_v16 = vmul.f32 %v11975_v45, %v19967_v61  ;;  %v20235_v38 = vmul.f32 %v11975_v45, %v19974_v32 }
 0xadc   : > { %v20238_v12 = vmul.f32 %v11975_v45, %v20111_v60  ;;  %v20241_v6 = vmul.f32 %v11975_v45, %v20120_v52  ;;  %v20244_v0 = vmul.f32 %v11975_v45, %v20130_v23  ;;  %v20247_v48 = vmul.f32 %v11975_v45, %v20139_v30 }
 0xadd   : > { %v20250_v56 = vadd.f32 %v20214_v7, %v12011_v22  ;;  %v20253_v61 = vmul.f32 %v11975_v45, %v20149_v18  ;;  %v20256_v32 = vmul.f32 %v11975_v45, %v20157_v4  ;;  %v20259_v60 = vmul.f32 %v11975_v45, %v20164_v5 }
 0xade   : > { %v20262_v52 = vmul.f32 %v11975_v45, %v20170_v46  ;;  %v12015_v23 = vadd.f32 %v20214_v7, %v11976_v19  ;;  %v12016_v30 = vadd.f32 %v20214_v7, %v11977_v31  ;;  %v12017_v17 = vadd.f32 %v20214_v7, %v11978_v20 }
 0xadf   : > { %v12018_v49 = vadd.f32 %v20214_v7, %v11979_v58  ;;  %v20269_v18 = vmul.f32 %v11975_v45, %v20176_v39  ;;  %v12019_v4 = vadd.f32 %v20214_v7, %v11980_v63  ;;  %v12020_v5 = vadd.f32 %v20214_v7, %v11981_v33 }
 0xae0   : > { %v12021_v22 = vadd.f32 %v20214_v7, %v11982_v57  ;;  %v12010_v46 = vmul.f32 %v11975_v45, %v20181_v9  ;;  %v12022_v34 = vadd.f32 %v20214_v7, %v11983_v42  ;;  %v12023_v24 = vadd.f32 %v20214_v7, %v11984_v1 }
 0xae1   : > { %v12024_v19 = vadd.f32 %v20214_v7, %v11985_v13  ;;  %v12025_v26 = vadd.f32 %v20214_v7, %v11986_v62  ;;  %v12026_v31 = vadd.f32 %v20214_v7, %v11987_v40  ;;  %v12027_v39 = vadd.f32 %v20214_v7, %v11988_v43 }
 0xae2   : > { %v12028_v41 = vadd.f32 %v20214_v7, %v11989_v29  ;;  %v12051_v20 = vmax.f32 %v12015_v23, 0.0  ;;  %v12052_v25 = vmax.f32 %v12016_v30, 0.0  ;;  %v12053_v58 = vmax.f32 %v12017_v17, 0.0 }
 0xae3   : > { %v12054_v63 = vmax.f32 %v12018_v49, 0.0  ;;  %v12029_v9 = vadd.f32 %v20214_v7, %v11990_v2  ;;  %v12055_v45 = vmax.f32 %v12019_v4, 0.0  ;;  %v12056_v44 = vmax.f32 %v12020_v5, 0.0 }
 0xae4   : > { %v12057_v33 = vmax.f32 %v12021_v22, 0.0  ;;  %v12030_v8 = vadd.f32 %v20214_v7, %v11991_v59  ;;  %v20285_v57 = vadd.f32 %v20214_v7, %v11992_v21  ;;  %v20288_v51 = vadd.f32 %v20214_v7, %v11993_v37 }
 0xae5   : > { %v12058_v42 = vmax.f32 %v12022_v34, 0.0  ;;  %v20291_v10 = vadd.f32 %v20214_v7, %v11994_v15  ;;  %v12059_v1 = vmax.f32 %v12023_v24, 0.0  ;;  %v12060_v14 = vmax.f32 %v12024_v19, 0.0 }
 0xae6   : > { %v12061_v13 = vmax.f32 %v12025_v26, 0.0  ;;  %v20293_v53 = vrot.slane %v12051_v20, 5  ;;  %v12125_v62 = vrot.slane %v12052_v25, 5  ;;  %v12127_v40 = vrot.slane %v12053_v58, 5 }
 0xae7   : > { %v12129_v11 = vrot.slane %v12054_v63, 5  ;;  %v12062_v43 = vmax.f32 %v12026_v31, 0.0  ;;  %v12131_v36 = vrot.slane %v12055_v45, 5  ;;  %v12133_v29 = vrot.slane %v12056_v44, 5 }
 0xae8   : > { %v12135_v28 = vrot.slane %v12057_v33, 5  ;;  %v12126_v2 = vsel %vm12123_vm4, %v20293_v53, %v12125_v62  ;;  %v12128_v27 = vsel %vm12123_vm4, %v12125_v62, %v12127_v40  ;;  %v12137_v21 = vrot.slane %v12058_v42, 5 }
 0xae9   : > { %v12130_v59 = vsel %vm12123_vm4, %v12127_v40, %v12129_v11  ;;  %v20300_v54 = vadd.f32 %v20214_v7, %v11995_v50  ;;  %v12063_v37 = vmax.f32 %v12027_v39, 0.0  ;;  %v12132_v3 = vsel %vm12123_vm4, %v12129_v11, %v12131_v36  ;;  %12238 = vst [vmem:[%s19929_s23 + $0x18] sm:$0xff] %v12126_v2 }
 0xaea   : > { %v12139_v15 = vrot.slane %v12059_v1, 5  ;;  %v12035_v23 = vadd.f32 %v20214_v7, %v20223_v55  ;;  %v12064_v30 = vmax.f32 %v12028_v41, 0.0  ;;  %v12134_v17 = vsel %vm12123_vm4, %v12131_v36, %v12133_v29  ;;  %12239 = vst [vmem:[%s19929_s23 + $0x20] sm:$0xff] %v12128_v27 }
 0xaeb   : > { %v12141_v49 = vrot.slane %v12060_v14, 5  ;;  %v20310_v4 = vadd.f32 %v20214_v7, %v20226_v47  ;;  %v12065_v50 = vmax.f32 %v12029_v9, 0.0  ;;  %v12136_v5 = vsel %vm12123_vm4, %v12133_v29, %v12135_v28  ;;  %12240 = vst [vmem:[%s19929_s23 + $0x28] sm:$0xff] %v12130_v59 }
 0xaec   : > { %v12143_v22 = vrot.slane %v12061_v13, 5  ;;  %v20316_v34 = vadd.f32 %v20214_v7, %v20229_v35  ;;  %v12066_v55 = vmax.f32 %v12030_v8, 0.0  ;;  %v12138_v24 = vsel %vm12123_vm4, %v12135_v28, %v12137_v21  ;;  %12241 = vst [vmem:[%s19929_s23 + $0x30] sm:$0xff] %v12132_v3 }
 0xaed   : > { %v12145_v19 = vrot.slane %v12062_v43, 5  ;;  %v20322_v47 = vadd.f32 %v20214_v7, %v20232_v16  ;;  %v20326_v26 = vadd.f32 %v20214_v7, %v20235_v38  ;;  %v12140_v31 = vsel %vm12123_vm4, %v12137_v21, %v12139_v15  ;;  %12242 = vst [vmem:[%s19929_s23 + $0x38] sm:$0xff] %v12134_v17 }
 0xaee   : > { %v12147_v39 = vrot.slane %v12063_v37, 5  ;;  %v12049_v35 = vadd.f32 %v20214_v7, %v12010_v46  ;;  %v12067_v41 = vmax.f32 %v20285_v57, 0.0  ;;  %v12142_v20 = vsel %vm12123_vm4, %v12139_v15, %v12141_v49  ;;  %12243 = vst [vmem:[%s19929_s23 + $0x40] sm:$0xff] %v12136_v5 }
 0xaef   : > { %v12149_v25 = vrot.slane %v12064_v30, 5  ;;  %v20336_v16 = vadd.f32 %v20214_v7, %v20238_v12  ;;  %v12068_v38 = vmax.f32 %v20288_v51, 0.0  ;;  %v12144_v58 = vsel %vm12123_vm4, %v12141_v49, %v12143_v22  ;;  %12244 = vst [vmem:[%s19929_s23 + $0x48] sm:$0xff] %v12138_v24 }
 0xaf0   : > { %v12151_v63 = vrot.slane %v12065_v50, 5  ;;  %v20343_v46 = vadd.f32 %v20214_v7, %v20241_v6  ;;  %v12069_v9 = vmax.f32 %v20291_v10, 0.0  ;;  %v12146_v45 = vsel %vm12123_vm4, %v12143_v22, %v12145_v19  ;;  %12245 = vst [vmem:[%s19929_s23 + $0x50] sm:$0xff] %v12140_v31 }
 0xaf1   : > { %v12153_v44 = vrot.slane %v12066_v55, 5  ;;  %v12042_v12 = vadd.f32 %v20214_v7, %v20244_v0  ;;  %v12070_v33 = vmax.f32 %v20300_v54, 0.0  ;;  %v12071_v8 = vmax.f32 %v12035_v23, 0.0  ;;  %12246 = vst [vmem:[%s19929_s23 + $0x58] sm:$0xff] %v12142_v20 }
 0xaf2   : > { %v12148_v57 = vsel %vm12123_vm4, %v12145_v19, %v12147_v39  ;;  %v12085_v51 = vmax.f32 %v12049_v35, 0.0  ;;  %v12086_v6 = vmax.f32 %v20250_v56, 0.0  ;;  %v12150_v42 = vsel %vm12123_vm4, %v12147_v39, %v12149_v25  ;;  %12247 = vst [vmem:[%s19929_s23 + $0x60] sm:$0xff] %v12144_v58 }
 0xaf3   : > { %v12155_v10 = vrot.slane %v12067_v41, 5  ;;  %v12043_v1 = vadd.f32 %v20214_v7, %v20247_v48  ;;  %v12072_v0 = vmax.f32 %v20310_v4, 0.0  ;;  %v12152_v14 = vsel %vm12123_vm4, %v12149_v25, %v12151_v63  ;;  %12248 = vst [vmem:[%s19929_s23 + $0x68] sm:$0xff] %v12146_v45 }
 0xaf4   : > { %v12157_v13 = vrot.slane %v12068_v38, 5  ;;  %v12044_v62 = vadd.f32 %v20214_v7, %v20253_v61  ;;  %v12073_v56 = vmax.f32 %v20316_v34, 0.0  ;;  %v12154_v40 = vsel %vm12123_vm4, %v12151_v63, %v12153_v44  ;;  %12249 = vst [vmem:[%s19929_s23 + $0x70] sm:$0xff] %v12148_v57 }
 0xaf5   : > { %v12159_v11 = vrot.slane %v12069_v9, 5  ;;  %v12045_v48 = vadd.f32 %v20214_v7, %v20256_v32  ;;  %v12074_v43 = vmax.f32 %v20322_v47, 0.0  ;;  %v12075_v36 = vmax.f32 %v20326_v26, 0.0  ;;  %12250 = vst [vmem:[%s19929_s23 + $0x78] sm:$0xff] %v12150_v42 }
 0xaf6   : > { %v12161_v29 = vrot.slane %v12070_v33, 5  ;;  %v12156_v28 = vsel %vm12123_vm4, %v12153_v44, %v12155_v10  ;;  %v12163_v61 = vrot.slane %v12071_v8, 5  ;;  %v20372_v2 = vrot.slane %v12085_v51, 5  ;;  %12251 = vst [vmem:[%s19929_s23 + $0x80] sm:$0xff] %v12152_v14 }
 0xaf7   : > { %v20374_v27 = vrot.slane %v12086_v6, 5  ;;  %v12076_v59 = vmax.f32 %v20336_v16, 0.0  ;;  %v12158_v32 = vsel %vm12123_vm4, %v12155_v10, %v12157_v13  ;;  %v12165_v21 = vrot.slane %v12072_v0, 5  ;;  %12252 = vst [vmem:[%s19929_s23 + $0x88] sm:$0xff] %v12154_v40 }
 0xaf8   : > { %v12232_v54 = vsel %vm12123_vm4, 0.0, %v20293_v53  ;;  %v12077_v37 = vmax.f32 %v20343_v46, 0.0  ;;  %v12160_v3 = vsel %vm12123_vm4, %v12157_v13, %v12159_v11  ;;  %v12167_v15 = vrot.slane %v12073_v56, 5  ;;  %12253 = vst [vmem:[%s19929_s23 + $0x90] sm:$0xff] %v12156_v28 }
 0xaf9   : > { %v12194_v23 = vsel %vm12123_vm4, %v20372_v2, %v20374_v27  ;;  %12237 = vst [vmem:[%s19929_s23 + $0x10] sm:$0xff] %v12232_v54  ;;  %v12046_v30 = vadd.f32 %v20214_v7, %v20259_v60  ;;  %v12078_v17 = vmax.f32 %v12042_v12, 0.0  ;;  %v12162_v49 = vsel %vm12123_vm4, %v12159_v11, %v12161_v29 }
 0xafa   : > { %v12169_v53 = vrot.slane %v12074_v43, 5  ;;  %v12047_v4 = vadd.f32 %v20214_v7, %v20262_v52  ;;  %v12079_v50 = vmax.f32 %v12043_v1, 0.0  ;;  %v12164_v5 = vsel %vm12123_vm4, %v12161_v29, %v12163_v61  ;;  %12254 = vst [vmem:[%s19929_s23 + $0x98] sm:$0xff] %v12158_v32 }
 0xafb   : > { %v12171_v22 = vrot.slane %v12075_v36, 5  ;;  %v12048_v34 = vadd.f32 %v20214_v7, %v20269_v18  ;;  %v12080_v60 = vmax.f32 %v12044_v62, 0.0  ;;  %v12166_v55 = vsel %vm12123_vm4, %v12163_v61, %v12165_v21  ;;  %12255 = vst [vmem:[%s19929_s23 + $0xa0] sm:$0xff] %v12160_v3 }
 0xafc   : > { %v12173_v24 = vrot.slane %v12076_v59, 5  ;;  %v12081_v19 = vmax.f32 %v12045_v48, 0.0  ;;  %v12168_v47 = vsel %vm12123_vm4, %v12165_v21, %v12167_v15  ;;  %v12175_v52 = vrot.slane %v12077_v37, 5  ;;  %12256 = vst [vmem:[%s19929_s23 + $0xa8] sm:$0xff] %v12162_v49 }
 0xafd   : > { %v12082_v26 = vmax.f32 %v12046_v30, 0.0  ;;  %v12170_v31 = vsel %vm12123_vm4, %v12167_v15, %v12169_v53  ;;  %v12177_v39 = vrot.slane %v12078_v17, 5  ;;  %12257 = vst [vmem:[%s19929_s23 + $0xb0] sm:$0xff] %v12164_v5  ;;  %v12083_v7 = vmax.f32 %v12047_v4, 0.0 }
 0xafe   : > { %v12172_v18 = vsel %vm12123_vm4, %v12169_v53, %v12171_v22  ;;  %v12179_v35 = vrot.slane %v12079_v50, 5  ;;  %12258 = vst [vmem:[%s19929_s23 + $0xb8] sm:$0xff] %v12166_v55  ;;  %v12084_v41 = vmax.f32 %v12048_v34, 0.0  ;;  %v12174_v20 = vsel %vm12123_vm4, %v12171_v22, %v12173_v24 }
 0xaff   : > { %v12181_v25 = vrot.slane %v12080_v60, 5  ;;  %12259 = vst [vmem:[%s19929_s23 + $0xc0] sm:$0xff] %v12168_v47  ;;  %v12176_v16 = vsel %vm12123_vm4, %v12173_v24, %v12175_v52  ;;  %v12183_v38 = vrot.slane %v12081_v19, 5  ;;  %v12178_v58 = vsel %vm12123_vm4, %v12175_v52, %v12177_v39 }
 0xb00   : > { %12260 = vst [vmem:[%s19929_s23 + $0xc8] sm:$0xff] %v12170_v31  ;;  %v12185_v63 = vrot.slane %v12082_v26, 5  ;;  %v12180_v46 = vsel %vm12123_vm4, %v12177_v39, %v12179_v35  ;;  %v12187_v9 = vrot.slane %v12083_v7, 5  ;;  %v12189_v44 = vrot.slane %v12084_v41, 5 }
 0xb01   : > { %12261 = vst [vmem:[%s19929_s23 + $0xd0] sm:$0xff] %v12172_v18  ;;  %v12182_v45 = vsel %vm12123_vm4, %v12179_v35, %v12181_v25  ;;  %v12184_v12 = vsel %vm12123_vm4, %v12181_v25, %v12183_v38  ;;  %v12234_v6 = vsel %vm8549_vm10, %v20374_v27, 0.0 }
 0xb02   : > { %12262 = vst [vmem:[%s19929_s23 + $0xd8] sm:$0xff] %v12174_v20  ;;  %v12186_v33 = vsel %vm12123_vm4, %v12183_v38, %v12185_v63  ;;  %v12188_v8 = vsel %vm12123_vm4, %v12185_v63, %v12187_v9  ;;  %v12190_v57 = vsel %vm12123_vm4, %v12187_v9, %v12189_v44  ;;  %v12192_v51 = vsel %vm12123_vm4, %v12189_v44, %v20372_v2 }
 0xb03   : > { %12263 = vst [vmem:[%s19929_s23 + $0xe0] sm:$0xff] %v12176_v16 }
 0xb04   : > { %12264 = vst [vmem:[%s19929_s23 + $0xe8] sm:$0xff] %v12178_v58 }
 0xb05   : > { %12265 = vst [vmem:[%s19929_s23 + $0xf0] sm:$0xff] %v12180_v46 }
 0xb06   : > { %12266 = vst [vmem:[%s19929_s23 + $0xf8] sm:$0xff] %v12182_v45 }
 0xb07   : > { %12267 = vst [vmem:[%s19929_s23 + $0x100] sm:$0xff] %v12184_v12 }
 0xb08   : > { %12268 = vst [vmem:[%s19929_s23 + $0x108] sm:$0xff] %v12186_v33 }
 0xb09   : > { %12269 = vst [vmem:[%s19929_s23 + $0x110] sm:$0xff] %v12188_v8 }
 0xb0a   : > { %12270 = vst [vmem:[%s19929_s23 + $0x118] sm:$0xff] %v12190_v57 }
 0xb0b   : > { %12271 = vst [vmem:[%s19929_s23 + $0x120] sm:$0xff] %v12192_v51 }
 0xb0c   : > { %12272 = vst [vmem:[%s19929_s23 + $0x128] sm:$0xff] %v12194_v23 }
 0xb0d   : > { %12273 = vst [vmem:[%s19929_s23 + $0x130] sm:$0xff] %v12234_v6 }
 0xb0e PF: > { %s19_s30 = sadd.s32 1, %s14853_s30  }
 0xb0f   : > { %p16_p4 = scmp.ge.s32.totalorder %s19_s30, 4  }
 0xb11   :  { %18 = sbr.rel (!%p16_p4) target bundleno = 1 (0x1), region = 113 }

</bundles_post_ra>
